<compile_context>
chip_gen: v5e
topology: v5e:2x2
jax: 0.10.0
libtpu: 0.0.40
codegen_flags: <defaults>
</compile_context>

<pallas_src>
import numpy as np
import jax
import jax.numpy as jnp
from jax.experimental import pallas as pl
from jax.experimental.pallas import tpu as pltpu


def _round_up(v, m):
    return -(-int(v) // m) * m


def _padded_bytes(shape, dtype):
    """VMEM footprint of a tile with (sublane, lane) layout padding."""
    it = jnp.dtype(dtype).itemsize
    sub = 8 * max(1, 4 // it)          # 8 for f32, 16 for bf16, 32 for int8
    dims = list(int(d) for d in shape)
    dims[-1] = _round_up(dims[-1], 128)
    if len(dims) >= 2:
        dims[-2] = _round_up(dims[-2], sub)
    n = 1
    for d in dims:
        n *= d
    return n * it


def _vmem_estimate(tc, hblk, h, w, dtype):
    """Double-buffered in/out blocks + per-channel relayout temps, layout-padded."""
    in2 = 2 * _padded_bytes((tc, h, w), dtype)
    out2 = 2 * _padded_bytes((hblk, w, tc * 16), dtype)
    tmp = (_padded_bytes((hblk, 16, w), dtype)          # stacked taps (pre-transpose)
           + _padded_bytes((hblk, w, 16), dtype)        # transposed taps (lane-padded)
           + 5 * _padded_bytes((hblk + 3, w), dtype))   # shifted row windows
    return in2 + out2 + tmp


def _choose_tiles(c, h, w, dtype, budget, h_tile=None):
    # Channel tile: full C when small / awkward, else 8 channels -> 128-lane output groups.
    tc = 8 if (c > 8 and c % 8 == 0) else c
    if h_tile is not None:
        assert h % h_tile == 0 and (h_tile == h or h_tile >= 3), h_tile
        hblk = int(h_tile)
    else:
        cands = [d for d in range(1, h + 1) if h % d == 0 and (d == h or d % 8 == 0)]
        cands.sort(reverse=True)        # largest (fewest steps / biggest DMAs) first
        hblk = cands[-1]
        for cand in cands:
            if _vmem_estimate(tc, cand, h, w, dtype) <= budget:
                hblk = cand
                break
    return tc, hblk, _vmem_estimate(tc, hblk, h, w, dtype)


def _block_sample_fused(x, masked, h_tile=None):
    """Fused path: gather + channels-last relayout inside one Pallas kernel."""
    b, c, h, w = x.shape
    dtype = x.dtype
    itemsize = jnp.dtype(dtype).itemsize

    try:  # generation-aware VMEM budget (v5e/v6e: 128 MiB physical, v7x: 64 MiB)
        vmem_cap = int(getattr(pltpu.get_tpu_info(), "vmem_capacity_bytes", 64 << 20))
    except Exception:
        vmem_cap = 64 << 20
    budget = min(int(vmem_cap * 0.45), 40 << 20)

    tc, hblk, est = _choose_tiles(c, h, w, dtype, budget, h_tile=h_tile)
    n_h = h // hblk
    vmem_limit = int(max(16 << 20,
                         min(48 << 20, (vmem_cap * 3) // 4, (est * 3) // 2 + (2 << 20))))

    def shift_cols(xk, j):
        # out[:, x] = xk[:, x + j - 2], zero where the source column is outside the image.
        s = j - 2
        if s == 0:
            return xk
        z = jnp.zeros((xk.shape[0], abs(s)), dtype)
        if s < 0:
            return jnp.concatenate([z, xk[:, :w + s]], axis=1)
        return jnp.concatenate([xk[:, s:], z], axis=1)

    def kernel(x_ref, o_ref):
        # x_ref: (1, tc, h, w)        input channel tile, resident across the hi axis
        # o_ref: (1, hblk, w, tc*16)  channels-last output row block
        hi = pl.program_id(2)

        def emit(get_rows):
            for k in range(tc):
                xk = get_rows(k)                                  # (hblk+3, w): rows y+i-3
                xjs = [shift_cols(xk, j) for j in range(4)]       # hoisted out of the i loop
                slabs = []
                for i in range(4):
                    for j in range(4):
                        if masked and i == 3 and j >= 2:          # masked taps -> zero lanes
                            slabs.append(jnp.zeros((hblk, w), dtype))
                        else:
                            slabs.append(xjs[j][i:i + hblk, :])
                ak = jnp.stack(slabs, axis=1)                     # (hblk, 16, w)
                # lane<->sublane relayout on the XLU (a free slot in this HBM-bound kernel)
                o_ref[0, :, :, k * 16:(k + 1) * 16] = jnp.swapaxes(ak, 1, 2)

        def top_rows(k):
            # First row block: 3 virtual zero rows above the image (no wrapper pad needed).
            return jnp.concatenate(
                [jnp.zeros((3, w), dtype), x_ref[0, k, :hblk, :]], axis=0)

        if n_h == 1:
            emit(top_rows)
        else:
            @pl.when(hi == 0)
            def _():
                emit(top_rows)

            @pl.when(hi != 0)
            def _():
                emit(lambda k: x_ref[0, k, pl.ds(hi * hblk - 3, hblk + 3), :])

    t = pl.pallas_call(
        kernel,
        out_shape=jax.ShapeDtypeStruct((b, h, w, c * 16), dtype),
        grid=(b, c // tc, n_h),
        in_specs=[pl.BlockSpec((1, tc, h, w), lambda bi, ci, hi: (bi, ci, 0, 0))],
        out_specs=pl.BlockSpec((1, hblk, w, tc * 16),
                               lambda bi, ci, hi: (bi, hi, 0, ci)),
        compiler_params=pltpu.CompilerParams(
            dimension_semantics=("parallel", "parallel", "parallel"),
            vmem_limit_bytes=vmem_limit),
        cost_estimate=pl.CostEstimate(
            flops=0, transcendentals=0,
            bytes_accessed=b * c * h * w * itemsize * 17),   # 1x read + 16x write
    )(x)

    # The permute is already fused: (b, h, w, c*16) -> (b*h*w, c, 4, 4) is a free view.
    return t.reshape(b * h * w, c, 4, 4)


def _block_sample_fallback(x, masked):
    """Lowering safety net only: channel-major gather kernel + one extra XLA transpose pass."""
    b, c, h, w = x.shape
    xpad = jnp.pad(x, ((0, 0), (0, 0), (3, 0), (2, 1)))
    hp, wp = h + 3, w + 3

    def kernel(x_ref, o_ref):
        for i in range(4):
            for j in range(4):
                s = i * 4 + j
                if masked and i == 3 and j >= 2:
                    o_ref[0, s] = jnp.zeros((h, w), o_ref.dtype)
                else:
                    o_ref[0, s] = x_ref[0, 0, i:i + h, j:j + w]

    t = pl.pallas_call(
        kernel,
        out_shape=jax.ShapeDtypeStruct((b, c * 16, h, w), x.dtype),
        grid=(b, c),
        in_specs=[pl.BlockSpec((1, 1, hp, wp), lambda bi, ci: (bi, ci, 0, 0))],
        out_specs=pl.BlockSpec((1, 16, h, w), lambda bi, ci: (bi, ci, 0, 0)),
        compiler_params=pltpu.CompilerParams(
            dimension_semantics=("parallel", "parallel")),
    )(xpad)
    t = t.reshape(b, c, 4, 4, h, w)
    t = jnp.transpose(t, (0, 4, 5, 1, 2, 3))
    return t.reshape(b * h * w, c, 4, 4)


def block_sample(x, masked=True, h_tile=None):
    """Pallas TPU BlockSample.forward: (B, C, H, W) -> (B*H*W, C, 4, 4)."""
    try:
        out = _block_sample_fused(x, masked, h_tile=h_tile)
        jax.block_until_ready(out)
        return out
    except Exception:
        # Only taken if the fused (in-kernel relayout) path fails to lower for an exotic
        # shape/dtype on the local toolchain; keeps the op functional at the cost of one
        # extra HBM pass for the permute.
        return _block_sample_fallback(x, masked)


def block_sample_ref(x, masked=True):
    """Pure-JAX reference mirroring the PyTorch module exactly (one-hot conv + permute)."""
    b, c, h, w = x.shape
    flt = np.zeros((c * 16, c, 7, 7), dtype=np.float32)
    for i in range(4):
        for j in range(4):
            if masked and i == 3 and (j == 2 or j == 3):
                break
            for k in range(c):
                flt[k * 16 + i * 4 + j, k, i, j + 1] = 1.0
    t = jax.lax.conv_general_dilated(
        x.astype(jnp.float32), jnp.asarray(flt),
        window_strides=(1, 1), padding=((3, 3), (3, 3)),
        dimension_numbers=("NCHW", "OIHW", "NCHW"))
    t = t.reshape(b, c, 4, 4, h, w)
    t = jnp.transpose(t, (0, 4, 5, 1, 2, 3))
    return t.reshape(b * h * w, c, 4, 4).astype(x.dtype)


if __name__ == "__main__":
    key = jax.random.PRNGKey(0)
    b, c, h, w = 2, 4, 16, 16
    x = jax.random.normal(key, (b, c, h, w), dtype=jnp.float32)

    for masked in (True, False):
        out = jax.block_until_ready(block_sample(x, masked=masked))
        ref = block_sample_ref(x, masked=masked)
        assert out.shape == (b * h * w, c, 4, 4), out.shape
        assert bool(jnp.allclose(out, ref, atol=1e-6, rtol=1e-6)), f"mismatch masked={masked}"

    # Also exercise the row-tiled path (multiple h blocks, pl.when halo handling).
    out = jax.block_until_ready(block_sample(x, masked=True, h_tile=8))
    ref = block_sample_ref(x, masked=True)
    assert bool(jnp.allclose(out, ref, atol=1e-6, rtol=1e-6)), "mismatch h_tile=8"

    print("KERNEL_OK")
</pallas_src>

<mosaic_0001>
module attributes {stable_mosaic.version = 11 : i64} {
  func.func @kernel(%arg0: i32, %arg1: i32, %arg2: i32, %arg3: memref<1x4x16x16xf32, #tpu.memory_space<vmem>>, %arg4: memref<1x16x16x64xf32, #tpu.memory_space<vmem>>) attributes {dimension_semantics = [#tpu.dimension_semantics<parallel>, #tpu.dimension_semantics<parallel>, #tpu.dimension_semantics<parallel>], iteration_bounds = array<i64: 2, 1, 1>, scalar_prefetch = 0 : i64, scratch_operands = 0 : i64, tpu.core_type = #tpu.core_type<tc>, window_params = [{transform_indices = @transform_0, window_bounds = array<i64: 1, 4, 16, 16>}, {transform_indices = @transform_1, window_bounds = array<i64: 1, 16, 16, 64>}]} {
    %cst = arith.constant 0.000000e+00 : f32
    %0 = vector.broadcast %cst : f32 to vector<3x16xf32>
    %c0 = arith.constant 0 : index
    %c0_0 = arith.constant 0 : index
    %c0_1 = arith.constant 0 : index
    %c0_2 = arith.constant 0 : index
    %1 = vector.load %arg3[%c0, %c0_0, %c0_1, %c0_2] : memref<1x4x16x16xf32, #tpu.memory_space<vmem>>, vector<1x1x16x16xf32>
    %2 = vector.shape_cast %1 : vector<1x1x16x16xf32> to vector<16x16xf32>
    %3 = tpu.concatenate %0, %2 in 0 : vector<3x16xf32>, vector<16x16xf32> -> vector<19x16xf32>
    %cst_3 = arith.constant 0.000000e+00 : f32
    %4 = vector.broadcast %cst_3 : f32 to vector<19x2xf32>
    %5 = vector.extract_strided_slice %3 {offsets = [0, 0], sizes = [19, 14], strides = [1, 1]} : vector<19x16xf32> to vector<19x14xf32>
    %6 = tpu.concatenate %4, %5 in 1 : vector<19x2xf32>, vector<19x14xf32> -> vector<19x16xf32>
    %cst_4 = arith.constant 0.000000e+00 : f32
    %7 = vector.broadcast %cst_4 : f32 to vector<19x1xf32>
    %8 = vector.extract_strided_slice %3 {offsets = [0, 0], sizes = [19, 15], strides = [1, 1]} : vector<19x16xf32> to vector<19x15xf32>
    %9 = tpu.concatenate %7, %8 in 1 : vector<19x1xf32>, vector<19x15xf32> -> vector<19x16xf32>
    %cst_5 = arith.constant 0.000000e+00 : f32
    %10 = vector.broadcast %cst_5 : f32 to vector<19x1xf32>
    %11 = vector.extract_strided_slice %3 {offsets = [0, 1], sizes = [19, 15], strides = [1, 1]} : vector<19x16xf32> to vector<19x15xf32>
    %12 = tpu.concatenate %11, %10 in 1 : vector<19x15xf32>, vector<19x1xf32> -> vector<19x16xf32>
    %13 = vector.extract_strided_slice %6 {offsets = [0, 0], sizes = [16, 16], strides = [1, 1]} : vector<19x16xf32> to vector<16x16xf32>
    %14 = vector.extract_strided_slice %9 {offsets = [0, 0], sizes = [16, 16], strides = [1, 1]} : vector<19x16xf32> to vector<16x16xf32>
    %15 = vector.extract_strided_slice %3 {offsets = [0, 0], sizes = [16, 16], strides = [1, 1]} : vector<19x16xf32> to vector<16x16xf32>
    %16 = vector.extract_strided_slice %12 {offsets = [0, 0], sizes = [16, 16], strides = [1, 1]} : vector<19x16xf32> to vector<16x16xf32>
    %17 = vector.extract_strided_slice %6 {offsets = [1, 0], sizes = [16, 16], strides = [1, 1]} : vector<19x16xf32> to vector<16x16xf32>
    %18 = vector.extract_strided_slice %9 {offsets = [1, 0], sizes = [16, 16], strides = [1, 1]} : vector<19x16xf32> to vector<16x16xf32>
    %19 = vector.extract_strided_slice %3 {offsets = [1, 0], sizes = [16, 16], strides = [1, 1]} : vector<19x16xf32> to vector<16x16xf32>
    %20 = vector.extract_strided_slice %12 {offsets = [1, 0], sizes = [16, 16], strides = [1, 1]} : vector<19x16xf32> to vector<16x16xf32>
    %21 = vector.extract_strided_slice %6 {offsets = [2, 0], sizes = [16, 16], strides = [1, 1]} : vector<19x16xf32> to vector<16x16xf32>
    %22 = vector.extract_strided_slice %9 {offsets = [2, 0], sizes = [16, 16], strides = [1, 1]} : vector<19x16xf32> to vector<16x16xf32>
    %23 = vector.extract_strided_slice %3 {offsets = [2, 0], sizes = [16, 16], strides = [1, 1]} : vector<19x16xf32> to vector<16x16xf32>
    %24 = vector.extract_strided_slice %12 {offsets = [2, 0], sizes = [16, 16], strides = [1, 1]} : vector<19x16xf32> to vector<16x16xf32>
    %25 = vector.extract_strided_slice %6 {offsets = [3, 0], sizes = [16, 16], strides = [1, 1]} : vector<19x16xf32> to vector<16x16xf32>
    %26 = vector.extract_strided_slice %9 {offsets = [3, 0], sizes = [16, 16], strides = [1, 1]} : vector<19x16xf32> to vector<16x16xf32>
    %cst_6 = arith.constant 0.000000e+00 : f32
    %27 = vector.broadcast %cst_6 : f32 to vector<16x16xf32>
    %cst_7 = arith.constant 0.000000e+00 : f32
    %28 = vector.broadcast %cst_7 : f32 to vector<16x16xf32>
    %29 = vector.shape_cast %13 : vector<16x16xf32> to vector<16x1x16xf32>
    %30 = vector.shape_cast %14 : vector<16x16xf32> to vector<16x1x16xf32>
    %31 = vector.shape_cast %15 : vector<16x16xf32> to vector<16x1x16xf32>
    %32 = vector.shape_cast %16 : vector<16x16xf32> to vector<16x1x16xf32>
    %33 = vector.shape_cast %17 : vector<16x16xf32> to vector<16x1x16xf32>
    %34 = vector.shape_cast %18 : vector<16x16xf32> to vector<16x1x16xf32>
    %35 = vector.shape_cast %19 : vector<16x16xf32> to vector<16x1x16xf32>
    %36 = vector.shape_cast %20 : vector<16x16xf32> to vector<16x1x16xf32>
    %37 = vector.shape_cast %21 : vector<16x16xf32> to vector<16x1x16xf32>
    %38 = vector.shape_cast %22 : vector<16x16xf32> to vector<16x1x16xf32>
    %39 = vector.shape_cast %23 : vector<16x16xf32> to vector<16x1x16xf32>
    %40 = vector.shape_cast %24 : vector<16x16xf32> to vector<16x1x16xf32>
    %41 = vector.shape_cast %25 : vector<16x16xf32> to vector<16x1x16xf32>
    %42 = vector.shape_cast %26 : vector<16x16xf32> to vector<16x1x16xf32>
    %43 = vector.shape_cast %27 : vector<16x16xf32> to vector<16x1x16xf32>
    %44 = vector.shape_cast %28 : vector<16x16xf32> to vector<16x1x16xf32>
    %45 = tpu.concatenate %29, %30, %31, %32, %33, %34, %35, %36, %37, %38, %39, %40, %41, %42, %43, %44 in 1 : vector<16x1x16xf32>, vector<16x1x16xf32>, vector<16x1x16xf32>, vector<16x1x16xf32>, vector<16x1x16xf32>, vector<16x1x16xf32>, vector<16x1x16xf32>, vector<16x1x16xf32>, vector<16x1x16xf32>, vector<16x1x16xf32>, vector<16x1x16xf32>, vector<16x1x16xf32>, vector<16x1x16xf32>, vector<16x1x16xf32>, vector<16x1x16xf32>, vector<16x1x16xf32> -> vector<16x16x16xf32>
    %46 = tpu.transpose %45, [0, 2, 1] : vector<16x16x16xf32> -> vector<16x16x16xf32>
    %c0_8 = arith.constant 0 : index
    %c0_9 = arith.constant 0 : index
    %c0_10 = arith.constant 0 : index
    %c0_11 = arith.constant 0 : index
    %47 = vector.load %arg4[%c0_8, %c0_9, %c0_10, %c0_11] : memref<1x16x16x64xf32, #tpu.memory_space<vmem>>, vector<1x16x16x16xf32>
    %48 = vector.shape_cast %47 : vector<1x16x16x16xf32> to vector<16x16x16xf32>
    %49 = vector.shape_cast %46 : vector<16x16x16xf32> to vector<1x16x16x16xf32>
    tpu.vector_store %arg4[%c0_8, %c0_9, %c0_10, %c0_11], %49 {strides = array<i32>} : memref<1x16x16x64xf32, #tpu.memory_space<vmem>>, vector<1x16x16x16xf32>,
    %cst_12 = arith.constant 0.000000e+00 : f32
    %50 = vector.broadcast %cst_12 : f32 to vector<3x16xf32>
    %c0_13 = arith.constant 0 : index
    %c1 = arith.constant 1 : index
    %c0_14 = arith.constant 0 : index
    %c0_15 = arith.constant 0 : index
    %51 = vector.load %arg3[%c0_13, %c1, %c0_14, %c0_15] : memref<1x4x16x16xf32, #tpu.memory_space<vmem>>, vector<1x1x16x16xf32>
    %52 = vector.shape_cast %51 : vector<1x1x16x16xf32> to vector<16x16xf32>
    %53 = tpu.concatenate %50, %52 in 0 : vector<3x16xf32>, vector<16x16xf32> -> vector<19x16xf32>
    %cst_16 = arith.constant 0.000000e+00 : f32
    %54 = vector.broadcast %cst_16 : f32 to vector<19x2xf32>
    %55 = vector.extract_strided_slice %53 {offsets = [0, 0], sizes = [19, 14], strides = [1, 1]} : vector<19x16xf32> to vector<19x14xf32>
    %56 = tpu.concatenate %54, %55 in 1 : vector<19x2xf32>, vector<19x14xf32> -> vector<19x16xf32>
    %cst_17 = arith.constant 0.000000e+00 : f32
    %57 = vector.broadcast %cst_17 : f32 to vector<19x1xf32>
    %58 = vector.extract_strided_slice %53 {offsets = [0, 0], sizes = [19, 15], strides = [1, 1]} : vector<19x16xf32> to vector<19x15xf32>
    %59 = tpu.concatenate %57, %58 in 1 : vector<19x1xf32>, vector<19x15xf32> -> vector<19x16xf32>
    %cst_18 = arith.constant 0.000000e+00 : f32
    %60 = vector.broadcast %cst_18 : f32 to vector<19x1xf32>
    %61 = vector.extract_strided_slice %53 {offsets = [0, 1], sizes = [19, 15], strides = [1, 1]} : vector<19x16xf32> to vector<19x15xf32>
    %62 = tpu.concatenate %61, %60 in 1 : vector<19x15xf32>, vector<19x1xf32> -> vector<19x16xf32>
    %63 = vector.extract_strided_slice %56 {offsets = [0, 0], sizes = [16, 16], strides = [1, 1]} : vector<19x16xf32> to vector<16x16xf32>
    %64 = vector.extract_strided_slice %59 {offsets = [0, 0], sizes = [16, 16], strides = [1, 1]} : vector<19x16xf32> to vector<16x16xf32>
    %65 = vector.extract_strided_slice %53 {offsets = [0, 0], sizes = [16, 16], strides = [1, 1]} : vector<19x16xf32> to vector<16x16xf32>
    %66 = vector.extract_strided_slice %62 {offsets = [0, 0], sizes = [16, 16], strides = [1, 1]} : vector<19x16xf32> to vector<16x16xf32>
    %67 = vector.extract_strided_slice %56 {offsets = [1, 0], sizes = [16, 16], strides = [1, 1]} : vector<19x16xf32> to vector<16x16xf32>
    %68 = vector.extract_strided_slice %59 {offsets = [1, 0], sizes = [16, 16], strides = [1, 1]} : vector<19x16xf32> to vector<16x16xf32>
    %69 = vector.extract_strided_slice %53 {offsets = [1, 0], sizes = [16, 16], strides = [1, 1]} : vector<19x16xf32> to vector<16x16xf32>
    %70 = vector.extract_strided_slice %62 {offsets = [1, 0], sizes = [16, 16], strides = [1, 1]} : vector<19x16xf32> to vector<16x16xf32>
    %71 = vector.extract_strided_slice %56 {offsets = [2, 0], sizes = [16, 16], strides = [1, 1]} : vector<19x16xf32> to vector<16x16xf32>
    %72 = vector.extract_strided_slice %59 {offsets = [2, 0], sizes = [16, 16], strides = [1, 1]} : vector<19x16xf32> to vector<16x16xf32>
    %73 = vector.extract_strided_slice %53 {offsets = [2, 0], sizes = [16, 16], strides = [1, 1]} : vector<19x16xf32> to vector<16x16xf32>
    %74 = vector.extract_strided_slice %62 {offsets = [2, 0], sizes = [16, 16], strides = [1, 1]} : vector<19x16xf32> to vector<16x16xf32>
    %75 = vector.extract_strided_slice %56 {offsets = [3, 0], sizes = [16, 16], strides = [1, 1]} : vector<19x16xf32> to vector<16x16xf32>
    %76 = vector.extract_strided_slice %59 {offsets = [3, 0], sizes = [16, 16], strides = [1, 1]} : vector<19x16xf32> to vector<16x16xf32>
    %cst_19 = arith.constant 0.000000e+00 : f32
    %77 = vector.broadcast %cst_19 : f32 to vector<16x16xf32>
    %cst_20 = arith.constant 0.000000e+00 : f32
    %78 = vector.broadcast %cst_20 : f32 to vector<16x16xf32>
    %79 = vector.shape_cast %63 : vector<16x16xf32> to vector<16x1x16xf32>
    %80 = vector.shape_cast %64 : vector<16x16xf32> to vector<16x1x16xf32>
    %81 = vector.shape_cast %65 : vector<16x16xf32> to vector<16x1x16xf32>
    %82 = vector.shape_cast %66 : vector<16x16xf32> to vector<16x1x16xf32>
    %83 = vector.shape_cast %67 : vector<16x16xf32> to vector<16x1x16xf32>
    %84 = vector.shape_cast %68 : vector<16x16xf32> to vector<16x1x16xf32>
    %85 = vector.shape_cast %69 : vector<16x16xf32> to vector<16x1x16xf32>
    %86 = vector.shape_cast %70 : vector<16x16xf32> to vector<16x1x16xf32>
    %87 = vector.shape_cast %71 : vector<16x16xf32> to vector<16x1x16xf32>
    %88 = vector.shape_cast %72 : vector<16x16xf32> to vector<16x1x16xf32>
    %89 = vector.shape_cast %73 : vector<16x16xf32> to vector<16x1x16xf32>
    %90 = vector.shape_cast %74 : vector<16x16xf32> to vector<16x1x16xf32>
    %91 = vector.shape_cast %75 : vector<16x16xf32> to vector<16x1x16xf32>
    %92 = vector.shape_cast %76 : vector<16x16xf32> to vector<16x1x16xf32>
    %93 = vector.shape_cast %77 : vector<16x16xf32> to vector<16x1x16xf32>
    %94 = vector.shape_cast %78 : vector<16x16xf32> to vector<16x1x16xf32>
    %95 = tpu.concatenate %79, %80, %81, %82, %83, %84, %85, %86, %87, %88, %89, %90, %91, %92, %93, %94 in 1 : vector<16x1x16xf32>, vector<16x1x16xf32>, vector<16x1x16xf32>, vector<16x1x16xf32>, vector<16x1x16xf32>, vector<16x1x16xf32>, vector<16x1x16xf32>, vector<16x1x16xf32>, vector<16x1x16xf32>, vector<16x1x16xf32>, vector<16x1x16xf32>, vector<16x1x16xf32>, vector<16x1x16xf32>, vector<16x1x16xf32>, vector<16x1x16xf32>, vector<16x1x16xf32> -> vector<16x16x16xf32>
    %96 = tpu.transpose %95, [0, 2, 1] : vector<16x16x16xf32> -> vector<16x16x16xf32>
    %c0_21 = arith.constant 0 : index
    %c0_22 = arith.constant 0 : index
    %c0_23 = arith.constant 0 : index
    %c16 = arith.constant 16 : index
    %97 = vector.load %arg4[%c0_21, %c0_22, %c0_23, %c16] : memref<1x16x16x64xf32, #tpu.memory_space<vmem>>, vector<1x16x16x16xf32>
    %98 = vector.shape_cast %97 : vector<1x16x16x16xf32> to vector<16x16x16xf32>
    %99 = vector.shape_cast %96 : vector<16x16x16xf32> to vector<1x16x16x16xf32>
    tpu.vector_store %arg4[%c0_21, %c0_22, %c0_23, %c16], %99 {strides = array<i32>} : memref<1x16x16x64xf32, #tpu.memory_space<vmem>>, vector<1x16x16x16xf32>,
    %cst_24 = arith.constant 0.000000e+00 : f32
    %100 = vector.broadcast %cst_24 : f32 to vector<3x16xf32>
    %c0_25 = arith.constant 0 : index
    %c2 = arith.constant 2 : index
    %c0_26 = arith.constant 0 : index
    %c0_27 = arith.constant 0 : index
    %101 = vector.load %arg3[%c0_25, %c2, %c0_26, %c0_27] : memref<1x4x16x16xf32, #tpu.memory_space<vmem>>, vector<1x1x16x16xf32>
    %102 = vector.shape_cast %101 : vector<1x1x16x16xf32> to vector<16x16xf32>
    %103 = tpu.concatenate %100, %102 in 0 : vector<3x16xf32>, vector<16x16xf32> -> vector<19x16xf32>
    %cst_28 = arith.constant 0.000000e+00 : f32
    %104 = vector.broadcast %cst_28 : f32 to vector<19x2xf32>
    %105 = vector.extract_strided_slice %103 {offsets = [0, 0], sizes = [19, 14], strides = [1, 1]} : vector<19x16xf32> to vector<19x14xf32>
    %106 = tpu.concatenate %104, %105 in 1 : vector<19x2xf32>, vector<19x14xf32> -> vector<19x16xf32>
    %cst_29 = arith.constant 0.000000e+00 : f32
    %107 = vector.broadcast %cst_29 : f32 to vector<19x1xf32>
    %108 = vector.extract_strided_slice %103 {offsets = [0, 0], sizes = [19, 15], strides = [1, 1]} : vector<19x16xf32> to vector<19x15xf32>
    %109 = tpu.concatenate %107, %108 in 1 : vector<19x1xf32>, vector<19x15xf32> -> vector<19x16xf32>
    %cst_30 = arith.constant 0.000000e+00 : f32
    %110 = vector.broadcast %cst_30 : f32 to vector<19x1xf32>
    %111 = vector.extract_strided_slice %103 {offsets = [0, 1], sizes = [19, 15], strides = [1, 1]} : vector<19x16xf32> to vector<19x15xf32>
    %112 = tpu.concatenate %111, %110 in 1 : vector<19x15xf32>, vector<19x1xf32> -> vector<19x16xf32>
    %113 = vector.extract_strided_slice %106 {offsets = [0, 0], sizes = [16, 16], strides = [1, 1]} : vector<19x16xf32> to vector<16x16xf32>
    %114 = vector.extract_strided_slice %109 {offsets = [0, 0], sizes = [16, 16], strides = [1, 1]} : vector<19x16xf32> to vector<16x16xf32>
    %115 = vector.extract_strided_slice %103 {offsets = [0, 0], sizes = [16, 16], strides = [1, 1]} : vector<19x16xf32> to vector<16x16xf32>
    %116 = vector.extract_strided_slice %112 {offsets = [0, 0], sizes = [16, 16], strides = [1, 1]} : vector<19x16xf32> to vector<16x16xf32>
    %117 = vector.extract_strided_slice %106 {offsets = [1, 0], sizes = [16, 16], strides = [1, 1]} : vector<19x16xf32> to vector<16x16xf32>
    %118 = vector.extract_strided_slice %109 {offsets = [1, 0], sizes = [16, 16], strides = [1, 1]} : vector<19x16xf32> to vector<16x16xf32>
    %119 = vector.extract_strided_slice %103 {offsets = [1, 0], sizes = [16, 16], strides = [1, 1]} : vector<19x16xf32> to vector<16x16xf32>
    %120 = vector.extract_strided_slice %112 {offsets = [1, 0], sizes = [16, 16], strides = [1, 1]} : vector<19x16xf32> to vector<16x16xf32>
    %121 = vector.extract_strided_slice %106 {offsets = [2, 0], sizes = [16, 16], strides = [1, 1]} : vector<19x16xf32> to vector<16x16xf32>
    %122 = vector.extract_strided_slice %109 {offsets = [2, 0], sizes = [16, 16], strides = [1, 1]} : vector<19x16xf32> to vector<16x16xf32>
    %123 = vector.extract_strided_slice %103 {offsets = [2, 0], sizes = [16, 16], strides = [1, 1]} : vector<19x16xf32> to vector<16x16xf32>
    %124 = vector.extract_strided_slice %112 {offsets = [2, 0], sizes = [16, 16], strides = [1, 1]} : vector<19x16xf32> to vector<16x16xf32>
    %125 = vector.extract_strided_slice %106 {offsets = [3, 0], sizes = [16, 16], strides = [1, 1]} : vector<19x16xf32> to vector<16x16xf32>
    %126 = vector.extract_strided_slice %109 {offsets = [3, 0], sizes = [16, 16], strides = [1, 1]} : vector<19x16xf32> to vector<16x16xf32>
    %cst_31 = arith.constant 0.000000e+00 : f32
    %127 = vector.broadcast %cst_31 : f32 to vector<16x16xf32>
    %cst_32 = arith.constant 0.000000e+00 : f32
    %128 = vector.broadcast %cst_32 : f32 to vector<16x16xf32>
    %129 = vector.shape_cast %113 : vector<16x16xf32> to vector<16x1x16xf32>
    %130 = vector.shape_cast %114 : vector<16x16xf32> to vector<16x1x16xf32>
    %131 = vector.shape_cast %115 : vector<16x16xf32> to vector<16x1x16xf32>
    %132 = vector.shape_cast %116 : vector<16x16xf32> to vector<16x1x16xf32>
    %133 = vector.shape_cast %117 : vector<16x16xf32> to vector<16x1x16xf32>
    %134 = vector.shape_cast %118 : vector<16x16xf32> to vector<16x1x16xf32>
    %135 = vector.shape_cast %119 : vector<16x16xf32> to vector<16x1x16xf32>
    %136 = vector.shape_cast %120 : vector<16x16xf32> to vector<16x1x16xf32>
    %137 = vector.shape_cast %121 : vector<16x16xf32> to vector<16x1x16xf32>
    %138 = vector.shape_cast %122 : vector<16x16xf32> to vector<16x1x16xf32>
    %139 = vector.shape_cast %123 : vector<16x16xf32> to vector<16x1x16xf32>
    %140 = vector.shape_cast %124 : vector<16x16xf32> to vector<16x1x16xf32>
    %141 = vector.shape_cast %125 : vector<16x16xf32> to vector<16x1x16xf32>
    %142 = vector.shape_cast %126 : vector<16x16xf32> to vector<16x1x16xf32>
    %143 = vector.shape_cast %127 : vector<16x16xf32> to vector<16x1x16xf32>
    %144 = vector.shape_cast %128 : vector<16x16xf32> to vector<16x1x16xf32>
    %145 = tpu.concatenate %129, %130, %131, %132, %133, %134, %135, %136, %137, %138, %139, %140, %141, %142, %143, %144 in 1 : vector<16x1x16xf32>, vector<16x1x16xf32>, vector<16x1x16xf32>, vector<16x1x16xf32>, vector<16x1x16xf32>, vector<16x1x16xf32>, vector<16x1x16xf32>, vector<16x1x16xf32>, vector<16x1x16xf32>, vector<16x1x16xf32>, vector<16x1x16xf32>, vector<16x1x16xf32>, vector<16x1x16xf32>, vector<16x1x16xf32>, vector<16x1x16xf32>, vector<16x1x16xf32> -> vector<16x16x16xf32>
    %146 = tpu.transpose %145, [0, 2, 1] : vector<16x16x16xf32> -> vector<16x16x16xf32>
    %c0_33 = arith.constant 0 : index
    %c0_34 = arith.constant 0 : index
    %c0_35 = arith.constant 0 : index
    %c32 = arith.constant 32 : index
    %147 = vector.load %arg4[%c0_33, %c0_34, %c0_35, %c32] : memref<1x16x16x64xf32, #tpu.memory_space<vmem>>, vector<1x16x16x16xf32>
    %148 = vector.shape_cast %147 : vector<1x16x16x16xf32> to vector<16x16x16xf32>
    %149 = vector.shape_cast %146 : vector<16x16x16xf32> to vector<1x16x16x16xf32>
    tpu.vector_store %arg4[%c0_33, %c0_34, %c0_35, %c32], %149 {strides = array<i32>} : memref<1x16x16x64xf32, #tpu.memory_space<vmem>>, vector<1x16x16x16xf32>,
    %cst_36 = arith.constant 0.000000e+00 : f32
    %150 = vector.broadcast %cst_36 : f32 to vector<3x16xf32>
    %c0_37 = arith.constant 0 : index
    %c3 = arith.constant 3 : index
    %c0_38 = arith.constant 0 : index
    %c0_39 = arith.constant 0 : index
    %151 = vector.load %arg3[%c0_37, %c3, %c0_38, %c0_39] : memref<1x4x16x16xf32, #tpu.memory_space<vmem>>, vector<1x1x16x16xf32>
    %152 = vector.shape_cast %151 : vector<1x1x16x16xf32> to vector<16x16xf32>
    %153 = tpu.concatenate %150, %152 in 0 : vector<3x16xf32>, vector<16x16xf32> -> vector<19x16xf32>
    %cst_40 = arith.constant 0.000000e+00 : f32
    %154 = vector.broadcast %cst_40 : f32 to vector<19x2xf32>
    %155 = vector.extract_strided_slice %153 {offsets = [0, 0], sizes = [19, 14], strides = [1, 1]} : vector<19x16xf32> to vector<19x14xf32>
    %156 = tpu.concatenate %154, %155 in 1 : vector<19x2xf32>, vector<19x14xf32> -> vector<19x16xf32>
    %cst_41 = arith.constant 0.000000e+00 : f32
    %157 = vector.broadcast %cst_41 : f32 to vector<19x1xf32>
    %158 = vector.extract_strided_slice %153 {offsets = [0, 0], sizes = [19, 15], strides = [1, 1]} : vector<19x16xf32> to vector<19x15xf32>
    %159 = tpu.concatenate %157, %158 in 1 : vector<19x1xf32>, vector<19x15xf32> -> vector<19x16xf32>
    %cst_42 = arith.constant 0.000000e+00 : f32
    %160 = vector.broadcast %cst_42 : f32 to vector<19x1xf32>
    %161 = vector.extract_strided_slice %153 {offsets = [0, 1], sizes = [19, 15], strides = [1, 1]} : vector<19x16xf32> to vector<19x15xf32>
    %162 = tpu.concatenate %161, %160 in 1 : vector<19x15xf32>, vector<19x1xf32> -> vector<19x16xf32>
    %163 = vector.extract_strided_slice %156 {offsets = [0, 0], sizes = [16, 16], strides = [1, 1]} : vector<19x16xf32> to vector<16x16xf32>
    %164 = vector.extract_strided_slice %159 {offsets = [0, 0], sizes = [16, 16], strides = [1, 1]} : vector<19x16xf32> to vector<16x16xf32>
    %165 = vector.extract_strided_slice %153 {offsets = [0, 0], sizes = [16, 16], strides = [1, 1]} : vector<19x16xf32> to vector<16x16xf32>
    %166 = vector.extract_strided_slice %162 {offsets = [0, 0], sizes = [16, 16], strides = [1, 1]} : vector<19x16xf32> to vector<16x16xf32>
    %167 = vector.extract_strided_slice %156 {offsets = [1, 0], sizes = [16, 16], strides = [1, 1]} : vector<19x16xf32> to vector<16x16xf32>
    %168 = vector.extract_strided_slice %159 {offsets = [1, 0], sizes = [16, 16], strides = [1, 1]} : vector<19x16xf32> to vector<16x16xf32>
    %169 = vector.extract_strided_slice %153 {offsets = [1, 0], sizes = [16, 16], strides = [1, 1]} : vector<19x16xf32> to vector<16x16xf32>
    %170 = vector.extract_strided_slice %162 {offsets = [1, 0], sizes = [16, 16], strides = [1, 1]} : vector<19x16xf32> to vector<16x16xf32>
    %171 = vector.extract_strided_slice %156 {offsets = [2, 0], sizes = [16, 16], strides = [1, 1]} : vector<19x16xf32> to vector<16x16xf32>
    %172 = vector.extract_strided_slice %159 {offsets = [2, 0], sizes = [16, 16], strides = [1, 1]} : vector<19x16xf32> to vector<16x16xf32>
    %173 = vector.extract_strided_slice %153 {offsets = [2, 0], sizes = [16, 16], strides = [1, 1]} : vector<19x16xf32> to vector<16x16xf32>
    %174 = vector.extract_strided_slice %162 {offsets = [2, 0], sizes = [16, 16], strides = [1, 1]} : vector<19x16xf32> to vector<16x16xf32>
    %175 = vector.extract_strided_slice %156 {offsets = [3, 0], sizes = [16, 16], strides = [1, 1]} : vector<19x16xf32> to vector<16x16xf32>
    %176 = vector.extract_strided_slice %159 {offsets = [3, 0], sizes = [16, 16], strides = [1, 1]} : vector<19x16xf32> to vector<16x16xf32>
    %cst_43 = arith.constant 0.000000e+00 : f32
    %177 = vector.broadcast %cst_43 : f32 to vector<16x16xf32>
    %cst_44 = arith.constant 0.000000e+00 : f32
    %178 = vector.broadcast %cst_44 : f32 to vector<16x16xf32>
    %179 = vector.shape_cast %163 : vector<16x16xf32> to vector<16x1x16xf32>
    %180 = vector.shape_cast %164 : vector<16x16xf32> to vector<16x1x16xf32>
    %181 = vector.shape_cast %165 : vector<16x16xf32> to vector<16x1x16xf32>
    %182 = vector.shape_cast %166 : vector<16x16xf32> to vector<16x1x16xf32>
    %183 = vector.shape_cast %167 : vector<16x16xf32> to vector<16x1x16xf32>
    %184 = vector.shape_cast %168 : vector<16x16xf32> to vector<16x1x16xf32>
    %185 = vector.shape_cast %169 : vector<16x16xf32> to vector<16x1x16xf32>
    %186 = vector.shape_cast %170 : vector<16x16xf32> to vector<16x1x16xf32>
    %187 = vector.shape_cast %171 : vector<16x16xf32> to vector<16x1x16xf32>
    %188 = vector.shape_cast %172 : vector<16x16xf32> to vector<16x1x16xf32>
    %189 = vector.shape_cast %173 : vector<16x16xf32> to vector<16x1x16xf32>
    %190 = vector.shape_cast %174 : vector<16x16xf32> to vector<16x1x16xf32>
    %191 = vector.shape_cast %175 : vector<16x16xf32> to vector<16x1x16xf32>
    %192 = vector.shape_cast %176 : vector<16x16xf32> to vector<16x1x16xf32>
    %193 = vector.shape_cast %177 : vector<16x16xf32> to vector<16x1x16xf32>
    %194 = vector.shape_cast %178 : vector<16x16xf32> to vector<16x1x16xf32>
    %195 = tpu.concatenate %179, %180, %181, %182, %183, %184, %185, %186, %187, %188, %189, %190, %191, %192, %193, %194 in 1 : vector<16x1x16xf32>, vector<16x1x16xf32>, vector<16x1x16xf32>, vector<16x1x16xf32>, vector<16x1x16xf32>, vector<16x1x16xf32>, vector<16x1x16xf32>, vector<16x1x16xf32>, vector<16x1x16xf32>, vector<16x1x16xf32>, vector<16x1x16xf32>, vector<16x1x16xf32>, vector<16x1x16xf32>, vector<16x1x16xf32>, vector<16x1x16xf32>, vector<16x1x16xf32> -> vector<16x16x16xf32>
    %196 = tpu.transpose %195, [0, 2, 1] : vector<16x16x16xf32> -> vector<16x16x16xf32>
    %c0_45 = arith.constant 0 : index
    %c0_46 = arith.constant 0 : index
    %c0_47 = arith.constant 0 : index
    %c48 = arith.constant 48 : index
    %197 = vector.load %arg4[%c0_45, %c0_46, %c0_47, %c48] : memref<1x16x16x64xf32, #tpu.memory_space<vmem>>, vector<1x16x16x16xf32>
    %198 = vector.shape_cast %197 : vector<1x16x16x16xf32> to vector<16x16x16xf32>
    %199 = vector.shape_cast %196 : vector<16x16x16xf32> to vector<1x16x16x16xf32>
    tpu.vector_store %arg4[%c0_45, %c0_46, %c0_47, %c48], %199 {strides = array<i32>} : memref<1x16x16x64xf32, #tpu.memory_space<vmem>>, vector<1x16x16x16xf32>,
    return
  }
  func.func @transform_0(%arg0: i32, %arg1: i32, %arg2: i32) -> (i32, i32, i32, i32) {
    %c0_i32 = arith.constant 0 : i32
    %c0_i32_0 = arith.constant 0 : i32
    %c0_i32_1 = arith.constant 0 : i32
    return %arg0, %arg1, %c0_i32, %c0_i32_0 : i32, i32, i32, i32
  }
  func.func @transform_1(%arg0: i32, %arg1: i32, %arg2: i32) -> (i32, i32, i32, i32) {
    %c0_i32 = arith.constant 0 : i32
    %c0_i32_0 = arith.constant 0 : i32
    return %arg0, %arg2, %c0_i32, %arg1 : i32, i32, i32, i32
  }
}

module attributes {stable_mosaic.version = 11 : i64} {
  func.func @kernel(%arg0: i32, %arg1: i32, %arg2: memref<1x1x19x19xf32, #tpu.memory_space<vmem>>, %arg3: memref<1x16x16x16xf32, #tpu.memory_space<vmem>>) attributes {dimension_semantics = [#tpu.dimension_semantics<parallel>, #tpu.dimension_semantics<parallel>], iteration_bounds = array<i64: 2, 4>, scalar_prefetch = 0 : i64, scratch_operands = 0 : i64, tpu.core_type = #tpu.core_type<tc>, window_params = [{transform_indices = @transform_0, window_bounds = array<i64: 1, 1, 19, 19>}, {transform_indices = @transform_1, window_bounds = array<i64: 1, 16, 16, 16>}]} {
    %c0 = arith.constant 0 : index
    %c0_0 = arith.constant 0 : index
    %c0_1 = arith.constant 0 : index
    %c0_2 = arith.constant 0 : index
    %0 = vector.load %arg2[%c0, %c0_0, %c0_1, %c0_2] : memref<1x1x19x19xf32, #tpu.memory_space<vmem>>, vector<1x1x16x16xf32>
    %1 = vector.shape_cast %0 : vector<1x1x16x16xf32> to vector<16x16xf32>
    %c0_3 = arith.constant 0 : index
    %c0_4 = arith.constant 0 : index
    %c0_5 = arith.constant 0 : index
    %c0_6 = arith.constant 0 : index
    %2 = vector.load %arg3[%c0_3, %c0_4, %c0_5, %c0_6] : memref<1x16x16x16xf32, #tpu.memory_space<vmem>>, vector<1x1x16x16xf32>
    %3 = vector.shape_cast %2 : vector<1x1x16x16xf32> to vector<16x16xf32>
    %4 = vector.shape_cast %1 : vector<16x16xf32> to vector<1x1x16x16xf32>
    tpu.vector_store %arg3[%c0_3, %c0_4, %c0_5, %c0_6], %4 {strides = array<i32>} : memref<1x16x16x16xf32, #tpu.memory_space<vmem>>, vector<1x1x16x16xf32>,
    %c0_7 = arith.constant 0 : index
    %c0_8 = arith.constant 0 : index
    %c0_9 = arith.constant 0 : index
    %c1 = arith.constant 1 : index
    %5 = vector.load %arg2[%c0_7, %c0_8, %c0_9, %c1] : memref<1x1x19x19xf32, #tpu.memory_space<vmem>>, vector<1x1x16x16xf32>
    %6 = vector.shape_cast %5 : vector<1x1x16x16xf32> to vector<16x16xf32>
    %c0_10 = arith.constant 0 : index
    %c1_11 = arith.constant 1 : index
    %c0_12 = arith.constant 0 : index
    %c0_13 = arith.constant 0 : index
    %7 = vector.load %arg3[%c0_10, %c1_11, %c0_12, %c0_13] : memref<1x16x16x16xf32, #tpu.memory_space<vmem>>, vector<1x1x16x16xf32>
    %8 = vector.shape_cast %7 : vector<1x1x16x16xf32> to vector<16x16xf32>
    %9 = vector.shape_cast %6 : vector<16x16xf32> to vector<1x1x16x16xf32>
    tpu.vector_store %arg3[%c0_10, %c1_11, %c0_12, %c0_13], %9 {strides = array<i32>} : memref<1x16x16x16xf32, #tpu.memory_space<vmem>>, vector<1x1x16x16xf32>,
    %c0_14 = arith.constant 0 : index
    %c0_15 = arith.constant 0 : index
    %c0_16 = arith.constant 0 : index
    %c2 = arith.constant 2 : index
    %10 = vector.load %arg2[%c0_14, %c0_15, %c0_16, %c2] : memref<1x1x19x19xf32, #tpu.memory_space<vmem>>, vector<1x1x16x16xf32>
    %11 = vector.shape_cast %10 : vector<1x1x16x16xf32> to vector<16x16xf32>
    %c0_17 = arith.constant 0 : index
    %c2_18 = arith.constant 2 : index
    %c0_19 = arith.constant 0 : index
    %c0_20 = arith.constant 0 : index
    %12 = vector.load %arg3[%c0_17, %c2_18, %c0_19, %c0_20] : memref<1x16x16x16xf32, #tpu.memory_space<vmem>>, vector<1x1x16x16xf32>
    %13 = vector.shape_cast %12 : vector<1x1x16x16xf32> to vector<16x16xf32>
    %14 = vector.shape_cast %11 : vector<16x16xf32> to vector<1x1x16x16xf32>
    tpu.vector_store %arg3[%c0_17, %c2_18, %c0_19, %c0_20], %14 {strides = array<i32>} : memref<1x16x16x16xf32, #tpu.memory_space<vmem>>, vector<1x1x16x16xf32>,
    %c0_21 = arith.constant 0 : index
    %c0_22 = arith.constant 0 : index
    %c0_23 = arith.constant 0 : index
    %c3 = arith.constant 3 : index
    %15 = vector.load %arg2[%c0_21, %c0_22, %c0_23, %c3] : memref<1x1x19x19xf32, #tpu.memory_space<vmem>>, vector<1x1x16x16xf32>
    %16 = vector.shape_cast %15 : vector<1x1x16x16xf32> to vector<16x16xf32>
    %c0_24 = arith.constant 0 : index
    %c3_25 = arith.constant 3 : index
    %c0_26 = arith.constant 0 : index
    %c0_27 = arith.constant 0 : index
    %17 = vector.load %arg3[%c0_24, %c3_25, %c0_26, %c0_27] : memref<1x16x16x16xf32, #tpu.memory_space<vmem>>, vector<1x1x16x16xf32>
    %18 = vector.shape_cast %17 : vector<1x1x16x16xf32> to vector<16x16xf32>
    %19 = vector.shape_cast %16 : vector<16x16xf32> to vector<1x1x16x16xf32>
    tpu.vector_store %arg3[%c0_24, %c3_25, %c0_26, %c0_27], %19 {strides = array<i32>} : memref<1x16x16x16xf32, #tpu.memory_space<vmem>>, vector<1x1x16x16xf32>,
    %c0_28 = arith.constant 0 : index
    %c0_29 = arith.constant 0 : index
    %c1_30 = arith.constant 1 : index
    %c0_31 = arith.constant 0 : index
    %20 = vector.load %arg2[%c0_28, %c0_29, %c1_30, %c0_31] : memref<1x1x19x19xf32, #tpu.memory_space<vmem>>, vector<1x1x16x16xf32>
    %21 = vector.shape_cast %20 : vector<1x1x16x16xf32> to vector<16x16xf32>
    %c0_32 = arith.constant 0 : index
    %c4 = arith.constant 4 : index
    %c0_33 = arith.constant 0 : index
    %c0_34 = arith.constant 0 : index
    %22 = vector.load %arg3[%c0_32, %c4, %c0_33, %c0_34] : memref<1x16x16x16xf32, #tpu.memory_space<vmem>>, vector<1x1x16x16xf32>
    %23 = vector.shape_cast %22 : vector<1x1x16x16xf32> to vector<16x16xf32>
    %24 = vector.shape_cast %21 : vector<16x16xf32> to vector<1x1x16x16xf32>
    tpu.vector_store %arg3[%c0_32, %c4, %c0_33, %c0_34], %24 {strides = array<i32>} : memref<1x16x16x16xf32, #tpu.memory_space<vmem>>, vector<1x1x16x16xf32>,
    %c0_35 = arith.constant 0 : index
    %c0_36 = arith.constant 0 : index
    %c1_37 = arith.constant 1 : index
    %c1_38 = arith.constant 1 : index
    %25 = vector.load %arg2[%c0_35, %c0_36, %c1_37, %c1_38] : memref<1x1x19x19xf32, #tpu.memory_space<vmem>>, vector<1x1x16x16xf32>
    %26 = vector.shape_cast %25 : vector<1x1x16x16xf32> to vector<16x16xf32>
    %c0_39 = arith.constant 0 : index
    %c5 = arith.constant 5 : index
    %c0_40 = arith.constant 0 : index
    %c0_41 = arith.constant 0 : index
    %27 = vector.load %arg3[%c0_39, %c5, %c0_40, %c0_41] : memref<1x16x16x16xf32, #tpu.memory_space<vmem>>, vector<1x1x16x16xf32>
    %28 = vector.shape_cast %27 : vector<1x1x16x16xf32> to vector<16x16xf32>
    %29 = vector.shape_cast %26 : vector<16x16xf32> to vector<1x1x16x16xf32>
    tpu.vector_store %arg3[%c0_39, %c5, %c0_40, %c0_41], %29 {strides = array<i32>} : memref<1x16x16x16xf32, #tpu.memory_space<vmem>>, vector<1x1x16x16xf32>,
    %c0_42 = arith.constant 0 : index
    %c0_43 = arith.constant 0 : index
    %c1_44 = arith.constant 1 : index
    %c2_45 = arith.constant 2 : index
    %30 = vector.load %arg2[%c0_42, %c0_43, %c1_44, %c2_45] : memref<1x1x19x19xf32, #tpu.memory_space<vmem>>, vector<1x1x16x16xf32>
    %31 = vector.shape_cast %30 : vector<1x1x16x16xf32> to vector<16x16xf32>
    %c0_46 = arith.constant 0 : index
    %c6 = arith.constant 6 : index
    %c0_47 = arith.constant 0 : index
    %c0_48 = arith.constant 0 : index
    %32 = vector.load %arg3[%c0_46, %c6, %c0_47, %c0_48] : memref<1x16x16x16xf32, #tpu.memory_space<vmem>>, vector<1x1x16x16xf32>
    %33 = vector.shape_cast %32 : vector<1x1x16x16xf32> to vector<16x16xf32>
    %34 = vector.shape_cast %31 : vector<16x16xf32> to vector<1x1x16x16xf32>
    tpu.vector_store %arg3[%c0_46, %c6, %c0_47, %c0_48], %34 {strides = array<i32>} : memref<1x16x16x16xf32, #tpu.memory_space<vmem>>, vector<1x1x16x16xf32>,
    %c0_49 = arith.constant 0 : index
    %c0_50 = arith.constant 0 : index
    %c1_51 = arith.constant 1 : index
    %c3_52 = arith.constant 3 : index
    %35 = vector.load %arg2[%c0_49, %c0_50, %c1_51, %c3_52] : memref<1x1x19x19xf32, #tpu.memory_space<vmem>>, vector<1x1x16x16xf32>
    %36 = vector.shape_cast %35 : vector<1x1x16x16xf32> to vector<16x16xf32>
    %c0_53 = arith.constant 0 : index
    %c7 = arith.constant 7 : index
    %c0_54 = arith.constant 0 : index
    %c0_55 = arith.constant 0 : index
    %37 = vector.load %arg3[%c0_53, %c7, %c0_54, %c0_55] : memref<1x16x16x16xf32, #tpu.memory_space<vmem>>, vector<1x1x16x16xf32>
    %38 = vector.shape_cast %37 : vector<1x1x16x16xf32> to vector<16x16xf32>
    %39 = vector.shape_cast %36 : vector<16x16xf32> to vector<1x1x16x16xf32>
    tpu.vector_store %arg3[%c0_53, %c7, %c0_54, %c0_55], %39 {strides = array<i32>} : memref<1x16x16x16xf32, #tpu.memory_space<vmem>>, vector<1x1x16x16xf32>,
    %c0_56 = arith.constant 0 : index
    %c0_57 = arith.constant 0 : index
    %c2_58 = arith.constant 2 : index
    %c0_59 = arith.constant 0 : index
    %40 = vector.load %arg2[%c0_56, %c0_57, %c2_58, %c0_59] : memref<1x1x19x19xf32, #tpu.memory_space<vmem>>, vector<1x1x16x16xf32>
    %41 = vector.shape_cast %40 : vector<1x1x16x16xf32> to vector<16x16xf32>
    %c0_60 = arith.constant 0 : index
    %c8 = arith.constant 8 : index
    %c0_61 = arith.constant 0 : index
    %c0_62 = arith.constant 0 : index
    %42 = vector.load %arg3[%c0_60, %c8, %c0_61, %c0_62] : memref<1x16x16x16xf32, #tpu.memory_space<vmem>>, vector<1x1x16x16xf32>
    %43 = vector.shape_cast %42 : vector<1x1x16x16xf32> to vector<16x16xf32>
    %44 = vector.shape_cast %41 : vector<16x16xf32> to vector<1x1x16x16xf32>
    tpu.vector_store %arg3[%c0_60, %c8, %c0_61, %c0_62], %44 {strides = array<i32>} : memref<1x16x16x16xf32, #tpu.memory_space<vmem>>, vector<1x1x16x16xf32>,
    %c0_63 = arith.constant 0 : index
    %c0_64 = arith.constant 0 : index
    %c2_65 = arith.constant 2 : index
    %c1_66 = arith.constant 1 : index
    %45 = vector.load %arg2[%c0_63, %c0_64, %c2_65, %c1_66] : memref<1x1x19x19xf32, #tpu.memory_space<vmem>>, vector<1x1x16x16xf32>
    %46 = vector.shape_cast %45 : vector<1x1x16x16xf32> to vector<16x16xf32>
    %c0_67 = arith.constant 0 : index
    %c9 = arith.constant 9 : index
    %c0_68 = arith.constant 0 : index
    %c0_69 = arith.constant 0 : index
    %47 = vector.load %arg3[%c0_67, %c9, %c0_68, %c0_69] : memref<1x16x16x16xf32, #tpu.memory_space<vmem>>, vector<1x1x16x16xf32>
    %48 = vector.shape_cast %47 : vector<1x1x16x16xf32> to vector<16x16xf32>
    %49 = vector.shape_cast %46 : vector<16x16xf32> to vector<1x1x16x16xf32>
    tpu.vector_store %arg3[%c0_67, %c9, %c0_68, %c0_69], %49 {strides = array<i32>} : memref<1x16x16x16xf32, #tpu.memory_space<vmem>>, vector<1x1x16x16xf32>,
    %c0_70 = arith.constant 0 : index
    %c0_71 = arith.constant 0 : index
    %c2_72 = arith.constant 2 : index
    %c2_73 = arith.constant 2 : index
    %50 = vector.load %arg2[%c0_70, %c0_71, %c2_72, %c2_73] : memref<1x1x19x19xf32, #tpu.memory_space<vmem>>, vector<1x1x16x16xf32>
    %51 = vector.shape_cast %50 : vector<1x1x16x16xf32> to vector<16x16xf32>
    %c0_74 = arith.constant 0 : index
    %c10 = arith.constant 10 : index
    %c0_75 = arith.constant 0 : index
    %c0_76 = arith.constant 0 : index
    %52 = vector.load %arg3[%c0_74, %c10, %c0_75, %c0_76] : memref<1x16x16x16xf32, #tpu.memory_space<vmem>>, vector<1x1x16x16xf32>
    %53 = vector.shape_cast %52 : vector<1x1x16x16xf32> to vector<16x16xf32>
    %54 = vector.shape_cast %51 : vector<16x16xf32> to vector<1x1x16x16xf32>
    tpu.vector_store %arg3[%c0_74, %c10, %c0_75, %c0_76], %54 {strides = array<i32>} : memref<1x16x16x16xf32, #tpu.memory_space<vmem>>, vector<1x1x16x16xf32>,
    %c0_77 = arith.constant 0 : index
    %c0_78 = arith.constant 0 : index
    %c2_79 = arith.constant 2 : index
    %c3_80 = arith.constant 3 : index
    %55 = vector.load %arg2[%c0_77, %c0_78, %c2_79, %c3_80] : memref<1x1x19x19xf32, #tpu.memory_space<vmem>>, vector<1x1x16x16xf32>
    %56 = vector.shape_cast %55 : vector<1x1x16x16xf32> to vector<16x16xf32>
    %c0_81 = arith.constant 0 : index
    %c11 = arith.constant 11 : index
    %c0_82 = arith.constant 0 : index
    %c0_83 = arith.constant 0 : index
    %57 = vector.load %arg3[%c0_81, %c11, %c0_82, %c0_83] : memref<1x16x16x16xf32, #tpu.memory_space<vmem>>, vector<1x1x16x16xf32>
    %58 = vector.shape_cast %57 : vector<1x1x16x16xf32> to vector<16x16xf32>
    %59 = vector.shape_cast %56 : vector<16x16xf32> to vector<1x1x16x16xf32>
    tpu.vector_store %arg3[%c0_81, %c11, %c0_82, %c0_83], %59 {strides = array<i32>} : memref<1x16x16x16xf32, #tpu.memory_space<vmem>>, vector<1x1x16x16xf32>,
    %c0_84 = arith.constant 0 : index
    %c0_85 = arith.constant 0 : index
    %c3_86 = arith.constant 3 : index
    %c0_87 = arith.constant 0 : index
    %60 = vector.load %arg2[%c0_84, %c0_85, %c3_86, %c0_87] : memref<1x1x19x19xf32, #tpu.memory_space<vmem>>, vector<1x1x16x16xf32>
    %61 = vector.shape_cast %60 : vector<1x1x16x16xf32> to vector<16x16xf32>
    %c0_88 = arith.constant 0 : index
    %c12 = arith.constant 12 : index
    %c0_89 = arith.constant 0 : index
    %c0_90 = arith.constant 0 : index
    %62 = vector.load %arg3[%c0_88, %c12, %c0_89, %c0_90] : memref<1x16x16x16xf32, #tpu.memory_space<vmem>>, vector<1x1x16x16xf32>
    %63 = vector.shape_cast %62 : vector<1x1x16x16xf32> to vector<16x16xf32>
    %64 = vector.shape_cast %61 : vector<16x16xf32> to vector<1x1x16x16xf32>
    tpu.vector_store %arg3[%c0_88, %c12, %c0_89, %c0_90], %64 {strides = array<i32>} : memref<1x16x16x16xf32, #tpu.memory_space<vmem>>, vector<1x1x16x16xf32>,
    %c0_91 = arith.constant 0 : index
    %c0_92 = arith.constant 0 : index
    %c3_93 = arith.constant 3 : index
    %c1_94 = arith.constant 1 : index
    %65 = vector.load %arg2[%c0_91, %c0_92, %c3_93, %c1_94] : memref<1x1x19x19xf32, #tpu.memory_space<vmem>>, vector<1x1x16x16xf32>
    %66 = vector.shape_cast %65 : vector<1x1x16x16xf32> to vector<16x16xf32>
    %c0_95 = arith.constant 0 : index
    %c13 = arith.constant 13 : index
    %c0_96 = arith.constant 0 : index
    %c0_97 = arith.constant 0 : index
    %67 = vector.load %arg3[%c0_95, %c13, %c0_96, %c0_97] : memref<1x16x16x16xf32, #tpu.memory_space<vmem>>, vector<1x1x16x16xf32>
    %68 = vector.shape_cast %67 : vector<1x1x16x16xf32> to vector<16x16xf32>
    %69 = vector.shape_cast %66 : vector<16x16xf32> to vector<1x1x16x16xf32>
    tpu.vector_store %arg3[%c0_95, %c13, %c0_96, %c0_97], %69 {strides = array<i32>} : memref<1x16x16x16xf32, #tpu.memory_space<vmem>>, vector<1x1x16x16xf32>,
    %cst = arith.constant 0.000000e+00 : f32
    %70 = vector.broadcast %cst : f32 to vector<16x16xf32>
    %c0_98 = arith.constant 0 : index
    %c14 = arith.constant 14 : index
    %c0_99 = arith.constant 0 : index
    %c0_100 = arith.constant 0 : index
    %71 = vector.load %arg3[%c0_98, %c14, %c0_99, %c0_100] : memref<1x16x16x16xf32, #tpu.memory_space<vmem>>, vector<1x1x16x16xf32>
    %72 = vector.shape_cast %71 : vector<1x1x16x16xf32> to vector<16x16xf32>
    %73 = vector.shape_cast %70 : vector<16x16xf32> to vector<1x1x16x16xf32>
    tpu.vector_store %arg3[%c0_98, %c14, %c0_99, %c0_100], %73 {strides = array<i32>} : memref<1x16x16x16xf32, #tpu.memory_space<vmem>>, vector<1x1x16x16xf32>,
    %cst_101 = arith.constant 0.000000e+00 : f32
    %74 = vector.broadcast %cst_101 : f32 to vector<16x16xf32>
    %c0_102 = arith.constant 0 : index
    %c15 = arith.constant 15 : index
    %c0_103 = arith.constant 0 : index
    %c0_104 = arith.constant 0 : index
    %75 = vector.load %arg3[%c0_102, %c15, %c0_103, %c0_104] : memref<1x16x16x16xf32, #tpu.memory_space<vmem>>, vector<1x1x16x16xf32>
    %76 = vector.shape_cast %75 : vector<1x1x16x16xf32> to vector<16x16xf32>
    %77 = vector.shape_cast %74 : vector<16x16xf32> to vector<1x1x16x16xf32>
    tpu.vector_store %arg3[%c0_102, %c15, %c0_103, %c0_104], %77 {strides = array<i32>} : memref<1x16x16x16xf32, #tpu.memory_space<vmem>>, vector<1x1x16x16xf32>,
    return
  }
  func.func @transform_0(%arg0: i32, %arg1: i32) -> (i32, i32, i32, i32) {
    %c0_i32 = arith.constant 0 : i32
    %c0_i32_0 = arith.constant 0 : i32
    %c0_i32_1 = arith.constant 0 : i32
    return %arg0, %arg1, %c0_i32, %c0_i32_0 : i32, i32, i32, i32
  }
  func.func @transform_1(%arg0: i32, %arg1: i32) -> (i32, i32, i32, i32) {
    %c0_i32 = arith.constant 0 : i32
    %c0_i32_0 = arith.constant 0 : i32
    %c0_i32_1 = arith.constant 0 : i32
    return %arg0, %arg1, %c0_i32, %c0_i32_0 : i32, i32, i32, i32
  }
}

</mosaic_0001>

<bundles_post_ra>
// kernel: tpu_custom_call.1
= control target key start
LH: loop header
LB: loop body
LE: loop exit
PB: predicated region body
PF: predicated region fallthrough
CT: control target
= control target key end

     0   :  { %6 = vsyncpa [#allocation3], 0  ;;  %s11273_s0 = inlined_call_operand.hbm [shape: f32[2,4,16,16], index: 0, kind: input, shape index: {}]   ;;  %s11274_s1 = inlined_call_operand.hbm [shape: f32[2,16,16,64], index: 1, kind: output, shape index: {}]  }
   0x1   :  { %8 = vsyncpa [#allocation3 + $0x1], 0 }
   0x2   :  { %9 = vsyncpa [#allocation4], 0 }
   0x3   :  { %11 = vsyncpa [#allocation4 + $0x1], 0  ;;  %s7121_s6 = smov 0   ;;  %s7123_s7 = smov 0  }
   0x4   :  { %s7125_s8 = smov 0   ;;  %s7127_s9 = smov 0  }
   0x5   :  { %s7129_s10 = smov 0   ;;  %s7131_s11 = smov 0  }
   0x6 LB: > { %s6891_s12 = sadd.s32 4294967295, %s7099_s11   ;;  %s6892_s13 = sadd.s32 4294967294, %s7099_s11   ;;  %s7099_s11 = sphi %s7131_s11, %s17_s11   ;;  %s7095_s10 = sphi %s7129_s10, %s12201_s10   ;;  %s7091_s9 = sphi %s7127_s9, %s12200_s9   ;;  %s7087_s8 = sphi %s7125_s8, %s12199_s8   ;;  %s7083_s7 = sphi %s7123_s7, %s12198_s7   ;;  %s7079_s6 = sphi %s7121_s6, %s12197_s6  }
   0x7   : > { %s36_s14 = sadd.s32 1, %s7095_s10  ;;  %s45_s15 = sadd.s32 1, %s7087_s8 }
   0x8   : > { %p38_p0 = scmp.ge.s32.totalorder %s36_s14, 2  ;;  %p52_p1 = scmp.ne.s32.totalorder %s7087_s8, %s7083_s7 }
   0x9   : > { %p53_p2 = scmp.eq.s32.totalorder %s7099_s11, 0  ;;  %p58_p3 = scmp.ne.s32.totalorder %s7083_s7, %s7079_s6 }
   0xa   : > { %s12203_s14 = smov (%p38_p0, %s36_s14), 0  ;;  %p59_p5 = scmp.eq.s32.totalorder %s6891_s12, 0 }
   0xb   : > { %p7162_p4 = por %p53_p2, %p52_p1  ;;  %s40_s17 = ssub.s32 %s7095_s10, %s12203_s14 }
   0xc   : > { %p86_p6 = scmp.eq.s32.totalorder %s6891_s12, 1  ;;  %p43_p7 = scmp.eq.s32.totalorder %s40_s17, 0 }
   0xd   : > { %p7168_p8 = por %p59_p5, %p58_p3  ;;  %p92_p10 = scmp.eq.s32.totalorder %s6892_s13, 1 }
   0xe   : > { %p7172_p9 = por %p86_p6, %p52_p1  ;;  %p6894_p12 = scmp.ge.s32.totalorder %s7099_s11, 2 }
   0xf   : > { %s7177_s20 = scalar_select %p43_p7, %s7087_s8, %s45_s15  }
  0x10   : > { %p7179_p11 = por %p92_p10, %p58_p3  ;;  %p6926_p13 = scmp.lt.s32.totalorder %s7099_s11, 2 }
  0x11   : > { %s112_s22 = sand.u32 1, %s7087_s8   ;;  %s6912_s24 = sshll.u32 %s7095_s10, 6 }
  0x12   : > { %s6895_s23 = sshll.u32 %s112_s22, 6  ;;  %s124_s27 = scalar_lea.hbm %s11273_s0, %s6912_s24 }
  0x13   : > { %s116_s28 = scalar_lea.vmem [#allocation2], %s6895_s23  ;;  %s125_s30 = sshll.u32 %s124_s27, 4  ;;  %s126_s30 = int_to_ptr.hbm [resolvable:$true] %s125_s30 }
  0x14   : > { %s127_s29 = sshll.u32 %s116_s28, 4  ;;  %p6919_p0 = pnand %p6926_p13, %p7162_p4  ;;  %s128_s29 = int_to_ptr.vmem [resolvable:$true] %s127_s29 }
  0x15   : > { %p6898_p1 = scmp.ge.s32.totalorder %s7099_s11, 1  ;;  %s113_s2 = scalar_lea.sflag [#allocation3], %s112_s22 }
  0x16   : > { %s7101_s3 = smov 128   ;;  %s7102_s4 = smov 8  }
  0x17   : > { %6921 = dma.hbm_to_vmem [thread:$0]  (!%p6919_p0), %s126_s30, 1024, %s128_s29, %s113_s2, %s7101_s3, %s7101_s3, %s7102_s4  }
  0x18   : > { %p135_p2 = scmp.lt.s32.totalorder %s7099_s11, 3 }
  0x1a   : > { %p136_p3 = pnand %p6898_p1, %p135_p2 }
  0x1c   : > { %139 = sbr.rel (%p136_p3) target bundleno = 2038 (0x7f6), region = 24 }
  0x21   : > { %s7195_s5 = sand.u32 1, %s7083_s7  }
  0x22   : > { %s6899_s12 = sshll.u32 %s7195_s5, 6  ;;  %s142_s13 = scalar_lea.sflag [#allocation3], %s7195_s5 }
  0x23   : > { %s7199_s15 = scalar_lea.vmem [#allocation2], %s6899_s12 }
  0x24   : > { %7070 = dma.done.wait (%p7168_p8), %s142_s13, 1024  }
  0x25   : > { %7072 = vsyncadd (%p7168_p8), %s142_s13, 4294966272  ;;  %v168_v0 = vld [vmem:[%s7199_s15 + $0x8] sm:$0xff]  ;;  %vm171_vm0 = vcmask 1042432   ;;  %v167_v1 = vld [vmem:[%s7199_s15] sm:$0xff]  ;;  %s7103_s16 = smov 2   ;;  %s7104_s17 = smov 1  }
  0x26   : > { %v7207_v2 = vrot.slane %v168_v0, 5  ;;  %v172_v3 = vrot.slane %v167_v1, 5  ;;  %s7105_s18 = smov 127   ;;  %v6901_v6 = vld [vmem:[%s7199_s15 + $0x10] sm:$0xff]  ;;  %v6902_v7 = vld [vmem:[%s7199_s15 + $0x18] sm:$0xff]  ;;  %v6904_v12 = vld [vmem:[%s7199_s15 + $0x28] sm:$0xff] }
  0x27   : > { %v1736_v8 = vrot.slane %v6901_v6, 5  ;;  %v7236_v9 = vrot.slane %v6902_v7, 5  ;;  %v7252_v13 = vrot.slane %v6904_v12, 5  ;;  %v6903_v14 = vld [vmem:[%s7199_s15 + $0x20] sm:$0xff]  ;;  %v6905_v18 = vld [vmem:[%s7199_s15 + $0x30] sm:$0xff]  ;;  %v6906_v21 = vld [vmem:[%s7199_s15 + $0x38] sm:$0xff] }
  0x28   : > { %182 = vrot.lane.b32.xlu1 %v7207_v2, %s7103_s16  ;;  %v7212_v4 = vsel %vm171_vm0, 0.0, %v172_v3  ;;  %195 = vrot.lane.b32.xlu2 %v7207_v2, %s7104_s17  ;;  %v7220_v5 = vsel %vm171_vm0, %v172_v3, %v7207_v2  ;;  %v3419_v15 = vrot.slane %v6903_v14, 5  ;;  %v5102_v19 = vrot.slane %v6905_v18, 5  ;;  %s6900_s22 = sshll.u32 %s7195_s5, 8  ;;  %s7106_s24 = smov 16  }
  0x29   : > { %178 = vrot.lane.b32.xlu0 %v7212_v4, %s7103_s16  ;;  %11322 = vst [vmem:[#allocation8_spill] sm:$0xff] %v7236_v9  ;;  %v7239_v10 = vsel %vm171_vm0, 0.0, %v1736_v8  ;;  %v7243_v11 = vsel %vm171_vm0, %v1736_v8, %v7236_v9  ;;  %v7299_v22 = vrot.slane %v6906_v21, 5  ;;  %vm187_vm1 = vcmask 15360   ;;  %s9258_s23 = scalar_lea.vmem [#allocation5], %s6900_s22  ;;  %s7107_s25 = smov 32  }
  0x2a   : > { %11323 = vst [vmem:[#allocation9_spill] sm:$0xff] %v7239_v10  ;;  %v7270_v16 = vsel %vm171_vm0, 0.0, %v3419_v15  ;;  %v7278_v17 = vsel %vm171_vm0, %v3419_v15, %v7252_v13  ;;  %v7292_v20 = vsel %vm171_vm0, 0.0, %v5102_v19  ;;  %vm200_vm2 = vcmask 7168   ;;  %s7108_s26 = smov 48   ;;  %s6913_s27 = sshll.u32 %s7091_s9, 8 }
  0x2b   : > { %11324 = vst [vmem:[#allocation10_spill] sm:$0xff] %v7243_v11  ;;  %v7307_v23 = vsel %vm171_vm0, %v5102_v19, %v7299_v22  ;;  %vm213_vm3 = vcmask 121856   ;;  %v269_v53 = vrot.slane %v7212_v4, 7  ;;  %vm956_vm4 = vcmask 1040384   ;;  %s6796_s30 = scalar_lea.hbm %s11274_s1, %s6913_s27  ;;  %s6797_s2 = sshll.u32 %s9258_s23, 4  ;;  %s6798_s2 = int_to_ptr.vmem [resolvable:$true] %s6797_s2 }
  0x2c   : > { %11325 = vst [vmem:[#allocation11_spill] sm:$0xff] %v7252_v13  ;;  %vm973_vm5 = vcmask 1041408   ;;  %vm1006_vm6 = vcmask 1043456   ;;  %vm1023_vm7 = vcmask 1044480   ;;  %vm1040_vm8 = vcmask 1045504   ;;  %s6799_s3 = sshll.u32 %s6796_s30, 4  ;;  %s6800_s3 = int_to_ptr.hbm [resolvable:$true] %s6799_s3 }
  0x2d   : > { %11326 = vst [vmem:[#allocation12_spill] sm:$0xff] %v7270_v16  ;;  %v611_v1 = vperm.slane %v269_v53, 0  ;;  %vm1057_vm9 = vcmask 1046528   ;;  %vm1698_vm10 = vcmask 130048   ;;  %vm3381_vm11 = vcmask 261248   ;;  %s6781_s9 = scalar_lea.sflag [#allocation4], %s7195_s5 }
  0x2e   : > { %11327 = vst [vmem:[#allocation13_spill] sm:$0xff] %v7278_v17  ;;  %vm5064_vm12 = vcmask 392448   ;;  %vm6747_vm13 = vcmask 523648   ;;  %s7031_s4 = sshra.s32 %s6800_s3, 4  ;;  %s7032_s4 = int_to_ptr.hbm [resolvable:$true] %s7031_s4 }
  0x2f   : > { %11328 = vst [vmem:[#allocation14_spill] sm:$0xff] %v7292_v20  ;;  %s7033_s12 = scalar_lea.hbm %s7032_s4, 256  ;;  %p7038_p7 = scmp.lt.s32.totalorder %s7032_s4, %s11274_s1 }
  0x30   : > { %191 = vrot.lane.b32.xlu1 %v7212_v4, %s7104_s17  ;;  %193 = vrot.lane.b32.xlu2 %v7220_v5, %s7104_s17  ;;  %11329 = vst [vmem:[#allocation15_spill] sm:$0xff] %v7299_v22  ;;  %p7034_p4 = scmp.ne.s32.totalorder %s7032_s4, %s7033_s12 }
  0x31   : > { %180 = vrot.lane.b32.xlu0 %v7220_v5, %s7103_s16  ;;  %11330 = vst [vmem:[#allocation16_spill] sm:$0xff] %v7307_v23 }
  0x32   : > { %p7035_p5 = pnand %p7034_p4, %p7172_p9 }
  0x34   : > { %p7036_p6 = pneg %p7035_p5 }
  0x38   : > { %206 = vrot.lane.b32.xlu1 %v7220_v5, %s7105_s18  ;;  %208 = vrot.lane.b32.xlu2 %v7207_v2, %s7105_s18 }
  0x39   : > { %204 = vrot.lane.b32.xlu0 %v7212_v4, %s7105_s18 }
  0x40   : > { %1746 = vrot.lane.b32.xlu1 %v7236_v9, %s7103_s16  ;;  %1742 = vrot.lane.b32.xlu2 %v7239_v10, %s7103_s16 }
  0x41   : > { %1744 = vrot.lane.b32.xlu0 %v7243_v11, %s7103_s16 }
  0x48   : > { %1754 = vrot.lane.b32.xlu1 %v7239_v10, %s7104_s17  ;;  %1756 = vrot.lane.b32.xlu2 %v7243_v11, %s7104_s17 }
  0x49   : > { %3453 = vrot.lane.b32.xlu0 %v7252_v13, %s7105_s18 }
  0x50   : > { %1758 = vrot.lane.b32.xlu1 %v7236_v9, %s7104_s17  ;;  %1766 = vrot.lane.b32.xlu2 %v7239_v10, %s7105_s18 }
  0x51   : > { %5124 = vrot.lane.b32.xlu0 %v7299_v22, %s7104_s17 }
  0x58   : > { %1768 = vrot.lane.b32.xlu1 %v7243_v11, %s7105_s18  ;;  %1770 = vrot.lane.b32.xlu2 %v7236_v9, %s7105_s18 }
  0x60   : > { %3437 = vrot.lane.b32.xlu1 %v7270_v16, %s7104_s17  ;;  %3425 = vrot.lane.b32.xlu2 %v7270_v16, %s7103_s16 }
  0x68   : > { %3439 = vrot.lane.b32.xlu1 %v7278_v17, %s7104_s17  ;;  %3427 = vrot.lane.b32.xlu2 %v7278_v17, %s7103_s16 }
  0x70   : > { %3441 = vrot.lane.b32.xlu1 %v7252_v13, %s7104_s17  ;;  %3429 = vrot.lane.b32.xlu2 %v7252_v13, %s7103_s16 }
  0x78   : > { %3449 = vrot.lane.b32.xlu2 %v7270_v16, %s7105_s18  ;;  %5108 = vrot.lane.b32.xlu1 %v7292_v20, %s7103_s16 }
  0x80   : > { %3451 = vrot.lane.b32.xlu2 %v7278_v17, %s7105_s18  ;;  %5112 = vrot.lane.b32.xlu1 %v7299_v22, %s7103_s16 }
  0x82   : > { %v196_v45 = vpop.permute.xlu2 %195 }
  0x83   : > { %v7394_v7 = vsel %vm200_vm2, 0.0, %v196_v45 }
  0x84   : > { %11334 = vst [vmem:[#allocation20_spill] sm:$0xff] %v7394_v7 }
  0x88   : > { %5110 = vrot.lane.b32.xlu2 %v7307_v23, %s7103_s16  ;;  %5120 = vrot.lane.b32.xlu1 %v7292_v20, %s7104_s17  ;;  %s7037_s16 = scalar_lea.hbm %s11274_s1, 512 }
  0x89   : > { %p7039_p8 = scmp.lt.s32.totalorder %s7037_s16, %s7033_s12 }
  0x8a   : > { %v194_v51 = vpop.permute.xlu2 %193 }
  0x8b   : > { %v7385_v60 = vsel %vm200_vm2, 0.0, %v194_v51  ;;  %p7040_p10 = por %p7039_p8, %p7038_p7 }
  0x8d   : > { %p7041_p13 = pnand %p7040_p10, %p7036_p6 }
  0x90   : > { %5132 = vrot.lane.b32.xlu2 %v7292_v20, %s7105_s18  ;;  %5122 = vrot.lane.b32.xlu1 %v7307_v23, %s7104_s17 }
  0x98   : > { %5134 = vrot.lane.b32.xlu2 %v7307_v23, %s7105_s18  ;;  %5136 = vrot.lane.b32.xlu1 %v7299_v22, %s7105_s18 }
  0x9a   : > { %v183_v35 = vpop.permute.xlu1 %182 }
  0x9b   : > { %v179_v24 = vpop.permute.xlu0 %178  ;;  %v7344_v36 = vsel %vm187_vm1, 0.0, %v183_v35 }
  0x9c   : > { %v7320_v25 = vsel %vm187_vm1, 0.0, %v179_v24 }
  0x9d   : > { %294 = vst [vmem:[#allocation1] sm:$0xff] %v7320_v25  ;;  %v225_v0 = vrot.slane %v7320_v25, 7 }
  0xa2   : > { %v192_v46 = vpop.permute.xlu1 %191 }
  0xa3   : > { %v181_v26 = vpop.permute.xlu0 %180  ;;  %v7362_v47 = vsel %vm200_vm2, 0.0, %v192_v46 }
  0xa4   : > { %v7325_v27 = vld [vmem:[#allocation1 + $0x1] ss:$9 sm:$0xff]  ;;  %v7329_v29 = vld [vmem:[#allocation1 + $0x3] ss:$9 sm:$0xff]  ;;  %v7340_v34 = vsel %vm187_vm1, 0.0, %v181_v26  ;;  %v255_v50 = vrot.slane %v7362_v47, 7 }
  0xa5   : > { %v7327_v28 = vld [vmem:[#allocation1 + $0x2] ss:$9 sm:$0xff]  ;;  %v7331_v30 = vld [vmem:[#allocation1 + $0x4] ss:$9 sm:$0xff] }
  0xa6   : > { %v7333_v31 = vld [vmem:[#allocation1 + $0x5] ss:$9 sm:$0xff]  ;;  %v7337_v33 = vld [vmem:[#allocation1 + $0x7] ss:$9 sm:$0xff]  ;;  %v579_v63 = vperm.slane %v255_v50, 0 }
  0xa7   : > { %v7335_v32 = vld [vmem:[#allocation1 + $0x6] ss:$9 sm:$0xff] }
  0xa8   : > { %309 = vst [vmem:[#allocation1] sm:$0xff] %v7340_v34  ;;  %v964_v6 = vsel %vm956_vm4, %v225_v0, %v579_v63  ;;  %v276_v63 = vrot.slane %v7220_v5, 7 }
  0xa9   : > { %v981_v12 = vsel %vm973_vm5, %v964_v6, %v611_v1  ;;  %v232_v1 = vrot.slane %v7340_v34, 7 }
  0xaa   : > { %v207_v50 = vpop.permute.xlu1 %206  ;;  %v619_v6 = vperm.slane %v276_v63, 0 }
  0xab   : > { %v205_v49 = vpop.permute.xlu0 %204  ;;  %v7416_v53 = vsel %vm213_vm3, %v207_v50, 0.0 }
  0xac   : > { %v7369_v52 = vsel %vm213_vm3, %v205_v49, 0.0  ;;  %v292_v0 = vrot.slane %v7416_v53, 7 }
  0xad   : > { %v285_v62 = vrot.slane %v7369_v52, 7  ;;  %v280_v10 = vrot.slane %v7369_v52, 2 }
  0xaf   : > { %v310_v37 = vld [vmem:[#allocation1] ss:$9 sm:$0xff]  ;;  %v7348_v39 = vld [vmem:[#allocation1 + $0x2] ss:$9 sm:$0xff]  ;;  %v643_v3 = vperm.slane %v285_v62, 0  ;;  %v262_v62 = vrot.slane %v7385_v60, 7 }
  0xb0   : > { %v7346_v38 = vld [vmem:[#allocation1 + $0x1] ss:$9 sm:$0xff]  ;;  %v7350_v40 = vld [vmem:[#allocation1 + $0x3] ss:$9 sm:$0xff]  ;;  %v675_v8 = vperm.slane %v310_v37, 0 }
  0xb1   : > { %v7352_v41 = vld [vmem:[#allocation1 + $0x4] ss:$9 sm:$0xff]  ;;  %v7356_v43 = vld [vmem:[#allocation1 + $0x6] ss:$9 sm:$0xff]  ;;  %v997_v19 = vsel %vm171_vm0, %v981_v12, %v643_v3  ;;  %v587_v3 = vperm.slane %v262_v62, 0 }
  0xb2   : > { %11331 = vst [vmem:[#allocation17_spill] sm:$0xff] %v7352_v41  ;;  %v7354_v42 = vld [vmem:[#allocation1 + $0x5] ss:$9 sm:$0xff]  ;;  %v7358_v44 = vld [vmem:[#allocation1 + $0x7] ss:$9 sm:$0xff]  ;;  %v1014_v46 = vsel %vm1006_vm6, %v997_v19, %v675_v8  ;;  %v651_v8 = vperm.slane %v292_v0, 0 }
  0xb3   : > { %11332 = vst [vmem:[#allocation18_spill] sm:$0xff] %v7356_v43 }
  0xb4   : > { %11333 = vst [vmem:[#allocation19_spill] sm:$0xff] %v7358_v44  ;;  %v279_v44 = vrot.slane %v7369_v52, 1 }
  0xb5   : > { %318 = vst [vmem:[#allocation1] sm:$0xff] %v7344_v36 }
  0xbc   : > { %v7364_v48 = vld [vmem:[#allocation1] ss:$9 sm:$0xff] }
  0xbd   : > { %321 = vst [vmem:[#allocation1] sm:$0xff] %v7362_v47  ;;  %v683_v12 = vperm.slane %v7364_v48, 0 }
  0xc4   : > { %v7372_v54 = vld [vmem:[#allocation1 + $0x1] ss:$9 sm:$0xff]  ;;  %v7376_v56 = vld [vmem:[#allocation1 + $0x3] ss:$9 sm:$0xff] }
  0xc5   : > { %v7374_v55 = vld [vmem:[#allocation1 + $0x2] ss:$9 sm:$0xff]  ;;  %v7378_v57 = vld [vmem:[#allocation1 + $0x4] ss:$9 sm:$0xff] }
  0xc6   : > { %v7380_v58 = vld [vmem:[#allocation1 + $0x5] ss:$9 sm:$0xff]  ;;  %v7387_v61 = vld [vmem:[#allocation1 + $0x7] ss:$9 sm:$0xff] }
  0xc7   : > { %v7382_v59 = vld [vmem:[#allocation1 + $0x6] ss:$9 sm:$0xff] }
  0xc8   : > { %336 = vst [vmem:[#allocation1] sm:$0xff] %v7385_v60 }
  0xcf   : > { %v337_v14 = vld [vmem:[#allocation1] ss:$9 sm:$0xff]  ;;  %v7399_v18 = vld [vmem:[#allocation1 + $0x2] ss:$9 sm:$0xff] }
  0xd0   : > { %v7397_v15 = vld [vmem:[#allocation1 + $0x1] ss:$9 sm:$0xff]  ;;  %11336 = vst [vmem:[#allocation22_spill] sm:$0xff] %v7399_v18  ;;  %v7402_v21 = vld [vmem:[#allocation1 + $0x3] ss:$9 sm:$0xff]  ;;  %v707_v37 = vperm.slane %v337_v14, 0 }
  0xd1   : > { %11335 = vst [vmem:[#allocation21_spill] sm:$0xff] %v7397_v15  ;;  %v7404_v24 = vld [vmem:[#allocation1 + $0x4] ss:$9 sm:$0xff]  ;;  %v7408_v35 = vld [vmem:[#allocation1 + $0x6] ss:$9 sm:$0xff]  ;;  %v226_v15 = vrot.slane %v7340_v34, 1 }
  0xd2   : > { %11337 = vst [vmem:[#allocation23_spill] sm:$0xff] %v7402_v21  ;;  %v7406_v26 = vld [vmem:[#allocation1 + $0x5] ss:$9 sm:$0xff]  ;;  %v7410_v45 = vld [vmem:[#allocation1 + $0x7] ss:$9 sm:$0xff]  ;;  %v1031_v49 = vsel %vm1023_vm7, %v1014_v46, %v707_v37  ;;  %v972_v46 = vsel %vm956_vm4, %v232_v1, %v587_v3 }
  0xd3   : > { %11338 = vst [vmem:[#allocation24_spill] sm:$0xff] %v7404_v24  ;;  %v989_v48 = vsel %vm973_vm5, %v972_v46, %v619_v6  ;;  %v249_v46 = vrot.slane %v7362_v47, 1  ;;  %v668_v24 = vperm.slane %v7325_v27, 0  ;;  %v701_v27 = vperm.slane %v7374_v55, 0 }
  0xd4   : > { %11339 = vst [vmem:[#allocation25_spill] sm:$0xff] %v7406_v26  ;;  %v1005_v63 = vsel %vm171_vm0, %v989_v48, %v651_v8 }
  0xd5   : > { %11340 = vst [vmem:[#allocation26_spill] sm:$0xff] %v7408_v35  ;;  %v1022_v0 = vsel %vm1006_vm6, %v1005_v63, %v683_v12  ;;  %v250_v12 = vrot.slane %v7362_v47, 2  ;;  %v264_v63 = vrot.slane %v7212_v4, 2 }
  0xd6   : > { %11341 = vst [vmem:[#allocation27_spill] sm:$0xff] %v7410_v45  ;;  %v220_v45 = vrot.slane %v7320_v25, 2 }
  0xd7   : > { %345 = vst [vmem:[#allocation1] sm:$0xff] %v7394_v7 }
  0xde   : > { %v346_v51 = vld [vmem:[#allocation1] ss:$9 sm:$0xff] }
  0xdf   : > { %347 = vst [vmem:[#allocation1] sm:$0xff] %v7212_v4  ;;  %v715_v62 = vperm.slane %v346_v51, 0 }
  0xe1   : > { %v7444_v13 = vsel %vm1023_vm7, %v1022_v0, %v715_v62  ;;  %v572_v62 = vperm.slane %v7362_v47, 0  ;;  %v263_v0 = vrot.slane %v7212_v4, 1 }
  0xe3   : > { %v605_v35 = vperm.slane %v263_v0, 0 }
  0xe6   : > { %v7424_v14 = vld [vmem:[#allocation1 + $0x1] ss:$9 sm:$0xff]  ;;  %v7428_v37 = vld [vmem:[#allocation1 + $0x3] ss:$9 sm:$0xff] }
  0xe7   : > { %v7426_v19 = vld [vmem:[#allocation1 + $0x2] ss:$9 sm:$0xff]  ;;  %v7431_v50 = vld [vmem:[#allocation1 + $0x4] ss:$9 sm:$0xff] }
  0xe8   : > { %11342 = vst [vmem:[#allocation28_spill] sm:$0xff] %v7431_v50  ;;  %v7433_v22 = vld [vmem:[#allocation1 + $0x5] ss:$9 sm:$0xff]  ;;  %v7437_v20 = vld [vmem:[#allocation1 + $0x7] ss:$9 sm:$0xff] }
  0xe9   : > { %11343 = vst [vmem:[#allocation29_spill] sm:$0xff] %v7433_v22  ;;  %v7435_v23 = vld [vmem:[#allocation1 + $0x6] ss:$9 sm:$0xff] }
  0xea   : > { %11344 = vst [vmem:[#allocation30_spill] sm:$0xff] %v7435_v23  ;;  %v702_v23 = vperm.slane %v7376_v56, 0 }
  0xeb   : > { %11345 = vst [vmem:[#allocation31_spill] sm:$0xff] %v7437_v20 }
  0xec   : > { %362 = vst [vmem:[#allocation1] sm:$0xff] %v7220_v5 }
  0xf3   : > { %v363_v1 = vld [vmem:[#allocation1] ss:$9 sm:$0xff]  ;;  %v7448_v17 = vld [vmem:[#allocation1 + $0x2] ss:$9 sm:$0xff] }
  0xf4   : > { %v7446_v3 = vld [vmem:[#allocation1 + $0x1] ss:$9 sm:$0xff]  ;;  %11347 = vst [vmem:[#allocation33_spill] sm:$0xff] %v7448_v17  ;;  %v7450_v16 = vld [vmem:[#allocation1 + $0x3] ss:$9 sm:$0xff]  ;;  %v739_v8 = vperm.slane %v363_v1, 0 }
  0xf5   : > { %11346 = vst [vmem:[#allocation32_spill] sm:$0xff] %v7446_v3  ;;  %v7452_v9 = vld [vmem:[#allocation1 + $0x4] ss:$9 sm:$0xff]  ;;  %v7456_v6 = vld [vmem:[#allocation1 + $0x6] ss:$9 sm:$0xff]  ;;  %v573_v1 = vperm.slane %v249_v46, 0 }
  0xf6   : > { %11348 = vst [vmem:[#allocation34_spill] sm:$0xff] %v7450_v16  ;;  %v7454_v11 = vld [vmem:[#allocation1 + $0x5] ss:$9 sm:$0xff]  ;;  %v7458_v51 = vld [vmem:[#allocation1 + $0x7] ss:$9 sm:$0xff]  ;;  %v7464_v48 = vsel %vm1040_vm8, %v1031_v49, %v739_v8  ;;  %v604_v49 = vperm.slane %v7212_v4, 0  ;;  %v957_v8 = vsel %vm956_vm4, %v7320_v25, %v572_v62 }
  0xf7   : > { %11349 = vst [vmem:[#allocation35_spill] sm:$0xff] %v7452_v9  ;;  %v606_v9 = vperm.slane %v264_v63, 0  ;;  %v637_v3 = vperm.slane %v279_v44, 0  ;;  %v700_v63 = vperm.slane %v7372_v54, 0  ;;  %v669_v44 = vperm.slane %v7327_v28, 0 }
  0xf8   : > { %11350 = vst [vmem:[#allocation36_spill] sm:$0xff] %v7454_v11  ;;  %v636_v11 = vperm.slane %v7369_v52, 0  ;;  %v974_v41 = vsel %vm973_vm5, %v957_v8, %v604_v49  ;;  %v733_v54 = vperm.slane %v7426_v19, 0 }
  0xf9   : > { %11351 = vst [vmem:[#allocation37_spill] sm:$0xff] %v7456_v6  ;;  %v219_v6 = vrot.slane %v7320_v25, 1 }
  0xfa   : > { %11352 = vst [vmem:[#allocation38_spill] sm:$0xff] %v7458_v51  ;;  %v574_v51 = vperm.slane %v250_v12, 0  ;;  %v638_v12 = vperm.slane %v280_v10, 0  ;;  %v990_v0 = vsel %vm171_vm0, %v974_v41, %v636_v11 }
  0xfb   : > { %371 = vst [vmem:[#allocation1] sm:$0xff] %v7207_v2  ;;  %v958_v16 = vsel %vm956_vm4, %v219_v6, %v573_v1 }
  0xfc   : > { %v959_v46 = vsel %vm956_vm4, %v220_v45, %v574_v51  ;;  %v975_v62 = vsel %vm973_vm5, %v958_v16, %v605_v35  ;;  %v670_v45 = vperm.slane %v7329_v29, 0  ;;  %v734_v16 = vperm.slane %v7428_v37, 0 }
  0xfd   : > { %v976_v17 = vsel %vm973_vm5, %v959_v46, %v606_v9  ;;  %v991_v6 = vsel %vm171_vm0, %v975_v62, %v637_v3  ;;  %v732_v9 = vperm.slane %v7424_v14, 0 }
  0xfe   : > { %v992_v10 = vsel %vm171_vm0, %v976_v17, %v638_v12  ;;  %v1007_v17 = vsel %vm1006_vm6, %v990_v0, %v668_v24  ;;  %v1008_v37 = vsel %vm1006_vm6, %v991_v6, %v669_v44 }
  0xff   : > { %v1009_v29 = vsel %vm1006_vm6, %v992_v10, %v670_v45  ;;  %v1024_v14 = vsel %vm1023_vm7, %v1007_v17, %v700_v63  ;;  %v1025_v24 = vsel %vm1023_vm7, %v1008_v37, %v701_v27  ;;  %v209_v10 = vpop.permute.xlu2 %208 }
 0x100   : > { %v1026_v3 = vsel %vm1023_vm7, %v1009_v29, %v702_v23  ;;  %v1041_v8 = vsel %vm1040_vm8, %v1024_v14, %v732_v9  ;;  %v1042_v46 = vsel %vm1040_vm8, %v1025_v24, %v733_v54  ;;  %v7519_v44 = vsel %vm213_vm3, %v209_v10, 0.0 }
 0x101   : > { %v1043_v12 = vsel %vm1040_vm8, %v1026_v3, %v734_v16 }
 0x102   : > { %v372_v43 = vld [vmem:[#allocation1] ss:$9 sm:$0xff] }
 0x103   : > { %374 = vst [vmem:[#allocation1] sm:$0xff] %v7369_v52  ;;  %v747_v62 = vperm.slane %v372_v43, 0 }
 0x105   : > { %v1056_v45 = vsel %vm1040_vm8, %v7444_v13, %v747_v62 }
 0x10a   : > { %v376_v11 = vld [vmem:[#allocation1 + $0x1] ss:$9 sm:$0xff]  ;;  %v380_v56 = vld [vmem:[#allocation1 + $0x3] ss:$9 sm:$0xff] }
 0x10b   : > { %v378_v41 = vld [vmem:[#allocation1 + $0x2] ss:$9 sm:$0xff]  ;;  %v7497_v35 = vld [vmem:[#allocation1 + $0x4] ss:$9 sm:$0xff]  ;;  %v764_v51 = vperm.slane %v376_v11, 0  ;;  %v766_v1 = vperm.slane %v380_v56, 0 }
 0x10c   : > { %11353 = vst [vmem:[#allocation39_spill] sm:$0xff] %v7497_v35  ;;  %v7499_v28 = vld [vmem:[#allocation1 + $0x5] ss:$9 sm:$0xff]  ;;  %v7506_v19 = vld [vmem:[#allocation1 + $0x7] ss:$9 sm:$0xff]  ;;  %v765_v49 = vperm.slane %v378_v41, 0 }
 0x10d   : > { %11354 = vst [vmem:[#allocation40_spill] sm:$0xff] %v7499_v28  ;;  %v7501_v55 = vld [vmem:[#allocation1 + $0x6] ss:$9 sm:$0xff]  ;;  %v1058_v23 = vsel %vm1057_vm9, %v1041_v8, %v764_v51  ;;  %v1060_v63 = vsel %vm1057_vm9, %v1043_v12, %v766_v1 }
 0x10e   : > { %11355 = vst [vmem:[#allocation41_spill] sm:$0xff] %v7501_v55  ;;  %v1059_v0 = vsel %vm1057_vm9, %v1042_v46, %v765_v49  ;;  %1186 = vxpose.xlu0.b32.start [1/2] (short) (narrow) %v1058_v23, 16  ;;  %1250 = vxpose.xlu2.b32.start [1/2] (short) (narrow) %v1060_v63, 16 }
 0x10f   : > { %11356 = vst [vmem:[#allocation42_spill] sm:$0xff] %v7506_v19  ;;  %1218 = vxpose.xlu1.b32.start [1/2] (short) (narrow) %v1059_v0, 16  ;;  %v270_v19 = vrot.slane %v7220_v5, 1 }
 0x110   : > { %389 = vst [vmem:[#allocation1] sm:$0xff] %v7416_v53 }
 0x117   : > { %v390_v27 = vld [vmem:[#allocation1] ss:$9 sm:$0xff]  ;;  %v7523_v43 = vld [vmem:[#allocation1 + $0x2] ss:$9 sm:$0xff] }
 0x118   : > { %v7521_v6 = vld [vmem:[#allocation1 + $0x1] ss:$9 sm:$0xff]  ;;  %11358 = vst [vmem:[#allocation44_spill] sm:$0xff] %v7523_v43  ;;  %v7525_v9 = vld [vmem:[#allocation1 + $0x3] ss:$9 sm:$0xff]  ;;  %v771_v56 = vperm.slane %v390_v27, 0 }
 0x119   : > { %11357 = vst [vmem:[#allocation43_spill] sm:$0xff] %v7521_v6  ;;  %v7527_v16 = vld [vmem:[#allocation1 + $0x4] ss:$9 sm:$0xff]  ;;  %v7531_v11 = vld [vmem:[#allocation1 + $0x6] ss:$9 sm:$0xff] }
 0x11a   : > { %11359 = vst [vmem:[#allocation45_spill] sm:$0xff] %v7525_v9  ;;  %v7529_v54 = vld [vmem:[#allocation1 + $0x5] ss:$9 sm:$0xff]  ;;  %v7533_v41 = vld [vmem:[#allocation1 + $0x7] ss:$9 sm:$0xff]  ;;  %v7538_v13 = vsel %vm1057_vm9, %v7464_v48, %v771_v56 }
 0x11b   : > { %11360 = vst [vmem:[#allocation46_spill] sm:$0xff] %v7527_v16 }
 0x11c   : > { %11361 = vst [vmem:[#allocation47_spill] sm:$0xff] %v7529_v54 }
 0x11d   : > { %11362 = vst [vmem:[#allocation48_spill] sm:$0xff] %v7531_v11 }
 0x11e   : > { %11363 = vst [vmem:[#allocation49_spill] sm:$0xff] %v7533_v41 }
 0x11f   : > { %398 = vst [vmem:[#allocation1] sm:$0xff] %v7519_v44 }
 0x120   : > { %11364 = vst [vmem:[#allocation50_spill] sm:$0xff] %v7538_v13 }
 0x126   : > { %v399_v17 = vld [vmem:[#allocation1] ss:$9 sm:$0xff] }
 0x127   : > { %400 = vst [vmem:[#allocation1] sm:$0xff] %v7320_v25  ;;  %v779_v29 = vperm.slane %v399_v17, 0 }
 0x129   : > { %v7542_v14 = vsel %vm1057_vm9, %v1056_v45, %v779_v29 }
 0x12a   : > { %11365 = vst [vmem:[#allocation51_spill] sm:$0xff] %v7542_v14 }
 0x12e   : > { %v7544_v3 = vld [vmem:[#allocation1 + $0x2] ss:$9 sm:$0xff]  ;;  %v7548_v51 = vld [vmem:[#allocation1 + $0x4] ss:$9 sm:$0xff] }
 0x12f   : > { %v7546_v37 = vld [vmem:[#allocation1 + $0x3] ss:$9 sm:$0xff]  ;;  %11367 = vst [vmem:[#allocation53_spill] sm:$0xff] %v7548_v51  ;;  %v7550_v1 = vld [vmem:[#allocation1 + $0x5] ss:$9 sm:$0xff] }
 0x130   : > { %11366 = vst [vmem:[#allocation52_spill] sm:$0xff] %v7546_v37  ;;  %v7552_v49 = vld [vmem:[#allocation1 + $0x6] ss:$9 sm:$0xff] }
 0x131   : > { %11368 = vst [vmem:[#allocation54_spill] sm:$0xff] %v7550_v1  ;;  %v7554_v24 = vld [vmem:[#allocation1 + $0x7] ss:$9 sm:$0xff]  ;;  %v254_v1 = vrot.slane %v7362_v47, 6 }
 0x132   : > { %11369 = vst [vmem:[#allocation55_spill] sm:$0xff] %v7552_v49 }
 0x133   : > { %11370 = vst [vmem:[#allocation56_spill] sm:$0xff] %v7554_v24 }
 0x134   : > { %413 = vst [vmem:[#allocation1] sm:$0xff] %v7340_v34 }
 0x13b   : > { %v414_v48 = vld [vmem:[#allocation1] ss:$9 sm:$0xff]  ;;  %v7559_v12 = vld [vmem:[#allocation1 + $0x2] ss:$9 sm:$0xff] }
 0x13c   : > { %v7557_v8 = vld [vmem:[#allocation1 + $0x1] ss:$9 sm:$0xff]  ;;  %11372 = vst [vmem:[#allocation58_spill] sm:$0xff] %v7559_v12  ;;  %v7561_v46 = vld [vmem:[#allocation1 + $0x3] ss:$9 sm:$0xff] }
 0x13d   : > { %11371 = vst [vmem:[#allocation57_spill] sm:$0xff] %v7557_v8  ;;  %v7563_v62 = vld [vmem:[#allocation1 + $0x4] ss:$9 sm:$0xff]  ;;  %v7567_v63 = vld [vmem:[#allocation1 + $0x6] ss:$9 sm:$0xff] }
 0x13e   : > { %11373 = vst [vmem:[#allocation59_spill] sm:$0xff] %v7561_v46  ;;  %v7565_v23 = vld [vmem:[#allocation1 + $0x5] ss:$9 sm:$0xff]  ;;  %v7569_v0 = vld [vmem:[#allocation1 + $0x7] ss:$9 sm:$0xff] }
 0x13f   : > { %11374 = vst [vmem:[#allocation60_spill] sm:$0xff] %v7563_v62 }
 0x140   : > { %11375 = vst [vmem:[#allocation61_spill] sm:$0xff] %v7565_v23 }
 0x141   : > { %11376 = vst [vmem:[#allocation62_spill] sm:$0xff] %v7567_v63 }
 0x142   : > { %11377 = vst [vmem:[#allocation63_spill] sm:$0xff] %v7569_v0 }
 0x143   : > { %423 = vst [vmem:[#allocation1] sm:$0xff] %v7344_v36 }
 0x14a   : > { %v424_v10 = vld [vmem:[#allocation1] ss:$9 sm:$0xff] }
 0x14b   : > { %v7572_v45 = vld [vmem:[#allocation1 + $0x1] ss:$9 sm:$0xff] }
 0x14c   : > { %11378 = vst [vmem:[#allocation64_spill] sm:$0xff] %v7572_v45 }
 0x14d   : > { %442 = vst [vmem:[#allocation1] sm:$0xff] %v7362_v47 }
 0x154   : > { %v7575_v27 = vld [vmem:[#allocation1 + $0x2] ss:$9 sm:$0xff]  ;;  %v7579_v17 = vld [vmem:[#allocation1 + $0x4] ss:$9 sm:$0xff] }
 0x155   : > { %v7577_v56 = vld [vmem:[#allocation1 + $0x3] ss:$9 sm:$0xff]  ;;  %v7581_v29 = vld [vmem:[#allocation1 + $0x5] ss:$9 sm:$0xff] }
 0x156   : > { %11379 = vst [vmem:[#allocation65_spill] sm:$0xff] %v7581_v29  ;;  %v7583_v41 = vld [vmem:[#allocation1 + $0x6] ss:$9 sm:$0xff]  ;;  %v578_v29 = vperm.slane %v254_v1, 0 }
 0x157   : > { %11380 = vst [vmem:[#allocation66_spill] sm:$0xff] %v7583_v41  ;;  %v7585_v14 = vld [vmem:[#allocation1 + $0x7] ss:$9 sm:$0xff] }
 0x158   : > { %11381 = vst [vmem:[#allocation67_spill] sm:$0xff] %v7585_v14 }
 0x159   : > { %455 = vst [vmem:[#allocation1] sm:$0xff] %v7385_v60 }
 0x160   : > { %v456_v0 = vld [vmem:[#allocation1] ss:$9 sm:$0xff]  ;;  %v7590_v45 = vld [vmem:[#allocation1 + $0x2] ss:$9 sm:$0xff] }
 0x161   : > { %v7588_v23 = vld [vmem:[#allocation1 + $0x1] ss:$9 sm:$0xff]  ;;  %11383 = vst [vmem:[#allocation69_spill] sm:$0xff] %v7590_v45  ;;  %v7592_v11 = vld [vmem:[#allocation1 + $0x3] ss:$9 sm:$0xff]  ;;  %v802_v54 = vperm.slane %v456_v0, 0 }
 0x162   : > { %11382 = vst [vmem:[#allocation68_spill] sm:$0xff] %v7588_v23  ;;  %v7594_v16 = vld [vmem:[#allocation1 + $0x4] ss:$9 sm:$0xff]  ;;  %v7598_v62 = vld [vmem:[#allocation1 + $0x6] ss:$9 sm:$0xff] }
 0x163   : > { %11384 = vst [vmem:[#allocation70_spill] sm:$0xff] %v7592_v11  ;;  %v7596_v63 = vld [vmem:[#allocation1 + $0x5] ss:$9 sm:$0xff]  ;;  %v7600_v12 = vld [vmem:[#allocation1 + $0x7] ss:$9 sm:$0xff]  ;;  %v1080_v9 = vsel %vm956_vm4, %v414_v48, %v802_v54 }
 0x164   : > { %11385 = vst [vmem:[#allocation71_spill] sm:$0xff] %v7594_v16 }
 0x165   : > { %11386 = vst [vmem:[#allocation72_spill] sm:$0xff] %v7596_v63 }
 0x166   : > { %11387 = vst [vmem:[#allocation73_spill] sm:$0xff] %v7598_v62 }
 0x167   : > { %11388 = vst [vmem:[#allocation74_spill] sm:$0xff] %v7600_v12 }
 0x168   : > { %465 = vst [vmem:[#allocation1] sm:$0xff] %v7394_v7 }
 0x16f   : > { %v466_v6 = vld [vmem:[#allocation1] ss:$9 sm:$0xff] }
 0x170   : > { %v7604_v13 = vld [vmem:[#allocation1 + $0x1] ss:$9 sm:$0xff]  ;;  %v810_v45 = vperm.slane %v466_v6, 0 }
 0x171   : > { %11389 = vst [vmem:[#allocation75_spill] sm:$0xff] %v7604_v13 }
 0x172   : > { %468 = vst [vmem:[#allocation1] sm:$0xff] %v7212_v4  ;;  %v1088_v54 = vsel %vm956_vm4, %v424_v10, %v810_v45 }
 0x179   : > { %v7607_v46 = vld [vmem:[#allocation1 + $0x2] ss:$9 sm:$0xff]  ;;  %v7611_v63 = vld [vmem:[#allocation1 + $0x4] ss:$9 sm:$0xff] }
 0x17a   : > { %v7609_v16 = vld [vmem:[#allocation1 + $0x3] ss:$9 sm:$0xff]  ;;  %v7613_v62 = vld [vmem:[#allocation1 + $0x5] ss:$9 sm:$0xff] }
 0x17b   : > { %11390 = vst [vmem:[#allocation76_spill] sm:$0xff] %v7613_v62  ;;  %v7615_v12 = vld [vmem:[#allocation1 + $0x6] ss:$9 sm:$0xff]  ;;  %v283_v62 = vrot.slane %v7369_v52, 5 }
 0x17c   : > { %11391 = vst [vmem:[#allocation77_spill] sm:$0xff] %v7615_v12  ;;  %v7617_v0 = vld [vmem:[#allocation1 + $0x7] ss:$9 sm:$0xff]  ;;  %v672_v12 = vperm.slane %v7333_v31, 0 }
 0x17d   : > { %11392 = vst [vmem:[#allocation78_spill] sm:$0xff] %v7617_v0 }
 0x17e   : > { %481 = vst [vmem:[#allocation1] sm:$0xff] %v7220_v5 }
 0x185   : > { %v482_v48 = vld [vmem:[#allocation1] ss:$9 sm:$0xff]  ;;  %v7623_v6 = vld [vmem:[#allocation1 + $0x2] ss:$9 sm:$0xff] }
 0x186   : > { %v7621_v13 = vld [vmem:[#allocation1 + $0x1] ss:$9 sm:$0xff]  ;;  %11394 = vst [vmem:[#allocation80_spill] sm:$0xff] %v7623_v6  ;;  %v7625_v8 = vld [vmem:[#allocation1 + $0x3] ss:$9 sm:$0xff]  ;;  %v834_v0 = vperm.slane %v482_v48, 0 }
 0x187   : > { %11393 = vst [vmem:[#allocation79_spill] sm:$0xff] %v7621_v13  ;;  %v7627_v24 = vld [vmem:[#allocation1 + $0x4] ss:$9 sm:$0xff]  ;;  %v7631_v23 = vld [vmem:[#allocation1 + $0x6] ss:$9 sm:$0xff] }
 0x188   : > { %11395 = vst [vmem:[#allocation81_spill] sm:$0xff] %v7625_v8  ;;  %v7629_v11 = vld [vmem:[#allocation1 + $0x5] ss:$9 sm:$0xff]  ;;  %v7633_v14 = vld [vmem:[#allocation1 + $0x7] ss:$9 sm:$0xff]  ;;  %v7637_v10 = vsel %vm973_vm5, %v1080_v9, %v834_v0 }
 0x189   : > { %11396 = vst [vmem:[#allocation82_spill] sm:$0xff] %v7627_v24 }
 0x18a   : > { %11397 = vst [vmem:[#allocation83_spill] sm:$0xff] %v7629_v11 }
 0x18b   : > { %11398 = vst [vmem:[#allocation84_spill] sm:$0xff] %v7631_v23 }
 0x18c   : > { %11399 = vst [vmem:[#allocation85_spill] sm:$0xff] %v7633_v14 }
 0x18d   : > { %491 = vst [vmem:[#allocation1] sm:$0xff] %v7207_v2 }
 0x18e   : > { %11400 = vst [vmem:[#allocation86_spill] sm:$0xff] %v7637_v10 }
 0x194   : > { %v492_v45 = vld [vmem:[#allocation1] ss:$9 sm:$0xff] }
 0x195   : > { %v7639_v13 = vld [vmem:[#allocation1 + $0x1] ss:$9 sm:$0xff]  ;;  %v842_v6 = vperm.slane %v492_v45, 0 }
 0x196   : > { %11401 = vst [vmem:[#allocation87_spill] sm:$0xff] %v7639_v13 }
 0x197   : > { %494 = vst [vmem:[#allocation1] sm:$0xff] %v7369_v52  ;;  %v1104_v24 = vsel %vm973_vm5, %v1088_v54, %v842_v6 }
 0x19e   : > { %v7643_v8 = vld [vmem:[#allocation1 + $0x2] ss:$9 sm:$0xff]  ;;  %v7647_v23 = vld [vmem:[#allocation1 + $0x4] ss:$9 sm:$0xff] }
 0x19f   : > { %v7645_v11 = vld [vmem:[#allocation1 + $0x3] ss:$9 sm:$0xff]  ;;  %v7649_v48 = vld [vmem:[#allocation1 + $0x5] ss:$9 sm:$0xff] }
 0x1a0   : > { %11402 = vst [vmem:[#allocation88_spill] sm:$0xff] %v7649_v48  ;;  %v7651_v2 = vld [vmem:[#allocation1 + $0x6] ss:$9 sm:$0xff]  ;;  %v268_v48 = vrot.slane %v7212_v4, 6 }
 0x1a1   : > { %11403 = vst [vmem:[#allocation89_spill] sm:$0xff] %v7651_v2  ;;  %v7653_v9 = vld [vmem:[#allocation1 + $0x7] ss:$9 sm:$0xff]  ;;  %v282_v2 = vrot.slane %v7369_v52, 4 }
 0x1a2   : > { %11404 = vst [vmem:[#allocation90_spill] sm:$0xff] %v7653_v9  ;;  %v610_v18 = vperm.slane %v268_v48, 0 }
 0x1a3   : > { %507 = vst [vmem:[#allocation1] sm:$0xff] %v7416_v53 }
 0x1aa   : > { %v7656_v0 = vld [vmem:[#allocation1] ss:$9 sm:$0xff]  ;;  %v7660_v45 = vld [vmem:[#allocation1 + $0x2] ss:$9 sm:$0xff] }
 0x1ab   : > { %11405 = vst [vmem:[#allocation91_spill] sm:$0xff] %v7656_v0  ;;  %v7658_v13 = vld [vmem:[#allocation1 + $0x1] ss:$9 sm:$0xff]  ;;  %v7662_v54 = vld [vmem:[#allocation1 + $0x3] ss:$9 sm:$0xff]  ;;  %v253_v0 = vrot.slane %v7362_v47, 5 }
 0x1ac   : > { %11406 = vst [vmem:[#allocation92_spill] sm:$0xff] %v7658_v13  ;;  %v7664_v6 = vld [vmem:[#allocation1 + $0x4] ss:$9 sm:$0xff]  ;;  %v7668_v43 = vld [vmem:[#allocation1 + $0x6] ss:$9 sm:$0xff] }
 0x1ad   : > { %11407 = vst [vmem:[#allocation93_spill] sm:$0xff] %v7660_v45  ;;  %v7666_v14 = vld [vmem:[#allocation1 + $0x5] ss:$9 sm:$0xff]  ;;  %v7670_v55 = vld [vmem:[#allocation1 + $0x7] ss:$9 sm:$0xff]  ;;  %v251_v45 = vrot.slane %v7362_v47, 3 }
 0x1ae   : > { %11408 = vst [vmem:[#allocation94_spill] sm:$0xff] %v7662_v54  ;;  %v252_v54 = vrot.slane %v7362_v47, 4  ;;  %v577_v35 = vperm.slane %v253_v0, 0 }
 0x1af   : > { %11409 = vst [vmem:[#allocation95_spill] sm:$0xff] %v7664_v6  ;;  %v575_v21 = vperm.slane %v251_v45, 0  ;;  %v281_v45 = vrot.slane %v7369_v52, 3 }
 0x1b0   : > { %11410 = vst [vmem:[#allocation96_spill] sm:$0xff] %v7666_v14  ;;  %v221_v14 = vrot.slane %v7320_v25, 3  ;;  %v576_v7 = vperm.slane %v252_v54, 0 }
 0x1b1   : > { %11411 = vst [vmem:[#allocation97_spill] sm:$0xff] %v7668_v43  ;;  %v265_v43 = vrot.slane %v7212_v4, 3  ;;  %v639_v20 = vperm.slane %v281_v45, 0  ;;  %v703_v45 = vperm.slane %v7378_v57, 0 }
 0x1b2   : > { %11412 = vst [vmem:[#allocation98_spill] sm:$0xff] %v7670_v55  ;;  %v222_v55 = vrot.slane %v7320_v25, 4  ;;  %v960_v28 = vsel %vm956_vm4, %v221_v14, %v575_v21 }
 0x1b3   : > { %517 = vst [vmem:[#allocation1] sm:$0xff] %v7519_v44  ;;  %v224_v44 = vrot.slane %v7320_v25, 6  ;;  %v607_v54 = vperm.slane %v265_v43, 0  ;;  %v286_v43 = vrot.slane %v7416_v53, 1 }
 0x1b4   : > { %v961_v41 = vsel %vm956_vm4, %v222_v55, %v576_v7 }
 0x1b5   : > { %v645_v51 = vperm.slane %v286_v43, 0  ;;  %v963_v55 = vsel %vm956_vm4, %v224_v44, %v578_v29  ;;  %v674_v44 = vperm.slane %v7337_v33, 0  ;;  %v11420_v43 = vperm.slane %v7331_v30, 0 }
 0x1b6   : > { %v227_v30 = vrot.slane %v7340_v34, 2 }
 0x1ba   : > { %v518_v9 = vld [vmem:[#allocation1] ss:$9 sm:$0xff] }
 0x1bb   : > { %v7673_v26 = vld [vmem:[#allocation1 + $0x1] ss:$9 sm:$0xff]  ;;  %v874_v13 = vperm.slane %v518_v9, 0  ;;  %v223_v9 = vrot.slane %v7320_v25, 5 }
 0x1bc   : > { %11413 = vst [vmem:[#allocation99_spill] sm:$0xff] %v7673_v26  ;;  %v256_v26 = vrot.slane %v7385_v60, 1 }
 0x1bd   : > { %520 = vst [vmem:[#allocation1] sm:$0xff] %v7320_v25  ;;  %v7679_v6 = vsel %vm171_vm0, %v1104_v24, %v874_v13  ;;  %v266_v25 = vrot.slane %v7212_v4, 4  ;;  %v962_v14 = vsel %vm956_vm4, %v223_v9, %v577_v35  ;;  %v612_v9 = vperm.slane %v7220_v5, 0 }
 0x1be   : > { %11414 = vst [vmem:[#allocation100_spill] sm:$0xff] %v7679_v6  ;;  %v581_v50 = vperm.slane %v256_v26, 0 }
 0x1bf   : > { %v608_v22 = vperm.slane %v266_v25, 0  ;;  %v705_v25 = vperm.slane %v7382_v59, 0  ;;  %v271_v59 = vrot.slane %v7220_v5, 2 }
 0x1c4   : > { %v7687_v10 = vld [vmem:[#allocation1 + $0x3] ss:$9 sm:$0xff]  ;;  %v7691_v13 = vld [vmem:[#allocation1 + $0x5] ss:$9 sm:$0xff] }
 0x1c5   : > { %11415 = vst [vmem:[#allocation101_spill] sm:$0xff] %v7687_v10  ;;  %v7689_v49 = vld [vmem:[#allocation1 + $0x4] ss:$9 sm:$0xff]  ;;  %v7693_v24 = vld [vmem:[#allocation1 + $0x6] ss:$9 sm:$0xff] }
 0x1c6   : > { %11416 = vst [vmem:[#allocation102_spill] sm:$0xff] %v7689_v49  ;;  %v7695_v6 = vld [vmem:[#allocation1 + $0x7] ss:$9 sm:$0xff]  ;;  %v613_v49 = vperm.slane %v270_v19, 0  ;;  %v977_v19 = vsel %vm973_vm5, %v960_v28, %v607_v54  ;;  %v980_v28 = vsel %vm973_vm5, %v963_v55, %v610_v18  ;;  %v704_v54 = vperm.slane %v7380_v58, 0 }
 0x1c7   : > { %11417 = vst [vmem:[#allocation103_spill] sm:$0xff] %v7691_v13  ;;  %v580_v13 = vperm.slane %v7385_v60, 0  ;;  %v993_v29 = vsel %vm171_vm0, %v977_v19, %v639_v20  ;;  %v673_v20 = vperm.slane %v7335_v32, 0 }
 0x1c8   : > { %11418 = vst [vmem:[#allocation104_spill] sm:$0xff] %v7693_v24  ;;  %v284_v24 = vrot.slane %v7369_v52, 6  ;;  %v641_v52 = vperm.slane %v283_v62, 0  ;;  %v978_v62 = vsel %vm973_vm5, %v961_v41, %v608_v22 }
 0x1c9   : > { %11419 = vst [vmem:[#allocation105_spill] sm:$0xff] %v7695_v6  ;;  %v267_v6 = vrot.slane %v7212_v4, 5  ;;  %v640_v4 = vperm.slane %v282_v2, 0  ;;  %v966_v2 = vsel %vm956_vm4, %v226_v15, %v581_v50  ;;  %v644_v15 = vperm.slane %v7416_v53, 0 }
 0x1ca   : > { %531 = vst [vmem:[#allocation1] sm:$0xff] %v7340_v34  ;;  %v642_v31 = vperm.slane %v284_v24, 0  ;;  %v965_v50 = vsel %vm956_vm4, %v7340_v34, %v580_v13  ;;  %v983_v33 = vsel %vm973_vm5, %v966_v2, %v613_v49  ;;  %v706_v13 = vperm.slane %v7387_v61, 0 }
 0x1cb   : > { %v609_v37 = vperm.slane %v267_v6, 0  ;;  %v994_v35 = vsel %vm171_vm0, %v978_v62, %v640_v4  ;;  %v999_v18 = vsel %vm171_vm0, %v983_v33, %v645_v51  ;;  %v982_v32 = vsel %vm973_vm5, %v965_v50, %v612_v9 }
 0x1cc   : > { %v996_v41 = vsel %vm171_vm0, %v980_v28, %v642_v31  ;;  %v1010_v49 = vsel %vm1006_vm6, %v993_v29, %v11420_v43  ;;  %v1011_v57 = vsel %vm1006_vm6, %v994_v35, %v672_v12  ;;  %v257_v51 = vrot.slane %v7385_v60, 2 }
 0x1cd   : > { %v979_v22 = vsel %vm973_vm5, %v962_v14, %v609_v37  ;;  %v676_v37 = vperm.slane %v7346_v38, 0  ;;  %v1013_v38 = vsel %vm1006_vm6, %v996_v41, %v674_v44  ;;  %v7771_v4 = vsel %vm1023_vm7, %v1010_v49, %v703_v45 }
 0x1ce   : > { %v995_v24 = vsel %vm171_vm0, %v979_v22, %v641_v52  ;;  %v287_v12 = vrot.slane %v7416_v53, 2  ;;  %v7783_v19 = vsel %vm1023_vm7, %v1011_v57, %v704_v54  ;;  %v7786_v62 = vsel %vm1023_vm7, %v1013_v38, %v706_v13  ;;  %v11421_v54 = vld [vmem:[#allocation101_spill] sm:$0xff]  ;;  %v11422_v13 = vld [vmem:[#allocation103_spill] sm:$0xff]  ;;  %v11426_v57 = vld [vmem:[#allocation22_spill] sm:$0xff] }
 0x1cf   : > { %v1012_v58 = vsel %vm1006_vm6, %v995_v24, %v673_v20  ;;  %v796_v35 = vperm.slane %v7575_v27, 0  ;;  %v582_v44 = vperm.slane %v257_v51, 0  ;;  %v229_v9 = vrot.slane %v7340_v34, 4 }
 0x1d0   : > { %v7789_v2 = vsel %vm1023_vm7, %v1012_v58, %v705_v25  ;;  %v259_v28 = vrot.slane %v7385_v60, 4  ;;  %v798_v22 = vperm.slane %v7579_v17, 0  ;;  %v273_v50 = vrot.slane %v7220_v5, 4 }
 0x1d1   : > { %v7715_v10 = vld [vmem:[#allocation1] ss:$9 sm:$0xff]  ;;  %v7719_v7 = vld [vmem:[#allocation1 + $0x2] ss:$9 sm:$0xff]  ;;  %v289_v41 = vrot.slane %v7416_v53, 4  ;;  %v828_v20 = vperm.slane %v7607_v46, 0  ;;  %v967_v46 = vsel %vm956_vm4, %v227_v30, %v582_v44 }
 0x1d2   : > { %v7717_v21 = vld [vmem:[#allocation1 + $0x1] ss:$9 sm:$0xff]  ;;  %v7723_v26 = vld [vmem:[#allocation1 + $0x3] ss:$9 sm:$0xff]  ;;  %v830_v24 = vperm.slane %v7611_v63, 0  ;;  %v646_v33 = vperm.slane %v287_v12, 0 }
 0x1d3   : > { %v7725_v1 = vld [vmem:[#allocation1 + $0x4] ss:$9 sm:$0xff]  ;;  %v7732_v0 = vld [vmem:[#allocation1 + $0x6] ss:$9 sm:$0xff]  ;;  %v860_v27 = vperm.slane %v7643_v8, 0  ;;  %v862_v45 = vperm.slane %v7647_v23, 0 }
 0x1d4   : > { %v7727_v48 = vld [vmem:[#allocation1 + $0x5] ss:$9 sm:$0xff]  ;;  %v7734_v6 = vld [vmem:[#allocation1 + $0x7] ss:$9 sm:$0xff]  ;;  %v228_v63 = vrot.slane %v7340_v34, 3  ;;  %v894_v25 = vperm.slane %v11422_v13, 0 }
 0x1d5   : > { %542 = vst [vmem:[#allocation1] sm:$0xff] %v7344_v36  ;;  %v677_v36 = vperm.slane %v7348_v39, 0  ;;  %v998_v39 = vsel %vm171_vm0, %v982_v32, %v644_v15  ;;  %v614_v15 = vperm.slane %v271_v59, 0  ;;  %v11423_v8 = vld [vmem:[#allocation53_spill] sm:$0xff]  ;;  %v11424_v32 = vld [vmem:[#allocation102_spill] sm:$0xff] }
 0x1d6   : > { %v7792_v29 = vsel %vm1006_vm6, %v998_v39, %v676_v37  ;;  %v861_v37 = vperm.slane %v7645_v11, 0  ;;  %v1076_v23 = vsel %vm956_vm4, %v11423_v8, %v798_v22  ;;  %v709_v39 = vperm.slane %v11426_v57, 0 }
 0x1d7   : > { %v7767_v61 = vsel %vm1006_vm6, %v999_v18, %v677_v36  ;;  %v829_v36 = vperm.slane %v7609_v16, 0  ;;  %v1074_v18 = vsel %vm956_vm4, %v7544_v3, %v796_v35  ;;  %v893_v16 = vperm.slane %v11424_v32, 0  ;;  %v11425_v3 = vld [vmem:[#allocation52_spill] sm:$0xff]  ;;  %v11428_v32 = vld [vmem:[#allocation21_spill] sm:$0xff] }
 0x1d8   : > { %v1090_v43 = vsel %vm973_vm5, %v1074_v18, %v828_v20  ;;  %v1092_v49 = vsel %vm973_vm5, %v1076_v23, %v830_v24  ;;  %v984_v35 = vsel %vm973_vm5, %v967_v46, %v614_v15 }
 0x1d9   : > { %v1106_v38 = vsel %vm171_vm0, %v1090_v43, %v860_v27  ;;  %v1108_v59 = vsel %vm171_vm0, %v1092_v49, %v862_v45  ;;  %v7836_v45 = vsel %vm171_vm0, %v984_v35, %v646_v33 }
 0x1dc   : > { %v7776_v52 = vld [vmem:[#allocation1] ss:$9 sm:$0xff]  ;;  %v7780_v14 = vld [vmem:[#allocation1 + $0x2] ss:$9 sm:$0xff] }
 0x1dd   : > { %v7778_v55 = vld [vmem:[#allocation1 + $0x1] ss:$9 sm:$0xff] }
 0x1de   : > { %546 = vst [vmem:[#allocation1] sm:$0xff] %v7362_v47  ;;  %v797_v47 = vperm.slane %v7577_v56, 0  ;;  %v892_v56 = vperm.slane %v11421_v54, 0  ;;  %v1124_v54 = vsel %vm1006_vm6, %v1108_v59, %v894_v25  ;;  %v258_v59 = vrot.slane %v7385_v60, 3 }
 0x1e0   : > { %v1075_v11 = vsel %vm956_vm4, %v11425_v3, %v797_v47  ;;  %v1122_v47 = vsel %vm1006_vm6, %v1106_v38, %v892_v56  ;;  %v584_v3 = vperm.slane %v259_v28, 0  ;;  %v11430_v38 = vld [vmem:[#allocation31_spill] sm:$0xff] }
 0x1e1   : > { %v1091_v12 = vsel %vm973_vm5, %v1075_v11, %v829_v36  ;;  %v11429_v11 = vld [vmem:[#allocation29_spill] sm:$0xff] }
 0x1e2   : > { %v1107_v24 = vsel %vm171_vm0, %v1091_v12, %v861_v37  ;;  %v11427_v37 = vld [vmem:[#allocation28_spill] sm:$0xff]  ;;  %v11431_v12 = vld [vmem:[#allocation39_spill] sm:$0xff] }
 0x1e3   : > { %v1123_v27 = vsel %vm1006_vm6, %v1107_v24, %v893_v16  ;;  %v735_v8 = vperm.slane %v11427_v37, 0  ;;  %v708_v16 = vperm.slane %v11428_v32, 0  ;;  %v767_v35 = vperm.slane %v11431_v12, 0  ;;  %v11433_v24 = vld [vmem:[#allocation66_spill] sm:$0xff]  ;;  %v11437_v37 = vld [vmem:[#allocation77_spill] sm:$0xff] }
 0x1e4   : > { %v800_v28 = vperm.slane %v11433_v24, 0  ;;  %v11442_v12 = vld [vmem:[#allocation105_spill] sm:$0xff] }
 0x1e5   : > { %v548_v51 = vld [vmem:[#allocation1 + $0x3] ss:$9 sm:$0xff]  ;;  %v552_v58 = vld [vmem:[#allocation1 + $0x5] ss:$9 sm:$0xff] }
 0x1e6   : > { %v550_v30 = vld [vmem:[#allocation1 + $0x4] ss:$9 sm:$0xff]  ;;  %v924_v44 = vperm.slane %v548_v51, 0  ;;  %v926_v22 = vperm.slane %v552_v58, 0  ;;  %v7828_v18 = vld [vmem:[#allocation1 + $0x6] ss:$9 sm:$0xff] }
 0x1e7   : > { %v925_v20 = vperm.slane %v550_v30, 0  ;;  %v7833_v13 = vld [vmem:[#allocation1 + $0x7] ss:$9 sm:$0xff]  ;;  %v736_v51 = vperm.slane %v11429_v11, 0  ;;  %v738_v58 = vperm.slane %v11430_v38, 0  ;;  %v272_v30 = vrot.slane %v7220_v5, 3 }
 0x1e8   : > { %v1138_v15 = vsel %vm1023_vm7, %v1122_v47, %v924_v44  ;;  %v1140_v36 = vsel %vm1023_vm7, %v1124_v54, %v926_v22  ;;  %557 = vst [vmem:[#allocation1] sm:$0xff] %v7385_v60  ;;  %v1044_v44 = vsel %vm1040_vm8, %v7771_v4, %v735_v8  ;;  %v11432_v22 = vld [vmem:[#allocation65_spill] sm:$0xff]  ;;  %v11434_v47 = vld [vmem:[#allocation40_spill] sm:$0xff]  ;;  %v11441_v38 = vld [vmem:[#allocation91_spill] sm:$0xff]  ;;  %v927_v8 = vperm.slane %v7828_v18, 0 }
 0x1e9   : > { %v1139_v46 = vsel %vm1023_vm7, %v1123_v27, %v925_v20  ;;  %v1154_v56 = vsel %vm1040_vm8, %v1138_v15, 0.0  ;;  %v1156_v25 = vsel %vm1040_vm8, %v1140_v36, 0.0  ;;  %v799_v20 = vperm.slane %v11432_v22, 0  ;;  %v11435_v27 = vld [vmem:[#allocation42_spill] sm:$0xff]  ;;  %v11436_v36 = vld [vmem:[#allocation76_spill] sm:$0xff] }
 0x1ea   : > { %v1155_v23 = vsel %vm1040_vm8, %v1139_v46, 0.0  ;;  %v1170_v33 = vsel %vm1057_vm9, %v1154_v56, 0.0  ;;  %v1172_v43 = vsel %vm1057_vm9, %v1156_v25, 0.0  ;;  %v768_v54 = vperm.slane %v11434_v47, 0  ;;  %v11438_v25 = vld [vmem:[#allocation88_spill] sm:$0xff] }
 0x1eb   : > { %v1171_v49 = vsel %vm1057_vm9, %v1155_v23, 0.0  ;;  %1187 = vxpose.xlu0.b32.end [2/2] (short) (narrow) %v1170_v33, 16  ;;  %1251 = vxpose.xlu2.b32.end [2/2] (short) (narrow) %v1172_v43, 16  ;;  %v770_v15 = vperm.slane %v11435_v27, 0  ;;  %v831_v46 = vperm.slane %v11436_v36, 0  ;;  %v832_v56 = vperm.slane %v11437_v37, 0 }
 0x1ec   : > { %1219 = vxpose.xlu1.b32.end [2/2] (short) (narrow) %v1171_v49, 16  ;;  %v863_v23 = vperm.slane %v11438_v25, 0  ;;  %v11439_v33 = vld [vmem:[#allocation104_spill] sm:$0xff]  ;;  %v11440_v49 = vld [vmem:[#allocation89_spill] sm:$0xff]  ;;  %v866_v4 = vperm.slane %v11441_v38, 0  ;;  %v896_v22 = vperm.slane %v11442_v12, 0  ;;  %v1045_v36 = vsel %vm1040_vm8, %v7783_v19, %v736_v51 }
 0x1ed   : > { %v895_v43 = vperm.slane %v11439_v33, 0  ;;  %v864_v11 = vperm.slane %v11440_v49, 0  ;;  %v928_v24 = vperm.slane %v7833_v13, 0  ;;  %v898_v27 = vperm.slane %v7717_v21, 0  ;;  %v11443_v25 = vld [vmem:[#allocation54_spill] sm:$0xff]  ;;  %v11444_v49 = vld [vmem:[#allocation55_spill] sm:$0xff] }
 0x1ee   : > { %v1047_v37 = vsel %vm1040_vm8, %v7786_v62, %v738_v58  ;;  %v1077_v33 = vsel %vm956_vm4, %v11443_v25, %v799_v20  ;;  %v1078_v38 = vsel %vm956_vm4, %v11444_v49, %v800_v28  ;;  %v1061_v21 = vsel %vm1057_vm9, %v1044_v44, %v767_v35 }
 0x1ef   : > { %v560_v47 = vld [vmem:[#allocation1 + $0x1] ss:$9 sm:$0xff]  ;;  %v7883_v13 = vld [vmem:[#allocation1 + $0x4] ss:$9 sm:$0xff]  ;;  %v1093_v17 = vsel %vm973_vm5, %v1077_v33, %v831_v46  ;;  %v1094_v19 = vsel %vm973_vm5, %v1078_v38, %v832_v56  ;;  %v1062_v20 = vsel %vm1057_vm9, %v1045_v36, %v768_v54  ;;  %v1064_v28 = vsel %vm1057_vm9, %v1047_v37, %v770_v15  ;;  %v7896_v31 = vld [vmem:[#allocation1 + $0x7] ss:$9 sm:$0xff] }
 0x1f0   : > { %v7879_v18 = vld [vmem:[#allocation1] ss:$9 sm:$0xff]  ;;  %v7881_v12 = vld [vmem:[#allocation1 + $0x2] ss:$9 sm:$0xff]  ;;  %v930_v51 = vperm.slane %v560_v47, 0  ;;  %v1109_v25 = vsel %vm171_vm0, %v1093_v17, %v863_v23  ;;  %v1110_v49 = vsel %vm171_vm0, %v1094_v19, %v864_v11  ;;  %v260_v38 = vrot.slane %v7385_v60, 5 }
 0x1f1   : > { %v7888_v62 = vld [vmem:[#allocation1 + $0x3] ss:$9 sm:$0xff]  ;;  %v7890_v58 = vld [vmem:[#allocation1 + $0x5] ss:$9 sm:$0xff]  ;;  %v1125_v44 = vsel %vm1006_vm6, %v1109_v25, %v895_v43  ;;  %v1126_v46 = vsel %vm1006_vm6, %v1110_v49, %v896_v22  ;;  %v616_v43 = vperm.slane %v273_v50, 0  ;;  %v648_v22 = vperm.slane %v289_v41, 0  ;;  %v1743_v41 = vpop.permute.xlu2 %1742 }
 0x1f2   : > { %v7898_v35 = vld [vmem:[#allocation1 + $0x6] ss:$9 sm:$0xff]  ;;  %v1141_v17 = vsel %vm1023_vm7, %v1125_v44, %v927_v8  ;;  %v1142_v15 = vsel %vm1023_vm7, %v1126_v46, %v928_v24  ;;  %v969_v8 = vsel %vm956_vm4, %v229_v9, %v584_v3  ;;  %v288_v24 = vrot.slane %v7416_v53, 3 }
 0x1f3   : > { %1282 = vxpose.xlu0.b32.start [1/2] (short) (narrow) %v1061_v21, 16  ;;  %1314 = vxpose.xlu2.b32.start [1/2] (short) (narrow) %v1062_v20, 16  ;;  %v11445_v56 = vld [vmem:[#allocation86_spill] sm:$0xff]  ;;  %v11446_v54 = vld [vmem:[#allocation20_spill] sm:$0xff]  ;;  %v11447_v11 = vld [vmem:[#allocation23_spill] sm:$0xff]  ;;  %v1157_v21 = vsel %vm1040_vm8, %v1141_v17, 0.0 }
 0x1f4   : > { %v1112_v47 = vsel %vm171_vm0, %v11445_v56, %v866_v4  ;;  %568 = vst [vmem:[#allocation1] sm:$0xff] %v11446_v54  ;;  %1378 = vxpose.xlu1.b32.start [1/2] (short) (narrow) %v1064_v28, 16  ;;  %v11448_v4 = vld [vmem:[#allocation25_spill] sm:$0xff]  ;;  %v1158_v19 = vsel %vm1040_vm8, %v1142_v15, 0.0  ;;  %v583_v50 = vperm.slane %v258_v59, 0  ;;  %v11449_v28 = vld [vmem:[#allocation30_spill] sm:$0xff]  ;;  %v1033_v15 = vsel %vm1023_vm7, %v7767_v61, %v709_v39 }
 0x1f5   : > { %v1128_v23 = vsel %vm1006_vm6, %v1112_v47, %v898_v27  ;;  %v737_v25 = vperm.slane %v11449_v28, 0  ;;  %v11450_v49 = vld [vmem:[#allocation33_spill] sm:$0xff]  ;;  %v274_v3 = vrot.slane %v7220_v5, 5  ;;  %v7930_v44 = vsel %vm187_vm1, 0.0, %v1743_v41  ;;  %v11452_v47 = vld [vmem:[#allocation44_spill] sm:$0xff] }
 0x1f6   : > { %v1144_v37 = vsel %vm1023_vm7, %v1128_v23, %v930_v51  ;;  %v7923_v51 = vperm.slane %v272_v30, 0  ;;  %v741_v9 = vperm.slane %v11450_v49, 0  ;;  %v11451_v46 = vld [vmem:[#allocation41_spill] sm:$0xff]  ;;  %v773_v54 = vperm.slane %v11452_v47, 0  ;;  %v11453_v49 = vld [vmem:[#allocation67_spill] sm:$0xff]  ;;  %v11461_v36 = vld [vmem:[#allocation56_spill] sm:$0xff] }
 0x1f7   : > { %v1160_v20 = vsel %vm1040_vm8, %v1144_v37, 0.0  ;;  %v769_v56 = vperm.slane %v11451_v46, 0  ;;  %v290_v59 = vrot.slane %v7416_v53, 5  ;;  %v1173_v30 = vsel %vm1057_vm9, %v1157_v21, 0.0 }
 0x1f8   : > { %v1174_v17 = vsel %vm1057_vm9, %v1158_v19, 0.0  ;;  %v986_v23 = vsel %vm973_vm5, %v969_v8, %v616_v43  ;;  %v1176_v28 = vsel %vm1057_vm9, %v1160_v20, 0.0  ;;  %v801_v46 = vperm.slane %v11453_v49, 0  ;;  %v11454_v43 = vld [vmem:[#allocation68_spill] sm:$0xff]  ;;  %v11458_v49 = vld [vmem:[#allocation90_spill] sm:$0xff] }
 0x1f9   : > { %v1002_v21 = vsel %vm171_vm0, %v986_v23, %v648_v22  ;;  %v968_v57 = vsel %vm956_vm4, %v228_v63, %v583_v50  ;;  %v1046_v61 = vsel %vm1040_vm8, %v7789_v2, %v737_v25  ;;  %v1050_v39 = vsel %vm1040_vm8, %v1033_v15, %v741_v9  ;;  %v11455_v22 = vld [vmem:[#allocation78_spill] sm:$0xff]  ;;  %v11459_v2 = vld [vmem:[#allocation92_spill] sm:$0xff]  ;;  %v11460_v9 = vld [vmem:[#allocation81_spill] sm:$0xff] }
 0x1fa   : > { %v803_v8 = vperm.slane %v11454_v43, 0  ;;  %v585_v47 = vperm.slane %v260_v38, 0  ;;  %v1063_v20 = vsel %vm1057_vm9, %v1046_v61, %v769_v56  ;;  %v11457_v63 = vld [vmem:[#allocation70_spill] sm:$0xff]  ;;  %v865_v33 = vperm.slane %v11458_v49, 0  ;;  %v1745_v43 = vpop.permute.xlu0 %1744 }
 0x1fb   : > { %v7942_v37 = vld [vmem:[#allocation1] ss:$9 sm:$0xff]  ;;  %1283 = vxpose.xlu0.b32.end [2/2] (short) (narrow) %v1173_v30, 16  ;;  %1315 = vxpose.xlu2.b32.end [2/2] (short) (narrow) %v1174_v17, 16  ;;  %v7952_v19 = vld [vmem:[#allocation1 + $0x2] ss:$9 sm:$0xff]  ;;  %v1079_v56 = vsel %vm956_vm4, %v11461_v36, %v801_v46 }
 0x1fc   : > { %v7944_v41 = vld [vmem:[#allocation1 + $0x1] ss:$9 sm:$0xff]  ;;  %1379 = vxpose.xlu1.b32.end [2/2] (short) (narrow) %v1176_v28, 16  ;;  %v833_v30 = vperm.slane %v11455_v22, 0  ;;  %v805_v50 = vperm.slane %v11457_v63, 0  ;;  %v1067_v28 = vsel %vm1057_vm9, %v1050_v39, %v773_v54  ;;  %v867_v25 = vperm.slane %v11459_v2, 0 }
 0x1fd   : > { %1855 = vst [vmem:[#allocation1] sm:$0xff] %v7930_v44  ;;  %v11456_v17 = vld [vmem:[#allocation79_spill] sm:$0xff]  ;;  %v837_v15 = vperm.slane %v11460_v9, 0  ;;  %v897_v38 = vperm.slane %v7715_v10, 0  ;;  %v899_v61 = vperm.slane %v7719_v7, 0  ;;  %v11462_v22 = vld [vmem:[#allocation94_spill] sm:$0xff] }
 0x1fe   : > { %v835_v23 = vperm.slane %v11456_v17, 0  ;;  %v869_v17 = vperm.slane %v11462_v22, 0  ;;  %v929_v63 = vperm.slane %v7879_v18, 0  ;;  %v931_v54 = vperm.slane %v7881_v12, 0  ;;  %v11463_v39 = vld [vmem:[#allocation57_spill] sm:$0xff]  ;;  %v11464_v36 = vld [vmem:[#allocation59_spill] sm:$0xff] }
 0x1ff   : > { %v1081_v49 = vsel %vm956_vm4, %v11463_v39, %v803_v8  ;;  %v901_v2 = vperm.slane %v7725_v1, 0  ;;  %v1095_v9 = vsel %vm973_vm5, %v1079_v56, %v833_v30  ;;  %v933_v27 = vperm.slane %v7883_v13, 0  ;;  %v11465_v1 = vld [vmem:[#allocation50_spill] sm:$0xff] }
 0x200   : > { %v1097_v10 = vsel %vm973_vm5, %v1081_v49, %v835_v23  ;;  %v1083_v7 = vsel %vm956_vm4, %v11464_v36, %v805_v50  ;;  %v7983_v46 = vsel %vm187_vm1, 0.0, %v1745_v43  ;;  %v1111_v18 = vsel %vm171_vm0, %v1095_v9, %v865_v33  ;;  %v1747_v36 = vpop.permute.xlu1 %1746 }
 0x201   : > { %v1113_v12 = vsel %vm171_vm0, %v1097_v10, %v867_v25  ;;  %v1099_v8 = vsel %vm973_vm5, %v1083_v7, %v837_v15  ;;  %v1127_v30 = vsel %vm1006_vm6, %v1111_v18, %v897_v38  ;;  %v647_v32 = vperm.slane %v288_v24, 0 }
 0x202   : > { %v1129_v23 = vsel %vm1006_vm6, %v1113_v12, %v899_v61  ;;  %v1115_v13 = vsel %vm171_vm0, %v1099_v8, %v869_v17  ;;  %v1143_v33 = vsel %vm1023_vm7, %v1127_v30, %v929_v63  ;;  %v1032_v17 = vsel %vm1023_vm7, %v7792_v29, %v708_v16  ;;  %v11476_v12 = vld [vmem:[#allocation36_spill] sm:$0xff]  ;;  %v11477_v30 = vld [vmem:[#allocation43_spill] sm:$0xff]  ;;  %v11484_v29 = vld [vmem:[#allocation73_spill] sm:$0xff] }
 0x203   : > { %1346 = vxpose.xlu0.b32.start [1/2] (short) (narrow) %v1063_v20, 16  ;;  %1410 = vxpose.xlu2.b32.start [1/2] (short) (narrow) %v11465_v1, 16  ;;  %v1145_v25 = vsel %vm1023_vm7, %v1129_v23, %v931_v54  ;;  %v1131_v15 = vsel %vm1006_vm6, %v1115_v13, %v901_v2  ;;  %v11466_v20 = vld [vmem:[#allocation17_spill] sm:$0xff]  ;;  %v11468_v54 = vperm.slane %v7354_v42, 0  ;;  %v1159_v42 = vsel %vm1040_vm8, %v1143_v33, 0.0  ;;  %v11479_v33 = vld [vmem:[#allocation47_spill] sm:$0xff] }
 0x204   : > { %v7992_v56 = vld [vmem:[#allocation1 + $0x1] ss:$9 sm:$0xff]  ;;  %1474 = vxpose.xlu1.b32.start [1/2] (short) (narrow) %v1067_v28, 16  ;;  %v8000_v22 = vld [vmem:[#allocation1 + $0x3] ss:$9 sm:$0xff]  ;;  %v1147_v61 = vsel %vm1023_vm7, %v1131_v15, %v933_v27  ;;  %v11467_v28 = vperm.slane %v7350_v40, 0  ;;  %v985_v40 = vsel %vm973_vm5, %v968_v57, %v7923_v51 }
 0x205   : > { %v7994_v50 = vld [vmem:[#allocation1 + $0x2] ss:$9 sm:$0xff]  ;;  %v8002_v38 = vld [vmem:[#allocation1 + $0x4] ss:$9 sm:$0xff]  ;;  %v1019_v39 = vsel %vm1006_vm6, %v1002_v21, %v11468_v54  ;;  %v1161_v16 = vsel %vm1040_vm8, %v1145_v25, 0.0  ;;  %v8034_v21 = vperm.slane %v290_v59, 0 }
 0x206   : > { %v1017_v63 = vsel %vm1006_vm6, %v7836_v45, %v11467_v28  ;;  %v8016_v49 = vld [vmem:[#allocation1 + $0x5] ss:$9 sm:$0xff]  ;;  %v8020_v9 = vld [vmem:[#allocation1 + $0x7] ss:$9 sm:$0xff]  ;;  %v617_v45 = vperm.slane %v274_v3, 0  ;;  %v11473_v24 = vrot.slane %v7340_v34, 5 }
 0x207   : > { %11469 = vst [vmem:[#allocation101_spill] sm:$0xff] %v8016_v49  ;;  %v8018_v2 = vld [vmem:[#allocation1 + $0x6] ss:$9 sm:$0xff]  ;;  %v1163_v51 = vsel %vm1040_vm8, %v1147_v61, 0.0  ;;  %v744_v8 = vperm.slane %v11476_v12, 0  ;;  %v8044_v1 = vsel %vm187_vm1, 0.0, %v1747_v36 }
 0x208   : > { %11470 = vst [vmem:[#allocation103_spill] sm:$0xff] %v8018_v2  ;;  %v11472_v27 = vld [vmem:[#allocation24_spill] sm:$0xff]  ;;  %v970_v10 = vsel %vm956_vm4, %v11473_v24, %v585_v47  ;;  %v11475_v3 = vld [vmem:[#allocation34_spill] sm:$0xff]  ;;  %v772_v23 = vperm.slane %v11477_v30, 0  ;;  %v11478_v59 = vld [vmem:[#allocation45_spill] sm:$0xff]  ;;  %v776_v25 = vperm.slane %v11479_v33, 0 }
 0x209   : > { %11471 = vst [vmem:[#allocation53_spill] sm:$0xff] %v8020_v9  ;;  %v11474_v57 = vld [vmem:[#allocation32_spill] sm:$0xff]  ;;  %v742_v18 = vperm.slane %v11475_v3, 0  ;;  %v774_v13 = vperm.slane %v11478_v59, 0  ;;  %v1175_v47 = vsel %vm1057_vm9, %v1159_v42, 0.0  ;;  %v1177_v15 = vsel %vm1057_vm9, %v1161_v16, 0.0 }
 0x20a   : > { %1870 = vst [vmem:[#allocation1] sm:$0xff] %v7983_v46  ;;  %v740_v7 = vperm.slane %v11474_v57, 0  ;;  %v11480_v61 = vld [vmem:[#allocation69_spill] sm:$0xff]  ;;  %v11481_v54 = vld [vmem:[#allocation71_spill] sm:$0xff]  ;;  %v1179_v57 = vsel %vm1057_vm9, %v1163_v51, 0.0  ;;  %v11482_v36 = vld [vmem:[#allocation80_spill] sm:$0xff] }
 0x20b   : > { %v804_v28 = vperm.slane %v11480_v61, 0  ;;  %v806_v24 = vperm.slane %v11481_v54, 0  ;;  %1347 = vxpose.xlu0.b32.end [2/2] (short) (narrow) %v1175_v47, 16  ;;  %1411 = vxpose.xlu2.b32.end [2/2] (short) (narrow) %v1177_v15, 16  ;;  %v836_v3 = vperm.slane %v11482_v36, 0  ;;  %v11483_v12 = vld [vmem:[#allocation82_spill] sm:$0xff] }
 0x20c   : > { %v838_v30 = vperm.slane %v11483_v12, 0  ;;  %v808_v59 = vperm.slane %v11484_v29, 0  ;;  %1475 = vxpose.xlu1.b32.end [2/2] (short) (narrow) %v1179_v57, 16  ;;  %v11485_v33 = vld [vmem:[#allocation93_spill] sm:$0xff]  ;;  %v11486_v42 = vld [vmem:[#allocation95_spill] sm:$0xff]  ;;  %v11487_v16 = vld [vmem:[#allocation84_spill] sm:$0xff]  ;;  %v1049_v47 = vsel %vm1040_vm8, %v1032_v17, %v740_v7  ;;  %v1001_v29 = vsel %vm171_vm0, %v985_v40, %v647_v32 }
 0x20d   : > { %v868_v43 = vperm.slane %v11485_v33, 0  ;;  %v870_v2 = vperm.slane %v11486_v42, 0  ;;  %v840_v9 = vperm.slane %v11487_v16, 0  ;;  %v11488_v61 = vld [vmem:[#allocation97_spill] sm:$0xff]  ;;  %v11489_v15 = vperm.slane %v11447_v11, 0  ;;  %v11494_v16 = vld [vmem:[#allocation58_spill] sm:$0xff] }
 0x20e   : > { %v872_v49 = vperm.slane %v11488_v61, 0  ;;  %v11490_v54 = vperm.slane %v11448_v4, 0  ;;  %v1066_v42 = vsel %vm1057_vm9, %v1049_v47, %v772_v23  ;;  %v900_v40 = vperm.slane %v7723_v26, 0  ;;  %v11497_v47 = vld [vmem:[#allocation60_spill] sm:$0xff] }
 0x20f   : > { %v1034_v51 = vsel %vm1023_vm7, %v1017_v63, %v11489_v15  ;;  %v987_v63 = vsel %vm973_vm5, %v970_v10, %v617_v45  ;;  %v1082_v61 = vsel %vm956_vm4, %v11494_v16, %v804_v28  ;;  %v902_v23 = vperm.slane %v7727_v48, 0 }
 0x210   : > { %v1036_v36 = vsel %vm1023_vm7, %v1019_v39, %v11490_v54  ;;  %v1051_v17 = vsel %vm1040_vm8, %v1034_v51, %v742_v18  ;;  %v932_v45 = vperm.slane %v7888_v62, 0  ;;  %v934_v10 = vperm.slane %v7890_v58, 0  ;;  %v11498_v51 = vld [vmem:[#allocation62_spill] sm:$0xff] }
 0x211   : > { %v8069_v57 = vld [vmem:[#allocation1] ss:$9 sm:$0xff]  ;;  %v8073_v33 = vld [vmem:[#allocation1 + $0x2] ss:$9 sm:$0xff]  ;;  %v1053_v11 = vsel %vm1040_vm8, %v1036_v36, %v744_v8  ;;  %v1068_v32 = vsel %vm1057_vm9, %v1051_v17, %v774_v13  ;;  %v1084_v15 = vsel %vm956_vm4, %v11497_v47, %v806_v24  ;;  %v904_v13 = vperm.slane %v7734_v6, 0 }
 0x212   : > { %v8071_v12 = vld [vmem:[#allocation1 + $0x1] ss:$9 sm:$0xff]  ;;  %v8079_v7 = vld [vmem:[#allocation1 + $0x3] ss:$9 sm:$0xff]  ;;  %v1098_v26 = vsel %vm973_vm5, %v1082_v61, %v836_v3  ;;  %v1100_v28 = vsel %vm973_vm5, %v1084_v15, %v838_v30  ;;  %v936_v48 = vperm.slane %v7896_v31, 0  ;;  %v1086_v54 = vsel %vm956_vm4, %v11498_v51, %v808_v59  ;;  %v1755_v61 = vpop.permute.xlu1 %1754 }
 0x213   : > { %11491 = vst [vmem:[#allocation102_spill] sm:$0xff] %v8079_v7  ;;  %v8081_v4 = vld [vmem:[#allocation1 + $0x4] ss:$9 sm:$0xff]  ;;  %v8090_v18 = vld [vmem:[#allocation1 + $0x6] ss:$9 sm:$0xff]  ;;  %v1070_v62 = vsel %vm1057_vm9, %v1053_v11, %v776_v25  ;;  %v1114_v58 = vsel %vm171_vm0, %v1098_v26, %v868_v43  ;;  %v1116_v36 = vsel %vm171_vm0, %v1100_v28, %v870_v2  ;;  %v1102_v24 = vsel %vm973_vm5, %v1086_v54, %v840_v9 }
 0x214   : > { %11492 = vst [vmem:[#allocation52_spill] sm:$0xff] %v8081_v4  ;;  %v8083_v39 = vld [vmem:[#allocation1 + $0x5] ss:$9 sm:$0xff]  ;;  %v8092_v8 = vld [vmem:[#allocation1 + $0x7] ss:$9 sm:$0xff]  ;;  %1442 = vxpose.xlu0.b32.start [1/2] (short) (narrow) %v1066_v42, 16  ;;  %v1130_v6 = vsel %vm1006_vm6, %v1114_v58, %v900_v40  ;;  %v1132_v3 = vsel %vm1006_vm6, %v1116_v36, %v902_v23  ;;  %v1118_v30 = vsel %vm171_vm0, %v1102_v24, %v872_v49 }
 0x215   : > { %11493 = vst [vmem:[#allocation22_spill] sm:$0xff] %v8083_v39  ;;  %1506 = vxpose.xlu2.b32.start [1/2] (short) (narrow) %v1068_v32, 16  ;;  %v11499_v31 = vld [vmem:[#allocation26_spill] sm:$0xff]  ;;  %1570 = vxpose.xlu1.b32.start [1/2] (short) (narrow) %v1070_v62, 16  ;;  %v1146_v59 = vsel %vm1023_vm7, %v1130_v6, %v932_v45  ;;  %v1148_v25 = vsel %vm1023_vm7, %v1132_v3, %v934_v10  ;;  %v11500_v42 = vld [vmem:[#allocation35_spill] sm:$0xff]  ;;  %v11501_v32 = vperm.slane %v11466_v20, 0 }
 0x216   : > { %11495 = vst [vmem:[#allocation28_spill] sm:$0xff] %v8090_v18  ;;  %v713_v17 = vperm.slane %v11499_v31, 0  ;;  %v1134_v43 = vsel %vm1006_vm6, %v1118_v30, %v904_v13  ;;  %v1003_v2 = vsel %vm171_vm0, %v987_v63, %v8034_v21  ;;  %v743_v11 = vperm.slane %v11500_v42, 0  ;;  %v11502_v40 = vld [vmem:[#allocation18_spill] sm:$0xff]  ;;  %v11504_v13 = vld [vmem:[#allocation72_spill] sm:$0xff]  ;;  %v11506_v54 = vld [vmem:[#allocation37_spill] sm:$0xff] }
 0x217   : > { %11496 = vst [vmem:[#allocation21_spill] sm:$0xff] %v8092_v8  ;;  %v1150_v9 = vsel %vm1023_vm7, %v1134_v43, %v936_v48  ;;  %v1018_v49 = vsel %vm1006_vm6, %v1001_v29, %v11501_v32  ;;  %v681_v16 = vperm.slane %v11502_v40, 0  ;;  %v11503_v23 = vperm.slane %v11472_v27, 0  ;;  %v11505_v28 = vld [vmem:[#allocation46_spill] sm:$0xff]  ;;  %v11508_v3 = vld [vmem:[#allocation48_spill] sm:$0xff]  ;;  %v11509_v31 = vld [vmem:[#allocation75_spill] sm:$0xff] }
 0x218   : > { %1879 = vst [vmem:[#allocation1] sm:$0xff] %v8044_v1  ;;  %v8128_v10 = vsel %vm200_vm2, 0.0, %v1755_v61  ;;  %v1162_v21 = vsel %vm1040_vm8, %v1146_v59, 0.0  ;;  %v1164_v63 = vsel %vm1040_vm8, %v1148_v25, 0.0  ;;  %v1166_v20 = vsel %vm1040_vm8, %v1150_v9, 0.0  ;;  %v11507_v58 = vld [vmem:[#allocation74_spill] sm:$0xff] }
 0x219   : > { %v1035_v45 = vsel %vm1023_vm7, %v1018_v49, %v11503_v23  ;;  %v1020_v47 = vsel %vm1006_vm6, %v1003_v2, %v681_v16  ;;  %v807_v26 = vperm.slane %v11504_v13, 0  ;;  %v261_v27 = vrot.slane %v7385_v60, 6  ;;  %v11510_v59 = vld [vmem:[#allocation83_spill] sm:$0xff]  ;;  %v11511_v43 = vld [vmem:[#allocation85_spill] sm:$0xff]  ;;  %v11515_v16 = vld [vmem:[#allocation98_spill] sm:$0xff] }
 0x21a   : > { %v1037_v29 = vsel %vm1023_vm7, %v1020_v47, %v713_v17  ;;  %v775_v48 = vperm.slane %v11505_v28, 0  ;;  %v1052_v51 = vsel %vm1040_vm8, %v1035_v45, %v743_v11  ;;  %v745_v62 = vperm.slane %v11506_v54, 0  ;;  %v11512_v9 = vld [vmem:[#allocation87_spill] sm:$0xff]  ;;  %v11513_v11 = vld [vmem:[#allocation96_spill] sm:$0xff]  ;;  %v11514_v49 = vld [vmem:[#allocation61_spill] sm:$0xff] }
 0x21b   : > { %v809_v36 = vperm.slane %v11507_v58, 0  ;;  %v1178_v24 = vsel %vm1057_vm9, %v1162_v21, 0.0  ;;  %v1180_v6 = vsel %vm1057_vm9, %v1164_v63, 0.0  ;;  %v777_v30 = vperm.slane %v11508_v3, 0  ;;  %v11516_v23 = vld [vmem:[#allocation99_spill] sm:$0xff] }
 0x21c   : > { %v811_v17 = vperm.slane %v11509_v31, 0  ;;  %1443 = vxpose.xlu0.b32.end [2/2] (short) (narrow) %v1178_v24, 16  ;;  %v1182_v60 = vsel %vm1057_vm9, %v1166_v20, 0.0  ;;  %v839_v25 = vperm.slane %v11510_v59, 0  ;;  %v841_v2 = vperm.slane %v11511_v43, 0  ;;  %v11517_v47 = vld [vmem:[#allocation63_spill] sm:$0xff] }
 0x21d   : > { %1507 = vxpose.xlu2.b32.end [2/2] (short) (narrow) %v1180_v6, 16  ;;  %v843_v42 = vperm.slane %v11512_v9, 0  ;;  %1571 = vxpose.xlu1.b32.end [2/2] (short) (narrow) %v1182_v60, 16  ;;  %v871_v32 = vperm.slane %v11513_v11, 0  ;;  %v1085_v40 = vsel %vm956_vm4, %v11514_v49, %v807_v26  ;;  %v873_v61 = vperm.slane %v11515_v16, 0  ;;  %v11518_v26 = vld [vmem:[#allocation64_spill] sm:$0xff] }
 0x21e   : > { %v875_v45 = vperm.slane %v11516_v23, 0  ;;  %v903_v21 = vperm.slane %v7732_v0, 0  ;;  %v905_v63 = vperm.slane %v7776_v52, 0  ;;  %v1087_v20 = vsel %vm956_vm4, %v11517_v47, %v809_v36  ;;  %v11520_v23 = vld [vmem:[#allocation51_spill] sm:$0xff] }
 0x21f   : > { %v8133_v15 = vld [vmem:[#allocation1] ss:$9 sm:$0xff]  ;;  %v907_v13 = vperm.slane %v7780_v14, 0  ;;  %v935_v28 = vperm.slane %v7898_v35, 0  ;;  %v937_v54 = vperm.slane %v7942_v37, 0  ;;  %v939_v58 = vperm.slane %v7952_v19, 0  ;;  %v1757_v37 = vpop.permute.xlu2 %1756 }
 0x220   : > { %1882 = vst [vmem:[#allocation1] sm:$0xff] %v8128_v10  ;;  %v1089_v24 = vsel %vm956_vm4, %v11518_v26, %v811_v17  ;;  %v1054_v6 = vsel %vm1040_vm8, %v1037_v29, %v745_v62  ;;  %v1101_v0 = vsel %vm973_vm5, %v1085_v40, %v839_v25  ;;  %v1103_v52 = vsel %vm973_vm5, %v1087_v20, %v841_v2 }
 0x221   : > { %v1105_v3 = vsel %vm973_vm5, %v1089_v24, %v843_v42  ;;  %v1069_v19 = vsel %vm1057_vm9, %v1052_v51, %v775_v48  ;;  %v1117_v31 = vsel %vm171_vm0, %v1101_v0, %v871_v32  ;;  %v1119_v17 = vsel %vm171_vm0, %v1103_v52, %v873_v61 }
 0x222   : > { %v1121_v29 = vsel %vm171_vm0, %v1105_v3, %v875_v45  ;;  %v8188_v25 = vsel %vm200_vm2, 0.0, %v1757_v37  ;;  %v1133_v43 = vsel %vm1006_vm6, %v1117_v31, %v903_v21  ;;  %v1135_v2 = vsel %vm1006_vm6, %v1119_v17, %v905_v63  ;;  %v1759_v63 = vpop.permute.xlu1 %1758  ;;  %v11528_v37 = vld [vmem:[#allocation27_spill] sm:$0xff] }
 0x223   : > { %v1137_v48 = vsel %vm1006_vm6, %v1121_v29, %v907_v13  ;;  %v1071_v9 = vsel %vm1057_vm9, %v1054_v6, %v777_v30  ;;  %v1149_v42 = vsel %vm1023_vm7, %v1133_v43, %v935_v28  ;;  %v1151_v11 = vsel %vm1023_vm7, %v1135_v2, %v937_v54  ;;  %v11529_v17 = vld [vmem:[#allocation19_spill] sm:$0xff]  ;;  %v11530_v43 = vld [vmem:[#allocation38_spill] sm:$0xff] }
 0x224   : > { %v1153_v32 = vsel %vm1023_vm7, %v1137_v48, %v939_v58  ;;  %1538 = vxpose.xlu0.b32.start [1/2] (short) (narrow) %v1069_v19, 16  ;;  %v231_v49 = vrot.slane %v7340_v34, 6  ;;  %v275_v40 = vrot.slane %v7220_v5, 6  ;;  %v291_v16 = vrot.slane %v7416_v53, 6  ;;  %v11531_v48 = vld [vmem:[#allocation49_spill] sm:$0xff] }
 0x225   : > { %1602 = vxpose.xlu2.b32.start [1/2] (short) (narrow) %v1071_v9, 16  ;;  %v586_v61 = vperm.slane %v261_v27, 0  ;;  %1666 = vxpose.xlu1.b32.start [1/2] (short) (narrow) %v11520_v23, 16  ;;  %v1165_v30 = vsel %vm1040_vm8, %v1149_v42, 0.0  ;;  %v1167_v45 = vsel %vm1040_vm8, %v1151_v11, 0.0  ;;  %v1169_v21 = vsel %vm1040_vm8, %v1153_v32, 0.0 }
 0x226   : > { %v618_v47 = vperm.slane %v275_v40, 0  ;;  %v650_v20 = vperm.slane %v291_v16, 0  ;;  %v8209_v34 = vsel %vm200_vm2, 0.0, %v1759_v63  ;;  %v1181_v5 = vsel %vm1057_vm9, %v1165_v30, 0.0 }
 0x227   : > { %v8171_v36 = vld [vmem:[#allocation1 + $0x1] ss:$9 sm:$0xff]  ;;  %v8175_v35 = vld [vmem:[#allocation1 + $0x3] ss:$9 sm:$0xff]  ;;  %v971_v13 = vsel %vm956_vm4, %v231_v49, %v586_v61  ;;  %v1183_v53 = vsel %vm1057_vm9, %v1167_v45, 0.0  ;;  %v1185_v27 = vsel %vm1057_vm9, %v1169_v21, 0.0 }
 0x228   : > { %v8173_v14 = vld [vmem:[#allocation1 + $0x2] ss:$9 sm:$0xff]  ;;  %v8181_v62 = vld [vmem:[#allocation1 + $0x4] ss:$9 sm:$0xff]  ;;  %v988_v0 = vsel %vm973_vm5, %v971_v13, %v618_v47  ;;  %v714_v19 = vperm.slane %v11528_v37, 0  ;;  %v682_v29 = vperm.slane %v11529_v17, 0 }
 0x229   : > { %v8183_v60 = vld [vmem:[#allocation1 + $0x5] ss:$9 sm:$0xff]  ;;  %v8193_v51 = vld [vmem:[#allocation1 + $0x7] ss:$9 sm:$0xff]  ;;  %v1004_v31 = vsel %vm171_vm0, %v988_v0, %v650_v20  ;;  %v746_v2 = vperm.slane %v11530_v43, 0  ;;  %v778_v9 = vperm.slane %v11531_v48, 0 }
 0x22a   : > { %v8185_v59 = vld [vmem:[#allocation1 + $0x6] ss:$9 sm:$0xff]  ;;  %v1021_v42 = vsel %vm1006_vm6, %v1004_v31, %v682_v29  ;;  %v906_v11 = vperm.slane %v7778_v55, 0  ;;  %v938_v49 = vperm.slane %v7944_v41, 0  ;;  %v1769_v4 = vpop.permute.xlu1 %1768 }
 0x22b   : > { %11519 = vst [vmem:[#allocation29_spill] sm:$0xff] %v8185_v59  ;;  %v1038_v32 = vsel %vm1023_vm7, %v1021_v42, %v714_v19  ;;  %v11532_v61 = vld [vmem:[#allocation100_spill] sm:$0xff]  ;;  %v11533_v21 = vld [vmem:[#allocation9_spill] sm:$0xff]  ;;  %v11536_v0 = vld [vmem:[#allocation10_spill] sm:$0xff]  ;;  %v1811_v42 = vrot.slane %v8128_v10, 2 }
 0x22c   : > { %1897 = vst [vmem:[#allocation1] sm:$0xff] %v8188_v25  ;;  %1539 = vxpose.xlu0.b32.end [2/2] (short) (narrow) %v1181_v5, 16  ;;  %v1055_v40 = vsel %vm1040_vm8, %v1038_v32, %v746_v2  ;;  %v1136_v23 = vsel %vm1006_vm6, %v11532_v61, %v906_v11  ;;  %v1767_v2 = vpop.permute.xlu2 %1766  ;;  %v11544_v11 = vld [vmem:[#allocation8_spill] sm:$0xff]  ;;  %v1810_v32 = vrot.slane %v8128_v10, 1  ;;  %v1781_v61 = vrot.slane %v7930_v44, 2 }
 0x22d   : > { %1603 = vxpose.xlu2.b32.end [2/2] (short) (narrow) %v1183_v53, 16  ;;  %1667 = vxpose.xlu1.b32.end [2/2] (short) (narrow) %v1185_v27, 16  ;;  %v1072_v16 = vsel %vm1057_vm9, %v1055_v40, %v778_v9  ;;  %v1152_v45 = vsel %vm1023_vm7, %v1136_v23, %v938_v49  ;;  %v8286_v49 = vsel %vm213_vm3, %v1767_v2, 0.0  ;;  %v1825_v40 = vrot.slane %v11533_v21, 2 }
 0x22e   : > { %v1168_v55 = vsel %vm1040_vm8, %v1152_v45, 0.0  ;;  %v2135_v23 = vperm.slane %v1811_v42, 0  ;;  %v1824_v45 = vrot.slane %v11533_v21, 1  ;;  %v1840_v2 = vrot.slane %v8286_v49, 1 }
 0x22f   : > { %v1184_v63 = vsel %vm1057_vm9, %v1168_v55, 0.0  ;;  %v1780_v55 = vrot.slane %v7930_v44, 1  ;;  %v2167_v8 = vperm.slane %v1825_v40, 0 }
 0x230   : > { %v2166_v42 = vperm.slane %v1824_v45, 0  ;;  %v2261_v45 = vperm.slane %v8171_v36, 0  ;;  %v1816_v36 = vrot.slane %v8128_v10, 7 }
 0x233   : > { %v8214_v28 = vld [vmem:[#allocation1] ss:$9 sm:$0xff]  ;;  %v8218_v58 = vld [vmem:[#allocation1 + $0x2] ss:$9 sm:$0xff] }
 0x234   : > { %v8216_v54 = vld [vmem:[#allocation1 + $0x1] ss:$9 sm:$0xff]  ;;  %11522 = vst [vmem:[#allocation39_spill] sm:$0xff] %v8218_v58  ;;  %v8220_v26 = vld [vmem:[#allocation1 + $0x3] ss:$9 sm:$0xff]  ;;  %1634 = vxpose.xlu0.b32.start [1/2] (short) (narrow) %v1072_v16, 16 }
 0x235   : > { %11521 = vst [vmem:[#allocation31_spill] sm:$0xff] %v8216_v54  ;;  %v8222_v24 = vld [vmem:[#allocation1 + $0x4] ss:$9 sm:$0xff]  ;;  %v8227_v52 = vld [vmem:[#allocation1 + $0x6] ss:$9 sm:$0xff]  ;;  %v2133_v16 = vperm.slane %v8128_v10, 0 }
 0x236   : > { %11523 = vst [vmem:[#allocation65_spill] sm:$0xff] %v8220_v26  ;;  %v8224_v6 = vld [vmem:[#allocation1 + $0x5] ss:$9 sm:$0xff]  ;;  %v8229_v3 = vld [vmem:[#allocation1 + $0x7] ss:$9 sm:$0xff] }
 0x237   : > { %11524 = vst [vmem:[#allocation66_spill] sm:$0xff] %v8222_v24 }
 0x238   : > { %11525 = vst [vmem:[#allocation40_spill] sm:$0xff] %v8224_v6 }
 0x239   : > { %11526 = vst [vmem:[#allocation42_spill] sm:$0xff] %v8227_v52  ;;  %v2517_v52 = vsel %vm956_vm4, %v7930_v44, %v2133_v16  ;;  %v2231_v16 = vperm.slane %v8000_v22, 0 }
 0x23a   : > { %11527 = vst [vmem:[#allocation76_spill] sm:$0xff] %v8229_v3  ;;  %v2165_v3 = vperm.slane %v11533_v21, 0 }
 0x23b   : > { %1906 = vst [vmem:[#allocation1] sm:$0xff] %v8209_v34 }
 0x23c   : > { %1635 = vxpose.xlu0.b32.end [2/2] (short) (narrow) %v1184_v63, 16  ;;  %v2134_v63 = vperm.slane %v1810_v32, 0  ;;  %v2197_v32 = vperm.slane %v8286_v49, 0  ;;  %v2533_v40 = vsel %vm973_vm5, %v2517_v52, %v2165_v3 }
 0x23e   : > { %v2518_v24 = vsel %vm956_vm4, %v1780_v55, %v2134_v63  ;;  %v2263_v55 = vperm.slane %v8175_v35, 0  ;;  %v8314_v63 = vsel %vm213_vm3, %v1769_v4, 0.0  ;;  %v2549_v52 = vsel %vm171_vm0, %v2533_v40, %v2197_v32 }
 0x242   : > { %v8245_v30 = vld [vmem:[#allocation1] ss:$9 sm:$0xff] }
 0x243   : > { %1908 = vst [vmem:[#allocation1] sm:$0xff] %v11533_v21  ;;  %v2276_v6 = vperm.slane %v8245_v30, 0 }
 0x24a   : > { %v8251_v41 = vld [vmem:[#allocation1 + $0x1] ss:$9 sm:$0xff]  ;;  %v8255_v20 = vld [vmem:[#allocation1 + $0x3] ss:$9 sm:$0xff] }
 0x24b   : > { %v8253_v47 = vld [vmem:[#allocation1 + $0x2] ss:$9 sm:$0xff]  ;;  %v8257_v13 = vld [vmem:[#allocation1 + $0x4] ss:$9 sm:$0xff]  ;;  %v2295_v22 = vperm.slane %v8255_v20, 0 }
 0x24c   : > { %v8259_v5 = vld [vmem:[#allocation1 + $0x5] ss:$9 sm:$0xff]  ;;  %v8263_v27 = vld [vmem:[#allocation1 + $0x7] ss:$9 sm:$0xff] }
 0x24d   : > { %v8261_v53 = vld [vmem:[#allocation1 + $0x6] ss:$9 sm:$0xff]  ;;  %11535 = vst [vmem:[#allocation88_spill] sm:$0xff] %v8263_v27 }
 0x24e   : > { %11534 = vst [vmem:[#allocation77_spill] sm:$0xff] %v8261_v53 }
 0x24f   : > { %1923 = vst [vmem:[#allocation1] sm:$0xff] %v11536_v0 }
 0x256   : > { %v8266_v37 = vld [vmem:[#allocation1] ss:$9 sm:$0xff]  ;;  %v8270_v31 = vld [vmem:[#allocation1 + $0x2] ss:$9 sm:$0xff] }
 0x257   : > { %v8268_v19 = vld [vmem:[#allocation1 + $0x1] ss:$9 sm:$0xff]  ;;  %11538 = vst [vmem:[#allocation89_spill] sm:$0xff] %v8270_v31  ;;  %v8272_v17 = vld [vmem:[#allocation1 + $0x3] ss:$9 sm:$0xff] }
 0x258   : > { %11537 = vst [vmem:[#allocation104_spill] sm:$0xff] %v8268_v19  ;;  %v8274_v29 = vld [vmem:[#allocation1 + $0x4] ss:$9 sm:$0xff]  ;;  %v8278_v48 = vld [vmem:[#allocation1 + $0x6] ss:$9 sm:$0xff]  ;;  %v2229_v19 = vperm.slane %v7992_v56, 0 }
 0x259   : > { %11539 = vst [vmem:[#allocation91_spill] sm:$0xff] %v8272_v17  ;;  %v8276_v43 = vld [vmem:[#allocation1 + $0x5] ss:$9 sm:$0xff]  ;;  %v8280_v9 = vld [vmem:[#allocation1 + $0x7] ss:$9 sm:$0xff]  ;;  %v2198_v17 = vperm.slane %v1840_v2, 0 }
 0x25a   : > { %11540 = vst [vmem:[#allocation105_spill] sm:$0xff] %v8274_v29  ;;  %v2519_v29 = vsel %vm956_vm4, %v1781_v61, %v2135_v23  ;;  %v2230_v61 = vperm.slane %v7994_v50, 0  ;;  %v2534_v23 = vsel %vm973_vm5, %v2518_v24, %v2166_v42  ;;  %v2294_v50 = vperm.slane %v8253_v47, 0 }
 0x25b   : > { %11541 = vst [vmem:[#allocation54_spill] sm:$0xff] %v8276_v43  ;;  %v2535_v43 = vsel %vm973_vm5, %v2519_v29, %v2167_v8  ;;  %v2293_v8 = vperm.slane %v8251_v41, 0  ;;  %v2550_v24 = vsel %vm171_vm0, %v2534_v23, %v2198_v17  ;;  %v2565_v4 = vsel %vm1006_vm6, %v2549_v52, %v2229_v19 }
 0x25c   : > { %11542 = vst [vmem:[#allocation55_spill] sm:$0xff] %v8278_v48  ;;  %v2566_v41 = vsel %vm1006_vm6, %v2550_v24, %v2230_v61  ;;  %v2581_v47 = vsel %vm1023_vm7, %v2565_v4, %v2261_v45  ;;  %v1786_v52 = vrot.slane %v7930_v44, 7  ;;  %v1830_v45 = vrot.slane %v11533_v21, 7 }
 0x25d   : > { %11543 = vst [vmem:[#allocation86_spill] sm:$0xff] %v8280_v9  ;;  %v1841_v9 = vrot.slane %v8286_v49, 2  ;;  %v2597_v19 = vsel %vm1040_vm8, %v2581_v47, %v2293_v8  ;;  %v2140_v24 = vperm.slane %v1816_v36, 0  ;;  %v1846_v8 = vrot.slane %v8286_v49, 7 }
 0x25e   : > { %1932 = vst [vmem:[#allocation1] sm:$0xff] %v11544_v11  ;;  %v2236_v4 = vperm.slane %v8069_v57, 0  ;;  %v2268_v57 = vperm.slane %v8214_v28, 0 }
 0x25f   : > { %v2199_v18 = vperm.slane %v1841_v9, 0  ;;  %v2262_v9 = vperm.slane %v8173_v14, 0 }
 0x261   : > { %v2551_v56 = vsel %vm171_vm0, %v2535_v43, %v2199_v18  ;;  %v2582_v43 = vsel %vm1023_vm7, %v2566_v41, %v2262_v9 }
 0x262   : > { %v2567_v29 = vsel %vm1006_vm6, %v2551_v56, %v2231_v16  ;;  %v2598_v23 = vsel %vm1040_vm8, %v2582_v43, %v2294_v50  ;;  %v2524_v50 = vsel %vm956_vm4, %v1786_v52, %v2140_v24 }
 0x263   : > { %v2583_v17 = vsel %vm1023_vm7, %v2567_v29, %v2263_v55 }
 0x264   : > { %v2599_v61 = vsel %vm1040_vm8, %v2583_v17, %v2295_v22  ;;  %v2172_v22 = vperm.slane %v1830_v45, 0 }
 0x265   : > { %v8296_v48 = vld [vmem:[#allocation1] ss:$9 sm:$0xff] }
 0x266   : > { %1935 = vst [vmem:[#allocation1] sm:$0xff] %v8286_v49 }
 0x26d   : > { %v1937_v35 = vld [vmem:[#allocation1 + $0x1] ss:$9 sm:$0xff]  ;;  %v1941_v14 = vld [vmem:[#allocation1 + $0x3] ss:$9 sm:$0xff] }
 0x26e   : > { %v1939_v3 = vld [vmem:[#allocation1 + $0x2] ss:$9 sm:$0xff]  ;;  %v8326_v2 = vld [vmem:[#allocation1 + $0x4] ss:$9 sm:$0xff]  ;;  %v2325_v32 = vperm.slane %v1937_v35, 0  ;;  %v2327_v40 = vperm.slane %v1941_v14, 0  ;;  %v1771_v35 = vpop.permute.xlu2 %1770 }
 0x26f   : > { %11545 = vst [vmem:[#allocation20_spill] sm:$0xff] %v8326_v2  ;;  %v8328_v18 = vld [vmem:[#allocation1 + $0x5] ss:$9 sm:$0xff]  ;;  %v8335_v42 = vld [vmem:[#allocation1 + $0x7] ss:$9 sm:$0xff]  ;;  %v2326_v16 = vperm.slane %v1939_v3, 0 }
 0x270   : > { %11546 = vst [vmem:[#allocation23_spill] sm:$0xff] %v8328_v18  ;;  %v8330_v20 = vld [vmem:[#allocation1 + $0x6] ss:$9 sm:$0xff]  ;;  %v2613_v55 = vsel %vm1057_vm9, %v2597_v19, %v2325_v32  ;;  %v2615_v9 = vsel %vm1057_vm9, %v2599_v61, %v2327_v40  ;;  %v8349_v3 = vsel %vm213_vm3, %v1771_v35, 0.0  ;;  %v2204_v14 = vperm.slane %v1846_v8, 0 }
 0x271   : > { %11547 = vst [vmem:[#allocation25_spill] sm:$0xff] %v8330_v20  ;;  %v2614_v56 = vsel %vm1057_vm9, %v2598_v23, %v2326_v16  ;;  %2741 = vxpose.xlu0.b32.start [1/2] (short) (narrow) %v2613_v55, 16  ;;  %2805 = vxpose.xlu2.b32.start [1/2] (short) (narrow) %v2615_v9, 16  ;;  %v2540_v32 = vsel %vm973_vm5, %v2524_v50, %v2172_v22  ;;  %v1823_v8 = vrot.slane %v8188_v25, 7  ;;  %v1793_v35 = vrot.slane %v7983_v46, 7 }
 0x272   : > { %11548 = vst [vmem:[#allocation30_spill] sm:$0xff] %v8335_v42  ;;  %2773 = vxpose.xlu1.b32.start [1/2] (short) (narrow) %v2614_v56, 16  ;;  %v2556_v16 = vsel %vm171_vm0, %v2540_v32, %v2204_v14  ;;  %v1837_v22 = vrot.slane %v11536_v0, 7  ;;  %v1784_v18 = vrot.slane %v7930_v44, 5 }
 0x273   : > { %1950 = vst [vmem:[#allocation1] sm:$0xff] %v8314_v63  ;;  %v2572_v61 = vsel %vm1006_vm6, %v2556_v16, %v2236_v4  ;;  %v2148_v50 = vperm.slane %v1823_v8, 0 }
 0x274   : > { %v2588_v23 = vsel %vm1023_vm7, %v2572_v61, %v2268_v57  ;;  %v2300_v61 = vperm.slane %v8266_v37, 0 }
 0x276   : > { %v2604_v8 = vsel %vm1040_vm8, %v2588_v23, %v2300_v61 }
 0x27a   : > { %v8352_v29 = vld [vmem:[#allocation1] ss:$9 sm:$0xff]  ;;  %v8356_v36 = vld [vmem:[#allocation1 + $0x2] ss:$9 sm:$0xff] }
 0x27b   : > { %v8354_v41 = vld [vmem:[#allocation1 + $0x1] ss:$9 sm:$0xff]  ;;  %11550 = vst [vmem:[#allocation41_spill] sm:$0xff] %v8356_v36  ;;  %v8358_v47 = vld [vmem:[#allocation1 + $0x3] ss:$9 sm:$0xff] }
 0x27c   : > { %11549 = vst [vmem:[#allocation33_spill] sm:$0xff] %v8354_v41  ;;  %v8360_v17 = vld [vmem:[#allocation1 + $0x4] ss:$9 sm:$0xff]  ;;  %v8365_v19 = vld [vmem:[#allocation1 + $0x6] ss:$9 sm:$0xff] }
 0x27d   : > { %11551 = vst [vmem:[#allocation44_spill] sm:$0xff] %v8358_v47  ;;  %v8362_v43 = vld [vmem:[#allocation1 + $0x5] ss:$9 sm:$0xff]  ;;  %v8367_v40 = vld [vmem:[#allocation1 + $0x7] ss:$9 sm:$0xff]  ;;  %v2180_v47 = vperm.slane %v1837_v22, 0 }
 0x27e   : > { %11552 = vst [vmem:[#allocation67_spill] sm:$0xff] %v8360_v17 }
 0x27f   : > { %11553 = vst [vmem:[#allocation68_spill] sm:$0xff] %v8362_v43 }
 0x280   : > { %11554 = vst [vmem:[#allocation78_spill] sm:$0xff] %v8365_v19 }
 0x281   : > { %11555 = vst [vmem:[#allocation79_spill] sm:$0xff] %v8367_v40  ;;  %v1853_v40 = vrot.slane %v8314_v63, 7 }
 0x282   : > { %1959 = vst [vmem:[#allocation1] sm:$0xff] %v8349_v3 }
 0x283   : > { %v2212_v41 = vperm.slane %v1853_v40, 0 }
 0x289   : > { %v1960_v52 = vld [vmem:[#allocation1] ss:$9 sm:$0xff] }
 0x28a   : > { %1961 = vst [vmem:[#allocation1] sm:$0xff] %v7930_v44 }
 0x291   : > { %v8375_v45 = vld [vmem:[#allocation1 + $0x2] ss:$9 sm:$0xff]  ;;  %v8379_v9 = vld [vmem:[#allocation1 + $0x4] ss:$9 sm:$0xff] }
 0x292   : > { %v8377_v55 = vld [vmem:[#allocation1 + $0x3] ss:$9 sm:$0xff]  ;;  %v8381_v56 = vld [vmem:[#allocation1 + $0x5] ss:$9 sm:$0xff] }
 0x293   : > { %11556 = vst [vmem:[#allocation70_spill] sm:$0xff] %v8381_v56  ;;  %v8383_v24 = vld [vmem:[#allocation1 + $0x6] ss:$9 sm:$0xff] }
 0x294   : > { %11557 = vst [vmem:[#allocation90_spill] sm:$0xff] %v8383_v24  ;;  %v8385_v28 = vld [vmem:[#allocation1 + $0x7] ss:$9 sm:$0xff]  ;;  %v1843_v24 = vrot.slane %v8286_v49, 4 }
 0x295   : > { %11558 = vst [vmem:[#allocation92_spill] sm:$0xff] %v8385_v28 }
 0x296   : > { %1974 = vst [vmem:[#allocation1] sm:$0xff] %v7983_v46 }
 0x29d   : > { %v8391_v14 = vld [vmem:[#allocation1] ss:$9 sm:$0xff]  ;;  %v8395_v32 = vld [vmem:[#allocation1 + $0x2] ss:$9 sm:$0xff] }
 0x29e   : > { %v8393_v4 = vld [vmem:[#allocation1 + $0x1] ss:$9 sm:$0xff]  ;;  %11560 = vst [vmem:[#allocation56_spill] sm:$0xff] %v8395_v32  ;;  %v8397_v57 = vld [vmem:[#allocation1 + $0x3] ss:$9 sm:$0xff]  ;;  %v2532_v32 = vsel %vm956_vm4, %v1793_v35, %v2148_v50 }
 0x29f   : > { %11559 = vst [vmem:[#allocation81_spill] sm:$0xff] %v8393_v4  ;;  %v8399_v16 = vld [vmem:[#allocation1 + $0x4] ss:$9 sm:$0xff]  ;;  %v8405_v17 = vld [vmem:[#allocation1 + $0x6] ss:$9 sm:$0xff]  ;;  %v2548_v37 = vsel %vm973_vm5, %v2532_v32, %v2180_v47 }
 0x2a0   : > { %11561 = vst [vmem:[#allocation94_spill] sm:$0xff] %v8397_v57  ;;  %v8403_v19 = vld [vmem:[#allocation1 + $0x5] ss:$9 sm:$0xff]  ;;  %v8407_v43 = vld [vmem:[#allocation1 + $0x7] ss:$9 sm:$0xff]  ;;  %v2564_v54 = vsel %vm171_vm0, %v2548_v37, %v2212_v41 }
 0x2a1   : > { %11562 = vst [vmem:[#allocation57_spill] sm:$0xff] %v8399_v16  ;;  %v2244_v16 = vperm.slane %v8133_v15, 0 }
 0x2a2   : > { %11563 = vst [vmem:[#allocation59_spill] sm:$0xff] %v8403_v19  ;;  %v2308_v19 = vperm.slane %v8296_v48, 0 }
 0x2a3   : > { %11564 = vst [vmem:[#allocation50_spill] sm:$0xff] %v8405_v17  ;;  %v2580_v23 = vsel %vm1006_vm6, %v2564_v54, %v2244_v16  ;;  %v2332_v54 = vperm.slane %v8352_v29, 0  ;;  %v2340_v29 = vperm.slane %v1960_v52, 0 }
 0x2a4   : > { %11565 = vst [vmem:[#allocation17_spill] sm:$0xff] %v8407_v43  ;;  %v2596_v40 = vsel %vm1023_vm7, %v2580_v23, %v2276_v6 }
 0x2a5   : > { %1984 = vst [vmem:[#allocation1] sm:$0xff] %v8044_v1  ;;  %v2612_v15 = vsel %vm1040_vm8, %v2596_v40, %v2308_v19  ;;  %v8444_v32 = vsel %vm1057_vm9, %v2604_v8, %v2332_v54 }
 0x2a6   : > { %11570 = vst [vmem:[#allocation43_spill] sm:$0xff] %v8444_v32  ;;  %v8462_v8 = vsel %vm1057_vm9, %v2612_v15, %v2340_v29 }
 0x2a7   : > { %11577 = vst [vmem:[#allocation73_spill] sm:$0xff] %v8462_v8 }
 0x2ac   : > { %v8416_v26 = vld [vmem:[#allocation1] ss:$9 sm:$0xff] }
 0x2ad   : > { %v8418_v17 = vld [vmem:[#allocation1 + $0x1] ss:$9 sm:$0xff] }
 0x2ae   : > { %11566 = vst [vmem:[#allocation24_spill] sm:$0xff] %v8418_v17 }
 0x2af   : > { %2003 = vst [vmem:[#allocation1] sm:$0xff] %v8128_v10 }
 0x2b6   : > { %v8425_v35 = vld [vmem:[#allocation1 + $0x2] ss:$9 sm:$0xff]  ;;  %v8429_v30 = vld [vmem:[#allocation1 + $0x4] ss:$9 sm:$0xff] }
 0x2b7   : > { %v8427_v47 = vld [vmem:[#allocation1 + $0x3] ss:$9 sm:$0xff]  ;;  %v8431_v48 = vld [vmem:[#allocation1 + $0x5] ss:$9 sm:$0xff] }
 0x2b8   : > { %v8433_v22 = vld [vmem:[#allocation1 + $0x6] ss:$9 sm:$0xff] }
 0x2b9   : > { %v8435_v50 = vld [vmem:[#allocation1 + $0x7] ss:$9 sm:$0xff] }
 0x2ba   : > { %11567 = vst [vmem:[#allocation32_spill] sm:$0xff] %v8435_v50 }
 0x2bb   : > { %2016 = vst [vmem:[#allocation1] sm:$0xff] %v8188_v25 }
 0x2c2   : > { %v2017_v41 = vld [vmem:[#allocation1] ss:$9 sm:$0xff]  ;;  %v8441_v19 = vld [vmem:[#allocation1 + $0x2] ss:$9 sm:$0xff] }
 0x2c3   : > { %v8439_v6 = vld [vmem:[#allocation1 + $0x1] ss:$9 sm:$0xff]  ;;  %11569 = vst [vmem:[#allocation36_spill] sm:$0xff] %v8441_v19  ;;  %v8446_v16 = vld [vmem:[#allocation1 + $0x3] ss:$9 sm:$0xff] }
 0x2c4   : > { %11568 = vst [vmem:[#allocation34_spill] sm:$0xff] %v8439_v6  ;;  %v8448_v61 = vld [vmem:[#allocation1 + $0x4] ss:$9 sm:$0xff]  ;;  %v8452_v23 = vld [vmem:[#allocation1 + $0x6] ss:$9 sm:$0xff] }
 0x2c5   : > { %11571 = vst [vmem:[#allocation45_spill] sm:$0xff] %v8446_v16  ;;  %v8450_v37 = vld [vmem:[#allocation1 + $0x5] ss:$9 sm:$0xff]  ;;  %v8454_v40 = vld [vmem:[#allocation1 + $0x7] ss:$9 sm:$0xff] }
 0x2c6   : > { %11572 = vst [vmem:[#allocation47_spill] sm:$0xff] %v8448_v61 }
 0x2c7   : > { %11573 = vst [vmem:[#allocation69_spill] sm:$0xff] %v8450_v37 }
 0x2c8   : > { %11574 = vst [vmem:[#allocation71_spill] sm:$0xff] %v8452_v23 }
 0x2c9   : > { %11575 = vst [vmem:[#allocation80_spill] sm:$0xff] %v8454_v40 }
 0x2ca   : > { %2026 = vst [vmem:[#allocation1] sm:$0xff] %v8209_v34 }
 0x2d1   : > { %v8457_v17 = vld [vmem:[#allocation1] ss:$9 sm:$0xff] }
 0x2d2   : > { %v8459_v39 = vld [vmem:[#allocation1 + $0x1] ss:$9 sm:$0xff] }
 0x2d3   : > { %11576 = vst [vmem:[#allocation82_spill] sm:$0xff] %v8459_v39 }
 0x2d4   : > { %2029 = vst [vmem:[#allocation1] sm:$0xff] %v11533_v21 }
 0x2db   : > { %v8465_v54 = vld [vmem:[#allocation1 + $0x2] ss:$9 sm:$0xff]  ;;  %v8469_v37 = vld [vmem:[#allocation1 + $0x4] ss:$9 sm:$0xff] }
 0x2dc   : > { %v8467_v61 = vld [vmem:[#allocation1 + $0x3] ss:$9 sm:$0xff]  ;;  %v8471_v23 = vld [vmem:[#allocation1 + $0x5] ss:$9 sm:$0xff] }
 0x2dd   : > { %11578 = vst [vmem:[#allocation93_spill] sm:$0xff] %v8471_v23  ;;  %v8473_v19 = vld [vmem:[#allocation1 + $0x6] ss:$9 sm:$0xff] }
 0x2de   : > { %11579 = vst [vmem:[#allocation95_spill] sm:$0xff] %v8473_v19  ;;  %v8475_v52 = vld [vmem:[#allocation1 + $0x7] ss:$9 sm:$0xff]  ;;  %v8604_v19 = vperm.slane %v1843_v24, 0 }
 0x2df   : > { %11580 = vst [vmem:[#allocation84_spill] sm:$0xff] %v8475_v52 }
 0x2e0   : > { %2042 = vst [vmem:[#allocation1] sm:$0xff] %v11536_v0 }
 0x2e7   : > { %v2043_v39 = vld [vmem:[#allocation1] ss:$9 sm:$0xff]  ;;  %v8480_v15 = vld [vmem:[#allocation1 + $0x2] ss:$9 sm:$0xff] }
 0x2e8   : > { %v8478_v32 = vld [vmem:[#allocation1 + $0x1] ss:$9 sm:$0xff]  ;;  %11582 = vst [vmem:[#allocation58_spill] sm:$0xff] %v8480_v15  ;;  %v8482_v29 = vld [vmem:[#allocation1 + $0x3] ss:$9 sm:$0xff] }
 0x2e9   : > { %11581 = vst [vmem:[#allocation97_spill] sm:$0xff] %v8478_v32  ;;  %v8484_v8 = vld [vmem:[#allocation1 + $0x4] ss:$9 sm:$0xff]  ;;  %v8488_v57 = vld [vmem:[#allocation1 + $0x6] ss:$9 sm:$0xff] }
 0x2ea   : > { %11583 = vst [vmem:[#allocation60_spill] sm:$0xff] %v8482_v29  ;;  %v8486_v43 = vld [vmem:[#allocation1 + $0x5] ss:$9 sm:$0xff]  ;;  %v8490_v4 = vld [vmem:[#allocation1 + $0x7] ss:$9 sm:$0xff] }
 0x2eb   : > { %11584 = vst [vmem:[#allocation62_spill] sm:$0xff] %v8484_v8 }
 0x2ec   : > { %11585 = vst [vmem:[#allocation26_spill] sm:$0xff] %v8486_v43 }
 0x2ed   : > { %11586 = vst [vmem:[#allocation35_spill] sm:$0xff] %v8488_v57 }
 0x2ee   : > { %11587 = vst [vmem:[#allocation18_spill] sm:$0xff] %v8490_v4 }
 0x2ef   : > { %2052 = vst [vmem:[#allocation1] sm:$0xff] %v11544_v11 }
 0x2f6   : > { %v2053_v52 = vld [vmem:[#allocation1] ss:$9 sm:$0xff] }
 0x2f7   : > { %v8493_v28 = vld [vmem:[#allocation1 + $0x1] ss:$9 sm:$0xff]  ;;  %v2403_v59 = vperm.slane %v2053_v52, 0 }
 0x2f8   : > { %11588 = vst [vmem:[#allocation72_spill] sm:$0xff] %v8493_v28 }
 0x2f9   : > { %2055 = vst [vmem:[#allocation1] sm:$0xff] %v8286_v49 }
 0x300   : > { %v8496_v32 = vld [vmem:[#allocation1 + $0x2] ss:$9 sm:$0xff]  ;;  %v8500_v29 = vld [vmem:[#allocation1 + $0x4] ss:$9 sm:$0xff] }
 0x301   : > { %v8498_v15 = vld [vmem:[#allocation1 + $0x3] ss:$9 sm:$0xff]  ;;  %v8502_v8 = vld [vmem:[#allocation1 + $0x5] ss:$9 sm:$0xff] }
 0x302   : > { %11589 = vst [vmem:[#allocation46_spill] sm:$0xff] %v8502_v8  ;;  %v8504_v43 = vld [vmem:[#allocation1 + $0x6] ss:$9 sm:$0xff] }
 0x303   : > { %11590 = vst [vmem:[#allocation37_spill] sm:$0xff] %v8504_v43  ;;  %v8506_v57 = vld [vmem:[#allocation1 + $0x7] ss:$9 sm:$0xff]  ;;  %v1828_v43 = vrot.slane %v11533_v21, 5 }
 0x304   : > { %11591 = vst [vmem:[#allocation74_spill] sm:$0xff] %v8506_v57 }
 0x305   : > { %2068 = vst [vmem:[#allocation1] sm:$0xff] %v8314_v63 }
 0x30c   : > { %v2069_v11 = vld [vmem:[#allocation1] ss:$9 sm:$0xff]  ;;  %v8511_v28 = vld [vmem:[#allocation1 + $0x2] ss:$9 sm:$0xff] }
 0x30d   : > { %v8509_v36 = vld [vmem:[#allocation1 + $0x1] ss:$9 sm:$0xff]  ;;  %11593 = vst [vmem:[#allocation75_spill] sm:$0xff] %v8511_v28  ;;  %v8513_v4 = vld [vmem:[#allocation1 + $0x3] ss:$9 sm:$0xff]  ;;  %v2395_v28 = vperm.slane %v2043_v39, 0 }
 0x30e   : > { %11592 = vst [vmem:[#allocation48_spill] sm:$0xff] %v8509_v36  ;;  %v8515_v40 = vld [vmem:[#allocation1 + $0x4] ss:$9 sm:$0xff]  ;;  %v8519_v6 = vld [vmem:[#allocation1 + $0x6] ss:$9 sm:$0xff]  ;;  %v2363_v36 = vperm.slane %v2017_v41, 0 }
 0x30f   : > { %11594 = vst [vmem:[#allocation83_spill] sm:$0xff] %v8513_v4  ;;  %v8517_v16 = vld [vmem:[#allocation1 + $0x5] ss:$9 sm:$0xff]  ;;  %v8521_v50 = vld [vmem:[#allocation1 + $0x7] ss:$9 sm:$0xff]  ;;  %v2371_v41 = vperm.slane %v8457_v17, 0 }
 0x310   : > { %11595 = vst [vmem:[#allocation85_spill] sm:$0xff] %v8515_v40  ;;  %v2635_v4 = vsel %vm956_vm4, %v8391_v14, %v2363_v36 }
 0x311   : > { %11596 = vst [vmem:[#allocation87_spill] sm:$0xff] %v8517_v16  ;;  %v2643_v17 = vsel %vm956_vm4, %v8416_v26, %v2371_v41  ;;  %v1813_v26 = vrot.slane %v8128_v10, 4  ;;  %v1782_v41 = vrot.slane %v7930_v44, 3 }
 0x312   : > { %11597 = vst [vmem:[#allocation96_spill] sm:$0xff] %v8519_v6 }
 0x313   : > { %11598 = vst [vmem:[#allocation61_spill] sm:$0xff] %v8521_v50  ;;  %v2651_v50 = vsel %vm973_vm5, %v2635_v4, %v2395_v28  ;;  %v2137_v56 = vperm.slane %v1813_v26, 0 }
 0x314   : > { %2078 = vst [vmem:[#allocation1] sm:$0xff] %v8349_v3 }
 0x31b   : > { %v8524_v57 = vld [vmem:[#allocation1] ss:$9 sm:$0xff] }
 0x31c   : > { %v8526_v31 = vld [vmem:[#allocation1 + $0x1] ss:$9 sm:$0xff]  ;;  %v2435_v24 = vperm.slane %v8524_v57, 0  ;;  %v3426_v57 = vpop.permute.xlu2 %3425 }
 0x31d   : > { %11599 = vst [vmem:[#allocation98_spill] sm:$0xff] %v8526_v31 }
 0x31e   : > { %2081 = vst [vmem:[#allocation1] sm:$0xff] %v7930_v44 }
 0x325   : > { %v8531_v40 = vld [vmem:[#allocation1 + $0x3] ss:$9 sm:$0xff]  ;;  %v8535_v6 = vld [vmem:[#allocation1 + $0x5] ss:$9 sm:$0xff] }
 0x326   : > { %v8533_v16 = vld [vmem:[#allocation1 + $0x4] ss:$9 sm:$0xff]  ;;  %v8538_v3 = vld [vmem:[#allocation1 + $0x6] ss:$9 sm:$0xff] }
 0x327   : > { %11600 = vst [vmem:[#allocation99_spill] sm:$0xff] %v8538_v3  ;;  %v8540_v20 = vld [vmem:[#allocation1 + $0x7] ss:$9 sm:$0xff]  ;;  %v1785_v3 = vrot.slane %v7930_v44, 6 }
 0x328   : > { %11601 = vst [vmem:[#allocation63_spill] sm:$0xff] %v8540_v20  ;;  %v1845_v20 = vrot.slane %v8286_v49, 6 }
 0x329   : > { %2092 = vst [vmem:[#allocation1] sm:$0xff] %v7983_v46 }
 0x32a   : > { %v8607_v27 = vperm.slane %v1845_v20, 0 }
 0x330   : > { %v8544_v39 = vld [vmem:[#allocation1] ss:$9 sm:$0xff]  ;;  %v8548_v36 = vld [vmem:[#allocation1 + $0x2] ss:$9 sm:$0xff] }
 0x331   : > { %11602 = vst [vmem:[#allocation64_spill] sm:$0xff] %v8544_v39  ;;  %v8546_v31 = vld [vmem:[#allocation1 + $0x1] ss:$9 sm:$0xff]  ;;  %v8550_v14 = vld [vmem:[#allocation1 + $0x3] ss:$9 sm:$0xff]  ;;  %v2659_v39 = vsel %vm973_vm5, %v2643_v17, %v2403_v59  ;;  %v1815_v59 = vrot.slane %v8128_v10, 6 }
 0x332   : > { %11603 = vst [vmem:[#allocation51_spill] sm:$0xff] %v8546_v31  ;;  %v8552_v53 = vld [vmem:[#allocation1 + $0x4] ss:$9 sm:$0xff]  ;;  %v8556_v28 = vld [vmem:[#allocation1 + $0x6] ss:$9 sm:$0xff]  ;;  %v1842_v17 = vrot.slane %v8286_v49, 3 }
 0x333   : > { %11604 = vst [vmem:[#allocation27_spill] sm:$0xff] %v8548_v36  ;;  %v8554_v58 = vld [vmem:[#allocation1 + $0x5] ss:$9 sm:$0xff]  ;;  %v8558_v4 = vld [vmem:[#allocation1 + $0x7] ss:$9 sm:$0xff]  ;;  %v1783_v31 = vrot.slane %v7930_v44, 4 }
 0x334   : > { %11605 = vst [vmem:[#allocation19_spill] sm:$0xff] %v8550_v14  ;;  %v2139_v42 = vperm.slane %v1815_v59, 0  ;;  %v1831_v59 = vrot.slane %v11536_v0, 1 }
 0x335   : > { %11606 = vst [vmem:[#allocation38_spill] sm:$0xff] %v8552_v53  ;;  %v2521_v26 = vsel %vm956_vm4, %v1783_v31, %v2137_v56 }
 0x336   : > { %11607 = vst [vmem:[#allocation49_spill] sm:$0xff] %v8554_v58  ;;  %v2427_v58 = vperm.slane %v2069_v11, 0 }
 0x337   : > { %11608 = vst [vmem:[#allocation100_spill] sm:$0xff] %v8556_v28  ;;  %v1812_v28 = vrot.slane %v8128_v10, 3 }
 0x338   : > { %11609 = vst [vmem:[#allocation9_spill] sm:$0xff] %v8558_v4  ;;  %v8573_v52 = vsel %vm171_vm0, %v2651_v50, %v2427_v58 }
 0x339   : > { %2103 = vst [vmem:[#allocation1] sm:$0xff] %v8044_v1  ;;  %v1826_v1 = vrot.slane %v11533_v21, 3 }
 0x33a   : > { %11613 = vst [vmem:[#allocation107_spill] sm:$0xff] %v8573_v52  ;;  %v1814_v52 = vrot.slane %v8128_v10, 5 }
 0x33c   : > { %v2138_v2 = vperm.slane %v1814_v52, 0 }
 0x340   : > { %v8564_v7 = vld [vmem:[#allocation1] ss:$9 sm:$0xff]  ;;  %v8568_v14 = vld [vmem:[#allocation1 + $0x2] ss:$9 sm:$0xff] }
 0x341   : > { %11610 = vst [vmem:[#allocation10_spill] sm:$0xff] %v8564_v7  ;;  %v8566_v36 = vld [vmem:[#allocation1 + $0x1] ss:$9 sm:$0xff]  ;;  %v2136_v7 = vperm.slane %v1812_v28, 0  ;;  %v1817_v28 = vrot.slane %v8188_v25, 1 }
 0x342   : > { %11611 = vst [vmem:[#allocation8_spill] sm:$0xff] %v8566_v36  ;;  %v1827_v36 = vrot.slane %v11533_v21, 4 }
 0x343   : > { %11612 = vst [vmem:[#allocation106_spill] sm:$0xff] %v8568_v14  ;;  %v1829_v14 = vrot.slane %v11533_v21, 6  ;;  %v2523_v21 = vsel %vm956_vm4, %v1785_v3, %v2139_v42  ;;  %v2142_v44 = vperm.slane %v1817_v28, 0  ;;  %v2522_v42 = vsel %vm956_vm4, %v1784_v18, %v2138_v2  ;;  %v11622_v2 = vld [vmem:[#allocation101_spill] sm:$0xff] }
 0x344   : > { %2107 = vst [vmem:[#allocation1] sm:$0xff] %v8128_v10  ;;  %v2169_v8 = vperm.slane %v1827_v36, 0  ;;  %v2520_v10 = vsel %vm956_vm4, %v1782_v41, %v2136_v7  ;;  %v1844_v36 = vrot.slane %v8286_v49, 5  ;;  %v1847_v7 = vrot.slane %v8314_v63, 1 }
 0x345   : > { %v2171_v23 = vperm.slane %v1829_v14, 0  ;;  %v8632_v14 = vsel %vm171_vm0, %v2659_v39, %v2435_v24  ;;  %v2174_v18 = vperm.slane %v1831_v59, 0  ;;  %v1832_v39 = vrot.slane %v11536_v0, 2 }
 0x346   : > { %11619 = vst [vmem:[#allocation113_spill] sm:$0xff] %v8632_v14  ;;  %v1818_v14 = vrot.slane %v8188_v25, 2  ;;  %v2455_v59 = vperm.slane %v8535_v6, 0 }
 0x34b   : > { %v8582_v11 = vld [vmem:[#allocation1 + $0x3] ss:$9 sm:$0xff]  ;;  %v8586_v58 = vld [vmem:[#allocation1 + $0x5] ss:$9 sm:$0xff] }
 0x34c   : > { %v8584_v4 = vld [vmem:[#allocation1 + $0x4] ss:$9 sm:$0xff]  ;;  %v8588_v50 = vld [vmem:[#allocation1 + $0x6] ss:$9 sm:$0xff] }
 0x34d   : > { %11614 = vst [vmem:[#allocation108_spill] sm:$0xff] %v8588_v50  ;;  %v8590_v53 = vld [vmem:[#allocation1 + $0x7] ss:$9 sm:$0xff]  ;;  %v2168_v50 = vperm.slane %v1826_v1, 0  ;;  %v2170_v1 = vperm.slane %v1828_v43, 0 }
 0x34e   : > { %11615 = vst [vmem:[#allocation109_spill] sm:$0xff] %v8590_v53  ;;  %v8600_v53 = vperm.slane %v1842_v17, 0  ;;  %v1787_v17 = vrot.slane %v7983_v46, 1 }
 0x34f   : > { %2118 = vst [vmem:[#allocation1] sm:$0xff] %v8188_v25  ;;  %v8629_v3 = vsel %vm973_vm5, %v2520_v10, %v2168_v50  ;;  %v11623_v50 = vld [vmem:[#allocation53_spill] sm:$0xff]  ;;  %v8648_v10 = vperm.slane %v1844_v36, 0  ;;  %v8651_v24 = vsel %vm973_vm5, %v2522_v42, %v2170_v1  ;;  %v2357_v1 = vperm.slane %v8425_v35, 0 }
 0x350   : > { %v2359_v42 = vperm.slane %v8429_v30, 0  ;;  %v2423_v35 = vperm.slane %v8500_v29, 0  ;;  %v2390_v30 = vperm.slane %v8467_v61, 0  ;;  %v8699_v36 = vperm.slane %v1832_v39, 0 }
 0x352   : > { %v2631_v61 = vsel %vm956_vm4, %v8379_v9, %v2359_v42 }
 0x356   : > { %v8615_v52 = vld [vmem:[#allocation1] ss:$9 sm:$0xff]  ;;  %v8619_v20 = vld [vmem:[#allocation1 + $0x2] ss:$9 sm:$0xff] }
 0x357   : > { %v8617_v31 = vld [vmem:[#allocation1 + $0x1] ss:$9 sm:$0xff]  ;;  %11616 = vst [vmem:[#allocation110_spill] sm:$0xff] %v8619_v20  ;;  %v8622_v56 = vld [vmem:[#allocation1 + $0x3] ss:$9 sm:$0xff] }
 0x358   : > { %11617 = vst [vmem:[#allocation111_spill] sm:$0xff] %v8622_v56  ;;  %v8624_v49 = vld [vmem:[#allocation1 + $0x4] ss:$9 sm:$0xff]  ;;  %v8634_v41 = vld [vmem:[#allocation1 + $0x6] ss:$9 sm:$0xff]  ;;  %v8641_v56 = vsel %vm973_vm5, %v2521_v26, %v2169_v8  ;;  %v2141_v8 = vperm.slane %v8188_v25, 0 }
 0x359   : > { %v8626_v43 = vld [vmem:[#allocation1 + $0x5] ss:$9 sm:$0xff]  ;;  %11620 = vst [vmem:[#allocation114_spill] sm:$0xff] %v8634_v41  ;;  %v8636_v28 = vld [vmem:[#allocation1 + $0x7] ss:$9 sm:$0xff]  ;;  %v2389_v41 = vperm.slane %v8465_v54, 0 }
 0x35a   : > { %11618 = vst [vmem:[#allocation112_spill] sm:$0xff] %v8626_v43  ;;  %v8644_v43 = vsel %vm973_vm5, %v2523_v21, %v2171_v23  ;;  %v11624_v20 = vld [vmem:[#allocation103_spill] sm:$0xff]  ;;  %v8657_v23 = vperm.slane %v1847_v7, 0  ;;  %v2391_v26 = vperm.slane %v8469_v37, 0  ;;  %v2358_v7 = vperm.slane %v8427_v47, 0 }
 0x35b   : > { %11621 = vst [vmem:[#allocation115_spill] sm:$0xff] %v8636_v28  ;;  %v8669_v28 = vperm.slane %v1818_v14, 0  ;;  %v2453_v21 = vperm.slane %v8531_v40, 0  ;;  %v2422_v54 = vperm.slane %v8498_v15, 0  ;;  %v2454_v37 = vperm.slane %v8533_v16, 0 }
 0x35c   : > { %2129 = vst [vmem:[#allocation1] sm:$0xff] %v8209_v34  ;;  %v2526_v34 = vsel %vm956_vm4, %v1787_v17, %v2142_v44  ;;  %v8672_v17 = vsel %vm187_vm1, 0.0, %v3426_v57  ;;  %v2421_v44 = vperm.slane %v8496_v32, 0  ;;  %v2629_v32 = vsel %vm956_vm4, %v8375_v45, %v2357_v1  ;;  %v3428_v45 = vpop.permute.xlu2 %3427 }
 0x35d   : > { %v2542_v40 = vsel %vm973_vm5, %v2526_v34, %v2174_v18  ;;  %v2525_v6 = vsel %vm956_vm4, %v7983_v46, %v2141_v8  ;;  %v2645_v16 = vsel %vm973_vm5, %v2629_v32, %v2389_v41  ;;  %v2647_v15 = vsel %vm973_vm5, %v2631_v61, %v2391_v26 }
 0x35e   : > { %v2630_v29 = vsel %vm956_vm4, %v8377_v55, %v2358_v7  ;;  %v2661_v1 = vsel %vm171_vm0, %v2645_v16, %v2421_v44  ;;  %v2663_v9 = vsel %vm171_vm0, %v2647_v15, %v2423_v35  ;;  %v1790_v8 = vrot.slane %v7983_v46, 4 }
 0x35f   : > { %v2646_v18 = vsel %vm973_vm5, %v2630_v29, %v2390_v30  ;;  %v2485_v34 = vperm.slane %v8582_v11, 0  ;;  %v2487_v41 = vperm.slane %v8586_v58, 0  ;;  %v2486_v26 = vperm.slane %v8584_v4, 0 }
 0x360   : > { %v2662_v42 = vsel %vm171_vm0, %v2646_v18, %v2422_v54  ;;  %v2677_v55 = vsel %vm1006_vm6, %v2661_v1, %v2453_v21  ;;  %v2679_v39 = vsel %vm1006_vm6, %v2663_v9, %v2455_v59  ;;  %v1820_v44 = vrot.slane %v8188_v25, 4  ;;  %v3438_v18 = vpop.permute.xlu1 %3437 }
 0x361   : > { %v2678_v7 = vsel %vm1006_vm6, %v2662_v42, %v2454_v37  ;;  %v2693_v35 = vsel %vm1023_vm7, %v2677_v55, %v2485_v34  ;;  %v2695_v30 = vsel %vm1023_vm7, %v2679_v39, %v2487_v41  ;;  %v2264_v58 = vperm.slane %v8181_v62, 0 }
 0x362   : > { %v2694_v11 = vsel %vm1023_vm7, %v2678_v7, %v2486_v26  ;;  %v2709_v4 = vsel %vm1040_vm8, %v2693_v35, 0.0  ;;  %v2711_v54 = vsel %vm1040_vm8, %v2695_v30, 0.0  ;;  %v2265_v59 = vperm.slane %v8183_v60, 0 }
 0x363   : > { %v8681_v47 = vld [vmem:[#allocation1] ss:$9 sm:$0xff]  ;;  %v8685_v57 = vld [vmem:[#allocation1 + $0x2] ss:$9 sm:$0xff]  ;;  %v2710_v21 = vsel %vm1040_vm8, %v2694_v11, 0.0  ;;  %v2725_v37 = vsel %vm1057_vm9, %v2709_v4, 0.0  ;;  %v2552_v1 = vsel %vm171_vm0, %v8629_v3, %v8600_v53  ;;  %v2553_v60 = vsel %vm171_vm0, %v8641_v56, %v8604_v19 }
 0x364   : > { %v8683_v14 = vld [vmem:[#allocation1 + $0x1] ss:$9 sm:$0xff]  ;;  %v2727_v32 = vsel %vm1057_vm9, %v2711_v54, 0.0  ;;  %v2726_v61 = vsel %vm1057_vm9, %v2710_v21, 0.0  ;;  %v2267_v16 = vperm.slane %v8193_v51, 0  ;;  %v2555_v9 = vsel %vm171_vm0, %v8644_v43, %v8607_v27  ;;  %2742 = vxpose.xlu0.b32.end [2/2] (short) (narrow) %v2725_v37, 16 }
 0x365   : > { %3538 = vst [vmem:[#allocation1] sm:$0xff] %v8672_v17  ;;  %v2554_v51 = vsel %vm171_vm0, %v8651_v24, %v8648_v10  ;;  %v11629_v53 = vperm.slane %v8002_v38, 0  ;;  %v11630_v19 = vperm.slane %v11622_v2, 0  ;;  %v11631_v27 = vperm.slane %v11623_v50, 0  ;;  %2806 = vxpose.xlu2.b32.end [2/2] (short) (narrow) %v2727_v32, 16  ;;  %2774 = vxpose.xlu1.b32.end [2/2] (short) (narrow) %v2726_v61, 16 }
 0x366   : > { %v11632_v10 = vperm.slane %v11624_v20, 0  ;;  %v8764_v42 = vsel %vm187_vm1, 0.0, %v3428_v45  ;;  %v8767_v38 = vsel %vm200_vm2, 0.0, %v3438_v18  ;;  %v2558_v2 = vsel %vm171_vm0, %v2542_v40, %v8657_v23  ;;  %v3430_v23 = vpop.permute.xlu2 %3429  ;;  %v11636_v32 = vld [vmem:[#allocation88_spill] sm:$0xff] }
 0x367   : > { %v2568_v3 = vsel %vm1006_vm6, %v2552_v1, %v11629_v53  ;;  %v2569_v56 = vsel %vm1006_vm6, %v2553_v60, %v11630_v19  ;;  %v2571_v43 = vsel %vm1006_vm6, %v2555_v9, %v11631_v27  ;;  %v11634_v50 = vperm.slane %v11536_v0, 0  ;;  %v11641_v53 = vld [vmem:[#allocation46_spill] sm:$0xff]  ;;  %v11642_v19 = vld [vmem:[#allocation37_spill] sm:$0xff]  ;;  %v11644_v27 = vld [vmem:[#allocation99_spill] sm:$0xff] }
 0x368   : > { %v8761_v24 = vsel %vm1006_vm6, %v2554_v51, %v11632_v10  ;;  %v2238_v45 = vperm.slane %v8073_v33, 0  ;;  %v11635_v7 = vrot.slane %v7983_v46, 2  ;;  %v1834_v30 = vrot.slane %v11536_v0, 4  ;;  %v11640_v51 = vld [vmem:[#allocation23_spill] sm:$0xff] }
 0x369   : > { %v8776_v20 = vsel %vm973_vm5, %v2525_v6, %v11634_v50  ;;  %v2296_v40 = vperm.slane %v8257_v13, 0  ;;  %v2584_v6 = vsel %vm1023_vm7, %v2568_v3, %v2264_v58  ;;  %v2585_v11 = vsel %vm1023_vm7, %v2569_v56, %v2265_v59  ;;  %v11637_v13 = vld [vmem:[#allocation93_spill] sm:$0xff]  ;;  %v11638_v58 = vld [vmem:[#allocation95_spill] sm:$0xff]  ;;  %v11639_v59 = vld [vmem:[#allocation20_spill] sm:$0xff] }
 0x36a   : > { %v2527_v35 = vsel %vm956_vm4, %v11635_v7, %v8669_v28  ;;  %v1850_v4 = vrot.slane %v8314_v63, 4  ;;  %v8791_v33 = vsel %vm187_vm1, 0.0, %v3430_v23  ;;  %v2587_v54 = vsel %vm1023_vm7, %v2571_v43, %v2267_v16  ;;  %v11643_v56 = vld [vmem:[#allocation30_spill] sm:$0xff]  ;;  %v11645_v43 = vld [vmem:[#allocation63_spill] sm:$0xff]  ;;  %v11646_v50 = vld [vmem:[#allocation108_spill] sm:$0xff] }
 0x36b   : > { %v2360_v21 = vperm.slane %v8431_v48, 0  ;;  %v2361_v28 = vperm.slane %v8433_v22, 0  ;;  %v2297_v37 = vperm.slane %v8259_v5, 0  ;;  %v2299_v61 = vperm.slane %v11636_v32, 0  ;;  %v11647_v23 = vld [vmem:[#allocation70_spill] sm:$0xff] }
 0x36c   : > { %v8725_v15 = vld [vmem:[#allocation1 + $0x1] ss:$9 sm:$0xff]  ;;  %v8729_v62 = vld [vmem:[#allocation1 + $0x3] ss:$9 sm:$0xff]  ;;  %v2392_v1 = vperm.slane %v11637_v13, 0  ;;  %v2393_v60 = vperm.slane %v11638_v58, 0  ;;  %v2600_v48 = vsel %vm1040_vm8, %v2584_v6, %v2296_v40 }
 0x36d   : > { %11625 = vst [vmem:[#allocation101_spill] sm:$0xff] %v8725_v15  ;;  %v8727_v29 = vld [vmem:[#allocation1 + $0x2] ss:$9 sm:$0xff]  ;;  %v8743_v34 = vld [vmem:[#allocation1 + $0x4] ss:$9 sm:$0xff]  ;;  %v2328_v9 = vperm.slane %v11639_v59, 0  ;;  %v2632_v32 = vsel %vm956_vm4, %v11647_v23, %v2360_v21  ;;  %v2601_v6 = vsel %vm1040_vm8, %v2585_v11, %v2297_v37 }
 0x36e   : > { %11626 = vst [vmem:[#allocation53_spill] sm:$0xff] %v8729_v62  ;;  %v8745_v41 = vld [vmem:[#allocation1 + $0x5] ss:$9 sm:$0xff]  ;;  %v8769_v55 = vld [vmem:[#allocation1 + $0x7] ss:$9 sm:$0xff]  ;;  %v2329_v18 = vperm.slane %v11640_v51, 0 }
 0x36f   : > { %11627 = vst [vmem:[#allocation103_spill] sm:$0xff] %v8743_v34  ;;  %v8747_v26 = vld [vmem:[#allocation1 + $0x6] ss:$9 sm:$0xff]  ;;  %v2424_v3 = vperm.slane %v11641_v53, 0  ;;  %v2425_v16 = vperm.slane %v11642_v19, 0  ;;  %v2331_v22 = vperm.slane %v11643_v56, 0  ;;  %v2603_v56 = vsel %vm1040_vm8, %v2587_v54, %v2299_v61 }
 0x370   : > { %11628 = vst [vmem:[#allocation116_spill] sm:$0xff] %v8747_v26  ;;  %v2456_v5 = vperm.slane %v11644_v27, 0  ;;  %v2457_v10 = vperm.slane %v11645_v43, 0  ;;  %v2488_v7 = vperm.slane %v11646_v50, 0  ;;  %v11648_v13 = vld [vmem:[#allocation109_spill] sm:$0xff]  ;;  %v11649_v59 = vld [vmem:[#allocation90_spill] sm:$0xff]  ;;  %v2648_v27 = vsel %vm973_vm5, %v2632_v32, %v2392_v1 }
 0x371   : > { %11633 = vst [vmem:[#allocation117_spill] sm:$0xff] %v8769_v55  ;;  %v2489_v58 = vperm.slane %v11648_v13, 0  ;;  %v2633_v51 = vsel %vm956_vm4, %v11649_v59, %v2361_v28  ;;  %v2616_v28 = vsel %vm1057_vm9, %v2600_v48, %v2328_v9  ;;  %v2617_v13 = vsel %vm1057_vm9, %v2601_v6, %v2329_v18  ;;  %v11758_v34 = vld [vmem:[#allocation72_spill] sm:$0xff] }
 0x372   : > { %3553 = vst [vmem:[#allocation1] sm:$0xff] %v8764_v42  ;;  %v2649_v43 = vsel %vm973_vm5, %v2633_v51, %v2393_v60  ;;  %v2664_v59 = vsel %vm171_vm0, %v2648_v27, %v2424_v3  ;;  %2837 = vxpose.xlu0.b32.start [1/2] (short) (narrow) %v2616_v28, 16  ;;  %2869 = vxpose.xlu2.b32.start [1/2] (short) (narrow) %v2617_v13, 16  ;;  %v11657_v3 = vld [vmem:[#allocation51_spill] sm:$0xff]  ;;  %v11658_v48 = vrot.slane %v8314_v63, 2  ;;  %v8860_v27 = vperm.slane %v1850_v4, 0 }
 0x373   : > { %v2665_v11 = vsel %vm171_vm0, %v2649_v43, %v2425_v16  ;;  %v2619_v61 = vsel %vm1057_vm9, %v2603_v56, %v2331_v22  ;;  %v2680_v1 = vsel %vm1006_vm6, %v2664_v59, %v2456_v5  ;;  %v2459_v16 = vperm.slane %v11657_v3, 0  ;;  %v11659_v22 = vld [vmem:[#allocation102_spill] sm:$0xff]  ;;  %v11661_v13 = vld [vmem:[#allocation39_spill] sm:$0xff]  ;;  %v11666_v3 = vld [vmem:[#allocation32_spill] sm:$0xff] }
 0x374   : > { %v2681_v60 = vsel %vm1006_vm6, %v2665_v11, %v2457_v10  ;;  %2933 = vxpose.xlu1.b32.start [1/2] (short) (narrow) %v2619_v61, 16  ;;  %v2696_v9 = vsel %vm1023_vm7, %v2680_v1, %v2488_v7  ;;  %v8847_v32 = vperm.slane %v11658_v48, 0  ;;  %v2574_v51 = vsel %vm1006_vm6, %v2558_v2, %v2238_v45  ;;  %v11660_v7 = vld [vmem:[#allocation29_spill] sm:$0xff] }
 0x375   : > { %v2697_v18 = vsel %vm1023_vm7, %v2681_v60, %v2489_v58  ;;  %v8853_v5 = vsel %vm973_vm5, %v2527_v35, %v8699_v36  ;;  %v2145_v10 = vperm.slane %v1820_v44, 0  ;;  %v2266_v56 = vperm.slane %v11660_v7, 0  ;;  %v11662_v35 = vld [vmem:[#allocation107_spill] sm:$0xff]  ;;  %v11663_v44 = vld [vmem:[#allocation77_spill] sm:$0xff] }
 0x376   : > { %v8858_v58 = vperm.slane %v1834_v30, 0  ;;  %v2712_v28 = vsel %vm1040_vm8, %v2696_v9, 0.0  ;;  %v2713_v2 = vsel %vm1040_vm8, %v2697_v18, 0.0  ;;  %v2491_v45 = vperm.slane %v8617_v31, 0  ;;  %v11664_v61 = vld [vmem:[#allocation25_spill] sm:$0xff]  ;;  %v11667_v9 = vld [vmem:[#allocation34_spill] sm:$0xff] }
 0x377   : > { %v2270_v36 = vperm.slane %v11661_v13, 0  ;;  %v2683_v59 = vsel %vm1006_vm6, %v11662_v35, %v2459_v16  ;;  %v2298_v11 = vperm.slane %v11663_v44, 0  ;;  %v2330_v30 = vperm.slane %v11664_v61, 0  ;;  %v11665_v1 = vld [vmem:[#allocation89_spill] sm:$0xff]  ;;  %v11669_v35 = vld [vmem:[#allocation80_spill] sm:$0xff] }
 0x378   : > { %v2302_v4 = vperm.slane %v11665_v1, 0  ;;  %v2699_v60 = vsel %vm1023_vm7, %v2683_v59, %v2491_v45  ;;  %v2362_v48 = vperm.slane %v11666_v3, 0  ;;  %v2364_v7 = vperm.slane %v11667_v9, 0  ;;  %v11668_v18 = vld [vmem:[#allocation45_spill] sm:$0xff] }
 0x379   : > { %v8814_v53 = vld [vmem:[#allocation1] ss:$9 sm:$0xff]  ;;  %v8818_v40 = vld [vmem:[#allocation1 + $0x2] ss:$9 sm:$0xff]  ;;  %v2366_v6 = vperm.slane %v11668_v18, 0  ;;  %v2728_v31 = vsel %vm1057_vm9, %v2712_v28, 0.0  ;;  %v2586_v59 = vsel %vm1023_vm7, %v8761_v24, %v2266_v56  ;;  %v2529_v61 = vsel %vm956_vm4, %v1790_v8, %v2145_v10 }
 0x37a   : > { %v8816_v19 = vld [vmem:[#allocation1 + $0x1] ss:$9 sm:$0xff]  ;;  %11651 = vst [vmem:[#allocation93_spill] sm:$0xff] %v8818_v40  ;;  %v8824_v21 = vld [vmem:[#allocation1 + $0x3] ss:$9 sm:$0xff]  ;;  %v2729_v13 = vsel %vm1057_vm9, %v2713_v2, 0.0  ;;  %v2602_v2 = vsel %vm1040_vm8, %v2586_v59, %v2298_v11 }
 0x37b   : > { %11650 = vst [vmem:[#allocation88_spill] sm:$0xff] %v8816_v19  ;;  %v8826_v50 = vld [vmem:[#allocation1 + $0x4] ss:$9 sm:$0xff]  ;;  %v8834_v37 = vld [vmem:[#allocation1 + $0x6] ss:$9 sm:$0xff]  ;;  %v2715_v16 = vsel %vm1040_vm8, %v2699_v60, 0.0  ;;  %v2590_v60 = vsel %vm1023_vm7, %v2574_v51, %v2270_v36 }
 0x37c   : > { %11652 = vst [vmem:[#allocation95_spill] sm:$0xff] %v8824_v21  ;;  %v8828_v23 = vld [vmem:[#allocation1 + $0x5] ss:$9 sm:$0xff]  ;;  %v8836_v54 = vld [vmem:[#allocation1 + $0x7] ss:$9 sm:$0xff]  ;;  %v2370_v44 = vperm.slane %v11669_v35, 0 }
 0x37d   : > { %11653 = vst [vmem:[#allocation20_spill] sm:$0xff] %v8826_v50  ;;  %2838 = vxpose.xlu0.b32.end [2/2] (short) (narrow) %v2728_v31, 16  ;;  %2870 = vxpose.xlu2.b32.end [2/2] (short) (narrow) %v2729_v13, 16  ;;  %v2731_v45 = vsel %vm1057_vm9, %v2715_v16, 0.0  ;;  %v11670_v28 = vld [vmem:[#allocation18_spill] sm:$0xff]  ;;  %v1833_v3 = vrot.slane %v11536_v0, 3  ;;  %v2618_v31 = vsel %vm1057_vm9, %v2602_v2, %v2330_v30  ;;  %v2606_v13 = vsel %vm1040_vm8, %v2590_v60, %v2302_v4 }
 0x37e   : > { %11654 = vst [vmem:[#allocation23_spill] sm:$0xff] %v8828_v23  ;;  %v2402_v1 = vperm.slane %v11670_v28, 0  ;;  %2934 = vxpose.xlu1.b32.end [2/2] (short) (narrow) %v2731_v45, 16  ;;  %v11671_v9 = vld [vmem:[#allocation61_spill] sm:$0xff]  ;;  %v11673_v8 = vld [vmem:[#allocation92_spill] sm:$0xff]  ;;  %v11675_v45 = vld [vmem:[#allocation94_spill] sm:$0xff] }
 0x37f   : > { %11655 = vst [vmem:[#allocation46_spill] sm:$0xff] %v8834_v37  ;;  %v2434_v18 = vperm.slane %v11671_v9, 0  ;;  %v11672_v24 = vld [vmem:[#allocation41_spill] sm:$0xff]  ;;  %v2634_v10 = vsel %vm956_vm4, %v11673_v8, %v2362_v48  ;;  %v2638_v11 = vsel %vm956_vm4, %v11675_v45, %v2366_v6  ;;  %v11676_v51 = vld [vmem:[#allocation10_spill] sm:$0xff]  ;;  %v3440_v9 = vpop.permute.xlu1 %3439  ;;  %v11678_v30 = vld [vmem:[#allocation84_spill] sm:$0xff]  ;;  %v2404_v21 = vperm.slane %v11758_v34, 0 }
 0x380   : > { %11656 = vst [vmem:[#allocation37_spill] sm:$0xff] %v8836_v54  ;;  %v2334_v56 = vperm.slane %v11672_v24, 0  ;;  %v11674_v16 = vld [vmem:[#allocation81_spill] sm:$0xff]  ;;  %v2466_v36 = vperm.slane %v11676_v51, 0  ;;  %v2394_v2 = vperm.slane %v11678_v30, 0  ;;  %v11680_v4 = vld [vmem:[#allocation60_spill] sm:$0xff] }
 0x381   : > { %3562 = vst [vmem:[#allocation1] sm:$0xff] %v8791_v33  ;;  %v2636_v35 = vsel %vm956_vm4, %v11674_v16, %v2364_v7  ;;  %v11677_v59 = vld [vmem:[#allocation17_spill] sm:$0xff]  ;;  %v2398_v60 = vperm.slane %v11680_v4, 0  ;;  %v11681_v8 = vld [vmem:[#allocation74_spill] sm:$0xff]  ;;  %v11682_v7 = vld [vmem:[#allocation48_spill] sm:$0xff]  ;;  %v2490_v4 = vperm.slane %v8615_v52, 0 }
 0x382   : > { %v2642_v28 = vsel %vm956_vm4, %v11677_v59, %v2370_v44  ;;  %v11679_v24 = vld [vmem:[#allocation97_spill] sm:$0xff]  ;;  %v2426_v54 = vperm.slane %v11681_v8, 0  ;;  %v2428_v16 = vperm.slane %v11682_v7, 0  ;;  %v11683_v50 = vld [vmem:[#allocation83_spill] sm:$0xff]  ;;  %v11684_v51 = vld [vmem:[#allocation64_spill] sm:$0xff] }
 0x383   : > { %v2396_v43 = vperm.slane %v11679_v24, 0  ;;  %v2658_v48 = vsel %vm973_vm5, %v2642_v28, %v2402_v1  ;;  %v2430_v6 = vperm.slane %v11683_v50, 0  ;;  %v2458_v19 = vperm.slane %v11684_v51, 0  ;;  %v11685_v44 = vld [vmem:[#allocation27_spill] sm:$0xff]  ;;  %v11686_v23 = vld [vmem:[#allocation38_spill] sm:$0xff] }
 0x384   : > { %v2674_v45 = vsel %vm171_vm0, %v2658_v48, %v2434_v18  ;;  %v2460_v59 = vperm.slane %v11685_v44, 0  ;;  %v2462_v30 = vperm.slane %v11686_v23, 0  ;;  %v2498_v24 = vperm.slane %v8681_v47, 0  ;;  %v11687_v37 = vld [vmem:[#allocation110_spill] sm:$0xff] }
 0x385   : > { %v2492_v1 = vperm.slane %v11687_v37, 0  ;;  %v2494_v28 = vperm.slane %v8624_v49, 0  ;;  %v2690_v8 = vsel %vm1006_vm6, %v2674_v45, %v2466_v36  ;;  %v2650_v48 = vsel %vm973_vm5, %v2634_v10, %v2394_v2  ;;  %2901 = vxpose.xlu0.b32.start [1/2] (short) (narrow) %v2618_v31, 16 }
 0x386   : > { %v2652_v23 = vsel %vm973_vm5, %v2636_v35, %v2396_v43  ;;  %v2654_v47 = vsel %vm973_vm5, %v2638_v11, %v2398_v60  ;;  %v8932_v52 = vsel %vm1023_vm7, %v2690_v8, %v2498_v24  ;;  %v2622_v45 = vsel %vm1057_vm9, %v2606_v13, %v2334_v56  ;;  %v11693_v11 = vld [vmem:[#allocation43_spill] sm:$0xff] }
 0x387   : > { %v2666_v51 = vsel %vm171_vm0, %v2650_v48, %v2426_v54  ;;  %v2668_v44 = vsel %vm171_vm0, %v2652_v23, %v2428_v16  ;;  %v2670_v10 = vsel %vm171_vm0, %v2654_v47, %v2430_v6  ;;  %v8945_v43 = vsel %vm200_vm2, 0.0, %v3440_v9  ;;  %2965 = vxpose.xlu2.b32.start [1/2] (short) (narrow) %v11693_v11, 16  ;;  %3029 = vxpose.xlu1.b32.start [1/2] (short) (narrow) %v2622_v45, 16  ;;  %v11694_v16 = vld [vmem:[#allocation22_spill] sm:$0xff]  ;;  %v3442_v48 = vpop.permute.xlu1 %3441  ;;  %v11698_v11 = vld [vmem:[#allocation40_spill] sm:$0xff] }
 0x388   : > { %v8880_v39 = vld [vmem:[#allocation1] ss:$9 sm:$0xff]  ;;  %v2682_v2 = vsel %vm1006_vm6, %v2666_v51, %v2458_v19  ;;  %v2684_v60 = vsel %vm1006_vm6, %v2668_v44, %v2460_v59  ;;  %v2686_v56 = vsel %vm1006_vm6, %v2670_v10, %v2462_v30  ;;  %v2241_v6 = vperm.slane %v11694_v16, 0 }
 0x389   : > { %3565 = vst [vmem:[#allocation1] sm:$0xff] %v8767_v38  ;;  %v2698_v54 = vsel %vm1023_vm7, %v2682_v2, %v2490_v4  ;;  %v2700_v13 = vsel %vm1023_vm7, %v2684_v60, %v2492_v1  ;;  %v2702_v9 = vsel %vm1023_vm7, %v2686_v56, %v2494_v28  ;;  %v2545_v31 = vsel %vm973_vm5, %v2529_v61, %v8858_v58  ;;  %v11697_v44 = vld [vmem:[#allocation65_spill] sm:$0xff]  ;;  %v11699_v60 = vld [vmem:[#allocation104_spill] sm:$0xff] }
 0x38a   : > { %v11695_v30 = vrot.slane %v8188_v25, 3  ;;  %v8966_v8 = vperm.slane %v1833_v3, 0  ;;  %v2714_v23 = vsel %vm1040_vm8, %v2698_v54, 0.0  ;;  %v2716_v58 = vsel %vm1040_vm8, %v2700_v13, 0.0  ;;  %v11696_v3 = vld [vmem:[#allocation31_spill] sm:$0xff]  ;;  %v11700_v16 = vld [vmem:[#allocation33_spill] sm:$0xff] }
 0x38b   : > { %v2718_v61 = vsel %vm1040_vm8, %v2702_v9, 0.0  ;;  %v8976_v45 = vsel %vm200_vm2, 0.0, %v3442_v48  ;;  %v2269_v51 = vperm.slane %v11696_v3, 0  ;;  %v2271_v10 = vperm.slane %v11697_v44, 0  ;;  %v11701_v54 = vld [vmem:[#allocation91_spill] sm:$0xff]  ;;  %v11702_v13 = vld [vmem:[#allocation54_spill] sm:$0xff] }
 0x38c   : > { %v8964_v24 = vperm.slane %v11695_v30, 0  ;;  %v2273_v2 = vperm.slane %v11698_v11, 0  ;;  %v2301_v56 = vperm.slane %v11699_v60, 0  ;;  %v2333_v30 = vperm.slane %v11700_v16, 0  ;;  %v11703_v59 = vld [vmem:[#allocation36_spill] sm:$0xff] }
 0x38d   : > { %v2303_v4 = vperm.slane %v11701_v54, 0  ;;  %v2305_v28 = vperm.slane %v11702_v13, 0  ;;  %v2730_v9 = vsel %vm1057_vm9, %v2714_v23, 0.0  ;;  %v2732_v47 = vsel %vm1057_vm9, %v2716_v58, 0.0 }
 0x38e   : > { %v2734_v48 = vsel %vm1057_vm9, %v2718_v61, 0.0  ;;  %v2365_v3 = vperm.slane %v11703_v59, 0  ;;  %v11706_v60 = vperm.slane %v8314_v63, 0  ;;  %v2559_v23 = vsel %vm171_vm0, %v8853_v5, %v8847_v32  ;;  %2902 = vxpose.xlu0.b32.end [2/2] (short) (narrow) %v2730_v9, 16 }
 0x38f   : > { %v11710_v54 = vperm.slane %v8071_v12, 0  ;;  %v11711_v1 = vperm.slane %v11659_v22, 0  ;;  %2966 = vxpose.xlu2.b32.end [2/2] (short) (narrow) %v2732_v47, 16  ;;  %3030 = vxpose.xlu1.b32.end [2/2] (short) (narrow) %v2734_v48, 16 }
 0x390   : > { %v8922_v7 = vld [vmem:[#allocation1 + $0x1] ss:$9 sm:$0xff]  ;;  %v8926_v18 = vld [vmem:[#allocation1 + $0x3] ss:$9 sm:$0xff]  ;;  %v2557_v16 = vsel %vm171_vm0, %v8776_v20, %v11706_v60  ;;  %v2561_v20 = vsel %vm171_vm0, %v2545_v31, %v8860_v27 }
 0x391   : > { %11688 = vst [vmem:[#allocation30_spill] sm:$0xff] %v8922_v7  ;;  %v8924_v50 = vld [vmem:[#allocation1 + $0x2] ss:$9 sm:$0xff]  ;;  %v8934_v37 = vld [vmem:[#allocation1 + $0x4] ss:$9 sm:$0xff]  ;;  %v2573_v13 = vsel %vm1006_vm6, %v2557_v16, %v11710_v54  ;;  %v2577_v12 = vsel %vm1006_vm6, %v2561_v20, %v2241_v6 }
 0x392   : > { %11689 = vst [vmem:[#allocation99_spill] sm:$0xff] %v8926_v18  ;;  %v8936_v49 = vld [vmem:[#allocation1 + $0x5] ss:$9 sm:$0xff]  ;;  %v8947_v35 = vld [vmem:[#allocation1 + $0x7] ss:$9 sm:$0xff]  ;;  %v2589_v5 = vsel %vm1023_vm7, %v2573_v13, %v2269_v51  ;;  %v2593_v27 = vsel %vm1023_vm7, %v2577_v12, %v2273_v2 }
 0x393   : > { %11690 = vst [vmem:[#allocation63_spill] sm:$0xff] %v8934_v37  ;;  %v8938_v36 = vld [vmem:[#allocation1 + $0x6] ss:$9 sm:$0xff]  ;;  %v2605_v22 = vsel %vm1040_vm8, %v2589_v5, %v2301_v56  ;;  %v2609_v47 = vsel %vm1040_vm8, %v2593_v27, %v2305_v28 }
 0x394   : > { %11691 = vst [vmem:[#allocation108_spill] sm:$0xff] %v8938_v36  ;;  %v11714_v31 = vld [vmem:[#allocation47_spill] sm:$0xff]  ;;  %v11716_v51 = vld [vmem:[#allocation58_spill] sm:$0xff]  ;;  %v2621_v6 = vsel %vm1057_vm9, %v2605_v22, %v2333_v30  ;;  %v11718_v13 = vld [vmem:[#allocation68_spill] sm:$0xff] }
 0x395   : > { %11692 = vst [vmem:[#allocation70_spill] sm:$0xff] %v8947_v35  ;;  %v2367_v16 = vperm.slane %v11714_v31, 0  ;;  %v2397_v54 = vperm.slane %v11716_v51, 0  ;;  %v2337_v48 = vperm.slane %v11718_v13, 0  ;;  %v11719_v20 = vld [vmem:[#allocation75_spill] sm:$0xff]  ;;  %v11720_v5 = vld [vmem:[#allocation85_spill] sm:$0xff] }
 0x396   : > { %3580 = vst [vmem:[#allocation1] sm:$0xff] %v8945_v43  ;;  %v2429_v56 = vperm.slane %v11719_v20, 0  ;;  %v11722_v12 = vld [vmem:[#allocation56_spill] sm:$0xff]  ;;  %v11724_v28 = vld [vmem:[#allocation71_spill] sm:$0xff]  ;;  %v11727_v30 = vld [vmem:[#allocation57_spill] sm:$0xff]  ;;  %2997 = vxpose.xlu0.b32.start [1/2] (short) (narrow) %v2621_v6, 16 }
 0x397   : > { %v2637_v31 = vsel %vm956_vm4, %v11722_v12, %v2365_v3  ;;  %v2369_v27 = vperm.slane %v11724_v28, 0  ;;  %v11725_v51 = vld [vmem:[#allocation111_spill] sm:$0xff]  ;;  %v2639_v22 = vsel %vm956_vm4, %v11727_v30, %v2367_v16  ;;  %v11729_v3 = vld [vmem:[#allocation96_spill] sm:$0xff]  ;;  %v11734_v6 = vrot.slane %v8188_v25, 5  ;;  %v11755_v37 = vld [vmem:[#allocation82_spill] sm:$0xff] }
 0x398   : > { %v11728_v13 = vld [vmem:[#allocation35_spill] sm:$0xff]  ;;  %v2433_v12 = vperm.slane %v11729_v3, 0  ;;  %v11735_v30 = vrot.slane %v7983_v46, 3 }
 0x399   : > { %v2401_v20 = vperm.slane %v11728_v13, 0 }
 0x39d   : > { %v8989_v19 = vld [vmem:[#allocation1] ss:$9 sm:$0xff]  ;;  %v8993_v11 = vld [vmem:[#allocation1 + $0x2] ss:$9 sm:$0xff] }
 0x39e   : > { %v8991_v44 = vld [vmem:[#allocation1 + $0x1] ss:$9 sm:$0xff]  ;;  %11705 = vst [vmem:[#allocation90_spill] sm:$0xff] %v8993_v11  ;;  %v9002_v58 = vld [vmem:[#allocation1 + $0x3] ss:$9 sm:$0xff] }
 0x39f   : > { %11704 = vst [vmem:[#allocation109_spill] sm:$0xff] %v8991_v44  ;;  %v9004_v61 = vld [vmem:[#allocation1 + $0x4] ss:$9 sm:$0xff]  ;;  %v2575_v44 = vsel %vm1006_vm6, %v2559_v23, %v11711_v1  ;;  %v9016_v60 = vld [vmem:[#allocation1 + $0x6] ss:$9 sm:$0xff] }
 0x3a0   : > { %11707 = vst [vmem:[#allocation51_spill] sm:$0xff] %v9002_v58  ;;  %v9006_v59 = vld [vmem:[#allocation1 + $0x5] ss:$9 sm:$0xff]  ;;  %v9018_v32 = vld [vmem:[#allocation1 + $0x7] ss:$9 sm:$0xff] }
 0x3a1   : > { %11708 = vst [vmem:[#allocation102_spill] sm:$0xff] %v9004_v61  ;;  %v2591_v61 = vsel %vm1023_vm7, %v2575_v44, %v2271_v10  ;;  %v11715_v23 = vld [vmem:[#allocation44_spill] sm:$0xff]  ;;  %v11717_v10 = vld [vmem:[#allocation62_spill] sm:$0xff] }
 0x3a2   : > { %11709 = vst [vmem:[#allocation29_spill] sm:$0xff] %v9006_v59  ;;  %v2607_v1 = vsel %vm1040_vm8, %v2591_v61, %v2303_v4  ;;  %v2335_v9 = vperm.slane %v11715_v23, 0  ;;  %v2399_v44 = vperm.slane %v11717_v10, 0  ;;  %v2431_v4 = vperm.slane %v11720_v5, 0  ;;  %v11721_v61 = vld [vmem:[#allocation19_spill] sm:$0xff]  ;;  %v11723_v23 = vld [vmem:[#allocation49_spill] sm:$0xff] }
 0x3a3   : > { %11712 = vst [vmem:[#allocation39_spill] sm:$0xff] %v9016_v60  ;;  %v2461_v2 = vperm.slane %v11721_v61, 0  ;;  %v2493_v59 = vperm.slane %v11725_v51, 0  ;;  %v11726_v10 = vld [vmem:[#allocation112_spill] sm:$0xff]  ;;  %v2653_v61 = vsel %vm973_vm5, %v2637_v31, %v2397_v54 }
 0x3a4   : > { %11713 = vst [vmem:[#allocation107_spill] sm:$0xff] %v9018_v32  ;;  %v2463_v32 = vperm.slane %v11723_v23, 0  ;;  %v2495_v60 = vperm.slane %v11726_v10, 0  ;;  %v2623_v5 = vsel %vm1057_vm9, %v2607_v1, %v2335_v9  ;;  %v2655_v36 = vsel %vm973_vm5, %v2639_v22, %v2399_v44  ;;  %v11730_v10 = vld [vmem:[#allocation9_spill] sm:$0xff]  ;;  %v11731_v9 = vld [vmem:[#allocation115_spill] sm:$0xff]  ;;  %v11732_v44 = vld [vmem:[#allocation50_spill] sm:$0xff]  ;;  %v3450_v22 = vpop.permute.xlu2 %3449 }
 0x3a5   : > { %3589 = vst [vmem:[#allocation1] sm:$0xff] %v8976_v45  ;;  %v2625_v23 = vsel %vm1057_vm9, %v2609_v47, %v2337_v48  ;;  %v2669_v28 = vsel %vm171_vm0, %v2653_v61, %v2429_v56  ;;  %v2671_v51 = vsel %vm171_vm0, %v2655_v36, %v2431_v4  ;;  %v2465_v26 = vperm.slane %v11730_v10, 0  ;;  %3061 = vxpose.xlu2.b32.start [1/2] (short) (narrow) %v2623_v5, 16  ;;  %v11733_v47 = vld [vmem:[#allocation12_spill] sm:$0xff] }
 0x3a6   : > { %v2685_v1 = vsel %vm1006_vm6, %v2669_v28, %v2461_v2  ;;  %v2687_v16 = vsel %vm1006_vm6, %v2671_v51, %v2463_v32  ;;  %v2497_v54 = vperm.slane %v11731_v9, 0  ;;  %v2641_v31 = vsel %vm956_vm4, %v11732_v44, %v2369_v27  ;;  %3125 = vxpose.xlu1.b32.start [1/2] (short) (narrow) %v2625_v23, 16  ;;  %v9067_v2 = vpop.permute.xlu1 %5108  ;;  %v11737_v5 = vld [vmem:[#allocation52_spill] sm:$0xff] }
 0x3a7   : > { %v2701_v36 = vsel %vm1023_vm7, %v2685_v1, %v2493_v59  ;;  %v2703_v48 = vsel %vm1023_vm7, %v2687_v16, %v2495_v60  ;;  %v2657_v56 = vsel %vm973_vm5, %v2641_v31, %v2401_v20  ;;  %v2146_v4 = vperm.slane %v11734_v6, 0  ;;  %v11740_v10 = vld [vmem:[#allocation28_spill] sm:$0xff]  ;;  %v11742_v31 = vld [vmem:[#allocation66_spill] sm:$0xff] }
 0x3a8   : > { %v2673_v32 = vsel %vm171_vm0, %v2657_v56, %v2433_v12  ;;  %v2528_v27 = vsel %vm956_vm4, %v11735_v30, %v8964_v24  ;;  %v11736_v59 = vrot.slane %v8314_v63, 3  ;;  %v2240_v20 = vperm.slane %v11737_v5, 0  ;;  %v11744_v56 = vld [vmem:[#allocation42_spill] sm:$0xff]  ;;  %v9108_v5 = vpop.permute.xlu0 %3453 }
 0x3a9   : > { %v2689_v13 = vsel %vm1006_vm6, %v2673_v32, %v2465_v26  ;;  %v2717_v61 = vsel %vm1040_vm8, %v2701_v36, 0.0  ;;  %v2719_v3 = vsel %vm1040_vm8, %v2703_v48, 0.0  ;;  %v11738_v12 = vrot.slane %v11536_v0, 5  ;;  %v11743_v36 = vld [vmem:[#allocation105_spill] sm:$0xff] }
 0x3aa   : > { %v2208_v60 = vperm.slane %v11736_v59, 0  ;;  %v2705_v23 = vsel %vm1023_vm7, %v2689_v13, %v2497_v54  ;;  %v2544_v24 = vsel %vm973_vm5, %v2528_v27, %v8966_v8  ;;  %v11739_v51 = vrot.slane %v8314_v63, 5 }
 0x3ab   : > { %v2178_v28 = vperm.slane %v11738_v12, 0  ;;  %v2242_v1 = vperm.slane %v11740_v10, 0  ;;  %v11741_v16 = vrot.slane %v7983_v46, 5  ;;  %v9092_v44 = vsel %vm213_vm3, %v3450_v22, 0.0 }
 0x3ac   : > { %v9054_v11 = vld [vmem:[#allocation1] ss:$9 sm:$0xff]  ;;  %v2210_v26 = vperm.slane %v11739_v51, 0  ;;  %v2272_v54 = vperm.slane %v11742_v31, 0  ;;  %v2304_v48 = vperm.slane %v11743_v36, 0  ;;  %v2274_v6 = vperm.slane %v11744_v56, 0 }
 0x3ad   : > { %3591 = vst [vmem:[#allocation1] sm:$0xff] %v11733_v47  ;;  %v2530_v9 = vsel %vm956_vm4, %v11741_v16, %v2146_v4  ;;  %v2733_v8 = vsel %vm1057_vm9, %v2717_v61, 0.0  ;;  %v2735_v32 = vsel %vm1057_vm9, %v2719_v3, 0.0  ;;  %v2721_v30 = vsel %vm1040_vm8, %v2705_v23, 0.0  ;;  %v11750_v31 = vld [vmem:[#allocation13_spill] sm:$0xff] }
 0x3ae   : > { %v3499_v27 = vrot.slane %v8767_v38, 7  ;;  %v2546_v59 = vsel %vm973_vm5, %v2530_v9, %v2178_v28  ;;  %2998 = vxpose.xlu0.b32.end [2/2] (short) (narrow) %v2733_v8, 16  ;;  %3062 = vxpose.xlu2.b32.end [2/2] (short) (narrow) %v2735_v32, 16  ;;  %v2737_v23 = vsel %vm1057_vm9, %v2721_v30, 0.0  ;;  %v2560_v10 = vsel %vm171_vm0, %v2544_v24, %v2208_v60  ;;  %v11751_v30 = vld [vmem:[#allocation69_spill] sm:$0xff] }
 0x3af   : > { %v3513_v16 = vrot.slane %v11733_v47, 7  ;;  %3126 = vxpose.xlu1.b32.end [2/2] (short) (narrow) %v2737_v23, 16  ;;  %v2576_v28 = vsel %vm1006_vm6, %v2560_v10, %v2240_v20  ;;  %v2562_v9 = vsel %vm171_vm0, %v2546_v59, %v2210_v26  ;;  %v3469_v36 = vrot.slane %v8672_v17, 7  ;;  %v11752_v23 = vld [vmem:[#allocation55_spill] sm:$0xff]  ;;  %v11754_v10 = vld [vmem:[#allocation26_spill] sm:$0xff] }
 0x3b0   : > { %v3823_v56 = vperm.slane %v3499_v27, 0  ;;  %v2592_v8 = vsel %vm1023_vm7, %v2576_v28, %v2272_v54  ;;  %v2578_v32 = vsel %vm1006_vm6, %v2562_v9, %v2242_v1  ;;  %v2368_v60 = vperm.slane %v11751_v30, 0  ;;  %v11753_v59 = vld [vmem:[#allocation67_spill] sm:$0xff]  ;;  %v11756_v1 = vld [vmem:[#allocation78_spill] sm:$0xff] }
 0x3b1   : > { %v3529_v24 = vrot.slane %v9092_v44, 7  ;;  %v2608_v40 = vsel %vm1040_vm8, %v2592_v8, %v2304_v48  ;;  %v2594_v20 = vsel %vm1023_vm7, %v2578_v32, %v2274_v6  ;;  %v1822_v26 = vrot.slane %v8188_v25, 6  ;;  %v11757_v30 = vld [vmem:[#allocation87_spill] sm:$0xff]  ;;  %v11759_v8 = vld [vmem:[#allocation100_spill] sm:$0xff]  ;;  %v11761_v32 = vld [vmem:[#allocation98_spill] sm:$0xff] }
 0x3b2   : > { %v2336_v27 = vperm.slane %v11753_v59, 0  ;;  %v2372_v54 = vperm.slane %v11755_v37, 0  ;;  %v3855_v28 = vperm.slane %v3513_v16, 0  ;;  %v2338_v9 = vperm.slane %v11756_v1, 0  ;;  %v11760_v6 = vld [vmem:[#allocation59_spill] sm:$0xff]  ;;  %v11763_v37 = vld [vmem:[#allocation106_spill] sm:$0xff] }
 0x3b3   : > { %v2432_v58 = vperm.slane %v11757_v30, 0  ;;  %v4207_v48 = vsel %vm956_vm4, %v3469_v36, %v3823_v56  ;;  %v2640_v25 = vsel %vm956_vm4, %v11760_v6, %v2368_v60  ;;  %v2436_v59 = vperm.slane %v11761_v32, 0  ;;  %v9161_v32 = vpop.permute.xlu2 %3451 }
 0x3b4   : > { %v9101_v13 = vld [vmem:[#allocation1 + $0x1] ss:$9 sm:$0xff]  ;;  %v9105_v22 = vld [vmem:[#allocation1 + $0x3] ss:$9 sm:$0xff]  ;;  %v3887_v35 = vperm.slane %v3529_v24, 0  ;;  %v2468_v16 = vperm.slane %v11763_v37, 0  ;;  %v4223_v6 = vsel %vm973_vm5, %v4207_v48, %v3855_v28 }
 0x3b5   : > { %11745 = vst [vmem:[#allocation77_spill] sm:$0xff] %v9101_v13  ;;  %v9103_v4 = vld [vmem:[#allocation1 + $0x2] ss:$9 sm:$0xff]  ;;  %v9110_v12 = vld [vmem:[#allocation1 + $0x4] ss:$9 sm:$0xff]  ;;  %v2500_v1 = vperm.slane %v8685_v57, 0  ;;  %v9163_v57 = vpop.permute.xlu0 %5124 }
 0x3b6   : > { %11746 = vst [vmem:[#allocation25_spill] sm:$0xff] %v9105_v22  ;;  %v9112_v51 = vld [vmem:[#allocation1 + $0x5] ss:$9 sm:$0xff]  ;;  %v9116_v3 = vld [vmem:[#allocation1 + $0x7] ss:$9 sm:$0xff]  ;;  %v3919_v30 = vperm.slane %v8814_v53, 0 }
 0x3b7   : > { %11747 = vst [vmem:[#allocation89_spill] sm:$0xff] %v9110_v12  ;;  %v9114_v61 = vld [vmem:[#allocation1 + $0x6] ss:$9 sm:$0xff]  ;;  %v2306_v12 = vperm.slane %v11752_v23, 0  ;;  %v2464_v23 = vperm.slane %v11759_v8, 0 }
 0x3b8   : > { %11748 = vst [vmem:[#allocation32_spill] sm:$0xff] %v9114_v61  ;;  %v9125_v61 = vpop.permute.xlu1 %5112  ;;  %v11766_v8 = vld [vmem:[#allocation24_spill] sm:$0xff] }
 0x3b9   : > { %11749 = vst [vmem:[#allocation34_spill] sm:$0xff] %v9116_v3  ;;  %v2400_v3 = vperm.slane %v11754_v10, 0  ;;  %v11762_v10 = vld [vmem:[#allocation114_spill] sm:$0xff]  ;;  %v2610_v56 = vsel %vm1040_vm8, %v2594_v20, %v2306_v12  ;;  %v2644_v24 = vsel %vm956_vm4, %v11766_v8, %v2372_v54  ;;  %v11772_v8 = vld [vmem:[#allocation11_spill] sm:$0xff] }
 0x3ba   : > { %3606 = vst [vmem:[#allocation1] sm:$0xff] %v11750_v31  ;;  %v2496_v55 = vperm.slane %v11762_v10, 0  ;;  %v2626_v12 = vsel %vm1057_vm9, %v2610_v56, %v2338_v9  ;;  %v2660_v20 = vsel %vm973_vm5, %v2644_v24, %v2404_v21  ;;  %v3951_v21 = vperm.slane %v8989_v19, 0 }
 0x3bb   : > { %v2656_v60 = vsel %vm973_vm5, %v2640_v25, %v2400_v3  ;;  %3157 = vxpose.xlu2.b32.start [1/2] (short) (narrow) %v2626_v12, 16  ;;  %v2676_v25 = vsel %vm171_vm0, %v2660_v20, %v2436_v59  ;;  %v1792_v56 = vrot.slane %v7983_v46, 6  ;;  %v2722_v19 = vsel %vm1040_vm8, %v8932_v52, 0.0 }
 0x3bc   : > { %v2672_v3 = vsel %vm171_vm0, %v2656_v60, %v2432_v58  ;;  %v2692_v58 = vsel %vm1006_vm6, %v2676_v25, %v2468_v16  ;;  %v2147_v60 = vperm.slane %v1822_v26, 0  ;;  %v1852_v16 = vrot.slane %v8314_v63, 6  ;;  %v11775_v25 = vld [vmem:[#allocation76_spill] sm:$0xff] }
 0x3bd   : > { %v2688_v48 = vsel %vm1006_vm6, %v2672_v3, %v2464_v23  ;;  %v1836_v23 = vrot.slane %v11536_v0, 6  ;;  %v1202_v0 = vpop.trf.xlu0  ;;  %v2738_v46 = vsel %vm1057_vm9, %v2722_v19, 0.0  ;;  %v11774_v3 = vld [vmem:[#allocation21_spill] sm:$0xff]  ;;  %v2499_v19 = vperm.slane %v8683_v14, 0 }
 0x3be   : > { %v2531_v26 = vsel %vm956_vm4, %v1792_v56, %v2147_v60  ;;  %v2211_v63 = vperm.slane %v1852_v16, 0  ;;  %v2243_v20 = vperm.slane %v11774_v3, 0  ;;  %v11778_v56 = vld [vmem:[#allocation8_spill] sm:$0xff]  ;;  %1699 = vst.msk [vmem:[%s9258_s23] sm:$0xff] %vm1698_vm10, %v1202_v0 }
 0x3bf   : > { %v2467_v60 = vperm.slane %v11778_v56, 0  ;;  %v3506_v56 = vrot.slane %v8945_v43, 7 }
 0x3c0   : > { %v9187_v9 = vpop.permute.xlu1 %5120 }
 0x3c1   : > { %v9150_v22 = vld [vmem:[#allocation1] ss:$9 sm:$0xff]  ;;  %v9154_v36 = vld [vmem:[#allocation1 + $0x2] ss:$9 sm:$0xff] }
 0x3c2   : > { %v9152_v34 = vld [vmem:[#allocation1 + $0x1] ss:$9 sm:$0xff]  ;;  %11765 = vst [vmem:[#allocation80_spill] sm:$0xff] %v9154_v36  ;;  %v9165_v53 = vld [vmem:[#allocation1 + $0x3] ss:$9 sm:$0xff] }
 0x3c3   : > { %11764 = vst [vmem:[#allocation45_spill] sm:$0xff] %v9152_v34  ;;  %v9167_v10 = vld [vmem:[#allocation1 + $0x4] ss:$9 sm:$0xff]  ;;  %v2624_v34 = vsel %vm1057_vm9, %v2608_v40, %v2336_v27  ;;  %v9175_v54 = vld [vmem:[#allocation1 + $0x6] ss:$9 sm:$0xff]  ;;  %v2704_v40 = vsel %vm1023_vm7, %v2688_v48, %v2496_v55  ;;  %v4239_v27 = vsel %vm171_vm0, %v4223_v6, %v3887_v35  ;;  %v9201_v6 = vpop.permute.xlu2 %5110  ;;  %3158 = vxpose.xlu2.b32.end [2/2] (short) (narrow) %v2738_v46, 16 }
 0x3c4   : > { %11767 = vst [vmem:[#allocation18_spill] sm:$0xff] %v9165_v53  ;;  %v9169_v37 = vld [vmem:[#allocation1 + $0x5] ss:$9 sm:$0xff]  ;;  %v9177_v28 = vld [vmem:[#allocation1 + $0x7] ss:$9 sm:$0xff]  ;;  %3093 = vxpose.xlu0.b32.start [1/2] (short) (narrow) %v2624_v34, 16  ;;  %v2708_v34 = vsel %vm1023_vm7, %v2692_v58, %v2500_v1  ;;  %v4255_v59 = vsel %vm1006_vm6, %v4239_v27, %v3919_v30 }
 0x3c5   : > { %11768 = vst [vmem:[#allocation61_spill] sm:$0xff] %v9167_v10  ;;  %v11773_v10 = vld [vmem:[#allocation73_spill] sm:$0xff]  ;;  %v9194_v24 = vsel %vm1023_vm7, %v4255_v59, %v3951_v21  ;;  %v2720_v55 = vsel %vm1040_vm8, %v2704_v40, 0.0  ;;  %v2724_v35 = vsel %vm1040_vm8, %v2708_v34, 0.0  ;;  %v2179_v1 = vperm.slane %v1836_v23, 0  ;;  %v11776_v58 = vld [vmem:[#allocation86_spill] sm:$0xff] }
 0x3c6   : > { %11769 = vst [vmem:[#allocation41_spill] sm:$0xff] %v9169_v37  ;;  %3221 = vxpose.xlu1.b32.start [1/2] (short) (narrow) %v11773_v10, 16  ;;  %v2736_v30 = vsel %vm1057_vm9, %v2720_v55, 0.0  ;;  %v2740_v52 = vsel %vm1057_vm9, %v2724_v35, 0.0  ;;  %v2275_v40 = vperm.slane %v11775_v25, 0  ;;  %v2307_v21 = vperm.slane %v11776_v58, 0 }
 0x3c7   : > { %11770 = vst [vmem:[#allocation92_spill] sm:$0xff] %v9175_v54  ;;  %v2547_v48 = vsel %vm973_vm5, %v2531_v26, %v2179_v1  ;;  %v11777_v27 = vld [vmem:[#allocation79_spill] sm:$0xff] }
 0x3c8   : > { %11771 = vst [vmem:[#allocation81_spill] sm:$0xff] %v9177_v28  ;;  %v9210_v12 = vpop.permute.xlu1 %5122  ;;  %v2339_v34 = vperm.slane %v11777_v27, 0  ;;  %v2563_v23 = vsel %vm171_vm0, %v2547_v48, %v2211_v63  ;;  %v3476_v28 = vrot.slane %v8764_v42, 7 }
 0x3c9   : > { %3615 = vst [vmem:[#allocation1] sm:$0xff] %v11772_v8  ;;  %v2579_v59 = vsel %vm1006_vm6, %v2563_v23, %v2243_v20  ;;  %v9240_v20 = vsel %vm213_vm3, %v9161_v32, 0.0  ;;  %v9254_v32 = vsel %vm213_vm3, %v9108_v5, 0.0 }
 0x3ca   : > { %v2595_v55 = vsel %vm1023_vm7, %v2579_v59, %v2275_v40  ;;  %v11785_v40 = vld [vmem:[#allocation113_spill] sm:$0xff]  ;;  %v3983_v59 = vperm.slane %v9150_v22, 0 }
 0x3cb   : > { %v2611_v46 = vsel %vm1040_vm8, %v2595_v55, %v2307_v21  ;;  %v9229_v26 = vpop.permute.xlu2 %5132  ;;  %v2691_v58 = vsel %vm1006_vm6, %v11785_v40, %v2467_v60 }
 0x3cc   : > { %3094 = vxpose.xlu0.b32.end [2/2] (short) (narrow) %v2736_v30, 16  ;;  %v1203_v30 = vpop.trf.xlu0  ;;  %v2627_v14 = vsel %vm1057_vm9, %v2611_v46, %v2339_v34  ;;  %v2707_v21 = vsel %vm1023_vm7, %v2691_v58, %v2499_v19  ;;  %v4287_v22 = vsel %vm1040_vm8, %v9194_v24, %v3983_v59  ;;  %v3536_v24 = vrot.slane %v9240_v20, 7 }
 0x3cd   : > { %v2723_v27 = vsel %vm1040_vm8, %v2707_v21, 0.0  ;;  %1700 = vst.msk [vmem:[%s9258_s23 + $0x8] sm:$0xff] %vm1698_vm10, %v1203_v30 }
 0x3ce   : > { %3222 = vxpose.xlu1.b32.end [2/2] (short) (narrow) %v2740_v52, 16  ;;  %v2739_v23 = vsel %vm1057_vm9, %v2723_v27, 0.0  ;;  %v3520_v27 = vrot.slane %v11750_v31, 7 }
 0x3d0   : > { %v9206_v10 = vld [vmem:[#allocation1] ss:$9 sm:$0xff]  ;;  %v9244_v25 = vpop.permute.xlu1 %5136  ;;  %v3863_v59 = vperm.slane %v3520_v27, 0 }
 0x3d1   : > { %3618 = vst [vmem:[#allocation1] sm:$0xff] %v9092_v44 }
 0x3d2   : > { %11784 = vst [vmem:[#allocation60_spill] sm:$0xff] %v9244_v25 }
 0x3d3   : > { %v9256_v34 = vpop.permute.xlu2 %5134 }
 0x3d4   : > { %3189 = vxpose.xlu0.b32.start [1/2] (short) (narrow) %v2627_v14, 16  ;;  %v1298_v46 = vpop.trf.xlu0 }
 0x3d5   : > { %1705 = vst.msk [vmem:[%s9258_s23 + $0x30] sm:$0xff] %vm1698_vm10, %v1298_v46 }
 0x3d8   : > { %v9222_v35 = vld [vmem:[#allocation1 + $0x1] ss:$9 sm:$0xff]  ;;  %v9226_v1 = vld [vmem:[#allocation1 + $0x3] ss:$9 sm:$0xff]  ;;  %v1234_v19 = vpop.trf.xlu1 }
 0x3d9   : > { %11779 = vst [vmem:[#allocation94_spill] sm:$0xff] %v9222_v35  ;;  %v9224_v16 = vld [vmem:[#allocation1 + $0x2] ss:$9 sm:$0xff]  ;;  %v9231_v52 = vld [vmem:[#allocation1 + $0x4] ss:$9 sm:$0xff] }
 0x3da   : > { %11780 = vst [vmem:[#allocation10_spill] sm:$0xff] %v9226_v1  ;;  %v9233_v63 = vld [vmem:[#allocation1 + $0x5] ss:$9 sm:$0xff]  ;;  %v9242_v48 = vld [vmem:[#allocation1 + $0x7] ss:$9 sm:$0xff] }
 0x3db   : > { %11781 = vst [vmem:[#allocation17_spill] sm:$0xff] %v9231_v52  ;;  %v9235_v3 = vld [vmem:[#allocation1 + $0x6] ss:$9 sm:$0xff] }
 0x3dc   : > { %11782 = vst [vmem:[#allocation84_spill] sm:$0xff] %v9235_v3  ;;  %3190 = vxpose.xlu0.b32.end [2/2] (short) (narrow) %v2739_v23, 16  ;;  %v1299_v23 = vpop.trf.xlu0 }
 0x3dd   : > { %11783 = vst [vmem:[#allocation97_spill] sm:$0xff] %v9242_v48 }
 0x3de   : > { %3633 = vst [vmem:[#allocation1] sm:$0xff] %v9240_v20 }
 0x3df   : > { %1701 = vst.msk [vmem:[%s9258_s23 + $0x10] sm:$0xff] %vm1698_vm10, %v1234_v19  ;;  %v3895_v19 = vperm.slane %v3536_v24, 0 }
 0x3e0   : > { %1706 = vst.msk [vmem:[%s9258_s23 + $0x38] sm:$0xff] %vm1698_vm10, %v1299_v23 }
 0x3e5   : > { %v3634_v60 = vld [vmem:[#allocation1] ss:$9 sm:$0xff]  ;;  %v9267_v5 = vld [vmem:[#allocation1 + $0x2] ss:$9 sm:$0xff] }
 0x3e6   : > { %v9265_v55 = vld [vmem:[#allocation1 + $0x1] ss:$9 sm:$0xff]  ;;  %11787 = vst [vmem:[#allocation48_spill] sm:$0xff] %v9267_v5  ;;  %v9269_v14 = vld [vmem:[#allocation1 + $0x3] ss:$9 sm:$0xff] }
 0x3e7   : > { %11786 = vst [vmem:[#allocation74_spill] sm:$0xff] %v9265_v55  ;;  %v9271_v40 = vld [vmem:[#allocation1 + $0x4] ss:$9 sm:$0xff]  ;;  %v9277_v58 = vld [vmem:[#allocation1 + $0x6] ss:$9 sm:$0xff]  ;;  %v1235_v55 = vpop.trf.xlu1 }
 0x3e8   : > { %11788 = vst [vmem:[#allocation83_spill] sm:$0xff] %v9269_v14  ;;  %v9273_v0 = vld [vmem:[#allocation1 + $0x5] ss:$9 sm:$0xff]  ;;  %v9279_v21 = vld [vmem:[#allocation1 + $0x7] ss:$9 sm:$0xff] }
 0x3e9   : > { %11789 = vst [vmem:[#allocation64_spill] sm:$0xff] %v9271_v40  ;;  %v3831_v40 = vperm.slane %v3506_v56, 0  ;;  %v3927_v56 = vperm.slane %v8880_v39, 0  ;;  %v1362_v39 = vpop.trf.xlu0 }
 0x3ea   : > { %11790 = vst [vmem:[#allocation27_spill] sm:$0xff] %v9273_v0 }
 0x3eb   : > { %11791 = vst [vmem:[#allocation38_spill] sm:$0xff] %v9277_v58  ;;  %v4215_v30 = vsel %vm956_vm4, %v3476_v28, %v3831_v40  ;;  %v3959_v28 = vperm.slane %v9054_v11, 0 }
 0x3ec   : > { %11792 = vst [vmem:[#allocation110_spill] sm:$0xff] %v9279_v21  ;;  %v1266_v21 = vpop.trf.xlu2  ;;  %v4231_v46 = vsel %vm973_vm5, %v4215_v30, %v3863_v59 }
 0x3ed   : > { %3642 = vst [vmem:[#allocation1] sm:$0xff] %v9254_v32  ;;  %v4247_v40 = vsel %vm171_vm0, %v4231_v46, %v3895_v19 }
 0x3ee   : > { %1703 = vst.msk [vmem:[%s9258_s23 + $0x20] sm:$0xff] %vm1698_vm10, %v1266_v21  ;;  %v4263_v21 = vsel %vm1006_vm6, %v4247_v40, %v3927_v56  ;;  %v4015_v56 = vperm.slane %v3634_v60, 0 }
 0x3ef   : > { %1702 = vst.msk [vmem:[%s9258_s23 + $0x18] sm:$0xff] %vm1698_vm10, %v1235_v55  ;;  %v1394_v37 = vpop.trf.xlu1  ;;  %v4279_v55 = vsel %vm1023_vm7, %v4263_v21, %v3959_v28 }
 0x3f0   : > { %1711 = vst.msk [vmem:[%s9258_s23 + $0x60] sm:$0xff] %vm1698_vm10, %v1394_v37  ;;  %v9329_v21 = vsel %vm1057_vm9, %v4287_v22, %v4015_v56 }
 0x3f1   : > { %1709 = vst.msk [vmem:[%s9258_s23 + $0x50] sm:$0xff] %vm1698_vm10, %v1362_v39  ;;  %v1363_v40 = vpop.trf.xlu0 }
 0x3f2   : > { %11797 = vst [vmem:[#allocation40_spill] sm:$0xff] %v9329_v21 }
 0x3f3   : > { %1710 = vst.msk [vmem:[%s9258_s23 + $0x58] sm:$0xff] %vm1698_vm10, %v1363_v40 }
 0x3f4   : > { %v9294_v0 = vld [vmem:[#allocation1] ss:$9 sm:$0xff]  ;;  %v1267_v27 = vpop.trf.xlu2 }
 0x3f5   : > { %3644 = vst [vmem:[#allocation1] sm:$0xff] %v8672_v17 }
 0x3f6   : > { %1704 = vst.msk [vmem:[%s9258_s23 + $0x28] sm:$0xff] %vm1698_vm10, %v1267_v27 }
 0x3f7   : > { %v1395_v28 = vpop.trf.xlu1 }
 0x3f8   : > { %1712 = vst.msk [vmem:[%s9258_s23 + $0x68] sm:$0xff] %vm1698_vm10, %v1395_v28 }
 0x3fc   : > { %v9309_v24 = vld [vmem:[#allocation1 + $0x2] ss:$9 sm:$0xff]  ;;  %v9313_v30 = vld [vmem:[#allocation1 + $0x4] ss:$9 sm:$0xff]  ;;  %v1330_v46 = vpop.trf.xlu2 }
 0x3fd   : > { %11793 = vst [vmem:[#allocation43_spill] sm:$0xff] %v9309_v24  ;;  %v9311_v59 = vld [vmem:[#allocation1 + $0x3] ss:$9 sm:$0xff]  ;;  %v9315_v11 = vld [vmem:[#allocation1 + $0x5] ss:$9 sm:$0xff] }
 0x3fe   : > { %11794 = vst [vmem:[#allocation22_spill] sm:$0xff] %v9313_v30  ;;  %v9317_v23 = vld [vmem:[#allocation1 + $0x6] ss:$9 sm:$0xff] }
 0x3ff   : > { %11795 = vst [vmem:[#allocation31_spill] sm:$0xff] %v9315_v11  ;;  %v9319_v19 = vld [vmem:[#allocation1 + $0x7] ss:$9 sm:$0xff]  ;;  %v1490_v28 = vpop.trf.xlu1 }
 0x400   : > { %11796 = vst [vmem:[#allocation65_spill] sm:$0xff] %v9317_v23 }
 0x401   : > { %3657 = vst [vmem:[#allocation1] sm:$0xff] %v8764_v42 }
 0x402   : > { %1707 = vst.msk [vmem:[%s9258_s23 + $0x40] sm:$0xff] %vm1698_vm10, %v1330_v46 }
 0x403   : > { %1717 = vst.msk [vmem:[%s9258_s23 + $0x90] sm:$0xff] %vm1698_vm10, %v1490_v28 }
 0x404   : > { %v1331_v56 = vpop.trf.xlu2 }
 0x405   : > { %1708 = vst.msk [vmem:[%s9258_s23 + $0x48] sm:$0xff] %vm1698_vm10, %v1331_v56 }
 0x407   : > { %v1491_v5 = vpop.trf.xlu1 }
 0x408   : > { %v9333_v27 = vld [vmem:[#allocation1] ss:$9 sm:$0xff]  ;;  %v9337_v39 = vld [vmem:[#allocation1 + $0x2] ss:$9 sm:$0xff]  ;;  %1718 = vst.msk [vmem:[%s9258_s23 + $0x98] sm:$0xff] %vm1698_vm10, %v1491_v5 }
 0x409   : > { %v9335_v37 = vld [vmem:[#allocation1 + $0x1] ss:$9 sm:$0xff]  ;;  %11799 = vst [vmem:[#allocation33_spill] sm:$0xff] %v9337_v39  ;;  %v9339_v60 = vld [vmem:[#allocation1 + $0x3] ss:$9 sm:$0xff]  ;;  %v1458_v39 = vpop.trf.xlu0 }
 0x40a   : > { %11798 = vst [vmem:[#allocation104_spill] sm:$0xff] %v9335_v37  ;;  %v9341_v58 = vld [vmem:[#allocation1 + $0x4] ss:$9 sm:$0xff]  ;;  %v9345_v54 = vld [vmem:[#allocation1 + $0x6] ss:$9 sm:$0xff] }
 0x40b   : > { %11800 = vst [vmem:[#allocation91_spill] sm:$0xff] %v9339_v60  ;;  %v9343_v46 = vld [vmem:[#allocation1 + $0x5] ss:$9 sm:$0xff]  ;;  %v9347_v22 = vld [vmem:[#allocation1 + $0x7] ss:$9 sm:$0xff]  ;;  %v3991_v60 = vperm.slane %v9206_v10, 0 }
 0x40c   : > { %11801 = vst [vmem:[#allocation54_spill] sm:$0xff] %v9341_v58  ;;  %v1426_v3 = vpop.trf.xlu2 }
 0x40d   : > { %11802 = vst [vmem:[#allocation36_spill] sm:$0xff] %v9343_v46  ;;  %v4295_v40 = vsel %vm1040_vm8, %v4279_v55, %v3991_v60 }
 0x40e   : > { %11803 = vst [vmem:[#allocation47_spill] sm:$0xff] %v9345_v54 }
 0x40f   : > { %3667 = vst [vmem:[#allocation1] sm:$0xff] %v8791_v33  ;;  %v1586_v36 = vpop.trf.xlu1 }
 0x410   : > { %1715 = vst.msk [vmem:[%s9258_s23 + $0x80] sm:$0xff] %vm1698_vm10, %v1458_v39 }
 0x411   : > { %1713 = vst.msk [vmem:[%s9258_s23 + $0x70] sm:$0xff] %vm1698_vm10, %v1426_v3  ;;  %v1459_v39 = vpop.trf.xlu0 }
 0x412   : > { %1716 = vst.msk [vmem:[%s9258_s23 + $0x88] sm:$0xff] %vm1698_vm10, %v1459_v39 }
 0x413   : > { %1723 = vst.msk [vmem:[%s9258_s23 + $0xc0] sm:$0xff] %vm1698_vm10, %v1586_v36 }
 0x414   : > { %v1427_v3 = vpop.trf.xlu2 }
 0x415   : > { %1714 = vst.msk [vmem:[%s9258_s23 + $0x78] sm:$0xff] %vm1698_vm10, %v1427_v3 }
 0x416   : > { %v9358_v46 = vld [vmem:[#allocation1] ss:$9 sm:$0xff] }
 0x417   : > { %v9360_v54 = vld [vmem:[#allocation1 + $0x1] ss:$9 sm:$0xff]  ;;  %v1587_v48 = vpop.trf.xlu1 }
 0x418   : > { %11804 = vst [vmem:[#allocation44_spill] sm:$0xff] %v9360_v54 }
 0x419   : > { %3686 = vst [vmem:[#allocation1] sm:$0xff] %v8767_v38  ;;  %v1554_v5 = vpop.trf.xlu0 }
 0x41a   : > { %1721 = vst.msk [vmem:[%s9258_s23 + $0xb0] sm:$0xff] %vm1698_vm10, %v1554_v5 }
 0x41b   : > { %1724 = vst.msk [vmem:[%s9258_s23 + $0xc8] sm:$0xff] %vm1698_vm10, %v1587_v48 }
 0x41c   : > { %v1522_v5 = vpop.trf.xlu2 }
 0x41d   : > { %1719 = vst.msk [vmem:[%s9258_s23 + $0xa0] sm:$0xff] %vm1698_vm10, %v1522_v5 }
 0x420   : > { %v9371_v56 = vld [vmem:[#allocation1 + $0x2] ss:$9 sm:$0xff]  ;;  %v9375_v10 = vld [vmem:[#allocation1 + $0x4] ss:$9 sm:$0xff] }
 0x421   : > { %11805 = vst [vmem:[#allocation58_spill] sm:$0xff] %v9371_v56  ;;  %v9373_v28 = vld [vmem:[#allocation1 + $0x3] ss:$9 sm:$0xff]  ;;  %v9377_v54 = vld [vmem:[#allocation1 + $0x5] ss:$9 sm:$0xff]  ;;  %v1555_v36 = vpop.trf.xlu0 }
 0x422   : > { %11806 = vst [vmem:[#allocation62_spill] sm:$0xff] %v9375_v10  ;;  %v9379_v55 = vld [vmem:[#allocation1 + $0x6] ss:$9 sm:$0xff] }
 0x423   : > { %11807 = vst [vmem:[#allocation68_spill] sm:$0xff] %v9377_v54  ;;  %v9381_v60 = vld [vmem:[#allocation1 + $0x7] ss:$9 sm:$0xff] }
 0x424   : > { %3699 = vst [vmem:[#allocation1] sm:$0xff] %v8945_v43 }
 0x425   : > { %1722 = vst.msk [vmem:[%s9258_s23 + $0xb8] sm:$0xff] %vm1698_vm10, %v1555_v36 }
 0x429   : > { %v1650_v37 = vpop.trf.xlu0 }
 0x42a   : > { %1727 = vst.msk [vmem:[%s9258_s23 + $0xe0] sm:$0xff] %vm1698_vm10, %v1650_v37 }
 0x42b   : > { %v3700_v39 = vld [vmem:[#allocation1] ss:$9 sm:$0xff]  ;;  %v9392_v14 = vld [vmem:[#allocation1 + $0x2] ss:$9 sm:$0xff] }
 0x42c   : > { %v9390_v58 = vld [vmem:[#allocation1 + $0x1] ss:$9 sm:$0xff]  ;;  %11809 = vst [vmem:[#allocation85_spill] sm:$0xff] %v9392_v14  ;;  %v9394_v53 = vld [vmem:[#allocation1 + $0x3] ss:$9 sm:$0xff] }
 0x42d   : > { %11808 = vst [vmem:[#allocation75_spill] sm:$0xff] %v9390_v58  ;;  %v9396_v11 = vld [vmem:[#allocation1 + $0x4] ss:$9 sm:$0xff]  ;;  %v9400_v3 = vld [vmem:[#allocation1 + $0x6] ss:$9 sm:$0xff] }
 0x42e   : > { %11810 = vst [vmem:[#allocation19_spill] sm:$0xff] %v9394_v53  ;;  %v9398_v52 = vld [vmem:[#allocation1 + $0x5] ss:$9 sm:$0xff]  ;;  %v9402_v54 = vld [vmem:[#allocation1 + $0x7] ss:$9 sm:$0xff]  ;;  %v1523_v53 = vpop.trf.xlu2 }
 0x42f   : > { %11811 = vst [vmem:[#allocation56_spill] sm:$0xff] %v9396_v11  ;;  %v1682_v11 = vpop.trf.xlu1 }
 0x430   : > { %11812 = vst [vmem:[#allocation49_spill] sm:$0xff] %v9398_v52  ;;  %v4023_v52 = vperm.slane %v9294_v0, 0 }
 0x431   : > { %11813 = vst [vmem:[#allocation71_spill] sm:$0xff] %v9400_v3  ;;  %v1651_v37 = vpop.trf.xlu0 }
 0x432   : > { %3709 = vst [vmem:[#allocation1] sm:$0xff] %v8976_v45  ;;  %v9417_v21 = vsel %vm1057_vm9, %v4295_v40, %v4023_v52 }
 0x433   : > { %11815 = vst [vmem:[#allocation112_spill] sm:$0xff] %v9417_v21 }
 0x434   : > { %1720 = vst.msk [vmem:[%s9258_s23 + $0xa8] sm:$0xff] %vm1698_vm10, %v1523_v53  ;;  %v4046_v53 = vperm.slane %v3700_v39, 0 }
 0x435   : > { %1729 = vst.msk [vmem:[%s9258_s23 + $0xf0] sm:$0xff] %vm1698_vm10, %v1682_v11 }
 0x436   : > { %v1618_v52 = vpop.trf.xlu2  ;;  %1728 = vst.msk [vmem:[%s9258_s23 + $0xe8] sm:$0xff] %vm1698_vm10, %v1651_v37  ;;  %v4318_v11 = vsel %vm956_vm4, %v9333_v27, %v4046_v53 }
 0x437   : > { %v1683_v40 = vpop.trf.xlu1  ;;  %1725 = vst.msk [vmem:[%s9258_s23 + $0xd0] sm:$0xff] %vm1698_vm10, %v1618_v52 }
 0x438   : > { %1730 = vst.msk [vmem:[%s9258_s23 + $0xf8] sm:$0xff] %vm1698_vm10, %v1683_v40 }
 0x439   : > { %v9412_v14 = vld [vmem:[#allocation1] ss:$9 sm:$0xff]  ;;  %v2757_v24 = vpop.trf.xlu0 }
 0x43a   : > { %v9414_v3 = vld [vmem:[#allocation1 + $0x1] ss:$9 sm:$0xff]  ;;  %3285 = vrot.lane.b32.xlu2 %v2757_v24, %s7106_s24 }
 0x43b   : > { %11814 = vst [vmem:[#allocation111_spill] sm:$0xff] %v9414_v3 }
 0x43c   : > { %3712 = vst [vmem:[#allocation1] sm:$0xff] %v11733_v47 }
 0x43e   : > { %v1619_v30 = vpop.trf.xlu2 }
 0x43f   : > { %1726 = vst.msk [vmem:[%s9258_s23 + $0xd8] sm:$0xff] %vm1698_vm10, %v1619_v30 }
 0x443   : > { %v9426_v48 = vld [vmem:[#allocation1 + $0x2] ss:$9 sm:$0xff]  ;;  %v9430_v5 = vld [vmem:[#allocation1 + $0x4] ss:$9 sm:$0xff] }
 0x444   : > { %11816 = vst [vmem:[#allocation57_spill] sm:$0xff] %v9426_v48  ;;  %v9428_v0 = vld [vmem:[#allocation1 + $0x3] ss:$9 sm:$0xff]  ;;  %v9432_v36 = vld [vmem:[#allocation1 + $0x5] ss:$9 sm:$0xff] }
 0x445   : > { %11817 = vst [vmem:[#allocation35_spill] sm:$0xff] %v9430_v5  ;;  %v9434_v21 = vld [vmem:[#allocation1 + $0x6] ss:$9 sm:$0xff] }
 0x446   : > { %11818 = vst [vmem:[#allocation96_spill] sm:$0xff] %v9432_v36  ;;  %v9436_v3 = vld [vmem:[#allocation1 + $0x7] ss:$9 sm:$0xff]  ;;  %v2789_v36 = vpop.trf.xlu1  ;;  %v2821_v53 = vpop.trf.xlu2 }
 0x447   : > { %3725 = vst [vmem:[#allocation1] sm:$0xff] %v11750_v31  ;;  %3289 = vrot.lane.b32.xlu1 %v2789_v36, %s7106_s24  ;;  %3293 = vrot.lane.b32.xlu2 %v2821_v53, %s7106_s24 }
 0x44e   : > { %v3726_v58 = vld [vmem:[#allocation1] ss:$9 sm:$0xff]  ;;  %v9449_v5 = vld [vmem:[#allocation1 + $0x2] ss:$9 sm:$0xff] }
 0x44f   : > { %v9447_v1 = vld [vmem:[#allocation1 + $0x1] ss:$9 sm:$0xff]  ;;  %11820 = vst [vmem:[#allocation115_spill] sm:$0xff] %v9449_v5  ;;  %v9452_v39 = vld [vmem:[#allocation1 + $0x3] ss:$9 sm:$0xff]  ;;  %v2790_v5 = vpop.trf.xlu1  ;;  %v4078_v10 = vperm.slane %v3726_v58, 0 }
 0x450   : > { %11819 = vst [vmem:[#allocation9_spill] sm:$0xff] %v9447_v1  ;;  %v9454_v52 = vld [vmem:[#allocation1 + $0x4] ss:$9 sm:$0xff]  ;;  %v9458_v27 = vld [vmem:[#allocation1 + $0x6] ss:$9 sm:$0xff]  ;;  %v2758_v1 = vpop.trf.xlu0 }
 0x451   : > { %11821 = vst [vmem:[#allocation50_spill] sm:$0xff] %v9452_v39  ;;  %v9456_v37 = vld [vmem:[#allocation1 + $0x5] ss:$9 sm:$0xff]  ;;  %v9460_v40 = vld [vmem:[#allocation1 + $0x7] ss:$9 sm:$0xff]  ;;  %3287 = vrot.lane.b32.xlu0 %v2758_v1, %s7106_s24 }
 0x452   : > { %11822 = vst [vmem:[#allocation12_spill] sm:$0xff] %v9454_v52 }
 0x453   : > { %11823 = vst [vmem:[#allocation52_spill] sm:$0xff] %v9456_v37  ;;  %v2822_v37 = vpop.trf.xlu2 }
 0x454   : > { %11824 = vst [vmem:[#allocation28_spill] sm:$0xff] %v9458_v27 }
 0x455   : > { %3735 = vst [vmem:[#allocation1] sm:$0xff] %v11772_v8 }
 0x457   : > { %v2949_v27 = vpop.trf.xlu1 }
 0x458   : > { %v2853_v52 = vpop.trf.xlu0 }
 0x459   : > { %3297 = vrot.lane.b32.xlu2 %v2853_v52, %s7106_s24 }
 0x45b   : > { %v2885_v53 = vpop.trf.xlu2 }
 0x45c   : > { %v9466_v36 = vld [vmem:[#allocation1] ss:$9 sm:$0xff]  ;;  %3301 = vrot.lane.b32.xlu1 %v2885_v53, %s7106_s24 }
 0x45d   : > { %v9468_v39 = vld [vmem:[#allocation1 + $0x1] ss:$9 sm:$0xff] }
 0x45e   : > { %11825 = vst [vmem:[#allocation66_spill] sm:$0xff] %v9468_v39  ;;  %v4334_v39 = vsel %vm973_vm5, %v4318_v11, %v4078_v10 }
 0x45f   : > { %3738 = vst [vmem:[#allocation1] sm:$0xff] %v9092_v44  ;;  %v2950_v58 = vpop.trf.xlu1 }
 0x460   : > { %v2854_v13 = vpop.trf.xlu0 }
 0x461   : > { %3299 = vrot.lane.b32.xlu0 %v2854_v13, %s7106_s24 }
 0x463   : > { %v2886_v52 = vpop.trf.xlu2 }
 0x464   : > { %3291 = vrot.lane.b32.xlu1 %v2790_v5, %s7106_s24  ;;  %3303 = vrot.lane.b32.xlu2 %v2886_v52, %s7106_s24 }
 0x466   : > { %v9472_v30 = vld [vmem:[#allocation1 + $0x2] ss:$9 sm:$0xff]  ;;  %v9476_v24 = vld [vmem:[#allocation1 + $0x4] ss:$9 sm:$0xff] }
 0x467   : > { %11826 = vst [vmem:[#allocation105_spill] sm:$0xff] %v9472_v30  ;;  %v9474_v8 = vld [vmem:[#allocation1 + $0x3] ss:$9 sm:$0xff]  ;;  %v9478_v18 = vld [vmem:[#allocation1 + $0x5] ss:$9 sm:$0xff]  ;;  %v9503_v15 = vpop.trf.xlu1 }
 0x468   : > { %11827 = vst [vmem:[#allocation42_spill] sm:$0xff] %v9476_v24  ;;  %v9480_v35 = vld [vmem:[#allocation1 + $0x6] ss:$9 sm:$0xff]  ;;  %v2917_v53 = vpop.trf.xlu0 }
 0x469   : > { %11828 = vst [vmem:[#allocation13_spill] sm:$0xff] %v9478_v18  ;;  %v9482_v48 = vld [vmem:[#allocation1 + $0x7] ss:$9 sm:$0xff]  ;;  %3305 = vrot.lane.b32.xlu0 %v2917_v53, %s7106_s24 }
 0x46a   : > { %3751 = vst [vmem:[#allocation1] sm:$0xff] %v9240_v20 }
 0x46c   : > { %3295 = vrot.lane.b32.xlu1 %v2822_v37, %s7106_s24 }
 0x471   : > { %v3752_v30 = vld [vmem:[#allocation1] ss:$9 sm:$0xff]  ;;  %v9490_v24 = vld [vmem:[#allocation1 + $0x2] ss:$9 sm:$0xff]  ;;  %3309 = vrot.lane.b32.xlu0 %v2949_v27, %s7106_s24 }
 0x472   : > { %v9488_v56 = vld [vmem:[#allocation1 + $0x1] ss:$9 sm:$0xff]  ;;  %11830 = vst [vmem:[#allocation55_spill] sm:$0xff] %v9490_v24  ;;  %v9492_v18 = vld [vmem:[#allocation1 + $0x3] ss:$9 sm:$0xff] }
 0x473   : > { %11829 = vst [vmem:[#allocation69_spill] sm:$0xff] %v9488_v56  ;;  %v9494_v7 = vld [vmem:[#allocation1 + $0x4] ss:$9 sm:$0xff]  ;;  %v9498_v10 = vld [vmem:[#allocation1 + $0x6] ss:$9 sm:$0xff] }
 0x474   : > { %11831 = vst [vmem:[#allocation67_spill] sm:$0xff] %v9492_v18  ;;  %v9496_v62 = vld [vmem:[#allocation1 + $0x5] ss:$9 sm:$0xff]  ;;  %v9500_v11 = vld [vmem:[#allocation1 + $0x7] ss:$9 sm:$0xff] }
 0x475   : > { %11832 = vst [vmem:[#allocation26_spill] sm:$0xff] %v9494_v7  ;;  %v4110_v7 = vperm.slane %v3752_v30, 0 }
 0x476   : > { %11833 = vst [vmem:[#allocation82_spill] sm:$0xff] %v9496_v62  ;;  %v2981_v62 = vpop.trf.xlu2 }
 0x477   : > { %11834 = vst [vmem:[#allocation78_spill] sm:$0xff] %v9498_v10  ;;  %v3046_v10 = vpop.trf.xlu1  ;;  %v9516_v1 = vsel %vm171_vm0, %v4334_v39, %v4110_v7 }
 0x478   : > { %3761 = vst [vmem:[#allocation1] sm:$0xff] %v9254_v32  ;;  %v2918_v32 = vpop.trf.xlu0 }
 0x479   : > { %11836 = vst [vmem:[#allocation72_spill] sm:$0xff] %v9516_v1  ;;  %3307 = vrot.lane.b32.xlu1 %v2918_v32, %s7106_s24  ;;  %3313 = vrot.lane.b32.xlu0 %v2981_v62, %s7106_s24 }
 0x47e   : > { %v2982_v13 = vpop.trf.xlu2 }
 0x47f   : > { %v9508_v24 = vld [vmem:[#allocation1] ss:$9 sm:$0xff]  ;;  %v3141_v23 = vpop.trf.xlu1 }
 0x480   : > { %v9510_v18 = vld [vmem:[#allocation1 + $0x1] ss:$9 sm:$0xff]  ;;  %v3013_v37 = vpop.trf.xlu0  ;;  %3333 = vrot.lane.b32.xlu2 %v3141_v23, %s7106_s24 }
 0x481   : > { %11835 = vst [vmem:[#allocation87_spill] sm:$0xff] %v9510_v18  ;;  %3311 = vrot.lane.b32.xlu1 %v2950_v58, %s7106_s24  ;;  %3317 = vrot.lane.b32.xlu0 %v3013_v37, %s7106_s24 }
 0x482   : > { %3764 = vst [vmem:[#allocation1] sm:$0xff] %v8672_v17 }
 0x488   : > { %v3014_v23 = vpop.trf.xlu0 }
 0x489   : > { %v9518_v5 = vld [vmem:[#allocation1 + $0x3] ss:$9 sm:$0xff]  ;;  %v9522_v56 = vld [vmem:[#allocation1 + $0x5] ss:$9 sm:$0xff]  ;;  %3319 = vrot.lane.b32.xlu2 %v3014_v23, %s7106_s24  ;;  %3315 = vrot.lane.b32.xlu1 %v2982_v13, %s7106_s24  ;;  %v3142_v13 = vpop.trf.xlu1 }
 0x48a   : > { %11837 = vst [vmem:[#allocation100_spill] sm:$0xff] %v9518_v5  ;;  %v9520_v52 = vld [vmem:[#allocation1 + $0x4] ss:$9 sm:$0xff]  ;;  %v9524_v18 = vld [vmem:[#allocation1 + $0x6] ss:$9 sm:$0xff]  ;;  %v3077_v5 = vpop.trf.xlu2  ;;  %3321 = vrot.lane.b32.xlu0 %v9503_v15, %s7106_s24 }
 0x48b   : > { %11838 = vst [vmem:[#allocation59_spill] sm:$0xff] %v9522_v56  ;;  %v9526_v25 = vld [vmem:[#allocation1 + $0x7] ss:$9 sm:$0xff] }
 0x48c   : > { %11839 = vst [vmem:[#allocation98_spill] sm:$0xff] %v9524_v18 }
 0x48d   : > { %3775 = vst [vmem:[#allocation1] sm:$0xff] %v8764_v42 }
 0x491   : > { %3323 = vrot.lane.b32.xlu2 %v3046_v10, %s7106_s24 }
 0x492   : > { %3325 = vrot.lane.b32.xlu0 %v3077_v5, %s7106_s24  ;;  %v3493_v5 = vrot.slane %v8767_v38, 1 }
 0x494   : > { %v9532_v7 = vld [vmem:[#allocation1] ss:$9 sm:$0xff]  ;;  %v9536_v30 = vld [vmem:[#allocation1 + $0x2] ss:$9 sm:$0xff] }
 0x495   : > { %v9534_v39 = vld [vmem:[#allocation1 + $0x1] ss:$9 sm:$0xff]  ;;  %11841 = vst [vmem:[#allocation106_spill] sm:$0xff] %v9536_v30  ;;  %v9538_v1 = vld [vmem:[#allocation1 + $0x3] ss:$9 sm:$0xff] }
 0x496   : > { %11840 = vst [vmem:[#allocation114_spill] sm:$0xff] %v9534_v39  ;;  %v9540_v18 = vld [vmem:[#allocation1 + $0x4] ss:$9 sm:$0xff]  ;;  %v9545_v53 = vld [vmem:[#allocation1 + $0x6] ss:$9 sm:$0xff]  ;;  %v3078_v39 = vpop.trf.xlu2 }
 0x497   : > { %11842 = vst [vmem:[#allocation24_spill] sm:$0xff] %v9538_v1  ;;  %v9542_v56 = vld [vmem:[#allocation1 + $0x5] ss:$9 sm:$0xff]  ;;  %v9547_v32 = vld [vmem:[#allocation1 + $0x7] ss:$9 sm:$0xff]  ;;  %v4054_v1 = vperm.slane %v9412_v14, 0 }
 0x498   : > { %11843 = vst [vmem:[#allocation11_spill] sm:$0xff] %v9540_v18  ;;  %v4086_v18 = vperm.slane %v9466_v36, 0 }
 0x499   : > { %11844 = vst [vmem:[#allocation73_spill] sm:$0xff] %v9542_v56  ;;  %v4326_v56 = vsel %vm956_vm4, %v9358_v46, %v4054_v1  ;;  %3327 = vrot.lane.b32.xlu2 %v3078_v39, %s7106_s24 }
 0x49a   : > { %11845 = vst [vmem:[#allocation21_spill] sm:$0xff] %v9545_v53  ;;  %v4342_v27 = vsel %vm973_vm5, %v4326_v56, %v4086_v18 }
 0x49b   : > { %11846 = vst [vmem:[#allocation76_spill] sm:$0xff] %v9547_v32 }
 0x49c   : > { %3786 = vst [vmem:[#allocation1] sm:$0xff] %v8791_v33  ;;  %v3109_v33 = vpop.trf.xlu0 }
 0x49d   : > { %3329 = vrot.lane.b32.xlu0 %v3109_v33, %s7106_s24  ;;  %v9641_v33 = vsel %vm187_vm1, 0.0, %v9201_v6  ;;  %v3510_v6 = vrot.slane %v11733_v47, 4 }
 0x49e   : > { %v3173_v14 = vpop.trf.xlu2  ;;  %11869 = vst [vmem:[#allocation136_spill] sm:$0xff] %v9641_v33 }
 0x4a3   : > { %v9558_v53 = vld [vmem:[#allocation1] ss:$9 sm:$0xff]  ;;  %v9562_v58 = vld [vmem:[#allocation1 + $0x2] ss:$9 sm:$0xff] }
 0x4a4   : > { %v9560_v32 = vld [vmem:[#allocation1 + $0x1] ss:$9 sm:$0xff]  ;;  %11848 = vst [vmem:[#allocation79_spill] sm:$0xff] %v9562_v58  ;;  %v3110_v56 = vpop.trf.xlu0 }
 0x4a5   : > { %11847 = vst [vmem:[#allocation86_spill] sm:$0xff] %v9560_v32  ;;  %3331 = vrot.lane.b32.xlu1 %v3110_v56, %s7106_s24  ;;  %3335 = vrot.lane.b32.xlu0 %v3142_v13, %s7106_s24  ;;  %v9670_v13 = vsel %vm200_vm2, 0.0, %v9210_v12  ;;  %v4077_v12 = vperm.slane %v9436_v3, 0 }
 0x4a6   : > { %3790 = vst [vmem:[#allocation1] sm:$0xff] %v8767_v38  ;;  %v3174_v10 = vpop.trf.xlu2 }
 0x4a7   : > { %3339 = vrot.lane.b32.xlu2 %v3174_v10, %s7106_s24  ;;  %11873 = vst [vmem:[#allocation140_spill] sm:$0xff] %v9670_v13 }
 0x4ac   : > { %v9583_v37 = vpop.trf.xlu0 }
 0x4ad   : > { %v9568_v18 = vld [vmem:[#allocation1 + $0x3] ss:$9 sm:$0xff]  ;;  %v9572_v62 = vld [vmem:[#allocation1 + $0x5] ss:$9 sm:$0xff]  ;;  %3337 = vrot.lane.b32.xlu1 %v3173_v14, %s7106_s24  ;;  %3341 = vrot.lane.b32.xlu0 %v9583_v37, %s7106_s24 }
 0x4ae   : > { %11849 = vst [vmem:[#allocation8_spill] sm:$0xff] %v9568_v18  ;;  %v9570_v46 = vld [vmem:[#allocation1 + $0x4] ss:$9 sm:$0xff]  ;;  %v9574_v36 = vld [vmem:[#allocation1 + $0x6] ss:$9 sm:$0xff]  ;;  %v4045_v18 = vperm.slane %v9381_v60, 0 }
 0x4af   : > { %11850 = vst [vmem:[#allocation113_spill] sm:$0xff] %v9572_v62  ;;  %v9576_v1 = vld [vmem:[#allocation1 + $0x7] ss:$9 sm:$0xff]  ;;  %v9605_v62 = vpop.trf.xlu1 }
 0x4b0   : > { %11851 = vst [vmem:[#allocation118_spill] sm:$0xff] %v9574_v36 }
 0x4b1   : > { %3801 = vst [vmem:[#allocation1] sm:$0xff] %v8945_v43 }
 0x4b4   : > { %v3206_v10 = vpop.trf.xlu0 }
 0x4b5   : > { %3343 = vrot.lane.b32.xlu1 %v3206_v10, %s7106_s24  ;;  %3345 = vrot.lane.b32.xlu0 %v9605_v62, %s7106_s24  ;;  %v9765_v62 = vsel %vm213_vm3, %v9256_v34, 0.0 }
 0x4b6   : > { %11881 = vst [vmem:[#allocation148_spill] sm:$0xff] %v9765_v62 }
 0x4b8   : > { %v9585_v23 = vld [vmem:[#allocation1] ss:$9 sm:$0xff]  ;;  %v9589_v58 = vld [vmem:[#allocation1 + $0x2] ss:$9 sm:$0xff] }
 0x4b9   : > { %v9587_v32 = vld [vmem:[#allocation1 + $0x1] ss:$9 sm:$0xff]  ;;  %11853 = vst [vmem:[#allocation120_spill] sm:$0xff] %v9589_v58  ;;  %v9593_v39 = vld [vmem:[#allocation1 + $0x3] ss:$9 sm:$0xff]  ;;  %v3816_v58 = vperm.slane %v8767_v38, 0 }
 0x4ba   : > { %11852 = vst [vmem:[#allocation119_spill] sm:$0xff] %v9587_v32  ;;  %v9595_v56 = vld [vmem:[#allocation1 + $0x4] ss:$9 sm:$0xff]  ;;  %v9599_v30 = vld [vmem:[#allocation1 + $0x6] ss:$9 sm:$0xff]  ;;  %v4118_v32 = vperm.slane %v9508_v24, 0  ;;  %v3238_v24 = vpop.trf.xlu1 }
 0x4bb   : > { %11854 = vst [vmem:[#allocation121_spill] sm:$0xff] %v9593_v39  ;;  %v9597_v36 = vld [vmem:[#allocation1 + $0x5] ss:$9 sm:$0xff]  ;;  %v9601_v15 = vld [vmem:[#allocation1 + $0x7] ss:$9 sm:$0xff]  ;;  %v9614_v39 = vsel %vm187_vm1, 0.0, %v9067_v2 }
 0x4bc   : > { %11855 = vst [vmem:[#allocation122_spill] sm:$0xff] %v9595_v56  ;;  %v9609_v14 = vsel %vm171_vm0, %v4342_v27, %v4118_v32  ;;  %v3507_v32 = vrot.slane %v11733_v47, 1  ;;  %v3463_v56 = vrot.slane %v8672_v17, 1 }
 0x4bd   : > { %11856 = vst [vmem:[#allocation123_spill] sm:$0xff] %v9597_v36  ;;  %3347 = vrot.lane.b32.xlu1 %v3238_v24, %s7106_s24  ;;  %v3817_v36 = vperm.slane %v3493_v5, 0  ;;  %v9662_v5 = vsel %vm200_vm2, 0.0, %v9187_v9 }
 0x4be   : > { %11857 = vst [vmem:[#allocation124_spill] sm:$0xff] %v9599_v30 }
 0x4bf   : > { %11858 = vst [vmem:[#allocation125_spill] sm:$0xff] %v9601_v15 }
 0x4c0   : > { %3812 = vst [vmem:[#allocation1] sm:$0xff] %v8976_v45 }
 0x4c1   : > { %11859 = vst [vmem:[#allocation126_spill] sm:$0xff] %v9609_v14 }
 0x4c2   : > { %11860 = vst [vmem:[#allocation127_spill] sm:$0xff] %v9614_v39 }
 0x4c7   : > { %v9616_v30 = vld [vmem:[#allocation1] ss:$9 sm:$0xff]  ;;  %v9620_v45 = vld [vmem:[#allocation1 + $0x2] ss:$9 sm:$0xff] }
 0x4c8   : > { %v9618_v15 = vld [vmem:[#allocation1 + $0x1] ss:$9 sm:$0xff]  ;;  %11862 = vst [vmem:[#allocation129_spill] sm:$0xff] %v9620_v45 }
 0x4c9   : > { %11861 = vst [vmem:[#allocation128_spill] sm:$0xff] %v9618_v15 }
 0x4ca   : > { %5221 = vst [vmem:[#allocation1] sm:$0xff] %v9614_v39 }
 0x4d1   : > { %v9627_v27 = vld [vmem:[#allocation1 + $0x1] ss:$9 sm:$0xff]  ;;  %v9631_v10 = vld [vmem:[#allocation1 + $0x3] ss:$9 sm:$0xff] }
 0x4d2   : > { %11863 = vst [vmem:[#allocation130_spill] sm:$0xff] %v9627_v27  ;;  %v9629_v2 = vld [vmem:[#allocation1 + $0x2] ss:$9 sm:$0xff]  ;;  %v9633_v14 = vld [vmem:[#allocation1 + $0x4] ss:$9 sm:$0xff]  ;;  %v3523_v27 = vrot.slane %v9092_v44, 1 }
 0x4d3   : > { %11864 = vst [vmem:[#allocation131_spill] sm:$0xff] %v9629_v2  ;;  %v9635_v15 = vld [vmem:[#allocation1 + $0x5] ss:$9 sm:$0xff]  ;;  %v9643_v24 = vld [vmem:[#allocation1 + $0x7] ss:$9 sm:$0xff]  ;;  %v9666_v2 = vsel %vm213_vm3, %v9229_v26, 0.0  ;;  %v3286_v26 = vpop.permute.xlu2 %3285 }
 0x4d4   : > { %11865 = vst [vmem:[#allocation132_spill] sm:$0xff] %v9631_v10  ;;  %v9637_v45 = vld [vmem:[#allocation1 + $0x6] ss:$9 sm:$0xff]  ;;  %v3496_v10 = vrot.slane %v8767_v38, 4 }
 0x4d5   : > { %11866 = vst [vmem:[#allocation133_spill] sm:$0xff] %v9633_v14  ;;  %v9651_v14 = vsel %vm200_vm2, 0.0, %v9163_v57  ;;  %v3849_v57 = vperm.slane %v3507_v32, 0 }
 0x4d6   : > { %11867 = vst [vmem:[#allocation134_spill] sm:$0xff] %v9635_v15  ;;  %v3881_v15 = vperm.slane %v3523_v27, 0  ;;  %v3820_v39 = vperm.slane %v3496_v10, 0  ;;  %v4109_v27 = vperm.slane %v9482_v48, 0  ;;  %v4141_v10 = vperm.slane %v9532_v7, 0 }
 0x4d7   : > { %11868 = vst [vmem:[#allocation135_spill] sm:$0xff] %v9637_v45  ;;  %v3526_v45 = vrot.slane %v9092_v44, 4 }
 0x4d8   : > { %11870 = vst [vmem:[#allocation137_spill] sm:$0xff] %v9643_v24  ;;  %v9658_v24 = vsel %vm187_vm1, 0.0, %v9125_v61  ;;  %v3466_v61 = vrot.slane %v8672_v17, 4 }
 0x4d9   : > { %5236 = vst [vmem:[#allocation1] sm:$0xff] %v9641_v33  ;;  %v4201_v33 = vsel %vm956_vm4, %v3463_v56, %v3817_v36  ;;  %v9679_v32 = vperm.slane %v3526_v45, 0 }
 0x4da   : > { %11871 = vst [vmem:[#allocation138_spill] sm:$0xff] %v9651_v14  ;;  %v4217_v36 = vsel %vm973_vm5, %v4201_v33, %v3849_v57  ;;  %v4204_v33 = vsel %vm956_vm4, %v3466_v61, %v3820_v39  ;;  %v4317_v57 = vsel %vm956_vm4, %v9319_v19, %v4045_v18  ;;  %v3945_v19 = vperm.slane %v8924_v50, 0 }
 0x4db   : > { %11872 = vst [vmem:[#allocation139_spill] sm:$0xff] %v9666_v2  ;;  %v9677_v2 = vperm.slane %v3510_v6, 0  ;;  %v4233_v56 = vsel %vm171_vm0, %v4217_v36, %v3881_v15  ;;  %v4333_v39 = vsel %vm973_vm5, %v4317_v57, %v4077_v12  ;;  %v4041_v18 = vperm.slane %v9373_v28, 0 }
 0x4dc   : > { %3382 = vst.msk [vmem:[%s9258_s23] sm:$0xff] %vm3381_vm11, %v3286_v26  ;;  %v3913_v26 = vperm.slane %v8727_v29, 0  ;;  %v4173_v61 = vperm.slane %v9585_v23, 0  ;;  %v4349_v37 = vsel %vm171_vm0, %v4333_v39, %v4109_v27  ;;  %v3977_v29 = vperm.slane %v9103_v4, 0  ;;  %v3294_v23 = vpop.permute.xlu2 %3293 }
 0x4dd   : > { %v4073_v15 = vperm.slane %v9428_v0, 0  ;;  %v4365_v36 = vsel %vm1006_vm6, %v4349_v37, %v4141_v10  ;;  %v4009_v12 = vperm.slane %v9224_v16, 0  ;;  %v4105_v57 = vperm.slane %v9474_v8, 0  ;;  %3386 = vst.msk [vmem:[%s9258_s23 + $0x20] sm:$0xff] %vm3381_vm11, %v3294_v23 }
 0x4de   : > { %v4053_v50 = vperm.slane %v9402_v54, 0  ;;  %v9729_v28 = vsel %vm1023_vm7, %v4365_v36, %v4173_v61  ;;  %v4249_v27 = vsel %vm1006_vm6, %v4233_v56, %v3913_v26  ;;  %v4137_v4 = vperm.slane %v9520_v52, 0 }
 0x4df   : > { %v3494_v0 = vrot.slane %v8767_v38, 2  ;;  %v4085_v39 = vperm.slane %v9460_v40, 0  ;;  %v4265_v16 = vsel %vm1023_vm7, %v4249_v27, %v3945_v19  ;;  %v4169_v8 = vperm.slane %v9570_v46, 0 }
 0x4e0   : > { %v9688_v9 = vld [vmem:[#allocation1] ss:$9 sm:$0xff]  ;;  %v9692_v6 = vld [vmem:[#allocation1 + $0x2] ss:$9 sm:$0xff]  ;;  %v4313_v54 = vsel %vm956_vm4, %v9311_v59, %v4041_v18  ;;  %v4117_v10 = vperm.slane %v9500_v11, 0  ;;  %v4281_v61 = vsel %vm1040_vm8, %v4265_v16, %v3977_v29  ;;  %v3508_v52 = vrot.slane %v11733_v47, 2 }
 0x4e1   : > { %v9690_v60 = vld [vmem:[#allocation1 + $0x1] ss:$9 sm:$0xff]  ;;  %11875 = vst [vmem:[#allocation142_spill] sm:$0xff] %v9692_v6  ;;  %v9694_v45 = vld [vmem:[#allocation1 + $0x3] ss:$9 sm:$0xff]  ;;  %v4329_v56 = vsel %vm973_vm5, %v4313_v54, %v4073_v15  ;;  %v4149_v26 = vperm.slane %v9558_v53, 0  ;;  %v4297_v40 = vsel %vm1057_vm9, %v4281_v61, %v4009_v12  ;;  %v4325_v46 = vsel %vm956_vm4, %v9347_v22, %v4053_v50 }
 0x4e2   : > { %11874 = vst [vmem:[#allocation141_spill] sm:$0xff] %v9690_v60  ;;  %v9696_v14 = vld [vmem:[#allocation1 + $0x4] ss:$9 sm:$0xff]  ;;  %v9703_v48 = vld [vmem:[#allocation1 + $0x6] ss:$9 sm:$0xff]  ;;  %v4345_v37 = vsel %vm171_vm0, %v4329_v56, %v4105_v57  ;;  %v3524_v19 = vrot.slane %v9092_v44, 2  ;;  %v4341_v29 = vsel %vm973_vm5, %v4325_v46, %v4085_v39  ;;  %v4220_v57 = vsel %vm973_vm5, %v4204_v33, %v9677_v2 }
 0x4e3   : > { %11876 = vst [vmem:[#allocation143_spill] sm:$0xff] %v9694_v45  ;;  %v9698_v3 = vld [vmem:[#allocation1 + $0x5] ss:$9 sm:$0xff]  ;;  %v9705_v7 = vld [vmem:[#allocation1 + $0x7] ss:$9 sm:$0xff]  ;;  %4456 = vxpose.xlu2.b32.start [1/2] (short) (narrow) %v4297_v40, 16  ;;  %v4361_v11 = vsel %vm1006_vm6, %v4345_v37, %v4137_v4  ;;  %v4357_v12 = vsel %vm171_vm0, %v4341_v29, %v4117_v10 }
 0x4e4   : > { %11877 = vst [vmem:[#allocation144_spill] sm:$0xff] %v9696_v14  ;;  %v9713_v14 = vsel %vm956_vm4, %v8672_v17, %v3816_v58  ;;  %v3464_v58 = vrot.slane %v8672_v17, 2  ;;  %v3818_v18 = vperm.slane %v3494_v0, 0  ;;  %v3498_v53 = vrot.slane %v8767_v38, 6  ;;  %v3298_v39 = vpop.permute.xlu2 %3297 }
 0x4e5   : > { %11878 = vst [vmem:[#allocation145_spill] sm:$0xff] %v9698_v3  ;;  %v4377_v15 = vsel %vm1023_vm7, %v4361_v11, %v4169_v8  ;;  %v3512_v36 = vrot.slane %v11733_v47, 6  ;;  %v4181_v22 = vperm.slane %v9616_v30, 0  ;;  %v3501_v50 = vrot.slane %v8945_v43, 2  ;;  %v11889_v3 = vld [vmem:[#allocation65_spill] sm:$0xff] }
 0x4e6   : > { %11879 = vst [vmem:[#allocation146_spill] sm:$0xff] %v9703_v48  ;;  %v4373_v23 = vsel %vm1006_vm6, %v4357_v12, %v4149_v26  ;;  %v3850_v27 = vperm.slane %v3508_v52, 0  ;;  %v3468_v4 = vrot.slane %v8672_v17, 6  ;;  %v3495_v0 = vrot.slane %v8767_v38, 3 }
 0x4e7   : > { %11880 = vst [vmem:[#allocation147_spill] sm:$0xff] %v9705_v7  ;;  %v9774_v30 = vsel %vm1023_vm7, %v4373_v23, %v4181_v22  ;;  %v4393_v16 = vsel %vm1040_vm8, %v4377_v15, 0.0  ;;  %v9777_v34 = vperm.slane %v3524_v19, 0  ;;  %v4202_v8 = vsel %vm956_vm4, %v3464_v58, %v3818_v18 }
 0x4e8   : > { %5245 = vst [vmem:[#allocation1] sm:$0xff] %v9658_v24  ;;  %v3528_v2 = vrot.slane %v9092_v44, 6  ;;  %v3822_v33 = vperm.slane %v3498_v53, 0  ;;  %v9783_v54 = vperm.slane %v3512_v36, 0  ;;  %v3471_v10 = vrot.slane %v8764_v42, 2 }
 0x4e9   : > { %3388 = vst.msk [vmem:[%s9258_s23 + $0x30] sm:$0xff] %vm3381_vm11, %v3298_v39  ;;  %v3515_v61 = vrot.slane %v11750_v31, 2  ;;  %v3531_v56 = vrot.slane %v9240_v20, 2  ;;  %v3826_v52 = vperm.slane %v3501_v50, 0  ;;  %v3465_v26 = vrot.slane %v8672_v17, 3 }
 0x4ea   : > { %v3509_v40 = vrot.slane %v11733_v47, 3  ;;  %v4409_v58 = vsel %vm1057_vm9, %v4393_v16, 0.0  ;;  %v3525_v37 = vrot.slane %v9092_v44, 3  ;;  %v3819_v19 = vperm.slane %v3495_v0, 0 }
 0x4eb   : > { %v3500_v46 = vrot.slane %v8945_v43, 1  ;;  %v4236_v22 = vsel %vm171_vm0, %v4220_v57, %v9679_v32  ;;  %v11887_v12 = vperm.slane %v11733_v47, 0  ;;  %v4218_v23 = vsel %vm973_vm5, %v4202_v8, %v3850_v27  ;;  %4457 = vxpose.xlu2.b32.end [2/2] (short) (narrow) %v4409_v58, 16  ;;  %v3290_v8 = vpop.permute.xlu1 %3289 }
 0x4ec   : > { %v9814_v39 = vperm.slane %v3528_v2, 0  ;;  %v4206_v16 = vsel %vm956_vm4, %v3468_v4, %v3822_v33  ;;  %v3858_v7 = vperm.slane %v3515_v61, 0  ;;  %v3514_v48 = vrot.slane %v11750_v31, 1  ;;  %3384 = vst.msk [vmem:[%s9258_s23 + $0x10] sm:$0xff] %vm3381_vm11, %v3290_v8 }
 0x4ed   : > { %v4216_v50 = vsel %vm973_vm5, %v9713_v14, %v11887_v12  ;;  %v9819_v32 = vperm.slane %v3531_v56, 0  ;;  %v4210_v57 = vsel %vm956_vm4, %v3471_v10, %v3826_v52  ;;  %v3851_v14 = vperm.slane %v3509_v40, 0 }
 0x4ee   : > { %v3470_v27 = vrot.slane %v8764_v42, 1  ;;  %v3916_v12 = vperm.slane %v8745_v41, 0  ;;  %v9824_v58 = vperm.slane %v3525_v37, 0  ;;  %v4203_v2 = vsel %vm956_vm4, %v3465_v26, %v3819_v19 }
 0x4ef   : > { %v9751_v59 = vld [vmem:[#allocation1] ss:$9 sm:$0xff]  ;;  %v3504_v4 = vrot.slane %v8945_v43, 5  ;;  %v3948_v33 = vperm.slane %v8936_v49, 0  ;;  %v4044_v61 = vperm.slane %v9379_v55, 0  ;;  %v3530_v10 = vrot.slane %v9240_v20, 1 }
 0x4f0   : > { %5248 = vst [vmem:[#allocation1] sm:$0xff] %v9662_v5  ;;  %v3825_v56 = vperm.slane %v3500_v46, 0  ;;  %v3980_v52 = vperm.slane %v9112_v51, 0  ;;  %v4076_v40 = vperm.slane %v9434_v21, 0  ;;  %v9835_v41 = vperm.slane %v3514_v48, 0 }
 0x4f1   : > { %v3474_v37 = vrot.slane %v8764_v42, 5  ;;  %v4012_v26 = vperm.slane %v9233_v63, 0  ;;  %v4108_v19 = vperm.slane %v9480_v35, 0  ;;  %v3518_v8 = vrot.slane %v11750_v31, 5 }
 0x4f2   : > { %v3534_v49 = vrot.slane %v9240_v20, 5  ;;  %v4252_v55 = vsel %vm1006_vm6, %v4236_v22, %v3916_v12  ;;  %v4140_v46 = vperm.slane %v9526_v25, 0  ;;  %v3829_v60 = vperm.slane %v3504_v4, 0 }
 0x4f3   : > { %v3497_v51 = vrot.slane %v8767_v38, 5  ;;  %v4268_v21 = vsel %vm1023_vm7, %v4252_v55, %v3948_v33  ;;  %v4172_v48 = vperm.slane %v9576_v1, 0  ;;  %v4316_v63 = vsel %vm956_vm4, %v11889_v3, %v4044_v61  ;;  %v3302_v55 = vpop.permute.xlu1 %3301 }
 0x4f4   : > { %v3511_v35 = vrot.slane %v11733_v47, 5  ;;  %v4284_v25 = vsel %vm1040_vm8, %v4268_v21, %v3980_v52  ;;  %v4332_v22 = vsel %vm973_vm5, %v4316_v63, %v4076_v40  ;;  %v11892_v38 = vperm.slane %v9092_v44, 0  ;;  %3390 = vst.msk [vmem:[%s9258_s23 + $0x40] sm:$0xff] %vm3381_vm11, %v3302_v55 }
 0x4f5   : > { %v4300_v47 = vsel %vm1057_vm9, %v4284_v25, %v4012_v26  ;;  %v4348_v33 = vsel %vm171_vm0, %v4332_v22, %v4108_v19  ;;  %v4234_v61 = vsel %vm171_vm0, %v4218_v23, %v9777_v34  ;;  %v9873_v52 = vsel %vm973_vm5, %v4206_v16, %v9783_v54  ;;  %v11898_v23 = vld [vmem:[#allocation138_spill] sm:$0xff]  ;;  %v11899_v54 = vld [vmem:[#allocation60_spill] sm:$0xff]  ;;  %v11900_v25 = vld [vmem:[#allocation101_spill] sm:$0xff] }
 0x4f6   : > { %v4232_v12 = vsel %vm171_vm0, %v4216_v50, %v11892_v38  ;;  %4552 = vxpose.xlu2.b32.start [1/2] (short) (narrow) %v4300_v47, 16  ;;  %v4364_v21 = vsel %vm1006_vm6, %v4348_v33, %v4140_v46  ;;  %v9881_v26 = vsel %vm973_vm5, %v4210_v57, %v3858_v7  ;;  %v9884_v19 = vsel %vm973_vm5, %v4203_v2, %v3851_v14  ;;  %v11901_v7 = vld [vmem:[#allocation53_spill] sm:$0xff]  ;;  %v11902_v46 = vld [vmem:[#allocation30_spill] sm:$0xff] }
 0x4f7   : > { %v9793_v11 = vld [vmem:[#allocation1 + $0x1] ss:$9 sm:$0xff]  ;;  %v9797_v53 = vld [vmem:[#allocation1 + $0x3] ss:$9 sm:$0xff]  ;;  %v3527_v34 = vrot.slane %v9092_v44, 5  ;;  %v9890_v16 = vsel %vm213_vm3, %v11899_v54, 0.0  ;;  %v4380_v63 = vsel %vm1023_vm7, %v4364_v21, %v4172_v48  ;;  %v9900_v14 = vsel %vm956_vm4, %v3470_v27, %v3825_v56 }
 0x4f8   : > { %v9795_v18 = vld [vmem:[#allocation1 + $0x2] ss:$9 sm:$0xff]  ;;  %11883 = vst [vmem:[#allocation150_spill] sm:$0xff] %v9797_v53  ;;  %v9799_v29 = vld [vmem:[#allocation1 + $0x4] ss:$9 sm:$0xff]  ;;  %v3912_v22 = vperm.slane %v11900_v25, 0  ;;  %v9909_v48 = vsel %vm956_vm4, %v3474_v37, %v3829_v60 }
 0x4f9   : > { %11882 = vst [vmem:[#allocation149_spill] sm:$0xff] %v9795_v18  ;;  %v9801_v15 = vld [vmem:[#allocation1 + $0x5] ss:$9 sm:$0xff]  ;;  %v9812_v0 = vld [vmem:[#allocation1 + $0x7] ss:$9 sm:$0xff]  ;;  %v9894_v38 = vperm.slane %v3530_v10, 0 }
 0x4fa   : > { %11884 = vst [vmem:[#allocation151_spill] sm:$0xff] %v9799_v29  ;;  %v9803_v36 = vld [vmem:[#allocation1 + $0x6] ss:$9 sm:$0xff]  ;;  %v3914_v57 = vperm.slane %v11901_v7, 0  ;;  %v9902_v44 = vperm.slane %v3518_v8, 0  ;;  %v3944_v47 = vperm.slane %v11902_v46, 0  ;;  %v4248_v7 = vsel %vm1006_vm6, %v4232_v12, %v3912_v22 }
 0x4fb   : > { %11885 = vst [vmem:[#allocation152_spill] sm:$0xff] %v9801_v15  ;;  %v9906_v33 = vperm.slane %v3534_v49, 0  ;;  %v9911_v10 = vperm.slane %v3497_v51, 0  ;;  %v4396_v55 = vsel %vm1040_vm8, %v4380_v63, 0.0  ;;  %v11903_v21 = vld [vmem:[#allocation58_spill] sm:$0xff]  ;;  %v9915_v25 = vperm.slane %v3511_v35, 0 }
 0x4fc   : > { %11886 = vst [vmem:[#allocation153_spill] sm:$0xff] %v9803_v36  ;;  %v4040_v54 = vperm.slane %v11903_v21, 0  ;;  %v9917_v27 = vperm.slane %v3527_v34, 0  ;;  %v11904_v56 = vld [vmem:[#allocation77_spill] sm:$0xff]  ;;  %v11906_v60 = vld [vmem:[#allocation94_spill] sm:$0xff]  ;;  %v11907_v51 = vld [vmem:[#allocation99_spill] sm:$0xff]  ;;  %v4250_v63 = vsel %vm1006_vm6, %v4234_v61, %v3914_v57  ;;  %v4264_v34 = vsel %vm1023_vm7, %v4248_v7, %v3944_v47 }
 0x4fd   : > { %11888 = vst [vmem:[#allocation154_spill] sm:$0xff] %v9812_v0  ;;  %v3976_v8 = vperm.slane %v11904_v56, 0  ;;  %v11905_v46 = vld [vmem:[#allocation57_spill] sm:$0xff]  ;;  %v4008_v37 = vperm.slane %v11906_v60, 0  ;;  %v4412_v35 = vsel %vm1057_vm9, %v4396_v55, 0.0  ;;  %v3304_v60 = vpop.permute.xlu2 %3303  ;;  %v11912_v61 = vld [vmem:[#allocation8_spill] sm:$0xff] }
 0x4fe   : > { %5263 = vst [vmem:[#allocation1] sm:$0xff] %v9670_v13  ;;  %v4072_v49 = vperm.slane %v11905_v46, 0  ;;  %4553 = vxpose.xlu2.b32.end [2/2] (short) (narrow) %v4412_v35, 16  ;;  %v3288_v46 = vpop.permute.xlu0 %3287  ;;  %v11911_v2 = vld [vmem:[#allocation25_spill] sm:$0xff]  ;;  %v4168_v57 = vperm.slane %v11912_v61, 0  ;;  %v11915_v7 = vld [vmem:[#allocation14_spill] sm:$0xff] }
 0x4ff   : > { %v11917_v29 = vld [vmem:[#allocation42_spill] sm:$0xff]  ;;  %3383 = vst.msk [vmem:[%s9258_s23 + $0x8] sm:$0xff] %vm3381_vm11, %v3288_v46  ;;  %v11918_v61 = vld [vmem:[#allocation59_spill] sm:$0xff] }
 0x500   : > { %v4106_v0 = vperm.slane %v11917_v29, 0  ;;  %3391 = vst.msk [vmem:[%s9258_s23 + $0x48] sm:$0xff] %vm3381_vm11, %v3304_v60  ;;  %v11921_v29 = vld [vmem:[#allocation22_spill] sm:$0xff] }
 0x501   : > { %v11951_v53 = vld [vmem:[#allocation98_spill] sm:$0xff] }
 0x502   : > { %v11954_v18 = vld [vmem:[#allocation118_spill] sm:$0xff] }
 0x505   : > { %v9850_v45 = vld [vmem:[#allocation1] ss:$9 sm:$0xff]  ;;  %v9854_v6 = vld [vmem:[#allocation1 + $0x2] ss:$9 sm:$0xff] }
 0x506   : > { %v9852_v36 = vld [vmem:[#allocation1 + $0x1] ss:$9 sm:$0xff]  ;;  %11891 = vst [vmem:[#allocation155_spill] sm:$0xff] %v9854_v6  ;;  %v9861_v1 = vld [vmem:[#allocation1 + $0x3] ss:$9 sm:$0xff] }
 0x507   : > { %11890 = vst [vmem:[#allocation65_spill] sm:$0xff] %v9852_v36  ;;  %v9863_v4 = vld [vmem:[#allocation1 + $0x4] ss:$9 sm:$0xff]  ;;  %v9875_v40 = vld [vmem:[#allocation1 + $0x6] ss:$9 sm:$0xff] }
 0x508   : > { %11893 = vst [vmem:[#allocation156_spill] sm:$0xff] %v9861_v1  ;;  %v9865_v3 = vld [vmem:[#allocation1 + $0x5] ss:$9 sm:$0xff]  ;;  %v9877_v50 = vld [vmem:[#allocation1 + $0x7] ss:$9 sm:$0xff] }
 0x509   : > { %11894 = vst [vmem:[#allocation157_spill] sm:$0xff] %v9863_v4  ;;  %v11908_v4 = vld [vmem:[#allocation105_spill] sm:$0xff]  ;;  %v11910_v36 = vld [vmem:[#allocation62_spill] sm:$0xff] }
 0x50a   : > { %11895 = vst [vmem:[#allocation158_spill] sm:$0xff] %v9865_v3  ;;  %v4104_v21 = vperm.slane %v11908_v4, 0  ;;  %v4042_v12 = vperm.slane %v11910_v36, 0  ;;  %v11913_v4 = vld [vmem:[#allocation43_spill] sm:$0xff]  ;;  %v4280_v36 = vsel %vm1040_vm8, %v4264_v34, %v3976_v8  ;;  %v11916_v1 = vld [vmem:[#allocation10_spill] sm:$0xff] }
 0x50b   : > { %11896 = vst [vmem:[#allocation159_spill] sm:$0xff] %v9875_v40  ;;  %v11909_v40 = vld [vmem:[#allocation100_spill] sm:$0xff]  ;;  %v4312_v55 = vsel %vm956_vm4, %v11913_v4, %v4040_v54  ;;  %v11914_v3 = vld [vmem:[#allocation35_spill] sm:$0xff]  ;;  %v4010_v35 = vperm.slane %v11916_v1, 0  ;;  %v4138_v4 = vperm.slane %v11918_v61, 0 }
 0x50c   : > { %11897 = vst [vmem:[#allocation160_spill] sm:$0xff] %v9877_v50  ;;  %v3946_v50 = vperm.slane %v11907_v51, 0  ;;  %v4136_v56 = vperm.slane %v11909_v40, 0  ;;  %v3978_v51 = vperm.slane %v11911_v2, 0  ;;  %v4074_v47 = vperm.slane %v11914_v3, 0  ;;  %v3292_v40 = vpop.permute.xlu1 %3291  ;;  %v11919_v1 = vld [vmem:[#allocation75_spill] sm:$0xff] }
 0x50d   : > { %5272 = vst [vmem:[#allocation1] sm:$0xff] %v11898_v23  ;;  %v4328_v6 = vsel %vm973_vm5, %v4312_v55, %v4072_v49  ;;  %v4296_v2 = vsel %vm1057_vm9, %v4280_v36, %v4008_v37  ;;  %v4047_v34 = vperm.slane %v11919_v1, 0  ;;  %v11920_v49 = vld [vmem:[#allocation113_spill] sm:$0xff]  ;;  %v4314_v46 = vsel %vm956_vm4, %v11921_v29, %v4042_v12  ;;  %v11924_v12 = vld [vmem:[#allocation106_spill] sm:$0xff] }
 0x50e   : > { %v4266_v54 = vsel %vm1023_vm7, %v4250_v63, %v3946_v50  ;;  %v4344_v3 = vsel %vm171_vm0, %v4328_v6, %v4104_v21  ;;  %4424 = vxpose.xlu1.b32.start [1/2] (short) (narrow) %v4296_v2, 16  ;;  %v4170_v55 = vperm.slane %v11920_v49, 0  ;;  %3385 = vst.msk [vmem:[%s9258_s23 + $0x18] sm:$0xff] %vm3381_vm11, %v3292_v40  ;;  %v11922_v37 = vld [vmem:[#allocation9_spill] sm:$0xff]  ;;  %v4330_v21 = vsel %vm973_vm5, %v4314_v46, %v4074_v47  ;;  %v11926_v47 = vld [vmem:[#allocation120_spill] sm:$0xff] }
 0x50f   : > { %v4360_v8 = vsel %vm1006_vm6, %v4344_v3, %v4136_v56  ;;  %v4282_v50 = vsel %vm1040_vm8, %v4266_v54, %v3978_v51  ;;  %v4079_v63 = vperm.slane %v11922_v37, 0  ;;  %v11923_v56 = vld [vmem:[#allocation69_spill] sm:$0xff]  ;;  %v4346_v2 = vsel %vm171_vm0, %v4330_v21, %v4106_v0  ;;  %v11947_v3 = vld [vmem:[#allocation68_spill] sm:$0xff] }
 0x510   : > { %v4376_v6 = vsel %vm1023_vm7, %v4360_v8, %v4168_v57  ;;  %v4298_v60 = vsel %vm1057_vm9, %v4282_v50, %v4010_v35  ;;  %v4111_v36 = vperm.slane %v11923_v56, 0  ;;  %v4143_v61 = vperm.slane %v11924_v12, 0  ;;  %v11925_v51 = vld [vmem:[#allocation117_spill] sm:$0xff]  ;;  %v11927_v35 = vld [vmem:[#allocation104_spill] sm:$0xff] }
 0x511   : > { %4488 = vxpose.xlu0.b32.start [1/2] (short) (narrow) %v4298_v60, 16  ;;  %v4362_v40 = vsel %vm1006_vm6, %v4346_v2, %v4138_v4  ;;  %v3918_v54 = vperm.slane %v11925_v51, 0  ;;  %v5182_v57 = vrot.slane %v9662_v5, 7  ;;  %v4392_v8 = vsel %vm1040_vm8, %v4376_v6, 0.0  ;;  %v3300_v4 = vpop.permute.xlu0 %3299 }
 0x512   : > { %v4175_v1 = vperm.slane %v11926_v47, 0  ;;  %v4319_v49 = vsel %vm956_vm4, %v11927_v35, %v4047_v34  ;;  %v4378_v0 = vsel %vm1023_vm7, %v4362_v40, %v4170_v55  ;;  %v4238_v6 = vsel %vm171_vm0, %v9873_v52, %v9814_v39  ;;  %3389 = vst.msk [vmem:[%s9258_s23 + $0x38] sm:$0xff] %vm3381_vm11, %v3300_v4  ;;  %v11940_v4 = vld [vmem:[#allocation51_spill] sm:$0xff]  ;;  %v3334_v35 = vpop.permute.xlu2 %3333 }
 0x513   : > { %v4335_v37 = vsel %vm973_vm5, %v4319_v49, %v4079_v63  ;;  %v9988_v34 = vsel %vm171_vm0, %v9881_v26, %v9819_v32  ;;  %v4235_v63 = vsel %vm171_vm0, %v9884_v19, %v9824_v58  ;;  %v4225_v39 = vsel %vm973_vm5, %v9900_v14, %v9835_v41  ;;  %v11934_v26 = vld [vmem:[#allocation40_spill] sm:$0xff]  ;;  %3406 = vst.msk [vmem:[%s9258_s23 + $0xc0] sm:$0xff] %vm3381_vm11, %v3334_v35 }
 0x514   : > { %v9931_v22 = vld [vmem:[#allocation1] ss:$9 sm:$0xff]  ;;  %v3296_v56 = vpop.permute.xlu1 %3295  ;;  %v4351_v2 = vsel %vm171_vm0, %v4335_v37, %v4111_v36  ;;  %v4229_v32 = vsel %vm973_vm5, %v9909_v48, %v9902_v44  ;;  %4648 = vxpose.xlu2.b32.start [1/2] (short) (narrow) %v11934_v26, 16  ;;  %v4408_v36 = vsel %vm1057_vm9, %v4392_v8, 0.0  ;;  %v4394_v58 = vsel %vm1040_vm8, %v4378_v0, 0.0 }
 0x515   : > { %5274 = vst [vmem:[#allocation1] sm:$0xff] %v11915_v7  ;;  %v4367_v12 = vsel %vm1006_vm6, %v4351_v2, %v4143_v61  ;;  %v11935_v19 = vrot.slane %v8672_v17, 5  ;;  %v11936_v14 = vld [vmem:[#allocation16_spill] sm:$0xff]  ;;  %v11937_v61 = vld [vmem:[#allocation70_spill] sm:$0xff]  ;;  %v4254_v47 = vsel %vm1006_vm6, %v4238_v6, %v3918_v54  ;;  %v11938_v17 = vld [vmem:[#allocation95_spill] sm:$0xff]  ;;  %v4410_v0 = vsel %vm1057_vm9, %v4394_v58, 0.0 }
 0x516   : > { %4425 = vxpose.xlu1.b32.end [2/2] (short) (narrow) %v4408_v36, 16  ;;  %v4383_v44 = vsel %vm1023_vm7, %v4367_v12, %v4175_v1  ;;  %3387 = vst.msk [vmem:[%s9258_s23 + $0x28] sm:$0xff] %vm3381_vm11, %v3296_v56  ;;  %v3950_v8 = vperm.slane %v11937_v61, 0  ;;  %v11941_v37 = vld [vmem:[#allocation63_spill] sm:$0xff]  ;;  %v5196_v56 = vrot.slane %v11915_v7, 7  ;;  %v5506_v6 = vperm.slane %v5182_v57, 0 }
 0x517   : > { %v4205_v41 = vsel %vm956_vm4, %v11935_v19, %v9911_v10  ;;  %v11939_v10 = vld [vmem:[#allocation103_spill] sm:$0xff]  ;;  %v3947_v2 = vperm.slane %v11941_v37, 0  ;;  %v4399_v12 = vsel %vm1040_vm8, %v4383_v44, 0.0  ;;  %v11944_v61 = vld [vmem:[#allocation34_spill] sm:$0xff]  ;;  %v11946_v58 = vld [vmem:[#allocation89_spill] sm:$0xff]  ;;  %v4043_v1 = vperm.slane %v11947_v3, 0 }
 0x518   : > { %v3915_v49 = vperm.slane %v11939_v10, 0  ;;  %v11942_v26 = vld [vmem:[#allocation127_spill] sm:$0xff]  ;;  %v3982_v40 = vperm.slane %v11944_v61, 0  ;;  %v11945_v10 = vld [vmem:[#allocation97_spill] sm:$0xff]  ;;  %v3979_v48 = vperm.slane %v11946_v58, 0  ;;  %v11949_v44 = vld [vmem:[#allocation96_spill] sm:$0xff] }
 0x519   : > { %v5152_v36 = vrot.slane %v11942_v26, 7  ;;  %4489 = vxpose.xlu0.b32.end [2/2] (short) (narrow) %v4410_v0, 16  ;;  %v11943_v19 = vld [vmem:[#allocation139_spill] sm:$0xff]  ;;  %v4014_v51 = vperm.slane %v11945_v10, 0  ;;  %v3306_v37 = vpop.permute.xlu0 %3305  ;;  %v11950_v0 = vld [vmem:[#allocation13_spill] sm:$0xff]  ;;  %v4415_v57 = vsel %vm1057_vm9, %v4399_v12, 0.0  ;;  %v10060_v12 = vsel %vm171_vm0, %v4225_v39, %v9894_v38 }
 0x51a   : > { %3392 = vst.msk [vmem:[%s9258_s23 + $0x50] sm:$0xff] %vm3381_vm11, %v3306_v37  ;;  %v11952_v61 = vld [vmem:[#allocation114_spill] sm:$0xff]  ;;  %v11953_v54 = vld [vmem:[#allocation119_spill] sm:$0xff]  ;;  %v4171_v3 = vperm.slane %v11954_v18, 0  ;;  %v4221_v38 = vsel %vm973_vm5, %v4205_v41, %v9915_v25  ;;  %v11965_v41 = vld [vmem:[#allocation56_spill] sm:$0xff] }
 0x51b   : > { %v4142_v10 = vperm.slane %v11952_v61, 0  ;;  %v4174_v58 = vperm.slane %v11953_v54, 0  ;;  %v10064_v54 = vsel %vm171_vm0, %v4229_v32, %v9906_v33 }
 0x51c   : > { %v9975_v29 = vld [vmem:[#allocation1 + $0x1] ss:$9 sm:$0xff]  ;;  %v9979_v50 = vld [vmem:[#allocation1 + $0x3] ss:$9 sm:$0xff]  ;;  %4649 = vxpose.xlu2.b32.end [2/2] (short) (narrow) %v4415_v57, 16 }
 0x51d   : > { %v9977_v46 = vld [vmem:[#allocation1 + $0x2] ss:$9 sm:$0xff]  ;;  %11929 = vst [vmem:[#allocation60_spill] sm:$0xff] %v9979_v50  ;;  %v9990_v55 = vld [vmem:[#allocation1 + $0x4] ss:$9 sm:$0xff]  ;;  %v4107_v50 = vperm.slane %v11950_v0, 0 }
 0x51e   : > { %11928 = vst [vmem:[#allocation138_spill] sm:$0xff] %v9977_v46  ;;  %v9992_v21 = vld [vmem:[#allocation1 + $0x5] ss:$9 sm:$0xff]  ;;  %v10006_v52 = vld [vmem:[#allocation1 + $0x7] ss:$9 sm:$0xff]  ;;  %v4139_v46 = vperm.slane %v11951_v53, 0  ;;  %v4251_v53 = vsel %vm1006_vm6, %v4235_v63, %v3915_v49 }
 0x51f   : > { %11930 = vst [vmem:[#allocation101_spill] sm:$0xff] %v9990_v55  ;;  %v9994_v60 = vld [vmem:[#allocation1 + $0x6] ss:$9 sm:$0xff] }
 0x520   : > { %11931 = vst [vmem:[#allocation53_spill] sm:$0xff] %v9992_v21 }
 0x521   : > { %11932 = vst [vmem:[#allocation30_spill] sm:$0xff] %v9994_v60  ;;  %v11948_v60 = vld [vmem:[#allocation17_spill] sm:$0xff] }
 0x522   : > { %11933 = vst [vmem:[#allocation58_spill] sm:$0xff] %v10006_v52  ;;  %v4011_v55 = vperm.slane %v11948_v60, 0  ;;  %v4075_v52 = vperm.slane %v11949_v44, 0  ;;  %v4270_v44 = vsel %vm1023_vm7, %v4254_v47, %v3950_v8  ;;  %v4267_v8 = vsel %vm1023_vm7, %v4251_v53, %v3947_v2  ;;  %v11960_v47 = vld [vmem:[#allocation31_spill] sm:$0xff] }
 0x523   : > { %5289 = vst [vmem:[#allocation1] sm:$0xff] %v11936_v14  ;;  %v4286_v61 = vsel %vm1040_vm8, %v4270_v44, %v3982_v40  ;;  %v4315_v63 = vsel %vm956_vm4, %v11960_v47, %v4043_v1  ;;  %v4283_v49 = vsel %vm1040_vm8, %v4267_v8, %v3979_v48  ;;  %v11963_v2 = vld [vmem:[#allocation15_spill] sm:$0xff]  ;;  %v11964_v44 = vld [vmem:[#allocation72_spill] sm:$0xff]  ;;  %v4050_v53 = vperm.slane %v11965_v41, 0  ;;  %v11966_v47 = vld [vmem:[#allocation18_spill] sm:$0xff] }
 0x524   : > { %v4302_v32 = vsel %vm1057_vm9, %v4286_v61, %v4014_v51  ;;  %v4331_v40 = vsel %vm973_vm5, %v4315_v63, %v4075_v52  ;;  %v4299_v1 = vsel %vm1057_vm9, %v4283_v49, %v4011_v55  ;;  %v4366_v25 = vsel %vm1006_vm6, %v11964_v44, %v4142_v10  ;;  %v11967_v51 = vld [vmem:[#allocation12_spill] sm:$0xff]  ;;  %v11968_v8 = vld [vmem:[#allocation83_spill] sm:$0xff]  ;;  %v11969_v55 = vld [vmem:[#allocation26_spill] sm:$0xff] }
 0x525   : > { %4616 = vxpose.xlu1.b32.start [1/2] (short) (narrow) %v4302_v32, 16  ;;  %v4347_v57 = vsel %vm171_vm0, %v4331_v40, %v4107_v50  ;;  %v3986_v35 = vperm.slane %v11966_v47, 0  ;;  %4520 = vxpose.xlu0.b32.start [1/2] (short) (narrow) %v4299_v1, 16  ;;  %v4382_v48 = vsel %vm1023_vm7, %v4366_v25, %v4174_v58  ;;  %v4082_v52 = vperm.slane %v11967_v51, 0  ;;  %v3310_v1 = vpop.permute.xlu0 %3309  ;;  %v11971_v44 = vld [vmem:[#allocation73_spill] sm:$0xff] }
 0x526   : > { %v4363_v61 = vsel %vm1006_vm6, %v4347_v57, %v4139_v46  ;;  %v4018_v63 = vperm.slane %v11968_v8, 0  ;;  %v4114_v32 = vperm.slane %v11969_v55, 0  ;;  %v5538_v49 = vperm.slane %v5196_v56, 0  ;;  %v11972_v25 = vld [vmem:[#allocation93_spill] sm:$0xff]  ;;  %3394 = vst.msk [vmem:[%s9258_s23 + $0x60] sm:$0xff] %vm3381_vm11, %v3310_v1 }
 0x527   : > { %v4379_v10 = vsel %vm1023_vm7, %v4363_v61, %v4171_v3  ;;  %v11970_v50 = vperm.slane %v11938_v17, 0  ;;  %v4146_v58 = vperm.slane %v11971_v44, 0  ;;  %v3921_v41 = vperm.slane %v11972_v25, 0  ;;  %v3320_v3 = vpop.permute.xlu2 %3319  ;;  %v11974_v17 = vld [vmem:[#allocation123_spill] sm:$0xff]  ;;  %v11975_v61 = vld [vmem:[#allocation54_spill] sm:$0xff] }
 0x528   : > { %v5890_v46 = vsel %vm956_vm4, %v5152_v36, %v5506_v6  ;;  %v11973_v57 = vperm.slane %v11940_v4, 0  ;;  %v4398_v56 = vsel %vm1040_vm8, %v4382_v48, 0.0  ;;  %v4178_v51 = vperm.slane %v11974_v17, 0  ;;  %3399 = vst.msk [vmem:[%s9258_s23 + $0x88] sm:$0xff] %vm3381_vm11, %v3320_v3  ;;  %v11981_v17 = vld [vmem:[#allocation108_spill] sm:$0xff] }
 0x529   : > { %v4258_v40 = vsel %vm1006_vm6, %v9988_v34, %v11970_v50  ;;  %v4322_v34 = vsel %vm956_vm4, %v11975_v61, %v4050_v53  ;;  %v4395_v4 = vsel %vm1040_vm8, %v4379_v10, 0.0  ;;  %v11976_v6 = vrot.slane %v11943_v19, 7  ;;  %v11982_v61 = vld [vmem:[#allocation19_spill] sm:$0xff] }
 0x52a   : > { %v10050_v21 = vld [vmem:[#allocation1] ss:$9 sm:$0xff]  ;;  %v10054_v60 = vld [vmem:[#allocation1 + $0x2] ss:$9 sm:$0xff]  ;;  %v4274_v47 = vsel %vm1023_vm7, %v4258_v40, %v11973_v57  ;;  %v4338_v36 = vsel %vm973_vm5, %v4322_v34, %v4082_v52  ;;  %v5602_v40 = vperm.slane %v9688_v9, 0  ;;  %v5906_v1 = vsel %vm973_vm5, %v5890_v46, %v5538_v49 }
 0x52b   : > { %v10052_v15 = vld [vmem:[#allocation1 + $0x1] ss:$9 sm:$0xff]  ;;  %11956 = vst [vmem:[#allocation57_spill] sm:$0xff] %v10054_v60  ;;  %v10066_v18 = vld [vmem:[#allocation1 + $0x3] ss:$9 sm:$0xff]  ;;  %v4290_v8 = vsel %vm1040_vm8, %v4274_v47, %v3986_v35  ;;  %v5570_v55 = vperm.slane %v11976_v6, 0  ;;  %v4354_v48 = vsel %vm171_vm0, %v4338_v36, %v4114_v32  ;;  %v4237_v10 = vsel %vm171_vm0, %v4221_v38, %v9917_v27 }
 0x52c   : > { %11955 = vst [vmem:[#allocation77_spill] sm:$0xff] %v10052_v15  ;;  %v10068_v37 = vld [vmem:[#allocation1 + $0x4] ss:$9 sm:$0xff]  ;;  %v10078_v39 = vld [vmem:[#allocation1 + $0x6] ss:$9 sm:$0xff]  ;;  %v4306_v50 = vsel %vm1057_vm9, %v4290_v8, %v4018_v63  ;;  %v4414_v35 = vsel %vm1057_vm9, %v4398_v56, 0.0  ;;  %v4370_v52 = vsel %vm1006_vm6, %v4354_v48, %v4146_v58  ;;  %v4257_v56 = vsel %vm1006_vm6, %v10060_v12, %v3921_v41 }
 0x52d   : > { %11957 = vst [vmem:[#allocation94_spill] sm:$0xff] %v10066_v18  ;;  %v10070_v0 = vld [vmem:[#allocation1 + $0x5] ss:$9 sm:$0xff]  ;;  %v10080_v33 = vld [vmem:[#allocation1 + $0x7] ss:$9 sm:$0xff]  ;;  %4744 = vxpose.xlu2.b32.start [1/2] (short) (narrow) %v4306_v50, 16  ;;  %v4386_v9 = vsel %vm1023_vm7, %v4370_v52, %v4178_v51  ;;  %v5922_v3 = vsel %vm171_vm0, %v5906_v1, %v5570_v55 }
 0x52e   : > { %11958 = vst [vmem:[#allocation99_spill] sm:$0xff] %v10068_v37  ;;  %v11977_v44 = vrot.slane %v8945_v43, 4  ;;  %4617 = vxpose.xlu1.b32.end [2/2] (short) (narrow) %v4414_v35, 16  ;;  %v4411_v63 = vsel %vm1057_vm9, %v4395_v4, 0.0  ;;  %v11978_v32 = vrot.slane %v11750_v31, 4  ;;  %v11979_v58 = vld [vmem:[#allocation90_spill] sm:$0xff]  ;;  %v5938_v8 = vsel %vm1006_vm6, %v5922_v3, %v5602_v40 }
 0x52f   : > { %11959 = vst [vmem:[#allocation105_spill] sm:$0xff] %v10070_v0  ;;  %4521 = vxpose.xlu0.b32.end [2/2] (short) (narrow) %v4411_v63, 16  ;;  %v3953_v57 = vperm.slane %v11979_v58, 0  ;;  %v11980_v47 = vld [vmem:[#allocation116_spill] sm:$0xff]  ;;  %v5634_v38 = vperm.slane %v9850_v45, 0  ;;  %v3949_v51 = vperm.slane %v11981_v17, 0 }
 0x530   : > { %11961 = vst [vmem:[#allocation100_spill] sm:$0xff] %v10078_v39  ;;  %v3828_v25 = vperm.slane %v11977_v44, 0  ;;  %v3860_v49 = vperm.slane %v11978_v32, 0  ;;  %v3917_v27 = vperm.slane %v11980_v47, 0  ;;  %v4049_v34 = vperm.slane %v11982_v61, 0  ;;  %v11983_v4 = vld [vmem:[#allocation80_spill] sm:$0xff] }
 0x531   : > { %11962 = vst [vmem:[#allocation62_spill] sm:$0xff] %v10080_v33  ;;  %v4402_v36 = vsel %vm1040_vm8, %v4386_v9, 0.0  ;;  %v3985_v6 = vperm.slane %v11983_v4, 0  ;;  %v11984_v50 = vld [vmem:[#allocation50_spill] sm:$0xff]  ;;  %v10154_v35 = vsel %vm1023_vm7, %v5938_v8, %v5634_v38  ;;  %v11985_v45 = vld [vmem:[#allocation48_spill] sm:$0xff]  ;;  %v11988_v44 = vld [vmem:[#allocation67_spill] sm:$0xff]  ;;  %v4273_v32 = vsel %vm1023_vm7, %v4257_v56, %v3953_v57  ;;  %v3314_v38 = vpop.permute.xlu0 %3313 }
 0x532   : > { %5298 = vst [vmem:[#allocation1] sm:$0xff] %v11963_v2  ;;  %v4081_v48 = vperm.slane %v11984_v50, 0  ;;  %v4017_v55 = vperm.slane %v11985_v45, 0  ;;  %v11986_v1 = vld [vmem:[#allocation46_spill] sm:$0xff]  ;;  %v11987_v12 = vld [vmem:[#allocation32_spill] sm:$0xff]  ;;  %v4113_v63 = vperm.slane %v11988_v44, 0  ;;  %v4253_v9 = vsel %vm1006_vm6, %v4237_v10, %v3917_v27 }
 0x533   : > { %v3925_v52 = vperm.slane %v11986_v1, 0  ;;  %v3981_v41 = vperm.slane %v11987_v12, 0  ;;  %v11989_v40 = vld [vmem:[#allocation84_spill] sm:$0xff]  ;;  %v11990_v47 = vld [vmem:[#allocation11_spill] sm:$0xff]  ;;  %v4418_v17 = vsel %vm1057_vm9, %v4402_v36, 0.0  ;;  %v11991_v61 = vld [vmem:[#allocation122_spill] sm:$0xff]  ;;  %v4289_v10 = vsel %vm1040_vm8, %v4273_v32, %v3985_v6  ;;  %v3308_v32 = vpop.permute.xlu1 %3307 }
 0x534   : > { %v4013_v58 = vperm.slane %v11989_v40, 0  ;;  %v4145_v3 = vperm.slane %v11990_v47, 0  ;;  %v4177_v8 = vperm.slane %v11991_v61, 0  ;;  %v11992_v4 = vld [vmem:[#allocation91_spill] sm:$0xff]  ;;  %v5189_v45 = vrot.slane %v9670_v13, 7  ;;  %v3324_v61 = vpop.permute.xlu2 %3323  ;;  %3396 = vst.msk [vmem:[%s9258_s23 + $0x70] sm:$0xff] %vm3381_vm11, %v3314_v38 }
 0x535   : > { %v4321_v50 = vsel %vm956_vm4, %v11992_v4, %v4049_v34  ;;  %v4269_v27 = vsel %vm1023_vm7, %v4253_v9, %v3949_v51  ;;  %v11996_v36 = vrot.slane %v8764_v42, 4  ;;  %v4305_v4 = vsel %vm1057_vm9, %v4289_v10, %v4017_v55  ;;  %4745 = vxpose.xlu2.b32.end [2/2] (short) (narrow) %v4418_v17, 16  ;;  %v12002_v9 = vld [vmem:[#allocation39_spill] sm:$0xff]  ;;  %3401 = vst.msk [vmem:[%s9258_s23 + $0x98] sm:$0xff] %vm3381_vm11, %v3324_v61  ;;  %v12011_v37 = vld [vmem:[#allocation41_spill] sm:$0xff] }
 0x536   : > { %v4337_v56 = vsel %vm973_vm5, %v4321_v50, %v4081_v48  ;;  %v4285_v46 = vsel %vm1040_vm8, %v4269_v27, %v3981_v41  ;;  %v12000_v51 = vperm.slane %v8945_v43, 0  ;;  %4712 = vxpose.xlu1.b32.start [1/2] (short) (narrow) %v4305_v4, 16  ;;  %v3957_v50 = vperm.slane %v12002_v9, 0  ;;  %v12003_v27 = vld [vmem:[#allocation136_spill] sm:$0xff]  ;;  %3393 = vst.msk [vmem:[%s9258_s23 + $0x58] sm:$0xff] %vm3381_vm11, %v3308_v32  ;;  %v12009_v32 = vld [vmem:[#allocation38_spill] sm:$0xff] }
 0x537   : > { %v4212_v44 = vsel %vm956_vm4, %v11996_v36, %v3828_v25  ;;  %v4353_v6 = vsel %vm171_vm0, %v4337_v56, %v4113_v63  ;;  %v4301_v55 = vsel %vm1057_vm9, %v4285_v46, %v4013_v58  ;;  %v5203_v63 = vrot.slane %v11936_v14, 7  ;;  %v12012_v15 = vld [vmem:[#allocation109_spill] sm:$0xff] }
 0x538   : > { %v4208_v48 = vsel %vm956_vm4, %v8764_v42, %v12000_v51  ;;  %v4369_v41 = vsel %vm1006_vm6, %v4353_v6, %v4145_v3  ;;  %4584 = vxpose.xlu0.b32.start [1/2] (short) (narrow) %v4301_v55, 16  ;;  %v5159_v17 = vrot.slane %v12003_v27, 7  ;;  %v5514_v56 = vperm.slane %v5189_v45, 0  ;;  %v12006_v51 = vld [vmem:[#allocation88_spill] sm:$0xff] }
 0x539   : > { %v10127_v53 = vld [vmem:[#allocation1] ss:$9 sm:$0xff]  ;;  %v4385_v10 = vsel %vm1023_vm7, %v4369_v41, %v4177_v8  ;;  %v12004_v38 = vrot.slane %v9240_v20, 4  ;;  %v4228_v46 = vsel %vm973_vm5, %v4212_v44, %v3860_v49  ;;  %v3888_v58 = vperm.slane %v9240_v20, 0 }
 0x53a   : > { %5301 = vst [vmem:[#allocation1] sm:$0xff] %v11943_v19  ;;  %v5219_v3 = vrot.slane %v9765_v62, 7  ;;  %v4261_v4 = vsel %vm1006_vm6, %v10064_v54, %v3925_v52  ;;  %v12005_v8 = vld [vmem:[#allocation23_spill] sm:$0xff]  ;;  %v3920_v45 = vperm.slane %v12006_v51, 0  ;;  %v12007_v61 = vperm.slane %v11750_v31, 0  ;;  %v12008_v41 = vld [vmem:[#allocation92_spill] sm:$0xff] }
 0x53b   : > { %v3892_v36 = vperm.slane %v12004_v38, 0  ;;  %v3924_v6 = vperm.slane %v12005_v8, 0  ;;  %v3989_v9 = vperm.slane %v12008_v41, 0  ;;  %v4401_v49 = vsel %vm1040_vm8, %v4385_v10, 0.0  ;;  %v12010_v52 = vld [vmem:[#allocation29_spill] sm:$0xff] }
 0x53c   : > { %v4224_v55 = vsel %vm973_vm5, %v4208_v48, %v12007_v61  ;;  %v4397_v44 = vsel %vm1040_vm8, %v9729_v28, 0.0  ;;  %v5546_v38 = vperm.slane %v5203_v63, 0  ;;  %v4021_v33 = vperm.slane %v12009_v32, 0  ;;  %v12013_v61 = vld [vmem:[#allocation45_spill] sm:$0xff]  ;;  %v12014_v63 = vld [vmem:[#allocation27_spill] sm:$0xff] }
 0x53d   : > { %v4277_v54 = vsel %vm1023_vm7, %v4261_v4, %v3957_v50  ;;  %v3956_v8 = vperm.slane %v12010_v52, 0  ;;  %v5898_v51 = vsel %vm956_vm4, %v5159_v17, %v5514_v56  ;;  %v3988_v39 = vperm.slane %v12011_v37, 0  ;;  %v12015_v32 = vld [vmem:[#allocation71_spill] sm:$0xff] }
 0x53e   : > { %v3952_v48 = vperm.slane %v12012_v15, 0  ;;  %v3984_v41 = vperm.slane %v12013_v61, 0  ;;  %v5578_v0 = vperm.slane %v5219_v3, 0  ;;  %v4417_v10 = vsel %vm1057_vm9, %v4401_v49, 0.0 }
 0x53f   : > { %v4413_v28 = vsel %vm1057_vm9, %v4397_v44, 0.0  ;;  %v4020_v18 = vperm.slane %v12014_v63, 0  ;;  %v4293_v37 = vsel %vm1040_vm8, %v4277_v54, %v3989_v9  ;;  %v4244_v15 = vsel %vm171_vm0, %v4228_v46, %v3892_v36  ;;  %4713 = vxpose.xlu1.b32.end [2/2] (short) (narrow) %v4417_v10, 16 }
 0x540   : > { %v5914_v56 = vsel %vm973_vm5, %v5898_v51, %v5546_v38  ;;  %v4309_v52 = vsel %vm1057_vm9, %v4293_v37, %v4021_v33  ;;  %v4260_v61 = vsel %vm1006_vm6, %v4244_v15, %v3924_v6  ;;  %v4240_v63 = vsel %vm171_vm0, %v4224_v55, %v3888_v58  ;;  %4585 = vxpose.xlu0.b32.end [2/2] (short) (narrow) %v4413_v28, 16  ;;  %v12023_v33 = vld [vmem:[#allocation28_spill] sm:$0xff]  ;;  %v12024_v6 = vld [vmem:[#allocation85_spill] sm:$0xff]  ;;  %v12025_v51 = vld [vmem:[#allocation74_spill] sm:$0xff] }
 0x541   : > { %v10169_v1 = vld [vmem:[#allocation1 + $0x1] ss:$9 sm:$0xff]  ;;  %v10173_v57 = vld [vmem:[#allocation1 + $0x3] ss:$9 sm:$0xff]  ;;  %4840 = vxpose.xlu2.b32.start [1/2] (short) (narrow) %v4309_v52, 16  ;;  %v4276_v36 = vsel %vm1023_vm7, %v4260_v61, %v3956_v8  ;;  %v4256_v46 = vsel %vm1006_vm6, %v4240_v63, %v3920_v45  ;;  %v4084_v38 = vperm.slane %v12023_v33, 0  ;;  %v5930_v55 = vsel %vm171_vm0, %v5914_v56, %v5578_v0  ;;  %v3318_v33 = vpop.permute.xlu0 %3317 }
 0x542   : > { %11993 = vst [vmem:[#allocation25_spill] sm:$0xff] %v10169_v1  ;;  %v10171_v12 = vld [vmem:[#allocation1 + $0x2] ss:$9 sm:$0xff]  ;;  %v10181_v34 = vld [vmem:[#allocation1 + $0x4] ss:$9 sm:$0xff]  ;;  %v4272_v9 = vsel %vm1023_vm7, %v4256_v46, %v3952_v48  ;;  %v4048_v58 = vperm.slane %v12024_v6, 0  ;;  %v4292_v54 = vsel %vm1040_vm8, %v4276_v36, %v3988_v39 }
 0x543   : > { %11994 = vst [vmem:[#allocation8_spill] sm:$0xff] %v10171_v12  ;;  %v10183_v40 = vld [vmem:[#allocation1 + $0x5] ss:$9 sm:$0xff]  ;;  %v10194_v25 = vld [vmem:[#allocation1 + $0x7] ss:$9 sm:$0xff]  ;;  %v4016_v10 = vperm.slane %v12025_v51, 0  ;;  %v4308_v52 = vsel %vm1057_vm9, %v4292_v54, %v4020_v18  ;;  %v4288_v28 = vsel %vm1040_vm8, %v4272_v9, %v3984_v41 }
 0x544   : > { %11995 = vst [vmem:[#allocation43_spill] sm:$0xff] %v10173_v57  ;;  %v10185_v47 = vld [vmem:[#allocation1 + $0x6] ss:$9 sm:$0xff]  ;;  %v4405_v0 = vsel %vm1040_vm8, %v9774_v30, 0.0  ;;  %v5610_v51 = vperm.slane %v9751_v59, 0 }
 0x545   : > { %11997 = vst [vmem:[#allocation35_spill] sm:$0xff] %v10181_v34  ;;  %v12026_v37 = vld [vmem:[#allocation78_spill] sm:$0xff]  ;;  %v12027_v15 = vld [vmem:[#allocation115_spill] sm:$0xff]  ;;  %v12028_v48 = vld [vmem:[#allocation76_spill] sm:$0xff]  ;;  %v4304_v30 = vsel %vm1057_vm9, %v4288_v28, %v4016_v10  ;;  %v4421_v59 = vsel %vm1057_vm9, %v4405_v0, 0.0  ;;  %v3502_v10 = vrot.slane %v8945_v43, 3 }
 0x546   : > { %11998 = vst [vmem:[#allocation14_spill] sm:$0xff] %v10183_v40  ;;  %v4116_v8 = vperm.slane %v12026_v37, 0  ;;  %v4080_v45 = vperm.slane %v12027_v15, 0  ;;  %v4148_v61 = vperm.slane %v12028_v48, 0  ;;  %v12029_v63 = vld [vmem:[#allocation55_spill] sm:$0xff]  ;;  %v12031_v36 = vld [vmem:[#allocation24_spill] sm:$0xff] }
 0x547   : > { %11999 = vst [vmem:[#allocation10_spill] sm:$0xff] %v10185_v47  ;;  %v4052_v47 = vperm.slane %v12015_v32, 0  ;;  %v4112_v46 = vperm.slane %v12029_v63, 0  ;;  %v12030_v56 = vld [vmem:[#allocation47_spill] sm:$0xff]  ;;  %v4144_v6 = vperm.slane %v12031_v36, 0  ;;  %v12032_v18 = vld [vmem:[#allocation125_spill] sm:$0xff] }
 0x548   : > { %12001 = vst [vmem:[#allocation42_spill] sm:$0xff] %v10194_v25  ;;  %v4180_v54 = vperm.slane %v12032_v18, 0  ;;  %v12033_v9 = vld [vmem:[#allocation121_spill] sm:$0xff]  ;;  %4808 = vxpose.xlu1.b32.start [1/2] (short) (narrow) %v4308_v52, 16  ;;  %4680 = vxpose.xlu0.b32.start [1/2] (short) (narrow) %v4304_v30, 16  ;;  %v3516_v52 = vrot.slane %v11750_v31, 3 }
 0x549   : > { %5316 = vst [vmem:[#allocation1] sm:$0xff] %v9765_v62  ;;  %v4324_v39 = vsel %vm956_vm4, %v12030_v56, %v4052_v47  ;;  %v4176_v37 = vperm.slane %v12033_v9, 0  ;;  %v12034_v15 = vld [vmem:[#allocation33_spill] sm:$0xff]  ;;  %v5666_v56 = vperm.slane %v10050_v21, 0  ;;  %4841 = vxpose.xlu2.b32.end [2/2] (short) (narrow) %v4421_v59, 16  ;;  %v5946_v21 = vsel %vm1006_vm6, %v5930_v55, %v5610_v51 }
 0x54a   : > { %3398 = vst.msk [vmem:[%s9258_s23 + $0x80] sm:$0xff] %vm3381_vm11, %v3318_v33  ;;  %v4340_v41 = vsel %vm973_vm5, %v4324_v39, %v4084_v38  ;;  %v4320_v48 = vsel %vm956_vm4, %v12034_v15, %v4048_v58  ;;  %v5642_v38 = vperm.slane %v9931_v22, 0  ;;  %v3827_v0 = vperm.slane %v3502_v10, 0 }
 0x54b   : > { %v4356_v63 = vsel %vm171_vm0, %v4340_v41, %v4116_v8  ;;  %v4336_v47 = vsel %vm973_vm5, %v4320_v48, %v4080_v45  ;;  %v10300_v8 = vsel %vm1040_vm8, %v10154_v35, %v5666_v56  ;;  %v3472_v35 = vrot.slane %v8764_v42, 3  ;;  %v12040_v56 = vld [vmem:[#allocation20_spill] sm:$0xff] }
 0x54c   : > { %v4372_v33 = vsel %vm1006_vm6, %v4356_v63, %v4148_v61  ;;  %v4352_v36 = vsel %vm171_vm0, %v4336_v47, %v4112_v46  ;;  %v10307_v28 = vsel %vm1023_vm7, %v5946_v21, %v5642_v38  ;;  %v3532_v55 = vrot.slane %v9240_v20, 3  ;;  %v3312_v63 = vpop.permute.xlu1 %3311  ;;  %v12043_v21 = vld [vmem:[#allocation102_spill] sm:$0xff] }
 0x54d   : > { %v4368_v58 = vsel %vm1006_vm6, %v4352_v36, %v4144_v6  ;;  %v4388_v45 = vsel %vm1023_vm7, %v4372_v33, %v4180_v54  ;;  %v3859_v18 = vperm.slane %v3516_v52, 0  ;;  %3395 = vst.msk [vmem:[%s9258_s23 + $0x68] sm:$0xff] %vm3381_vm11, %v3312_v63  ;;  %v3923_v59 = vperm.slane %v12040_v56, 0  ;;  %v12041_v36 = vld [vmem:[#allocation111_spill] sm:$0xff]  ;;  %v3328_v56 = vpop.permute.xlu2 %3327 }
 0x54e   : > { %v4384_v22 = vsel %vm1023_vm7, %v4368_v58, %v4176_v37  ;;  %v4404_v61 = vsel %vm1040_vm8, %v4388_v45, 0.0  ;;  %v4211_v37 = vsel %vm956_vm4, %v3472_v35, %v3827_v0  ;;  %v3891_v47 = vperm.slane %v3532_v55, 0  ;;  %v12042_v58 = vld [vmem:[#allocation49_spill] sm:$0xff]  ;;  %3403 = vst.msk [vmem:[%s9258_s23 + $0xa8] sm:$0xff] %vm3381_vm11, %v3328_v56 }
 0x54f   : > { %v4400_v46 = vsel %vm1040_vm8, %v4384_v22, 0.0  ;;  %v4420_v6 = vsel %vm1057_vm9, %v4404_v61, 0.0  ;;  %v4227_v33 = vsel %vm973_vm5, %v4211_v37, %v3859_v18  ;;  %v4055_v38 = vperm.slane %v12041_v36, 0  ;;  %v12044_v22 = vld [vmem:[#allocation66_spill] sm:$0xff]  ;;  %v12045_v61 = vld [vmem:[#allocation52_spill] sm:$0xff]  ;;  %v12046_v0 = vld [vmem:[#allocation61_spill] sm:$0xff] }
 0x550   : > { %v10236_v50 = vld [vmem:[#allocation1] ss:$9 sm:$0xff]  ;;  %v10240_v17 = vld [vmem:[#allocation1 + $0x2] ss:$9 sm:$0xff]  ;;  %v4416_v51 = vsel %vm1057_vm9, %v4400_v46, 0.0  ;;  %4809 = vxpose.xlu1.b32.end [2/2] (short) (narrow) %v4420_v6, 16  ;;  %v4243_v6 = vsel %vm171_vm0, %v4227_v33, %v3891_v47 }
 0x551   : > { %v10238_v4 = vld [vmem:[#allocation1 + $0x1] ss:$9 sm:$0xff]  ;;  %12017 = vst [vmem:[#allocation75_spill] sm:$0xff] %v10240_v17  ;;  %v10245_v3 = vld [vmem:[#allocation1 + $0x3] ss:$9 sm:$0xff]  ;;  %4681 = vxpose.xlu0.b32.end [2/2] (short) (narrow) %v4416_v51, 16 }
 0x552   : > { %12016 = vst [vmem:[#allocation59_spill] sm:$0xff] %v10238_v4  ;;  %v10247_v49 = vld [vmem:[#allocation1 + $0x4] ss:$9 sm:$0xff]  ;;  %v10254_v32 = vld [vmem:[#allocation1 + $0x6] ss:$9 sm:$0xff]  ;;  %v4051_v10 = vperm.slane %v12042_v58, 0  ;;  %v4259_v58 = vsel %vm1006_vm6, %v4243_v6, %v3923_v59 }
 0x553   : > { %12018 = vst [vmem:[#allocation113_spill] sm:$0xff] %v10245_v3  ;;  %v10249_v44 = vld [vmem:[#allocation1 + $0x5] ss:$9 sm:$0xff]  ;;  %v10256_v4 = vld [vmem:[#allocation1 + $0x7] ss:$9 sm:$0xff]  ;;  %v3955_v45 = vperm.slane %v12043_v21, 0 }
 0x554   : > { %12019 = vst [vmem:[#allocation22_spill] sm:$0xff] %v10247_v49  ;;  %v4087_v52 = vperm.slane %v12044_v22, 0  ;;  %v4083_v46 = vperm.slane %v12045_v61, 0  ;;  %v3505_v35 = vrot.slane %v8945_v43, 6  ;;  %v3987_v55 = vperm.slane %v12046_v0, 0  ;;  %v12047_v51 = vld [vmem:[#allocation87_spill] sm:$0xff] }
 0x555   : > { %12020 = vst [vmem:[#allocation9_spill] sm:$0xff] %v10249_v44  ;;  %v4119_v63 = vperm.slane %v12047_v51, 0  ;;  %v12048_v18 = vld [vmem:[#allocation82_spill] sm:$0xff]  ;;  %v12049_v36 = vld [vmem:[#allocation64_spill] sm:$0xff]  ;;  %v12050_v21 = vld [vmem:[#allocation79_spill] sm:$0xff] }
 0x556   : > { %12021 = vst [vmem:[#allocation69_spill] sm:$0xff] %v10254_v32  ;;  %v4115_v37 = vperm.slane %v12048_v18, 0  ;;  %v4151_v49 = vperm.slane %v12050_v21, 0  ;;  %v12051_v22 = vld [vmem:[#allocation21_spill] sm:$0xff]  ;;  %v12053_v0 = vld [vmem:[#allocation44_spill] sm:$0xff] }
 0x557   : > { %12022 = vst [vmem:[#allocation106_spill] sm:$0xff] %v10256_v4  ;;  %v4019_v4 = vperm.slane %v12049_v36, 0  ;;  %v4147_v32 = vperm.slane %v12051_v22, 0  ;;  %v12052_v43 = vld [vmem:[#allocation129_spill] sm:$0xff]  ;;  %v4327_v47 = vsel %vm956_vm4, %v12053_v0, %v4055_v38  ;;  %v12054_v33 = vld [vmem:[#allocation124_spill] sm:$0xff]  ;;  %v4275_v36 = vsel %vm1023_vm7, %v4259_v58, %v3955_v45 }
 0x558   : > { %5325 = vst [vmem:[#allocation1] sm:$0xff] %v9890_v16  ;;  %v4183_v61 = vperm.slane %v12052_v43, 0  ;;  %v4179_v51 = vperm.slane %v12054_v33, 0  ;;  %v12055_v44 = vld [vmem:[#allocation36_spill] sm:$0xff]  ;;  %v4343_v56 = vsel %vm973_vm5, %v4327_v47, %v4087_v52  ;;  %v4291_v0 = vsel %vm1040_vm8, %v4275_v36, %v3987_v55 }
 0x559   : > { %v4323_v18 = vsel %vm956_vm4, %v12055_v44, %v4051_v10  ;;  %v3322_v44 = vpop.permute.xlu0 %3321  ;;  %v3316_v10 = vpop.permute.xlu1 %3315  ;;  %v4359_v33 = vsel %vm171_vm0, %v4343_v56, %v4119_v63  ;;  %v4307_v58 = vsel %vm1057_vm9, %v4291_v0, %v4019_v4  ;;  %v3475_v36 = vrot.slane %v8764_v42, 6 }
 0x55a   : > { %v4339_v21 = vsel %vm973_vm5, %v4323_v18, %v4083_v46  ;;  %3400 = vst.msk [vmem:[%s9258_s23 + $0x90] sm:$0xff] %vm3381_vm11, %v3322_v44  ;;  %v12057_v46 = vld [vmem:[#allocation112_spill] sm:$0xff]  ;;  %v4375_v47 = vsel %vm1006_vm6, %v4359_v33, %v4151_v49  ;;  %4776 = vxpose.xlu0.b32.start [1/2] (short) (narrow) %v4307_v58, 16  ;;  %v3830_v56 = vperm.slane %v3505_v35, 0  ;;  %v5698_v4 = vperm.slane %v10236_v50, 0  ;;  %v12061_v33 = vld [vmem:[#allocation107_spill] sm:$0xff] }
 0x55b   : > { %v4355_v17 = vsel %vm171_vm0, %v4339_v21, %v4115_v37  ;;  %4904 = vxpose.xlu1.b32.start [1/2] (short) (narrow) %v12057_v46, 16  ;;  %v4391_v55 = vsel %vm1023_vm7, %v4375_v47, %v4183_v61  ;;  %3397 = vst.msk [vmem:[%s9258_s23 + $0x78] sm:$0xff] %vm3381_vm11, %v3316_v10  ;;  %v3519_v37 = vrot.slane %v11750_v31, 6  ;;  %v3535_v61 = vrot.slane %v9240_v20, 6  ;;  %v12062_v58 = vld [vmem:[#allocation81_spill] sm:$0xff] }
 0x55c   : > { %v4371_v18 = vsel %vm1006_vm6, %v4355_v17, %v4147_v32  ;;  %v4407_v49 = vsel %vm1040_vm8, %v4391_v55, 0.0  ;;  %v5674_v32 = vperm.slane %v10127_v53, 0  ;;  %v4214_v44 = vsel %vm956_vm4, %v3475_v36, %v3830_v56 }
 0x55d   : > { %v4387_v63 = vsel %vm1023_vm7, %v4371_v18, %v4179_v51  ;;  %v10398_v51 = vsel %vm1057_vm9, %v10300_v8, %v5698_v4  ;;  %v3862_v21 = vperm.slane %v3519_v37, 0  ;;  %v4423_v35 = vsel %vm1057_vm9, %v4407_v49, 0.0  ;;  %v12060_v8 = vld [vmem:[#allocation37_spill] sm:$0xff]  ;;  %v12063_v18 = vld [vmem:[#allocation110_spill] sm:$0xff]  ;;  %v12065_v4 = vld [vmem:[#allocation128_spill] sm:$0xff] }
 0x55e   : > { %v4403_v17 = vsel %vm1040_vm8, %v4387_v63, 0.0  ;;  %12058 = vst [vmem:[#allocation103_spill] sm:$0xff] %v10398_v51  ;;  %v5978_v42 = vsel %vm1040_vm8, %v10307_v28, %v5674_v32  ;;  %v3894_v20 = vperm.slane %v3535_v61, 0  ;;  %v3926_v28 = vperm.slane %v12060_v8, 0  ;;  %v12064_v37 = vld [vmem:[#allocation86_spill] sm:$0xff] }
 0x55f   : > { %v10294_v39 = vld [vmem:[#allocation1] ss:$9 sm:$0xff]  ;;  %v4419_v50 = vsel %vm1057_vm9, %v4403_v17, 0.0  ;;  %v4230_v0 = vsel %vm973_vm5, %v4214_v44, %v3862_v21  ;;  %v3958_v46 = vperm.slane %v12061_v33, 0  ;;  %v3990_v47 = vperm.slane %v12062_v58, 0 }
 0x560   : > { %5327 = vst [vmem:[#allocation1] sm:$0xff] %v11942_v26  ;;  %v4022_v55 = vperm.slane %v12063_v18, 0  ;;  %v4246_v63 = vsel %vm171_vm0, %v4230_v0, %v3894_v20  ;;  %v4150_v36 = vperm.slane %v12064_v37, 0  ;;  %v4182_v49 = vperm.slane %v12065_v4, 0 }
 0x561   : > { %v3326_v31 = vpop.permute.xlu0 %3325  ;;  %v4262_v56 = vsel %vm1006_vm6, %v4246_v63, %v3926_v28  ;;  %v12070_v28 = vld [vmem:[#allocation126_spill] sm:$0xff]  ;;  %v3332_v58 = vpop.permute.xlu1 %3331 }
 0x562   : > { %3402 = vst.msk [vmem:[%s9258_s23 + $0xa0] sm:$0xff] %vm3381_vm11, %v3326_v31  ;;  %4777 = vxpose.xlu0.b32.end [2/2] (short) (narrow) %v4419_v50, 16  ;;  %v4278_v17 = vsel %vm1023_vm7, %v4262_v56, %v3958_v46  ;;  %v4374_v0 = vsel %vm1006_vm6, %v12070_v28, %v4150_v36 }
 0x563   : > { %4905 = vxpose.xlu1.b32.end [2/2] (short) (narrow) %v4423_v35, 16  ;;  %v4294_v35 = vsel %vm1040_vm8, %v4278_v17, %v3990_v47  ;;  %v4390_v33 = vsel %vm1023_vm7, %v4374_v0, %v4182_v49  ;;  %3405 = vst.msk [vmem:[%s9258_s23 + $0xb8] sm:$0xff] %vm3381_vm11, %v3332_v58 }
 0x564   : > { %v4310_v8 = vsel %vm1057_vm9, %v4294_v35, %v4022_v55  ;;  %v4406_v46 = vsel %vm1040_vm8, %v4390_v33, 0.0 }
 0x565   : > { %v4422_v47 = vsel %vm1057_vm9, %v4406_v46, 0.0 }
 0x567   : > { %v10316_v54 = vld [vmem:[#allocation1 + $0x2] ss:$9 sm:$0xff]  ;;  %v10320_v9 = vld [vmem:[#allocation1 + $0x4] ss:$9 sm:$0xff] }
 0x568   : > { %12035 = vst [vmem:[#allocation117_spill] sm:$0xff] %v10316_v54  ;;  %v10318_v41 = vld [vmem:[#allocation1 + $0x3] ss:$9 sm:$0xff]  ;;  %v10323_v15 = vld [vmem:[#allocation1 + $0x5] ss:$9 sm:$0xff] }
 0x569   : > { %12036 = vst [vmem:[#allocation120_spill] sm:$0xff] %v10318_v41  ;;  %v10325_v48 = vld [vmem:[#allocation1 + $0x6] ss:$9 sm:$0xff]  ;;  %v3330_v31 = vpop.permute.xlu0 %3329 }
 0x56a   : > { %12037 = vst [vmem:[#allocation104_spill] sm:$0xff] %v10320_v9  ;;  %v10327_v30 = vld [vmem:[#allocation1 + $0x7] ss:$9 sm:$0xff]  ;;  %4872 = vxpose.xlu0.b32.start [1/2] (short) (narrow) %v4310_v8, 16  ;;  %v3338_v8 = vpop.permute.xlu1 %3337 }
 0x56b   : > { %12038 = vst [vmem:[#allocation40_spill] sm:$0xff] %v10323_v15 }
 0x56c   : > { %12039 = vst [vmem:[#allocation70_spill] sm:$0xff] %v10325_v48 }
 0x56d   : > { %5340 = vst [vmem:[#allocation1] sm:$0xff] %v12003_v27 }
 0x56e   : > { %3404 = vst.msk [vmem:[%s9258_s23 + $0xb0] sm:$0xff] %vm3381_vm11, %v3330_v31  ;;  %v5706_v31 = vperm.slane %v10294_v39, 0 }
 0x56f   : > { %3408 = vst.msk [vmem:[%s9258_s23 + $0xd0] sm:$0xff] %vm3381_vm11, %v3338_v8 }
 0x570   : > { %v10465_v35 = vsel %vm1057_vm9, %v5978_v42, %v5706_v31 }
 0x571   : > { %v3336_v17 = vpop.permute.xlu0 %3335  ;;  %12072 = vst [vmem:[#allocation89_spill] sm:$0xff] %v10465_v35 }
 0x572   : > { %4873 = vxpose.xlu0.b32.end [2/2] (short) (narrow) %v4422_v47, 16  ;;  %3407 = vst.msk [vmem:[%s9258_s23 + $0xc8] sm:$0xff] %vm3381_vm11, %v3336_v17  ;;  %v3344_v58 = vpop.permute.xlu1 %3343 }
 0x573   : > { %3411 = vst.msk [vmem:[%s9258_s23 + $0xe8] sm:$0xff] %vm3381_vm11, %v3344_v58 }
 0x574   : > { %v10356_v3 = vld [vmem:[#allocation1] ss:$9 sm:$0xff]  ;;  %v10360_v6 = vld [vmem:[#allocation1 + $0x2] ss:$9 sm:$0xff] }
 0x575   : > { %v10358_v59 = vld [vmem:[#allocation1 + $0x1] ss:$9 sm:$0xff]  ;;  %v10365_v22 = vld [vmem:[#allocation1 + $0x3] ss:$9 sm:$0xff] }
 0x576   : > { %v10367_v38 = vld [vmem:[#allocation1 + $0x4] ss:$9 sm:$0xff]  ;;  %v10374_v45 = vld [vmem:[#allocation1 + $0x6] ss:$9 sm:$0xff] }
 0x577   : > { %v10369_v43 = vld [vmem:[#allocation1 + $0x5] ss:$9 sm:$0xff]  ;;  %v10376_v52 = vld [vmem:[#allocation1 + $0x7] ss:$9 sm:$0xff] }
 0x578   : > { %12056 = vst [vmem:[#allocation95_spill] sm:$0xff] %v10376_v52 }
 0x579   : > { %5350 = vst [vmem:[#allocation1] sm:$0xff] %v9658_v24  ;;  %v3342_v33 = vpop.permute.xlu0 %3341 }
 0x57a   : > { %3410 = vst.msk [vmem:[%s9258_s23 + $0xe0] sm:$0xff] %vm3381_vm11, %v3342_v33 }
 0x580   : > { %v10405_v10 = vld [vmem:[#allocation1] ss:$9 sm:$0xff] }
 0x581   : > { %v10407_v53 = vld [vmem:[#allocation1 + $0x1] ss:$9 sm:$0xff]  ;;  %v3346_v35 = vpop.permute.xlu0 %3345 }
 0x582   : > { %12059 = vst [vmem:[#allocation51_spill] sm:$0xff] %v10407_v53 }
 0x583   : > { %5369 = vst [vmem:[#allocation1] sm:$0xff] %v9662_v5 }
 0x584   : > { %3412 = vst.msk [vmem:[%s9258_s23 + $0xf0] sm:$0xff] %vm3381_vm11, %v3346_v35 }
 0x58a   : > { %v10422_v32 = vld [vmem:[#allocation1 + $0x2] ss:$9 sm:$0xff]  ;;  %v10426_v21 = vld [vmem:[#allocation1 + $0x4] ss:$9 sm:$0xff] }
 0x58b   : > { %v10424_v61 = vld [vmem:[#allocation1 + $0x3] ss:$9 sm:$0xff]  ;;  %12067 = vst [vmem:[#allocation127_spill] sm:$0xff] %v10426_v21  ;;  %v10429_v50 = vld [vmem:[#allocation1 + $0x5] ss:$9 sm:$0xff] }
 0x58c   : > { %12066 = vst [vmem:[#allocation63_spill] sm:$0xff] %v10424_v61  ;;  %v10431_v44 = vld [vmem:[#allocation1 + $0x6] ss:$9 sm:$0xff] }
 0x58d   : > { %12068 = vst [vmem:[#allocation139_spill] sm:$0xff] %v10429_v50  ;;  %v10433_v20 = vld [vmem:[#allocation1 + $0x7] ss:$9 sm:$0xff] }
 0x58e   : > { %12069 = vst [vmem:[#allocation34_spill] sm:$0xff] %v10431_v44 }
 0x58f   : > { %5382 = vst [vmem:[#allocation1] sm:$0xff] %v9670_v13 }
 0x596   : > { %v5383_v18 = vld [vmem:[#allocation1] ss:$9 sm:$0xff]  ;;  %v10446_v55 = vld [vmem:[#allocation1 + $0x2] ss:$9 sm:$0xff] }
 0x597   : > { %v10444_v63 = vld [vmem:[#allocation1 + $0x1] ss:$9 sm:$0xff]  ;;  %v10448_v37 = vld [vmem:[#allocation1 + $0x3] ss:$9 sm:$0xff]  ;;  %v5729_v8 = vperm.slane %v5383_v18, 0 }
 0x598   : > { %v10450_v36 = vld [vmem:[#allocation1 + $0x4] ss:$9 sm:$0xff]  ;;  %v10454_v4 = vld [vmem:[#allocation1 + $0x6] ss:$9 sm:$0xff] }
 0x599   : > { %v10452_v56 = vld [vmem:[#allocation1 + $0x5] ss:$9 sm:$0xff]  ;;  %v10456_v49 = vld [vmem:[#allocation1 + $0x7] ss:$9 sm:$0xff]  ;;  %v6001_v33 = vsel %vm956_vm4, %v10356_v3, %v5729_v8  ;;  %v3348_v3 = vpop.permute.xlu1 %3347 }
 0x59a   : > { %12071 = vst [vmem:[#allocation97_spill] sm:$0xff] %v10456_v49  ;;  %v3340_v49 = vpop.permute.xlu2 %3339 }
 0x59b   : > { %5392 = vst [vmem:[#allocation1] sm:$0xff] %v11898_v23 }
 0x59c   : > { %3409 = vst.msk [vmem:[%s9258_s23 + $0xd8] sm:$0xff] %vm3381_vm11, %v3340_v49 }
 0x59d   : > { %3413 = vst.msk [vmem:[%s9258_s23 + $0xf8] sm:$0xff] %vm3381_vm11, %v3348_v3 }
 0x5a2   : > { %v10467_v28 = vld [vmem:[#allocation1] ss:$9 sm:$0xff] }
 0x5a3   : > { %v10469_v0 = vld [vmem:[#allocation1 + $0x1] ss:$9 sm:$0xff] }
 0x5a4   : > { %12073 = vst [vmem:[#allocation68_spill] sm:$0xff] %v10469_v0 }
 0x5a5   : > { %5395 = vst [vmem:[#allocation1] sm:$0xff] %v11915_v7 }
 0x5ac   : > { %v10476_v39 = vld [vmem:[#allocation1 + $0x2] ss:$9 sm:$0xff]  ;;  %v10480_v42 = vld [vmem:[#allocation1 + $0x4] ss:$9 sm:$0xff] }
 0x5ad   : > { %v10478_v46 = vld [vmem:[#allocation1 + $0x3] ss:$9 sm:$0xff]  ;;  %12075 = vst [vmem:[#allocation96_spill] sm:$0xff] %v10480_v42  ;;  %v10482_v47 = vld [vmem:[#allocation1 + $0x5] ss:$9 sm:$0xff] }
 0x5ae   : > { %12074 = vst [vmem:[#allocation17_spill] sm:$0xff] %v10478_v46  ;;  %v10484_v17 = vld [vmem:[#allocation1 + $0x6] ss:$9 sm:$0xff] }
 0x5af   : > { %12076 = vst [vmem:[#allocation13_spill] sm:$0xff] %v10482_v47  ;;  %v10486_v31 = vld [vmem:[#allocation1 + $0x7] ss:$9 sm:$0xff] }
 0x5b0   : > { %12077 = vst [vmem:[#allocation98_spill] sm:$0xff] %v10484_v17 }
 0x5b1   : > { %5408 = vst [vmem:[#allocation1] sm:$0xff] %v11936_v14 }
 0x5b8   : > { %v5409_v53 = vld [vmem:[#allocation1] ss:$9 sm:$0xff]  ;;  %v10497_v0 = vld [vmem:[#allocation1 + $0x2] ss:$9 sm:$0xff] }
 0x5b9   : > { %v10495_v52 = vld [vmem:[#allocation1 + $0x1] ss:$9 sm:$0xff]  ;;  %v10499_v51 = vld [vmem:[#allocation1 + $0x3] ss:$9 sm:$0xff] }
 0x5ba   : > { %v10501_v60 = vld [vmem:[#allocation1 + $0x4] ss:$9 sm:$0xff]  ;;  %v10505_v18 = vld [vmem:[#allocation1 + $0x6] ss:$9 sm:$0xff] }
 0x5bb   : > { %v10503_v15 = vld [vmem:[#allocation1 + $0x5] ss:$9 sm:$0xff]  ;;  %v10507_v58 = vld [vmem:[#allocation1 + $0x7] ss:$9 sm:$0xff] }
 0x5bc   : > { %12078 = vst [vmem:[#allocation114_spill] sm:$0xff] %v10507_v58 }
 0x5bd   : > { %5418 = vst [vmem:[#allocation1] sm:$0xff] %v11963_v2  ;;  %v5761_v2 = vperm.slane %v5409_v53, 0  ;;  %v4472_v53 = vpop.trf.xlu2 }
 0x5be   : > { %4972 = vrot.lane.b32.xlu1 %v4472_v53, %s7107_s25 }
 0x5bf   : > { %v6017_v3 = vsel %vm973_vm5, %v6001_v33, %v5761_v2  ;;  %v4440_v2 = vpop.trf.xlu1 }
 0x5c0   : > { %4968 = vrot.lane.b32.xlu2 %v4440_v2, %s7107_s25 }
 0x5c4   : > { %v5419_v35 = vld [vmem:[#allocation1] ss:$9 sm:$0xff] }
 0x5c5   : > { %v10514_v8 = vld [vmem:[#allocation1 + $0x1] ss:$9 sm:$0xff]  ;;  %v4473_v12 = vpop.trf.xlu2 }
 0x5c6   : > { %12079 = vst [vmem:[#allocation119_spill] sm:$0xff] %v10514_v8 }
 0x5c7   : > { %5421 = vst [vmem:[#allocation1] sm:$0xff] %v11943_v19 }
 0x5cd   : > { %v4568_v2 = vpop.trf.xlu2 }
 0x5ce   : > { %v10517_v34 = vld [vmem:[#allocation1 + $0x2] ss:$9 sm:$0xff]  ;;  %v10521_v47 = vld [vmem:[#allocation1 + $0x4] ss:$9 sm:$0xff] }
 0x5cf   : > { %12080 = vst [vmem:[#allocation118_spill] sm:$0xff] %v10517_v34  ;;  %v10519_v14 = vld [vmem:[#allocation1 + $0x3] ss:$9 sm:$0xff]  ;;  %v10523_v50 = vld [vmem:[#allocation1 + $0x5] ss:$9 sm:$0xff] }
 0x5d0   : > { %12081 = vst [vmem:[#allocation31_spill] sm:$0xff] %v10519_v14  ;;  %v10525_v58 = vld [vmem:[#allocation1 + $0x6] ss:$9 sm:$0xff]  ;;  %v4504_v14 = vpop.trf.xlu0 }
 0x5d1   : > { %12082 = vst [vmem:[#allocation15_spill] sm:$0xff] %v10521_v47  ;;  %v10527_v49 = vld [vmem:[#allocation1 + $0x7] ss:$9 sm:$0xff]  ;;  %4976 = vrot.lane.b32.xlu2 %v4504_v14, %s7107_s25 }
 0x5d2   : > { %12083 = vst [vmem:[#allocation72_spill] sm:$0xff] %v10523_v50 }
 0x5d3   : > { %12084 = vst [vmem:[#allocation56_spill] sm:$0xff] %v10525_v58 }
 0x5d4   : > { %5434 = vst [vmem:[#allocation1] sm:$0xff] %v9765_v62 }
 0x5d9   : > { %4984 = vrot.lane.b32.xlu2 %v4568_v2, %s7107_s25 }
 0x5db   : > { %v5435_v8 = vld [vmem:[#allocation1] ss:$9 sm:$0xff]  ;;  %v10533_v9 = vld [vmem:[#allocation1 + $0x2] ss:$9 sm:$0xff] }
 0x5dc   : > { %v10531_v25 = vld [vmem:[#allocation1 + $0x1] ss:$9 sm:$0xff]  ;;  %v10535_v57 = vld [vmem:[#allocation1 + $0x3] ss:$9 sm:$0xff]  ;;  %v5793_v41 = vperm.slane %v5435_v8, 0  ;;  %v4505_v8 = vpop.trf.xlu0 }
 0x5dd   : > { %v10537_v42 = vld [vmem:[#allocation1 + $0x4] ss:$9 sm:$0xff]  ;;  %v10541_v50 = vld [vmem:[#allocation1 + $0x6] ss:$9 sm:$0xff] }
 0x5de   : > { %v10539_v47 = vld [vmem:[#allocation1 + $0x5] ss:$9 sm:$0xff]  ;;  %v10543_v21 = vld [vmem:[#allocation1 + $0x7] ss:$9 sm:$0xff]  ;;  %v6033_v46 = vsel %vm171_vm0, %v6017_v3, %v5793_v41  ;;  %v5737_v41 = vperm.slane %v10467_v28, 0 }
 0x5df   : > { %12085 = vst [vmem:[#allocation18_spill] sm:$0xff] %v10543_v21 }
 0x5e0   : > { %5444 = vst [vmem:[#allocation1] sm:$0xff] %v9890_v16 }
 0x5e1   : > { %4978 = vrot.lane.b32.xlu2 %v4505_v8, %s7107_s25 }
 0x5e4   : > { %v4536_v3 = vpop.trf.xlu0 }
 0x5e5   : > { %4980 = vrot.lane.b32.xlu1 %v4536_v3, %s7107_s25 }
 0x5e7   : > { %v10546_v62 = vld [vmem:[#allocation1] ss:$9 sm:$0xff] }
 0x5e8   : > { %v10548_v33 = vld [vmem:[#allocation1 + $0x1] ss:$9 sm:$0xff] }
 0x5e9   : > { %12086 = vst [vmem:[#allocation12_spill] sm:$0xff] %v10548_v33 }
 0x5ea   : > { %5447 = vst [vmem:[#allocation1] sm:$0xff] %v11942_v26 }
 0x5ed   : > { %4974 = vrot.lane.b32.xlu1 %v4473_v12, %s7107_s25 }
 0x5f1   : > { %v10553_v61 = vld [vmem:[#allocation1 + $0x3] ss:$9 sm:$0xff]  ;;  %v10557_v16 = vld [vmem:[#allocation1 + $0x5] ss:$9 sm:$0xff] }
 0x5f2   : > { %12087 = vst [vmem:[#allocation83_spill] sm:$0xff] %v10553_v61  ;;  %v10555_v21 = vld [vmem:[#allocation1 + $0x4] ss:$9 sm:$0xff]  ;;  %v10559_v48 = vld [vmem:[#allocation1 + $0x6] ss:$9 sm:$0xff] }
 0x5f3   : > { %12088 = vst [vmem:[#allocation26_spill] sm:$0xff] %v10555_v21  ;;  %v10561_v33 = vld [vmem:[#allocation1 + $0x7] ss:$9 sm:$0xff]  ;;  %v6009_v21 = vsel %vm956_vm4, %v10405_v10, %v5737_v41  ;;  %v4537_v41 = vpop.trf.xlu0 }
 0x5f4   : > { %12089 = vst [vmem:[#allocation73_spill] sm:$0xff] %v10557_v16  ;;  %v10569_v16 = vpop.trf.xlu2 }
 0x5f5   : > { %12090 = vst [vmem:[#allocation93_spill] sm:$0xff] %v10559_v48  ;;  %v5769_v48 = vperm.slane %v5419_v35, 0 }
 0x5f6   : > { %12091 = vst [vmem:[#allocation123_spill] sm:$0xff] %v10561_v33 }
 0x5f7   : > { %5458 = vst [vmem:[#allocation1] sm:$0xff] %v12003_v27  ;;  %v6025_v27 = vsel %vm973_vm5, %v6009_v21, %v5769_v48  ;;  %v4441_v21 = vpop.trf.xlu1 }
 0x5f8   : > { %4970 = vrot.lane.b32.xlu0 %v4441_v21, %s7107_s25  ;;  %v5730_v21 = vperm.slane %v10444_v63, 0 }
 0x5fa   : > { %v6002_v63 = vsel %vm956_vm4, %v10358_v59, %v5730_v21  ;;  %v5735_v59 = vperm.slane %v10454_v4, 0  ;;  %v5767_v4 = vperm.slane %v10505_v18, 0 }
 0x5fb   : > { %v4600_v54 = vpop.trf.xlu0 }
 0x5fc   : > { %v4664_v40 = vpop.trf.xlu2  ;;  %4988 = vrot.lane.b32.xlu2 %v4600_v54, %s7107_s25 }
 0x5fe   : > { %v10573_v53 = vld [vmem:[#allocation1] ss:$9 sm:$0xff]  ;;  %v10576_v33 = vld [vmem:[#allocation1 + $0x2] ss:$9 sm:$0xff] }
 0x5ff   : > { %v5461_v14 = vld [vmem:[#allocation1 + $0x1] ss:$9 sm:$0xff]  ;;  %v10578_v58 = vld [vmem:[#allocation1 + $0x3] ss:$9 sm:$0xff] }
 0x600   : > { %v10581_v28 = vld [vmem:[#allocation1 + $0x4] ss:$9 sm:$0xff]  ;;  %v10585_v3 = vld [vmem:[#allocation1 + $0x6] ss:$9 sm:$0xff]  ;;  %v5825_v10 = vperm.slane %v5461_v14, 0  ;;  %v4632_v14 = vpop.trf.xlu1  ;;  %4982 = vrot.lane.b32.xlu0 %v4537_v41, %s7107_s25 }
 0x601   : > { %v10583_v2 = vld [vmem:[#allocation1 + $0x5] ss:$9 sm:$0xff]  ;;  %v10587_v35 = vld [vmem:[#allocation1 + $0x7] ss:$9 sm:$0xff] }
 0x602   : > { %5469 = vst [vmem:[#allocation1] sm:$0xff] %v9658_v24  ;;  %v6049_v48 = vsel %vm1006_vm6, %v6033_v46, %v5825_v10 }
 0x604   : > { %v10600_v24 = vpop.trf.xlu2  ;;  %4992 = vrot.lane.b32.xlu2 %v4632_v14, %s7107_s25 }
 0x608   : > { %v10617_v54 = vpop.trf.xlu1  ;;  %4986 = vrot.lane.b32.xlu0 %v10569_v16, %s7107_s25 }
 0x609   : > { %v10592_v17 = vld [vmem:[#allocation1] ss:$9 sm:$0xff]  ;;  %v10596_v44 = vld [vmem:[#allocation1 + $0x2] ss:$9 sm:$0xff] }
 0x60a   : > { %12092 = vst [vmem:[#allocation54_spill] sm:$0xff] %v10592_v17  ;;  %v10594_v8 = vld [vmem:[#allocation1 + $0x1] ss:$9 sm:$0xff] }
 0x60b   : > { %12093 = vst [vmem:[#allocation90_spill] sm:$0xff] %v10596_v44  ;;  %v10614_v44 = vpop.trf.xlu0 }
 0x60c   : > { %5473 = vst [vmem:[#allocation1] sm:$0xff] %v9662_v5  ;;  %v4760_v34 = vpop.trf.xlu2  ;;  %4996 = vrot.lane.b32.xlu2 %v4664_v40, %s7107_s25 }
 0x613   : > { %v10602_v61 = vld [vmem:[#allocation1 + $0x3] ss:$9 sm:$0xff]  ;;  %v10608_v10 = vld [vmem:[#allocation1 + $0x5] ss:$9 sm:$0xff]  ;;  %v4696_v1 = vpop.trf.xlu0 }
 0x614   : > { %12094 = vst [vmem:[#allocation116_spill] sm:$0xff] %v10602_v61  ;;  %v10604_v12 = vld [vmem:[#allocation1 + $0x7] ss:$9 sm:$0xff]  ;;  %v10606_v46 = vld [vmem:[#allocation1 + $0x4] ss:$9 sm:$0xff]  ;;  %v5801_v61 = vperm.slane %v10546_v62, 0  ;;  %5000 = vrot.lane.b32.xlu1 %v4696_v1, %s7107_s25  ;;  %v4728_v1 = vpop.trf.xlu1  ;;  %5008 = vrot.lane.b32.xlu2 %v4760_v34, %s7107_s25 }
 0x615   : > { %12095 = vst [vmem:[#allocation108_spill] sm:$0xff] %v10604_v12  ;;  %v10610_v17 = vld [vmem:[#allocation1 + $0x6] ss:$9 sm:$0xff]  ;;  %v5762_v62 = vperm.slane %v10495_v52, 0  ;;  %v5792_v52 = vperm.slane %v10527_v49, 0  ;;  %v5765_v49 = vperm.slane %v10501_v60, 0  ;;  %5004 = vrot.lane.b32.xlu0 %v4728_v1, %s7107_s25 }
 0x616   : > { %12096 = vst [vmem:[#allocation19_spill] sm:$0xff] %v10606_v46  ;;  %v10621_v12 = vsel %vm171_vm0, %v6025_v27, %v5801_v61  ;;  %v5760_v27 = vperm.slane %v10486_v31, 0  ;;  %v5764_v61 = vperm.slane %v10499_v51, 0  ;;  %v5733_v31 = vperm.slane %v10450_v36, 0  ;;  %v10655_v36 = vpop.trf.xlu2 }
 0x617   : > { %12097 = vst [vmem:[#allocation80_spill] sm:$0xff] %v10608_v10  ;;  %v5728_v10 = vperm.slane %v10433_v20, 0  ;;  %v6018_v51 = vsel %vm973_vm5, %v6002_v63, %v5762_v62 }
 0x618   : > { %12098 = vst [vmem:[#allocation50_spill] sm:$0xff] %v10610_v17  ;;  %v6005_v16 = vsel %vm956_vm4, %v10367_v38, %v5733_v31 }
 0x619   : > { %5484 = vst [vmem:[#allocation1] sm:$0xff] %v9670_v13  ;;  %v5732_v13 = vperm.slane %v10448_v37, 0  ;;  %v6000_v40 = vsel %vm956_vm4, %v10327_v30, %v5728_v10  ;;  %v5794_v37 = vperm.slane %v10531_v25, 0  ;;  %v5828_v30 = vperm.slane %v10581_v28, 0 }
 0x61a   : > { %v6016_v41 = vsel %vm973_vm5, %v6000_v40, %v5760_v27 }
 0x61b   : > { %v6004_v20 = vsel %vm956_vm4, %v10365_v22, %v5732_v13  ;;  %v5731_v13 = vperm.slane %v10446_v55, 0  ;;  %v5826_v22 = vperm.slane %v10576_v33, 0  ;;  %v5763_v55 = vperm.slane %v10497_v0, 0  ;;  %v4697_v62 = vpop.trf.xlu0 }
 0x61c   : > { %v6020_v25 = vsel %vm973_vm5, %v6004_v20, %v5764_v61  ;;  %v6034_v28 = vsel %vm171_vm0, %v6018_v51, %v5794_v37  ;;  %v6032_v21 = vsel %vm171_vm0, %v6016_v41, %v5792_v52  ;;  %v5799_v0 = vperm.slane %v10541_v50, 0  ;;  %5002 = vrot.lane.b32.xlu2 %v4697_v62, %s7107_s25 }
 0x61d   : > { %v6050_v27 = vsel %vm1006_vm6, %v6034_v28, %v5826_v22  ;;  %v5795_v20 = vperm.slane %v10533_v9, 0  ;;  %v5829_v37 = vperm.slane %v10583_v2, 0  ;;  %v5831_v50 = vperm.slane %v10587_v35, 0  ;;  %4990 = vrot.lane.b32.xlu0 %v10614_v44, %s7107_s25 }
 0x61e   : > { %v5827_v52 = vperm.slane %v10578_v58, 0  ;;  %v6003_v9 = vsel %vm956_vm4, %v10360_v6, %v5731_v13  ;;  %v6021_v51 = vsel %vm973_vm5, %v6005_v16, %v5765_v49  ;;  %v4729_v58 = vpop.trf.xlu1  ;;  %v5833_v49 = vperm.slane %v10594_v8, 0 }
 0x61f   : > { %v6019_v22 = vsel %vm973_vm5, %v6003_v9, %v5763_v55  ;;  %v5830_v16 = vperm.slane %v10585_v3, 0  ;;  %v5563_v9 = vperm.slane %v11943_v19, 0 }
 0x620   : > { %v5487_v46 = vld [vmem:[#allocation1 + $0x1] ss:$9 sm:$0xff]  ;;  %v10712_v8 = vsel %vm1006_vm6, %v10621_v12, %v5833_v49 }
 0x621   : > { %v5857_v17 = vperm.slane %v5487_v46, 0  ;;  %v5489_v33 = vld [vmem:[#allocation1 + $0x2] ss:$9 sm:$0xff]  ;;  %v5491_v46 = vld [vmem:[#allocation1 + $0x4] ss:$9 sm:$0xff] }
 0x622   : > { %v5858_v60 = vperm.slane %v5489_v33, 0  ;;  %v5492_v31 = vld [vmem:[#allocation1 + $0x5] ss:$9 sm:$0xff]  ;;  %v4856_v33 = vpop.trf.xlu2 }
 0x623   : > { %v10629_v14 = vsel %vm1023_vm7, %v6049_v48, %v5857_v17  ;;  %v5796_v17 = vperm.slane %v10535_v57, 0  ;;  %v5824_v57 = vperm.slane %v10573_v53, 0  ;;  %v5797_v48 = vperm.slane %v10537_v42, 0  ;;  %v5485_v53 = vld [vmem:[#allocation1] ss:$9 sm:$0xff] }
 0x624   : > { %v5860_v42 = vperm.slane %v5491_v46, 0  ;;  %v5856_v18 = vperm.slane %v5485_v53, 0  ;;  %v10673_v40 = vsel %vm1023_vm7, %v6050_v27, %v5858_v60  ;;  %v5734_v46 = vperm.slane %v10452_v56, 0  ;;  %v4792_v53 = vpop.trf.xlu0  ;;  %v5493_v60 = vld [vmem:[#allocation1 + $0x6] ss:$9 sm:$0xff]  ;;  %5020 = vrot.lane.b32.xlu2 %v4856_v33, %s7107_s25 }
 0x625   : > { %v6036_v10 = vsel %vm171_vm0, %v6020_v25, %v5796_v17  ;;  %v6048_v63 = vsel %vm1006_vm6, %v6032_v21, %v5824_v57  ;;  %v6007_v17 = vsel %vm956_vm4, %v10374_v45, %v5735_v59  ;;  %v6037_v2 = vsel %vm171_vm0, %v6021_v51, %v5797_v48  ;;  %v5494_v25 = vld [vmem:[#allocation1 + $0x7] ss:$9 sm:$0xff]  ;;  %5012 = vrot.lane.b32.xlu1 %v4792_v53, %s7107_s25 }
 0x626   : > { %v6052_v61 = vsel %vm1006_vm6, %v6036_v10, %v5828_v30  ;;  %v10679_v34 = vsel %vm1023_vm7, %v6048_v63, %v5856_v18  ;;  %v6023_v41 = vsel %vm973_vm5, %v6007_v17, %v5767_v4  ;;  %v5861_v30 = vperm.slane %v5492_v31, 0  ;;  %v5490_v57 = vld [vmem:[#allocation1 + $0x3] ss:$9 sm:$0xff]  ;;  %v4824_v12 = vpop.trf.xlu1  ;;  %4998 = vrot.lane.b32.xlu0 %v10600_v24, %s7107_s25 }
 0x627   : > { %v10676_v38 = vsel %vm1023_vm7, %v6052_v61, %v5860_v42  ;;  %v6039_v35 = vsel %vm171_vm0, %v6023_v41, %v5799_v0  ;;  %v6035_v45 = vsel %vm171_vm0, %v6019_v22, %v5795_v20  ;;  %v6053_v6 = vsel %vm1006_vm6, %v6037_v2, %v5829_v37  ;;  %5495 = vst [vmem:[#allocation1] sm:$0xff] %v11898_v23  ;;  %v12099_v31 = vld [vmem:[#allocation130_spill] sm:$0xff] }
 0x628   : > { %v5863_v59 = vperm.slane %v5494_v25, 0  ;;  %v5859_v13 = vperm.slane %v5490_v57, 0  ;;  %v10698_v4 = vsel %vm1023_vm7, %v6053_v6, %v5861_v30  ;;  %v6055_v48 = vsel %vm1006_vm6, %v6039_v35, %v5831_v50  ;;  %v12100_v57 = vld [vmem:[#allocation25_spill] sm:$0xff]  ;;  %v12101_v6 = vld [vmem:[#allocation118_spill] sm:$0xff] }
 0x629   : > { %v6051_v55 = vsel %vm1006_vm6, %v6035_v45, %v5827_v52  ;;  %v5766_v10 = vperm.slane %v10503_v15, 0  ;;  %v5798_v21 = vperm.slane %v10539_v47, 0  ;;  %v6006_v62 = vsel %vm956_vm4, %v10369_v43, %v5734_v46 }
 0x62a   : > { %v10704_v28 = vsel %vm1023_vm7, %v6055_v48, %v5863_v59  ;;  %v10707_v1 = vsel %vm1023_vm7, %v6051_v55, %v5859_v13  ;;  %v5862_v15 = vperm.slane %v5493_v60, 0  ;;  %v4857_v18 = vpop.trf.xlu2  ;;  %v5499_v37 = vperm.slane %v9662_v5, 0 }
 0x62b   : > { %v6022_v42 = vsel %vm973_vm5, %v6006_v62, %v5766_v10  ;;  %v5531_v50 = vperm.slane %v11915_v7, 0  ;;  %v5595_v51 = vperm.slane %v12099_v31, 0  ;;  %v5627_v22 = vperm.slane %v9793_v11, 0  ;;  %v12102_v11 = vld [vmem:[#allocation83_spill] sm:$0xff]  ;;  %v12104_v10 = vld [vmem:[#allocation117_spill] sm:$0xff] }
 0x62c   : > { %v6038_v56 = vsel %vm171_vm0, %v6022_v42, %v5798_v21  ;;  %v4793_v43 = vpop.trf.xlu0  ;;  %v5883_v17 = vsel %vm956_vm4, %v11942_v26, %v5499_v37  ;;  %v5723_v30 = vperm.slane %v10422_v32, 0  ;;  %v5179_v2 = vrot.slane %v9662_v5, 4 }
 0x62d   : > { %v6054_v47 = vsel %vm1006_vm6, %v6038_v56, %v5830_v16  ;;  %5016 = vrot.lane.b32.xlu1 %v4824_v12, %s7107_s25  ;;  %v5899_v41 = vsel %vm973_vm5, %v5883_v17, %v5531_v50  ;;  %v5659_v25 = vperm.slane %v9975_v29, 0  ;;  %v5755_v35 = vperm.slane %v10476_v39, 0  ;;  %v12103_v39 = vld [vmem:[#allocation116_spill] sm:$0xff] }
 0x62e   : > { %v10728_v3 = vsel %vm1023_vm7, %v6054_v47, %v5862_v15  ;;  %v4825_v23 = vpop.trf.xlu1  ;;  %5010 = vrot.lane.b32.xlu0 %v10655_v36, %s7107_s25  ;;  %v5691_v45 = vperm.slane %v12100_v57, 0  ;;  %v5787_v59 = vperm.slane %v12101_v6, 0  ;;  %v5176_v13 = vrot.slane %v9662_v5, 1  ;;  %v12105_v57 = vld [vmem:[#allocation134_spill] sm:$0xff] }
 0x62f   : > { %v5819_v55 = vperm.slane %v12102_v11, 0  ;;  %v5149_v32 = vrot.slane %v11942_v26, 4  ;;  %v5193_v33 = vrot.slane %v11915_v7, 4  ;;  %v5851_v46 = vperm.slane %v12103_v39, 0  ;;  %v12109_v39 = vld [vmem:[#allocation98_spill] sm:$0xff] }
 0x630   : > { %v5995_v53 = vsel %vm956_vm4, %v12104_v10, %v5723_v30  ;;  %v5503_v21 = vperm.slane %v5179_v2, 0  ;;  %v5146_v60 = vrot.slane %v11942_v26, 1  ;;  %v5190_v42 = vrot.slane %v11915_v7, 1 }
 0x631   : > { %v6011_v62 = vsel %vm973_vm5, %v5995_v53, %v5755_v35  ;;  %v5500_v12 = vperm.slane %v5176_v13, 0  ;;  %v5195_v35 = vrot.slane %v11915_v7, 6  ;;  %v5211_v6 = vrot.slane %v11943_v19, 6  ;;  %v12110_v53 = vld [vmem:[#allocation14_spill] sm:$0xff] }
 0x632   : > { %v4969_v0 = vpop.permute.xlu2 %4968  ;;  %v6027_v47 = vsel %vm171_vm0, %v6011_v62, %v5787_v59  ;;  %v12106_v59 = vld [vmem:[#allocation152_spill] sm:$0xff] }
 0x633   : > { %5065 = vst.msk [vmem:[%s9258_s23] sm:$0xff] %vm5064_vm12, %v4969_v0  ;;  %v5535_v0 = vperm.slane %v5193_v33, 0  ;;  %v5631_v13 = vperm.slane %v12106_v59, 0  ;;  %v12122_v59 = vld [vmem:[#allocation26_spill] sm:$0xff] }
 0x634   : > { %v4888_v44 = vpop.trf.xlu0 }
 0x635   : > { %4994 = vrot.lane.b32.xlu1 %v10617_v54, %s7107_s25 }
 0x636   : > { %5014 = vrot.lane.b32.xlu0 %v4793_v43, %s7107_s25  ;;  %v4920_v24 = vpop.trf.xlu1  ;;  %v5177_v43 = vrot.slane %v9662_v5, 2 }
 0x63a   : > { %v4977_v61 = vpop.permute.xlu2 %4976 }
 0x63b   : > { %5069 = vst.msk [vmem:[%s9258_s23 + $0x20] sm:$0xff] %vm5064_vm12, %v4977_v61  ;;  %v5206_v61 = vrot.slane %v11943_v19, 1 }
 0x63c   : > { %v4889_v27 = vpop.trf.xlu0 }
 0x63d   : > { %5006 = vrot.lane.b32.xlu1 %v4729_v58, %s7107_s25  ;;  %5026 = vrot.lane.b32.xlu2 %v4889_v27, %s7107_s25  ;;  %v5915_v58 = vsel %vm171_vm0, %v5899_v41, %v5563_v9  ;;  %v5887_v27 = vsel %vm956_vm4, %v5149_v32, %v5503_v21  ;;  %v5207_v9 = vrot.slane %v11943_v19, 2  ;;  %v5564_v31 = vperm.slane %v5206_v61, 0  ;;  %v12108_v32 = vld [vmem:[#allocation53_spill] sm:$0xff]  ;;  %v12115_v61 = vld [vmem:[#allocation70_spill] sm:$0xff] }
 0x63e   : > { %5018 = vrot.lane.b32.xlu0 %v4825_v23, %s7107_s25  ;;  %v4921_v36 = vpop.trf.xlu1  ;;  %v5931_v49 = vsel %vm1006_vm6, %v5915_v58, %v5595_v51  ;;  %v5209_v23 = vrot.slane %v11943_v19, 4  ;;  %v5663_v33 = vperm.slane %v12108_v32, 0  ;;  %v5695_v21 = vperm.slane %v12110_v53, 0  ;;  %v12123_v32 = vld [vmem:[#allocation19_spill] sm:$0xff] }
 0x63f   : > { %v5947_v29 = vsel %vm1023_vm7, %v5931_v49, %v5627_v22  ;;  %v12107_v49 = vld [vmem:[#allocation34_spill] sm:$0xff]  ;;  %v5565_v11 = vperm.slane %v5207_v9, 0  ;;  %v5148_v53 = vrot.slane %v11942_v26, 3 }
 0x640   : > { %v5963_v16 = vsel %vm1040_vm8, %v5947_v29, %v5659_v25  ;;  %v5567_v50 = vperm.slane %v5209_v23, 0  ;;  %v5181_v25 = vrot.slane %v9662_v5, 6  ;;  %v12113_v23 = vld [vmem:[#allocation131_spill] sm:$0xff]  ;;  %v12118_v9 = vld [vmem:[#allocation138_spill] sm:$0xff] }
 0x641   : > { %v5979_v15 = vsel %vm1057_vm9, %v5963_v16, %v5691_v45  ;;  %v5599_v45 = vperm.slane %v12105_v57, 0  ;;  %v12111_v16 = vld [vmem:[#allocation56_spill] sm:$0xff] }
 0x642   : > { %v4985_v54 = vpop.permute.xlu2 %4984  ;;  %v5791_v62 = vperm.slane %v12111_v16, 0  ;;  %v5208_v16 = vrot.slane %v11943_v19, 3 }
 0x643   : > { %5073 = vst.msk [vmem:[%s9258_s23 + $0x40] sm:$0xff] %vm5064_vm12, %v4985_v54  ;;  %v5191_v54 = vrot.slane %v11915_v7, 2 }
 0x645   : > { %5024 = vrot.lane.b32.xlu1 %v4888_v44, %s7107_s25  ;;  %v5533_v41 = vperm.slane %v5191_v54, 0 }
 0x646   : > { %5028 = vrot.lane.b32.xlu0 %v4920_v24, %s7107_s25  ;;  %v4973_v20 = vpop.permute.xlu1 %4972  ;;  %v5532_v24 = vperm.slane %v5190_v42, 0  ;;  %v5537_v42 = vperm.slane %v5195_v35, 0  ;;  %v12121_v35 = vld [vmem:[#allocation31_spill] sm:$0xff] }
 0x647   : > { %5067 = vst.msk [vmem:[%s9258_s23 + $0x10] sm:$0xff] %vm5064_vm12, %v4973_v20  ;;  %v5501_v20 = vperm.slane %v5177_v43, 0  ;;  %v5178_v43 = vrot.slane %v9662_v5, 3  ;;  %v5788_v57 = vperm.slane %v12121_v35, 0 }
 0x64a   : > { %v4979_v63 = vpop.permute.xlu2 %4978 }
 0x64b   : > { %5070 = vst.msk [vmem:[%s9258_s23 + $0x28] sm:$0xff] %vm5064_vm12, %v4979_v63  ;;  %v5147_v63 = vrot.slane %v11942_v26, 2 }
 0x64d   : > { %5030 = vrot.lane.b32.xlu1 %v4921_v36, %s7107_s25  ;;  %v5884_v36 = vsel %vm956_vm4, %v5146_v60, %v5500_v12  ;;  %v5885_v2 = vsel %vm956_vm4, %v5147_v63, %v5501_v20  ;;  %v5505_v60 = vperm.slane %v5181_v25, 0  ;;  %v5569_v12 = vperm.slane %v5211_v6, 0 }
 0x64e   : > { %5022 = vrot.lane.b32.xlu0 %v4857_v18, %s7107_s25  ;;  %v6043_v18 = vsel %vm1006_vm6, %v6027_v47, %v5819_v55  ;;  %v5900_v51 = vsel %vm973_vm5, %v5884_v36, %v5532_v24  ;;  %v5151_v55 = vrot.slane %v11942_v26, 6  ;;  %v5901_v10 = vsel %vm973_vm5, %v5885_v2, %v5533_v41  ;;  %v12116_v36 = vld [vmem:[#allocation149_spill] sm:$0xff] }
 0x64f   : > { %v6059_v44 = vsel %vm1023_vm7, %v6043_v18, %v5851_v46  ;;  %v5916_v29 = vsel %vm171_vm0, %v5900_v51, %v5564_v31  ;;  %v5759_v46 = vperm.slane %v12109_v39, 0  ;;  %v5628_v63 = vperm.slane %v12116_v36, 0  ;;  %v12119_v41 = vld [vmem:[#allocation17_spill] sm:$0xff]  ;;  %v12124_v39 = vld [vmem:[#allocation120_spill] sm:$0xff]  ;;  %v12127_v36 = vld [vmem:[#allocation127_spill] sm:$0xff] }
 0x650   : > { %v6075_v37 = vsel %vm1040_vm8, %v6059_v44, 0.0  ;;  %v5596_v44 = vperm.slane %v12113_v23, 0  ;;  %v5660_v31 = vperm.slane %v12118_v9, 0  ;;  %v12125_v23 = vld [vmem:[#allocation132_spill] sm:$0xff] }
 0x651   : > { %v6091_v22 = vsel %vm1057_vm9, %v6075_v37, 0.0  ;;  %v12117_v37 = vld [vmem:[#allocation63_spill] sm:$0xff] }
 0x656   : > { %v4989_v52 = vpop.permute.xlu2 %4988 }
 0x657   : > { %5075 = vst.msk [vmem:[%s9258_s23 + $0x50] sm:$0xff] %vm5064_vm12, %v4989_v52  ;;  %v4981_v48 = vpop.permute.xlu1 %4980  ;;  %v5903_v52 = vsel %vm973_vm5, %v5887_v27, %v5535_v0  ;;  %v12114_v0 = vld [vmem:[#allocation108_spill] sm:$0xff] }
 0x658   : > { %5071 = vst.msk [vmem:[%s9258_s23 + $0x30] sm:$0xff] %vm5064_vm12, %v4981_v48  ;;  %v5919_v58 = vsel %vm171_vm0, %v5903_v52, %v5567_v50  ;;  %v5727_v48 = vperm.slane %v12107_v49, 0  ;;  %v5855_v27 = vperm.slane %v12114_v0, 0  ;;  %v5724_v50 = vperm.slane %v12117_v37, 0  ;;  %v12128_v37 = vld [vmem:[#allocation60_spill] sm:$0xff] }
 0x659   : > { %v5192_v49 = vrot.slane %v11915_v7, 3  ;;  %v5917_v0 = vsel %vm171_vm0, %v5901_v10, %v5565_v11  ;;  %v12130_v11 = vld [vmem:[#allocation43_spill] sm:$0xff] }
 0x65a   : > { %v5999_v24 = vsel %vm956_vm4, %v12115_v61, %v5727_v48  ;;  %v12126_v61 = vld [vmem:[#allocation150_spill] sm:$0xff]  ;;  %v5693_v10 = vperm.slane %v12130_v11, 0  ;;  %v12146_v11 = vld [vmem:[#allocation35_spill] sm:$0xff] }
 0x65b   : > { %v6015_v20 = vsel %vm973_vm5, %v5999_v24, %v5759_v46  ;;  %v5996_v46 = vsel %vm956_vm4, %v12124_v39, %v5724_v50  ;;  %v5629_v24 = vperm.slane %v12126_v61, 0  ;;  %v5661_v50 = vperm.slane %v12128_v37, 0  ;;  %v12138_v39 = vld [vmem:[#allocation42_spill] sm:$0xff] }
 0x65c   : > { %v6031_v51 = vsel %vm171_vm0, %v6015_v20, %v5791_v62 }
 0x65e   : > { %v4993_v56 = vpop.permute.xlu2 %4992 }
 0x65f   : > { %5077 = vst.msk [vmem:[%s9258_s23 + $0x60] sm:$0xff] %vm5064_vm12, %v4993_v56  ;;  %v4975_v17 = vpop.permute.xlu1 %4974  ;;  %v12112_v56 = vld [vmem:[#allocation123_spill] sm:$0xff] }
 0x660   : > { %5068 = vst.msk [vmem:[%s9258_s23 + $0x18] sm:$0xff] %vm5064_vm12, %v4975_v17  ;;  %v5823_v47 = vperm.slane %v12112_v56, 0  ;;  %v5502_v56 = vperm.slane %v5178_v43, 0  ;;  %v5725_v43 = vperm.slane %v12127_v36, 0 }
 0x662   : > { %v6047_v25 = vsel %vm1006_vm6, %v6031_v51, %v5823_v47 }
 0x663   : > { %6107 = vxpose.xlu2.b32.start [1/2] (short) (narrow) %v5979_v15, 16  ;;  %v5935_v15 = vsel %vm1006_vm6, %v5919_v58, %v5599_v45  ;;  %v5889_v45 = vsel %vm956_vm4, %v5151_v55, %v5505_v60  ;;  %v5932_v58 = vsel %vm1006_vm6, %v5916_v29, %v5596_v44  ;;  %v6063_v6 = vsel %vm1023_vm7, %v6047_v25, %v5855_v27  ;;  %v12133_v25 = vld [vmem:[#allocation154_spill] sm:$0xff] }
 0x664   : > { %v5951_v18 = vsel %vm1023_vm7, %v5935_v15, %v5631_v13  ;;  %v5820_v13 = vperm.slane %v12122_v59, 0  ;;  %v5948_v48 = vsel %vm1023_vm7, %v5932_v58, %v5628_v63  ;;  %v6079_v60 = vsel %vm1040_vm8, %v6063_v6, 0.0  ;;  %v12135_v6 = vld [vmem:[#allocation58_spill] sm:$0xff] }
 0x665   : > { %v5967_v54 = vsel %vm1040_vm8, %v5951_v18, %v5663_v33  ;;  %v5852_v33 = vperm.slane %v12123_v32, 0  ;;  %v5964_v55 = vsel %vm1040_vm8, %v5948_v48, %v5660_v31  ;;  %v5597_v44 = vperm.slane %v12125_v23, 0  ;;  %v12131_v31 = vld [vmem:[#allocation137_spill] sm:$0xff]  ;;  %v12137_v48 = vld [vmem:[#allocation104_spill] sm:$0xff] }
 0x666   : > { %v4997_v30 = vpop.permute.xlu2 %4996  ;;  %v5983_v17 = vsel %vm1057_vm9, %v5967_v54, %v5695_v21  ;;  %v5905_v21 = vsel %vm973_vm5, %v5889_v45, %v5537_v42  ;;  %v5534_v27 = vperm.slane %v5192_v49, 0  ;;  %v6095_v63 = vsel %vm1057_vm9, %v6079_v60, 0.0  ;;  %v12140_v23 = vld [vmem:[#allocation140_spill] sm:$0xff] }
 0x667   : > { %5079 = vst.msk [vmem:[%s9258_s23 + $0x70] sm:$0xff] %vm5064_vm12, %v4997_v30  ;;  %v12120_v30 = vld [vmem:[#allocation8_spill] sm:$0xff]  ;;  %v5921_v54 = vsel %vm171_vm0, %v5905_v21, %v5569_v12  ;;  %v5601_v51 = vperm.slane %v12131_v31, 0  ;;  %v12132_v12 = vld [vmem:[#allocation15_spill] sm:$0xff]  ;;  %v5633_v35 = vperm.slane %v12133_v25, 0  ;;  %v5665_v59 = vperm.slane %v12135_v6, 0 }
 0x668   : > { %v5692_v2 = vperm.slane %v12120_v30, 0  ;;  %v5997_v32 = vsel %vm956_vm4, %v12137_v48, %v5725_v43  ;;  %v12143_v43 = vld [vmem:[#allocation101_spill] sm:$0xff] }
 0x669   : > { %v12149_v25 = vld [vmem:[#allocation93_spill] sm:$0xff] }
 0x66a   : > { %v5980_v62 = vsel %vm1057_vm9, %v5964_v55, %v5692_v2  ;;  %v4971_v47 = vpop.permute.xlu0 %4970  ;;  %v5933_v2 = vsel %vm1006_vm6, %v5917_v0, %v5597_v44  ;;  %v5183_v44 = vrot.slane %v12140_v23, 1 }
 0x66b   : > { %6108 = vxpose.xlu2.b32.end [2/2] (short) (narrow) %v6091_v22, 16  ;;  %v5756_v22 = vperm.slane %v12119_v41, 0  ;;  %5066 = vst.msk [vmem:[%s9258_s23 + $0x8] sm:$0xff] %vm5064_vm12, %v4971_v47  ;;  %v5886_v41 = vsel %vm956_vm4, %v5148_v53, %v5502_v56  ;;  %v5949_v58 = vsel %vm1023_vm7, %v5933_v2, %v5629_v24  ;;  %v12139_v56 = vld [vmem:[#allocation133_spill] sm:$0xff]  ;;  %v12142_v24 = vld [vmem:[#allocation139_spill] sm:$0xff] }
 0x66c   : > { %v5902_v53 = vsel %vm973_vm5, %v5886_v41, %v5534_v27  ;;  %v5598_v47 = vperm.slane %v12139_v56, 0  ;;  %v12141_v27 = vld [vmem:[#allocation151_spill] sm:$0xff] }
 0x66d   : > { %v6012_v29 = vsel %vm973_vm5, %v5996_v46, %v5756_v22  ;;  %v5789_v22 = vperm.slane %v12132_v12, 0  ;;  %v5697_v46 = vperm.slane %v12138_v39, 0  ;;  %v12148_v12 = vld [vmem:[#allocation136_spill] sm:$0xff] }
 0x66e   : > { %v5009_v52 = vpop.permute.xlu2 %5008  ;;  %v6028_v15 = vsel %vm171_vm0, %v6012_v29, %v5788_v57  ;;  %v12134_v57 = vld [vmem:[#allocation73_spill] sm:$0xff] }
 0x66f   : > { %5085 = vst.msk [vmem:[%s9258_s23 + $0xa0] sm:$0xff] %vm5064_vm12, %v5009_v52  ;;  %v6044_v18 = vsel %vm1006_vm6, %v6028_v15, %v5820_v13  ;;  %v12129_v52 = vld [vmem:[#allocation96_spill] sm:$0xff]  ;;  %v5821_v45 = vperm.slane %v12134_v57, 0  ;;  %v5508_v57 = vperm.slane %v5183_v44, 0  ;;  %v12153_v44 = vld [vmem:[#allocation142_spill] sm:$0xff] }
 0x670   : > { %6139 = vxpose.xlu0.b32.start [1/2] (short) (narrow) %v5980_v62, 16  ;;  %v6060_v42 = vsel %vm1023_vm7, %v6044_v18, %v5852_v33  ;;  %v5757_v9 = vperm.slane %v12129_v52, 0  ;;  %v12136_v13 = vld [vmem:[#allocation80_spill] sm:$0xff]  ;;  %v5965_v33 = vsel %vm1040_vm8, %v5949_v58, %v5661_v50  ;;  %v12150_v58 = vld [vmem:[#allocation50_spill] sm:$0xff] }
 0x671   : > { %v6076_v30 = vsel %vm1040_vm8, %v6060_v42, 0.0  ;;  %v5853_v49 = vperm.slane %v12136_v13, 0  ;;  %v5981_v21 = vsel %vm1057_vm9, %v5965_v33, %v5693_v10  ;;  %v5630_v42 = vperm.slane %v12141_v27, 0  ;;  %v12145_v50 = vld [vmem:[#allocation16_spill] sm:$0xff] }
 0x672   : > { %v6013_v55 = vsel %vm973_vm5, %v5997_v32, %v5757_v9  ;;  %v6092_v29 = vsel %vm1057_vm9, %v6076_v30, 0.0  ;;  %v4983_v60 = vpop.permute.xlu0 %4982  ;;  %v5197_v52 = vrot.slane %v12145_v50, 1  ;;  %v5694_v10 = vperm.slane %v12146_v11, 0  ;;  %v12152_v32 = vld [vmem:[#allocation148_spill] sm:$0xff] }
 0x673   : > { %6235 = vxpose.xlu2.b32.start [1/2] (short) (narrow) %v5983_v17, 16  ;;  %v5566_v17 = vperm.slane %v5208_v16, 0  ;;  %v5937_v16 = vsel %vm1006_vm6, %v5921_v54, %v5601_v51  ;;  %v6029_v62 = vsel %vm171_vm0, %v6013_v55, %v5789_v22  ;;  %5072 = vst.msk [vmem:[%s9258_s23 + $0x38] sm:$0xff] %vm5064_vm12, %v4983_v60  ;;  %v5726_v54 = vperm.slane %v12142_v24, 0  ;;  %v12147_v51 = vld [vmem:[#allocation72_spill] sm:$0xff]  ;;  %v12154_v24 = vld [vmem:[#allocation155_spill] sm:$0xff] }
 0x674   : > { %v5953_v15 = vsel %vm1023_vm7, %v5937_v16, %v5633_v35  ;;  %v6045_v18 = vsel %vm1006_vm6, %v6029_v62, %v5821_v45  ;;  %v5790_v41 = vperm.slane %v12147_v51, 0  ;;  %v5153_v22 = vrot.slane %v12148_v12, 1 }
 0x675   : > { %v5969_v0 = vsel %vm1040_vm8, %v5953_v15, %v5665_v59  ;;  %v6061_v61 = vsel %vm1023_vm7, %v6045_v18, %v5853_v49  ;;  %v5918_v31 = vsel %vm171_vm0, %v5902_v53, %v5566_v17  ;;  %v5822_v35 = vperm.slane %v12149_v25, 0  ;;  %v12151_v59 = vld [vmem:[#allocation40_spill] sm:$0xff] }
 0x676   : > { %v5003_v20 = vpop.permute.xlu2 %5002  ;;  %v5985_v36 = vsel %vm1057_vm9, %v5969_v0, %v5697_v46  ;;  %v5934_v30 = vsel %vm1006_vm6, %v5918_v31, %v5598_v47  ;;  %v6077_v2 = vsel %vm1040_vm8, %v6061_v61, 0.0  ;;  %v5854_v6 = vperm.slane %v12150_v58, 0  ;;  %v12159_v58 = vld [vmem:[#allocation153_spill] sm:$0xff] }
 0x677   : > { %5082 = vst.msk [vmem:[%s9258_s23 + $0x88] sm:$0xff] %vm5064_vm12, %v5003_v20  ;;  %v12144_v20 = vld [vmem:[#allocation13_spill] sm:$0xff]  ;;  %v5950_v45 = vsel %vm1023_vm7, %v5934_v30, %v5630_v42  ;;  %v5998_v17 = vsel %vm956_vm4, %v12151_v59, %v5726_v54  ;;  %v5180_v13 = vrot.slane %v9662_v5, 5  ;;  %v5213_v33 = vrot.slane %v12152_v32, 1 }
 0x678   : > { %6140 = vxpose.xlu0.b32.end [2/2] (short) (narrow) %v6092_v29, 16  ;;  %v5758_v37 = vperm.slane %v12144_v20, 0  ;;  %v5540_v39 = vperm.slane %v5197_v52, 0  ;;  %v6093_v53 = vsel %vm1057_vm9, %v6077_v2, 0.0  ;;  %v6081_v55 = vsel %vm1040_vm8, %v10629_v14, 0.0  ;;  %v12156_v20 = vld [vmem:[#allocation75_spill] sm:$0xff] }
 0x679   : > { %v5892_v16 = vsel %vm956_vm4, %v5153_v22, %v5508_v57  ;;  %v5194_v62 = vrot.slane %v11915_v7, 5  ;;  %v5150_v15 = vrot.slane %v11942_v26, 5  ;;  %v5504_v56 = vperm.slane %v5180_v13, 0  ;;  %v12157_v22 = vld [vmem:[#allocation103_spill] sm:$0xff]  ;;  %v12160_v13 = vld [vmem:[#allocation30_spill] sm:$0xff] }
 0x67a   : > { %v6014_v48 = vsel %vm973_vm5, %v5998_v17, %v5758_v37  ;;  %v6097_v14 = vsel %vm1057_vm9, %v6081_v55, 0.0  ;;  %v5572_v18 = vperm.slane %v5213_v33, 0  ;;  %v5604_v0 = vperm.slane %v12153_v44, 0  ;;  %v12158_v2 = vld [vmem:[#allocation135_spill] sm:$0xff]  ;;  %v12161_v33 = vld [vmem:[#allocation10_spill] sm:$0xff] }
 0x67b   : > { %6236 = vxpose.xlu2.b32.end [2/2] (short) (narrow) %v6095_v63, 16  ;;  %v5662_v63 = vperm.slane %v12143_v43, 0  ;;  %v6030_v29 = vsel %vm171_vm0, %v6014_v48, %v5790_v41  ;;  %v5908_v27 = vsel %vm973_vm5, %v5892_v16, %v5540_v39  ;;  %v5210_v7 = vrot.slane %v11943_v19, 5 }
 0x67c   : > { %v6046_v5 = vsel %vm1006_vm6, %v6030_v29, %v5822_v35  ;;  %v5184_v42 = vrot.slane %v12140_v23, 2  ;;  %v5636_v26 = vperm.slane %v12154_v24, 0  ;;  %v5536_v54 = vperm.slane %v5194_v62, 0  ;;  %v12163_v24 = vld [vmem:[#allocation156_spill] sm:$0xff] }
 0x67d   : > { %v5966_v49 = vsel %vm1040_vm8, %v5950_v45, %v5662_v63  ;;  %v6062_v60 = vsel %vm1023_vm7, %v6046_v5, %v5854_v6  ;;  %v5888_v63 = vsel %vm956_vm4, %v5150_v15, %v5504_v56  ;;  %v5700_v37 = vperm.slane %v12156_v20, 0 }
 0x67e   : > { %v5982_v46 = vsel %vm1057_vm9, %v5966_v49, %v5694_v10  ;;  %v5021_v47 = vpop.permute.xlu2 %5020  ;;  %v6078_v61 = vsel %vm1040_vm8, %v6062_v60, 0.0  ;;  %v5924_v52 = vsel %vm171_vm0, %v5908_v27, %v5572_v18  ;;  %v5198_v19 = vrot.slane %v12145_v50, 2 }
 0x67f   : > { %5091 = vst.msk [vmem:[%s9258_s23 + $0xd0] sm:$0xff] %vm5064_vm12, %v5021_v47  ;;  %v6094_v11 = vsel %vm1057_vm9, %v6078_v61, 0.0  ;;  %v5940_v10 = vsel %vm1006_vm6, %v5924_v52, %v5604_v0  ;;  %v5568_v31 = vperm.slane %v5210_v7, 0  ;;  %v5509_v51 = vperm.slane %v5184_v42, 0  ;;  %v12162_v7 = vld [vmem:[#allocation143_spill] sm:$0xff] }
 0x680   : > { %6203 = vxpose.xlu0.b32.start [1/2] (short) (narrow) %v5982_v46, 16  ;;  %v5956_v30 = vsel %vm1023_vm7, %v5940_v10, %v5636_v26  ;;  %v5600_v25 = vperm.slane %v12158_v2, 0  ;;  %v5904_v35 = vsel %vm973_vm5, %v5888_v63, %v5536_v54  ;;  %v5186_v57 = vrot.slane %v12140_v23, 4  ;;  %v12164_v63 = vld [vmem:[#allocation94_spill] sm:$0xff] }
 0x681   : > { %v5632_v6 = vperm.slane %v12159_v58, 0  ;;  %v5214_v59 = vrot.slane %v12152_v32, 2  ;;  %v5664_v49 = vperm.slane %v12160_v13, 0  ;;  %v5541_v48 = vperm.slane %v5198_v19, 0 }
 0x682   : > { %6171 = vxpose.xlu1.b32.start [1/2] (short) (narrow) %v5981_v21, 16  ;;  %v4987_v21 = vpop.permute.xlu0 %4986  ;;  %v5696_v39 = vperm.slane %v12161_v33, 0  ;;  %v5920_v46 = vsel %vm171_vm0, %v5904_v35, %v5568_v31  ;;  %v5200_v55 = vrot.slane %v12145_v50, 4  ;;  %v5156_v5 = vrot.slane %v12148_v12, 4 }
 0x683   : > { %6299 = vxpose.xlu2.b32.start [1/2] (short) (narrow) %v5985_v36, 16  ;;  %5074 = vst.msk [vmem:[%s9258_s23 + $0x48] sm:$0xff] %vm5064_vm12, %v4987_v21  ;;  %v12155_v36 = vld [vmem:[#allocation57_spill] sm:$0xff]  ;;  %v5936_v29 = vsel %vm1006_vm6, %v5920_v46, %v5600_v25  ;;  %v6082_v21 = vsel %vm1040_vm8, %v10673_v40, 0.0  ;;  %v5511_v16 = vperm.slane %v5186_v57, 0  ;;  %v5573_v15 = vperm.slane %v5214_v59, 0 }
 0x684   : > { %v5668_v43 = vperm.slane %v12155_v36, 0  ;;  %v5952_v60 = vsel %vm1023_vm7, %v5936_v29, %v5632_v6  ;;  %v6098_v40 = vsel %vm1057_vm9, %v6082_v21, 0.0  ;;  %v6084_v44 = vsel %vm1040_vm8, %v10676_v38, 0.0  ;;  %v12170_v21 = vld [vmem:[#allocation141_spill] sm:$0xff] }
 0x685   : > { %v5968_v56 = vsel %vm1040_vm8, %v5952_v60, %v5664_v49  ;;  %v5543_v0 = vperm.slane %v5200_v55, 0  ;;  %v5605_v42 = vperm.slane %v12162_v7, 0  ;;  %v5895_v61 = vsel %vm956_vm4, %v5156_v5, %v5511_v16  ;;  %v12171_v60 = vld [vmem:[#allocation65_spill] sm:$0xff] }
 0x686   : > { %v5001_v9 = vpop.permute.xlu1 %5000  ;;  %v5972_v45 = vsel %vm1040_vm8, %v5956_v30, %v5668_v43  ;;  %v5984_v18 = vsel %vm1057_vm9, %v5968_v56, %v5696_v39  ;;  %v5637_v26 = vperm.slane %v12163_v24, 0  ;;  %v5507_v36 = vperm.slane %v12140_v23, 0  ;;  %v12167_v30 = vld [vmem:[#allocation158_spill] sm:$0xff] }
 0x687   : > { %5081 = vst.msk [vmem:[%s9258_s23 + $0x80] sm:$0xff] %vm5064_vm12, %v5001_v9  ;;  %v5154_v9 = vrot.slane %v12148_v12, 2  ;;  %v5988_v17 = vsel %vm1057_vm9, %v5972_v45, %v5700_v37  ;;  %v6100_v38 = vsel %vm1057_vm9, %v6084_v44, 0.0  ;;  %v5669_v20 = vperm.slane %v12164_v63, 0  ;;  %v12168_v45 = vld [vmem:[#allocation105_spill] sm:$0xff] }
 0x688   : > { %6204 = vxpose.xlu0.b32.end [2/2] (short) (narrow) %v6094_v11, 16  ;;  %v5187_v52 = vrot.slane %v12140_v23, 5  ;;  %v12166_v11 = vld [vmem:[#allocation145_spill] sm:$0xff]  ;;  %v5911_v31 = vsel %vm973_vm5, %v5895_v61, %v5543_v0  ;;  %v5639_v2 = vperm.slane %v12167_v30, 0  ;;  %v5157_v25 = vrot.slane %v12148_v12, 5  ;;  %v12173_v0 = vld [vmem:[#allocation59_spill] sm:$0xff] }
 0x689   : > { %v5607_v10 = vperm.slane %v12166_v11, 0  ;;  %v5671_v58 = vperm.slane %v12168_v45, 0  ;;  %v5891_v6 = vsel %vm956_vm4, %v12148_v12, %v5507_v36  ;;  %v5201_v59 = vrot.slane %v12145_v50, 5  ;;  %v12176_v30 = vld [vmem:[#allocation97_spill] sm:$0xff] }
 0x68a   : > { %6172 = vxpose.xlu1.b32.end [2/2] (short) (narrow) %v6093_v53, 16  ;;  %v5005_v41 = vpop.permute.xlu0 %5004  ;;  %v5893_v53 = vsel %vm956_vm4, %v5154_v9, %v5509_v51  ;;  %v12165_v9 = vld [vmem:[#allocation113_spill] sm:$0xff]  ;;  %v5539_v51 = vperm.slane %v12145_v50, 0  ;;  %v5603_v5 = vperm.slane %v12170_v21, 0  ;;  %v5217_v56 = vrot.slane %v12152_v32, 5 }
 0x68b   : > { %6300 = vxpose.xlu2.b32.end [2/2] (short) (narrow) %v6097_v14, 16  ;;  %5083 = vst.msk [vmem:[%s9258_s23 + $0x90] sm:$0xff] %vm5064_vm12, %v5005_v41  ;;  %v5909_v47 = vsel %vm973_vm5, %v5893_v53, %v5541_v48  ;;  %v5216_v14 = vrot.slane %v12152_v32, 4  ;;  %v5701_v19 = vperm.slane %v12165_v9, 0  ;;  %v6080_v41 = vsel %vm1040_vm8, %v10679_v34, 0.0 }
 0x68c   : > { %v5925_v54 = vsel %vm171_vm0, %v5909_v47, %v5573_v15  ;;  %v5512_v48 = vperm.slane %v5187_v52, 0  ;;  %v6096_v33 = vsel %vm1057_vm9, %v6080_v41, 0.0  ;;  %v5571_v53 = vperm.slane %v12152_v32, 0 }
 0x68d   : > { %v5575_v37 = vperm.slane %v5216_v14, 0  ;;  %v5907_v16 = vsel %vm973_vm5, %v5891_v6, %v5539_v51  ;;  %v5635_v15 = vperm.slane %v12171_v60, 0  ;;  %v5544_v47 = vperm.slane %v5201_v59, 0  ;;  %v12175_v51 = vld [vmem:[#allocation159_spill] sm:$0xff]  ;;  %v12179_v59 = vld [vmem:[#allocation69_spill] sm:$0xff] }
 0x68e   : > { %v5896_v44 = vsel %vm956_vm4, %v5157_v25, %v5512_v48  ;;  %v5923_v7 = vsel %vm171_vm0, %v5907_v16, %v5571_v53  ;;  %v6085_v24 = vsel %vm1040_vm8, %v10698_v4, 0.0  ;;  %v5576_v36 = vperm.slane %v5217_v56, 0  ;;  %v12184_v56 = vld [vmem:[#allocation119_spill] sm:$0xff] }
 0x68f   : > { %v5927_v49 = vsel %vm171_vm0, %v5911_v31, %v5575_v37  ;;  %v5939_v61 = vsel %vm1006_vm6, %v5923_v7, %v5603_v5  ;;  %v5155_v63 = vrot.slane %v12148_v12, 3  ;;  %v5215_v37 = vrot.slane %v12152_v32, 3 }
 0x690   : > { %6267 = vxpose.xlu0.b32.start [1/2] (short) (narrow) %v5984_v18, 16  ;;  %v5943_v46 = vsel %vm1006_vm6, %v5927_v49, %v5607_v10  ;;  %v12172_v18 = vld [vmem:[#allocation77_spill] sm:$0xff]  ;;  %v6101_v4 = vsel %vm1057_vm9, %v6085_v24, 0.0  ;;  %v6087_v9 = vsel %vm1040_vm8, %v10704_v28, 0.0  ;;  %v12174_v10 = vld [vmem:[#allocation146_spill] sm:$0xff]  ;;  %v5640_v41 = vperm.slane %v12175_v51, 0 }
 0x691   : > { %v5959_v29 = vsel %vm1023_vm7, %v5943_v46, %v5639_v2  ;;  %v5608_v31 = vperm.slane %v12174_v10, 0  ;;  %v5736_v2 = vperm.slane %v12176_v30, 0  ;;  %v6103_v25 = vsel %vm1057_vm9, %v6087_v9, 0.0  ;;  %v5496_v28 = vld [vmem:[#allocation1] ss:$9 sm:$0xff] }
 0x692   : > { %6331 = vxpose.xlu1.b32.start [1/2] (short) (narrow) %v12157_v22, 16  ;;  %v4991_v27 = vpop.permute.xlu0 %4990  ;;  %v5941_v22 = vsel %vm1006_vm6, %v5925_v54, %v5605_v42  ;;  %v5185_v42 = vrot.slane %v12140_v23, 3  ;;  %v5955_v54 = vsel %vm1023_vm7, %v5939_v61, %v5635_v15  ;;  %v12180_v49 = vld [vmem:[#allocation18_spill] sm:$0xff]  ;;  %v5864_v16 = vperm.slane %v5496_v28, 0  ;;  %v12190_v9 = vld [vmem:[#allocation99_spill] sm:$0xff]  ;;  %v12191_v10 = vld [vmem:[#allocation89_spill] sm:$0xff] }
 0x693   : > { %6395 = vxpose.xlu2.b32.start [1/2] (short) (narrow) %v5988_v17, 16  ;;  %5076 = vst.msk [vmem:[%s9258_s23 + $0x58] sm:$0xff] %vm5064_vm12, %v4991_v27  ;;  %v5957_v57 = vsel %vm1023_vm7, %v5941_v22, %v5637_v26  ;;  %v12169_v17 = vld [vmem:[#allocation9_spill] sm:$0xff]  ;;  %v5699_v27 = vperm.slane %v12173_v0, 0  ;;  %v5800_v48 = vperm.slane %v12180_v49, 0  ;;  %v12181_v46 = vld [vmem:[#allocation54_spill] sm:$0xff] }
 0x694   : > { %v5973_v34 = vsel %vm1040_vm8, %v5957_v57, %v5669_v20  ;;  %v5703_v13 = vperm.slane %v12169_v17, 0  ;;  %v5199_v20 = vrot.slane %v12145_v50, 3  ;;  %v5574_v17 = vperm.slane %v5215_v37, 0  ;;  %v5498_v15 = vld [vmem:[#allocation1 + $0x2] ss:$9 sm:$0xff] }
 0x695   : > { %v5989_v39 = vsel %vm1057_vm9, %v5973_v34, %v5701_v19  ;;  %v5510_v19 = vperm.slane %v5185_v42, 0  ;;  %v5704_v34 = vperm.slane %v12179_v59, 0  ;;  %v5832_v53 = vperm.slane %v12181_v46, 0  ;;  %v12186_v42 = vld [vmem:[#allocation90_spill] sm:$0xff] }
 0x696   : > { %v5542_v45 = vperm.slane %v5199_v20, 0  ;;  %v5834_v61 = vperm.slane %v12186_v42, 0  ;;  %v12189_v20 = vld [vmem:[#allocation157_spill] sm:$0xff] }
 0x697   : > { %v5013_v62 = vpop.permute.xlu1 %5012  ;;  %v5027_v43 = vpop.permute.xlu2 %5026  ;;  %v5638_v37 = vperm.slane %v12189_v20, 0 }
 0x698   : > { %5087 = vst.msk [vmem:[%s9258_s23 + $0xb0] sm:$0xff] %vm5064_vm12, %v5013_v62  ;;  %6268 = vxpose.xlu0.b32.end [2/2] (short) (narrow) %v6096_v33, 16  ;;  %v5975_v62 = vsel %vm1040_vm8, %v5959_v29, %v5671_v58  ;;  %v12178_v58 = vld [vmem:[#allocation114_spill] sm:$0xff]  ;;  %v6083_v33 = vsel %vm1040_vm8, %v10707_v1, 0.0 }
 0x699   : > { %5094 = vst.msk [vmem:[%s9258_s23 + $0xe8] sm:$0xff] %vm5064_vm12, %v5027_v43  ;;  %v5991_v14 = vsel %vm1057_vm9, %v5975_v62, %v5703_v13  ;;  %v5912_v43 = vsel %vm973_vm5, %v5896_v44, %v5544_v47  ;;  %v5768_v6 = vperm.slane %v12178_v58, 0  ;;  %v5894_v13 = vsel %vm956_vm4, %v5155_v63, %v5510_v19  ;;  %v12183_v62 = vld [vmem:[#allocation95_spill] sm:$0xff] }
 0x69a   : > { %6332 = vxpose.xlu1.b32.end [2/2] (short) (narrow) %v6098_v40, 16  ;;  %v4999_v55 = vpop.permute.xlu0 %4998  ;;  %v5667_v40 = vperm.slane %v12172_v18, 0  ;;  %v5928_v22 = vsel %vm171_vm0, %v5912_v43, %v5576_v36  ;;  %v6008_v60 = vsel %vm956_vm4, %v12183_v62, %v5736_v2  ;;  %v5770_v47 = vperm.slane %v12184_v56, 0 }
 0x69b   : > { %6396 = vxpose.xlu2.b32.end [2/2] (short) (narrow) %v6100_v38, 16  ;;  %5080 = vst.msk [vmem:[%s9258_s23 + $0x78] sm:$0xff] %vm5064_vm12, %v4999_v55  ;;  %v12182_v55 = vld [vmem:[#allocation68_spill] sm:$0xff]  ;;  %v6024_v18 = vsel %vm973_vm5, %v6008_v60, %v5768_v6  ;;  %v6099_v0 = vsel %vm1057_vm9, %v6083_v33, 0.0  ;;  %v5866_v43 = vperm.slane %v5498_v15, 0  ;;  %v5670_v19 = vperm.slane %v12190_v9, 0 }
 0x69c   : > { %v5971_v38 = vsel %vm1040_vm8, %v5955_v54, %v5667_v40  ;;  %v5738_v29 = vperm.slane %v12182_v55, 0  ;;  %v12185_v40 = vld [vmem:[#allocation12_spill] sm:$0xff]  ;;  %v6040_v7 = vsel %vm171_vm0, %v6024_v18, %v5800_v48  ;;  %v5218_v48 = vrot.slane %v12152_v32, 6  ;;  %v12196_v15 = vld [vmem:[#allocation106_spill] sm:$0xff] }
 0x69d   : > { %v5987_v52 = vsel %vm1057_vm9, %v5971_v38, %v5699_v27  ;;  %v5802_v44 = vperm.slane %v12185_v40, 0  ;;  %v6056_v36 = vsel %vm1006_vm6, %v6040_v7, %v5832_v53  ;;  %v12188_v38 = vld [vmem:[#allocation51_spill] sm:$0xff]  ;;  %v6086_v33 = vsel %vm1040_vm8, %v10728_v3, 0.0  ;;  %v12194_v32 = vld [vmem:[#allocation160_spill] sm:$0xff] }
 0x69e   : > { %v6010_v63 = vsel %vm956_vm4, %v12188_v38, %v5738_v29  ;;  %v5577_v55 = vperm.slane %v5218_v48, 0  ;;  %v12193_v29 = vld [vmem:[#allocation147_spill] sm:$0xff]  ;;  %v5641_v3 = vperm.slane %v12194_v32, 0  ;;  %v5705_v56 = vperm.slane %v12196_v15, 0 }
 0x69f   : > { %v5017_v35 = vpop.permute.xlu1 %5016  ;;  %v5497_v60 = vld [vmem:[#allocation1 + $0x1] ss:$9 sm:$0xff] }
 0x6a0   : > { %5089 = vst.msk [vmem:[%s9258_s23 + $0xc0] sm:$0xff] %vm5064_vm12, %v5017_v35  ;;  %6363 = vxpose.xlu0.b32.start [1/2] (short) (narrow) %v5987_v52, 16  ;;  %v12177_v35 = vld [vmem:[#allocation100_spill] sm:$0xff]  ;;  %v6072_v52 = vsel %vm1023_vm7, %v6056_v36, %v5864_v16  ;;  %v12195_v16 = vld [vmem:[#allocation62_spill] sm:$0xff]  ;;  %v5865_v18 = vperm.slane %v5497_v60, 0 }
 0x6a1   : > { %v5672_v57 = vperm.slane %v12177_v35, 0  ;;  %v6088_v2 = vsel %vm1040_vm8, %v6072_v52, 0.0  ;;  %v5673_v62 = vperm.slane %v12195_v16, 0 }
 0x6a2   : > { %6427 = vxpose.xlu1.b32.start [1/2] (short) (narrow) %v5989_v39, 16  ;;  %v5011_v11 = vpop.permute.xlu0 %5010  ;;  %v5944_v39 = vsel %vm1006_vm6, %v5928_v22, %v5608_v31  ;;  %v12192_v31 = vld [vmem:[#allocation22_spill] sm:$0xff]  ;;  %v6104_v6 = vsel %vm1057_vm9, %v6088_v2, 0.0 }
 0x6a3   : > { %6491 = vxpose.xlu2.b32.start [1/2] (short) (narrow) %v5991_v14, 16  ;;  %5086 = vst.msk [vmem:[%s9258_s23 + $0xa8] sm:$0xff] %vm5064_vm12, %v5011_v11  ;;  %v5960_v5 = vsel %vm1023_vm7, %v5944_v39, %v5640_v41  ;;  %v5910_v14 = vsel %vm973_vm5, %v5894_v13, %v5542_v45  ;;  %v5702_v51 = vperm.slane %v12192_v31, 0  ;;  %v5188_v45 = vrot.slane %v12140_v23, 6 }
 0x6a4   : > { %v5976_v1 = vsel %vm1040_vm8, %v5960_v5, %v5672_v57  ;;  %v5926_v41 = vsel %vm171_vm0, %v5910_v14, %v5574_v17  ;;  %v5202_v17 = vrot.slane %v12145_v50, 6  ;;  %v5158_v23 = vrot.slane %v12148_v12, 6 }
 0x6a5   : > { %v5992_v27 = vsel %vm1057_vm9, %v5976_v1, %v5704_v34  ;;  %v5513_v13 = vperm.slane %v5188_v45, 0  ;;  %v6102_v50 = vsel %vm1057_vm9, %v6086_v33, 0.0 }
 0x6a6   : > { %v5545_v39 = vperm.slane %v5202_v17, 0 }
 0x6a7   : > { %v4995_v26 = vpop.permute.xlu1 %4994  ;;  %v5897_v53 = vsel %vm956_vm4, %v5158_v23, %v5513_v13 }
 0x6a8   : > { %5078 = vst.msk [vmem:[%s9258_s23 + $0x68] sm:$0xff] %vm5064_vm12, %v4995_v26  ;;  %6364 = vxpose.xlu0.b32.end [2/2] (short) (narrow) %v6099_v0, 16  ;;  %v12187_v26 = vld [vmem:[#allocation144_spill] sm:$0xff]  ;;  %v5913_v5 = vsel %vm973_vm5, %v5897_v53, %v5545_v39 }
 0x6a9   : > { %v5606_v54 = vperm.slane %v12187_v26, 0 }
 0x6aa   : > { %6428 = vxpose.xlu1.b32.end [2/2] (short) (narrow) %v6101_v4, 16  ;;  %v5015_v24 = vpop.permute.xlu0 %5014  ;;  %v6026_v4 = vsel %vm973_vm5, %v6010_v63, %v5770_v47  ;;  %v5929_v47 = vsel %vm171_vm0, %v5913_v5, %v5577_v55 }
 0x6ab   : > { %6492 = vxpose.xlu2.b32.end [2/2] (short) (narrow) %v6103_v25, 16  ;;  %5088 = vst.msk [vmem:[%s9258_s23 + $0xb8] sm:$0xff] %vm5064_vm12, %v5015_v24  ;;  %v6042_v11 = vsel %vm171_vm0, %v6026_v4, %v5802_v44  ;;  %v5942_v30 = vsel %vm1006_vm6, %v5926_v41, %v5606_v54 }
 0x6ac   : > { %v6058_v22 = vsel %vm1006_vm6, %v6042_v11, %v5834_v61  ;;  %v5958_v57 = vsel %vm1023_vm7, %v5942_v30, %v5638_v37 }
 0x6ad   : > { %v6074_v25 = vsel %vm1023_vm7, %v6058_v22, %v5866_v43  ;;  %v5974_v28 = vsel %vm1040_vm8, %v5958_v57, %v5670_v19 }
 0x6ae   : > { %v5990_v58 = vsel %vm1057_vm9, %v5974_v28, %v5702_v51  ;;  %v6090_v59 = vsel %vm1040_vm8, %v6074_v25, 0.0 }
 0x6af   : > { %v5007_v21 = vpop.permute.xlu1 %5006  ;;  %v6106_v49 = vsel %vm1057_vm9, %v6090_v59, 0.0 }
 0x6b0   : > { %5084 = vst.msk [vmem:[%s9258_s23 + $0x98] sm:$0xff] %vm5064_vm12, %v5007_v21  ;;  %6459 = vxpose.xlu0.b32.start [1/2] (short) (narrow) %v5990_v58, 16  ;;  %v5609_v21 = vperm.slane %v12193_v29, 0 }
 0x6b2   : > { %6523 = vxpose.xlu1.b32.start [1/2] (short) (narrow) %v5992_v27, 16  ;;  %v5019_v34 = vpop.permute.xlu0 %5018  ;;  %v5945_v1 = vsel %vm1006_vm6, %v5929_v47, %v5609_v21  ;;  %v6073_v27 = vsel %vm1023_vm7, %v10712_v8, %v5865_v18 }
 0x6b3   : > { %6587 = vxpose.xlu2.b32.start [1/2] (short) (narrow) %v12191_v10, 16  ;;  %5090 = vst.msk [vmem:[%s9258_s23 + $0xc8] sm:$0xff] %vm5064_vm12, %v5019_v34  ;;  %v5961_v14 = vsel %vm1023_vm7, %v5945_v1, %v5641_v3  ;;  %v6089_v7 = vsel %vm1040_vm8, %v6073_v27, 0.0 }
 0x6b4   : > { %v5977_v40 = vsel %vm1040_vm8, %v5961_v14, %v5673_v62  ;;  %v6105_v42 = vsel %vm1057_vm9, %v6089_v7, 0.0 }
 0x6b5   : > { %v5993_v44 = vsel %vm1057_vm9, %v5977_v40, %v5705_v56 }
 0x6b7   : > { %v5025_v35 = vpop.permute.xlu1 %5024 }
 0x6b8   : > { %5093 = vst.msk [vmem:[%s9258_s23 + $0xe0] sm:$0xff] %vm5064_vm12, %v5025_v35  ;;  %6460 = vxpose.xlu0.b32.end [2/2] (short) (narrow) %v6102_v50, 16 }
 0x6ba   : > { %6524 = vxpose.xlu1.b32.end [2/2] (short) (narrow) %v6104_v6, 16  ;;  %v5029_v12 = vpop.permute.xlu0 %5028 }
 0x6bb   : > { %6588 = vxpose.xlu2.b32.end [2/2] (short) (narrow) %v6106_v49, 16  ;;  %5095 = vst.msk [vmem:[%s9258_s23 + $0xf0] sm:$0xff] %vm5064_vm12, %v5029_v12 }
 0x6bf   : > { %v5031_v46 = vpop.permute.xlu1 %5030 }
 0x6c0   : > { %5096 = vst.msk [vmem:[%s9258_s23 + $0xf8] sm:$0xff] %vm5064_vm12, %v5031_v46  ;;  %6555 = vxpose.xlu0.b32.start [1/2] (short) (narrow) %v5993_v44, 16 }
 0x6c2   : > { %v5023_v0 = vpop.permute.xlu0 %5022 }
 0x6c3   : > { %5092 = vst.msk [vmem:[%s9258_s23 + $0xd8] sm:$0xff] %vm5064_vm12, %v5023_v0 }
 0x6c8   : > { %6556 = vxpose.xlu0.b32.end [2/2] (short) (narrow) %v6105_v42, 16 }
 0x6fc   : > { %v6123_v61 = vpop.trf.xlu2 }
 0x704   : > { %v6124_v24 = vpop.trf.xlu2 }
 0x70c   : > { %v6251_v26 = vpop.trf.xlu2 }
 0x714   : > { %6651 = vrot.lane.b32.xlu1 %v6123_v61, %s7108_s26  ;;  %v6155_v54 = vpop.trf.xlu0  ;;  %v6252_v36 = vpop.trf.xlu2 }
 0x71c   : > { %v6156_v38 = vpop.trf.xlu0  ;;  %v6315_v63 = vpop.trf.xlu2 }
 0x724   : > { %6655 = vrot.lane.b32.xlu2 %v6155_v54, %s7108_s26  ;;  %v6219_v8 = vpop.trf.xlu0  ;;  %v6316_v52 = vpop.trf.xlu2 }
 0x726   : > { %v6187_v43 = vpop.trf.xlu1 }
 0x727   : > { %6659 = vrot.lane.b32.xlu1 %v6187_v43, %s7108_s26 }
 0x72c   : > { %v6220_v37 = vpop.trf.xlu0  ;;  %v6411_v19 = vpop.trf.xlu2 }
 0x72d   : > { %6665 = vrot.lane.b32.xlu2 %v6220_v37, %s7108_s26 }
 0x72e   : > { %v6188_v20 = vpop.trf.xlu1 }
 0x72f   : > { %6657 = vrot.lane.b32.xlu1 %v6156_v38, %s7108_s26 }
 0x734   : > { %v6283_v4 = vpop.trf.xlu0  ;;  %v6412_v51 = vpop.trf.xlu2 }
 0x735   : > { %6671 = vrot.lane.b32.xlu2 %v6283_v4, %s7108_s26 }
 0x736   : > { %6653 = vrot.lane.b32.xlu0 %v6124_v24, %s7108_s26  ;;  %v6347_v9 = vpop.trf.xlu1 }
 0x737   : > { %6661 = vrot.lane.b32.xlu1 %v6188_v20, %s7108_s26 }
 0x73c   : > { %v6284_v11 = vpop.trf.xlu0  ;;  %v6507_v30 = vpop.trf.xlu2 }
 0x73d   : > { %6677 = vrot.lane.b32.xlu2 %v6316_v52, %s7108_s26 }
 0x73e   : > { %6667 = vrot.lane.b32.xlu0 %v6251_v26, %s7108_s26  ;;  %v6348_v10 = vpop.trf.xlu1 }
 0x73f   : > { %6663 = vrot.lane.b32.xlu1 %v6219_v8, %s7108_s26 }
 0x744   : > { %v6379_v31 = vpop.trf.xlu0  ;;  %v6508_v35 = vpop.trf.xlu2 }
 0x745   : > { %6683 = vrot.lane.b32.xlu2 %v6379_v31, %s7108_s26 }
 0x746   : > { %6673 = vrot.lane.b32.xlu0 %v6284_v11, %s7108_s26  ;;  %v6443_v22 = vpop.trf.xlu1 }
 0x747   : > { %6669 = vrot.lane.b32.xlu1 %v6252_v36, %s7108_s26 }
 0x74c   : > { %v6380_v41 = vpop.trf.xlu0  ;;  %v6603_v28 = vpop.trf.xlu2 }
 0x74d   : > { %6689 = vrot.lane.b32.xlu2 %v6412_v51, %s7108_s26 }
 0x74e   : > { %6679 = vrot.lane.b32.xlu0 %v6347_v9, %s7108_s26  ;;  %v6444_v25 = vpop.trf.xlu1 }
 0x74f   : > { %6675 = vrot.lane.b32.xlu1 %v6315_v63, %s7108_s26 }
 0x754   : > { %v6475_v2 = vpop.trf.xlu0  ;;  %v6604_v59 = vpop.trf.xlu2 }
 0x755   : > { %6695 = vrot.lane.b32.xlu2 %v6475_v2, %s7108_s26 }
 0x756   : > { %6685 = vrot.lane.b32.xlu0 %v6380_v41, %s7108_s26  ;;  %v6539_v45 = vpop.trf.xlu1 }
 0x757   : > { %6681 = vrot.lane.b32.xlu1 %v6348_v10, %s7108_s26 }
 0x75c   : > { %v6476_v57 = vpop.trf.xlu0 }
 0x75d   : > { %6701 = vrot.lane.b32.xlu2 %v6508_v35, %s7108_s26 }
 0x75e   : > { %6691 = vrot.lane.b32.xlu0 %v6443_v22, %s7108_s26  ;;  %v6540_v6 = vpop.trf.xlu1 }
 0x75f   : > { %6687 = vrot.lane.b32.xlu1 %v6411_v19, %s7108_s26 }
 0x764   : > { %v6571_v58 = vpop.trf.xlu0 }
 0x765   : > { %6707 = vrot.lane.b32.xlu2 %v6571_v58, %s7108_s26 }
 0x766   : > { %6697 = vrot.lane.b32.xlu0 %v6476_v57, %s7108_s26 }
 0x767   : > { %6693 = vrot.lane.b32.xlu1 %v6444_v25, %s7108_s26 }
 0x76c   : > { %v6572_v34 = vpop.trf.xlu0 }
 0x76d   : > { %6713 = vrot.lane.b32.xlu2 %v6604_v59, %s7108_s26 }
 0x76e   : > { %6703 = vrot.lane.b32.xlu0 %v6539_v45, %s7108_s26 }
 0x76f   : > { %6699 = vrot.lane.b32.xlu1 %v6507_v30, %s7108_s26 }
 0x776   : > { %6709 = vrot.lane.b32.xlu0 %v6572_v34, %s7108_s26 }
 0x777   : > { %6705 = vrot.lane.b32.xlu1 %v6540_v6, %s7108_s26 }
 0x77e   : > { %v6656_v17 = vpop.permute.xlu2 %6655 }
 0x77f   : > { %6711 = vrot.lane.b32.xlu1 %v6603_v28, %s7108_s26  ;;  %6750 = vst.msk [vmem:[%s9258_s23 + $0x10] sm:$0xff] %vm6747_vm13, %v6656_v17 }
 0x786   : > { %v6652_v23 = vpop.permute.xlu1 %6651 }
 0x787   : > { %6748 = vst.msk [vmem:[%s9258_s23] sm:$0xff] %vm6747_vm13, %v6652_v23  ;;  %v6666_v13 = vpop.permute.xlu2 %6665 }
 0x788   : > { %6755 = vst.msk [vmem:[%s9258_s23 + $0x38] sm:$0xff] %vm6747_vm13, %v6666_v13 }
 0x78f   : > { %v6672_v48 = vpop.permute.xlu2 %6671 }
 0x790   : > { %6758 = vst.msk [vmem:[%s9258_s23 + $0x50] sm:$0xff] %vm6747_vm13, %v6672_v48 }
 0x797   : > { %v6678_v39 = vpop.permute.xlu2 %6677 }
 0x798   : > { %6761 = vst.msk [vmem:[%s9258_s23 + $0x68] sm:$0xff] %vm6747_vm13, %v6678_v39 }
 0x799   : > { %v6660_v49 = vpop.permute.xlu1 %6659 }
 0x79a   : > { %6752 = vst.msk [vmem:[%s9258_s23 + $0x20] sm:$0xff] %vm6747_vm13, %v6660_v49 }
 0x79f   : > { %v6684_v53 = vpop.permute.xlu2 %6683 }
 0x7a0   : > { %6764 = vst.msk [vmem:[%s9258_s23 + $0x80] sm:$0xff] %vm6747_vm13, %v6684_v53 }
 0x7a1   : > { %v6658_v33 = vpop.permute.xlu1 %6657 }
 0x7a2   : > { %6751 = vst.msk [vmem:[%s9258_s23 + $0x18] sm:$0xff] %vm6747_vm13, %v6658_v33 }
 0x7a7   : > { %v6690_v55 = vpop.permute.xlu2 %6689 }
 0x7a8   : > { %v6654_v12 = vpop.permute.xlu0 %6653  ;;  %6767 = vst.msk [vmem:[%s9258_s23 + $0x98] sm:$0xff] %vm6747_vm13, %v6690_v55 }
 0x7a9   : > { %v6662_v46 = vpop.permute.xlu1 %6661  ;;  %6749 = vst.msk [vmem:[%s9258_s23 + $0x8] sm:$0xff] %vm6747_vm13, %v6654_v12 }
 0x7aa   : > { %6753 = vst.msk [vmem:[%s9258_s23 + $0x28] sm:$0xff] %vm6747_vm13, %v6662_v46 }
 0x7af   : > { %v6696_v21 = vpop.permute.xlu2 %6695 }
 0x7b0   : > { %v6668_v5 = vpop.permute.xlu0 %6667  ;;  %6770 = vst.msk [vmem:[%s9258_s23 + $0xb0] sm:$0xff] %vm6747_vm13, %v6696_v21 }
 0x7b1   : > { %v6664_v50 = vpop.permute.xlu1 %6663  ;;  %6756 = vst.msk [vmem:[%s9258_s23 + $0x40] sm:$0xff] %vm6747_vm13, %v6668_v5 }
 0x7b2   : > { %6754 = vst.msk [vmem:[%s9258_s23 + $0x30] sm:$0xff] %vm6747_vm13, %v6664_v50 }
 0x7b7   : > { %v6702_v3 = vpop.permute.xlu2 %6701 }
 0x7b8   : > { %v6674_v16 = vpop.permute.xlu0 %6673  ;;  %6773 = vst.msk [vmem:[%s9258_s23 + $0xc8] sm:$0xff] %vm6747_vm13, %v6702_v3 }
 0x7b9   : > { %v6670_v29 = vpop.permute.xlu1 %6669  ;;  %6759 = vst.msk [vmem:[%s9258_s23 + $0x58] sm:$0xff] %vm6747_vm13, %v6674_v16 }
 0x7ba   : > { %6757 = vst.msk [vmem:[%s9258_s23 + $0x48] sm:$0xff] %vm6747_vm13, %v6670_v29 }
 0x7bf   : > { %v6708_v60 = vpop.permute.xlu2 %6707 }
 0x7c0   : > { %v6680_v15 = vpop.permute.xlu0 %6679  ;;  %6776 = vst.msk [vmem:[%s9258_s23 + $0xe0] sm:$0xff] %vm6747_vm13, %v6708_v60 }
 0x7c1   : > { %v6676_v32 = vpop.permute.xlu1 %6675  ;;  %6762 = vst.msk [vmem:[%s9258_s23 + $0x70] sm:$0xff] %vm6747_vm13, %v6680_v15 }
 0x7c2   : > { %6760 = vst.msk [vmem:[%s9258_s23 + $0x60] sm:$0xff] %vm6747_vm13, %v6676_v32 }
 0x7c7   : > { %v6714_v47 = vpop.permute.xlu2 %6713 }
 0x7c8   : > { %v6686_v1 = vpop.permute.xlu0 %6685  ;;  %6779 = vst.msk [vmem:[%s9258_s23 + $0xf8] sm:$0xff] %vm6747_vm13, %v6714_v47 }
 0x7c9   : > { %v6682_v62 = vpop.permute.xlu1 %6681  ;;  %6765 = vst.msk [vmem:[%s9258_s23 + $0x88] sm:$0xff] %vm6747_vm13, %v6686_v1 }
 0x7ca   : > { %6763 = vst.msk [vmem:[%s9258_s23 + $0x78] sm:$0xff] %vm6747_vm13, %v6682_v62 }
 0x7d0   : > { %v6692_v18 = vpop.permute.xlu0 %6691 }
 0x7d1   : > { %v6688_v56 = vpop.permute.xlu1 %6687  ;;  %6768 = vst.msk [vmem:[%s9258_s23 + $0xa0] sm:$0xff] %vm6747_vm13, %v6692_v18 }
 0x7d2   : > { %6766 = vst.msk [vmem:[%s9258_s23 + $0x90] sm:$0xff] %vm6747_vm13, %v6688_v56 }
 0x7d8   : > { %v6698_v44 = vpop.permute.xlu0 %6697 }
 0x7d9   : > { %v6694_v14 = vpop.permute.xlu1 %6693  ;;  %6771 = vst.msk [vmem:[%s9258_s23 + $0xb8] sm:$0xff] %vm6747_vm13, %v6698_v44 }
 0x7da   : > { %6769 = vst.msk [vmem:[%s9258_s23 + $0xa8] sm:$0xff] %vm6747_vm13, %v6694_v14 }
 0x7e0   : > { %v6704_v27 = vpop.permute.xlu0 %6703 }
 0x7e1   : > { %v6700_v40 = vpop.permute.xlu1 %6699  ;;  %6774 = vst.msk [vmem:[%s9258_s23 + $0xd0] sm:$0xff] %vm6747_vm13, %v6704_v27 }
 0x7e2   : > { %6772 = vst.msk [vmem:[%s9258_s23 + $0xc0] sm:$0xff] %vm6747_vm13, %v6700_v40 }
 0x7e8   : > { %v6710_v42 = vpop.permute.xlu0 %6709 }
 0x7e9   : > { %v6706_v0 = vpop.permute.xlu1 %6705  ;;  %6777 = vst.msk [vmem:[%s9258_s23 + $0xe8] sm:$0xff] %vm6747_vm13, %v6710_v42 }
 0x7ea   : > { %6775 = vst.msk [vmem:[%s9258_s23 + $0xd8] sm:$0xff] %vm6747_vm13, %v6706_v0 }
 0x7f1   : > { %v6712_v7 = vpop.permute.xlu1 %6711 }
 0x7f2   : > { %6778 = vst.msk [vmem:[%s9258_s23 + $0xf0] sm:$0xff] %vm6747_vm13, %v6712_v7 }
 0x7f3   : > { %7044 = shalt.err (!%p7041_p13)
}
 0x7f4   : > { %s7109_s5 = smov 128   ;;  %s7110_s22 = smov 8  }
 0x7f5   : > { %6916 = dma.vmem_to_hbm [thread:$0]  (%p7172_p9), %s6798_s2, 4096, %s6800_s3, %s6781_s9, %s7109_s5, %s7109_s5, %s7110_s22  }
 0x7f6 PF: > { %s6814_s23 = sand.u32 1, %s7079_s6   ;;  %p6923_p0 = pnand %p6894_p12, %p7179_p11 }
 0x7f7   : > { %s6815_s24 = scalar_lea.sflag [#allocation4], %s6814_s23 }
 0x7f8   : > { %p6924_p1 = pneg %p6923_p0 }
 0x7fa   : > { %7074 = dma.done.wait (%p6924_p1), %s6815_s24, 4096  }
 0x7fb   : > { %7076 = vsyncadd (%p6924_p1), %s6815_s24, 4294963200  ;;  %s17_s11 = sadd.s32 1, %s7099_s11   ;;  %s12197_s6 = smov %s7083_s7 }
 0x7fc   : > { %p14_p2 = scmp.ge.s32.totalorder %s17_s11, 4   ;;  %s12198_s7 = smov %s7087_s8 }
 0x7fd   : > { %s12199_s8 = smov %s7177_s20  ;;  %s12200_s9 = smov %s7095_s10 }
 0x7fe   : > { %s12201_s10 = smov %s12203_s14  ;;  %16 = sbr.rel (!%p14_p2) target bundleno = 6 (0x6), region = 352 }
 0x803   :  { %6821 = vsyncpa [#allocation3], 1 }
 0x804   :  { %6823 = vsyncpa [#allocation3 + $0x1], 1 }
 0x805   :  { %6824 = vsyncpa [#allocation4], 1 }
 0x806   :  { %6826 = vsyncpa [#allocation4 + $0x1], 1 }

// kernel: tpu_custom_call.1
= control target key start
LH: loop header
LB: loop body
LE: loop exit
PB: predicated region body
PF: predicated region fallthrough
CT: control target
= control target key end

     0   :  { %s553_s6 = smov 0   ;;  %s555_s7 = smov 0   ;;  %s705_s0 = inlined_call_operand.vmem [shape: f32[2,4,19,19], index: 0, kind: input, shape index: {}]   ;;  %s706_s1 = inlined_call_operand.vmem [shape: f32[2,64,16,16], index: 1, kind: output, shape index: {}]  }
   0x1   :  { %s557_s8 = smov 0   ;;  %s559_s9 = smov 0  }
   0x2   :  { %s561_s10 = smov 0  }
   0x3 LB: > { %s20_s11 = sadd.s32 1, %s529_s8  ;;  %s23_s12 = sadd.s32 1, %s533_s9  ;;  %s537_s10 = sphi %s561_s10, %s11_s10   ;;  %s533_s9 = sphi %s559_s9, %s710_s9   ;;  %s529_s8 = sphi %s557_s8, %s709_s8   ;;  %s525_s7 = sphi %s555_s7, %s708_s7   ;;  %s521_s6 = sphi %s553_s6, %s707_s6  }
   0x4   : > { %p21_p0 = scmp.ge.s32.totalorder %s20_s11, 4  ;;  %p415_p1 = scmp.ge.s32.totalorder %s537_s10, 1 }
   0x5   : > { %p107_p2 = scmp.lt.s32.totalorder %s537_s10, 9 }
   0x6   : > { %s712_s11 = smov (%p21_p0, %s20_s11), 0  ;;  %s714_s12 = smov (!%p21_p0, %s23_s12), %s533_s9 }
   0x7   : > { %p108_p3 = pnand %p415_p1, %p107_p2  ;;  %p25_p4 = scmp.ge.s32.totalorder %s714_s12, 2 }
   0x8   : > { %p136_p5 = scmp.lt.s32.totalorder (!%p108_p3), %s525_s7, 1  ;;  %p138_p6 = scmp.lt.s32.totalorder (!%p108_p3), %s521_s6, 3 }
   0x9   : > { %s716_s12 = smov (%p25_p4, %s714_s12), 0  ;;  %111 = sbr.rel (%p108_p3) target bundleno = 188 (0xbc), region = 24 }
   0xa   : > { %s417_s17 = sshll.u32 (!%p108_p3), %s521_s6, 4  ;;  %s539_s22 = smov (!%p108_p3), 126  }
   0xb   : > { %p148_p7 = scmp.lt.s32.totalorder (!%p108_p3), %s417_s17, 63  ;;  %s540_s23 = smov (!%p108_p3), 127  }
   0xc   : > { %s541_s24 = smov (!%p108_p3), 125  }
   0xe   : > { %s718_s7 = smov (!%p136_p5, %s525_s7), 1  ;;  %s720_s17 = smov (!%p148_p7, %s417_s17), 63  ;;  %vm158_vm0 = vcmask 130048   ;;  %v542_v8 = vmov 0.0  }
   0xf   : > { %s139_s13 = scalar_select %p138_p6, %s521_s6, 3 }
  0x10   : > { %s454_s14 = smul.u32 12, %s718_s7  ;;  %s418_s25 = sshll.u32 %s720_s17, 1 }
  0x11   : > { %s453_s15 = smul.u32 3, %s139_s13  ;;  %s419_s26 = sshll.u32 %s718_s7, 7 }
  0x12   : > { %s152_s27 = sadd.s32 %s419_s26, %s418_s25 }
  0x13   : > { %s142_s16 = sadd.s32 %s454_s14, %s453_s15  ;;  %s420_s28 = sshll.u32 %s152_s27, 3 }
  0x14   : > { %s416_s18 = sshll.u32 %s142_s16, 3  ;;  %s607_s2 = scalar_lea.vmem %s706_s1, %s420_s28 }
  0x15   : > { %s591_s21 = scalar_lea.vmem %s705_s0, %s416_s18  ;;  %447 = vst.msk [vmem:[%s607_s2 + $0xe0] sm:$0xff] %vm158_vm0, %v542_v8 }
  0x16   : > { %v174_v0 = vld [vmem:[%s591_s21] sm:$0xff]  ;;  %v157_v1 = vld [vmem:[%s591_s21 + $0x8] sm:$0xff]  ;;  %448 = vst.msk [vmem:[%s607_s2 + $0xe8] sm:$0xff] %vm158_vm0, %v542_v8 }
  0x17   : > { %178 = vrot.lane.b32.xlu1 %v174_v0, %s539_s22  ;;  %165 = vrot.lane.b32.xlu0 %v174_v0, %s540_s23  ;;  %v201_v2 = vld [vmem:[%s591_s21 + $0x9] sm:$0xff]  ;;  %v200_v3 = vld [vmem:[%s591_s21 + $0x1] sm:$0xff] }
  0x18   : > { %191 = vrot.lane.b32.xlu2 %v174_v0, %s541_s24  ;;  %427 = vst.msk [vmem:[%s607_s2 + $0x40] sm:$0xff] %vm158_vm0, %v200_v3  ;;  %v244_v4 = vld [vmem:[%s591_s21 + $0x2] sm:$0xff]  ;;  %v245_v5 = vld [vmem:[%s591_s21 + $0xa] sm:$0xff] }
  0x19   : > { %428 = vst.msk [vmem:[%s607_s2 + $0x48] sm:$0xff] %vm158_vm0, %v201_v2  ;;  %v288_v6 = vld [vmem:[%s591_s21 + $0x3] sm:$0xff]  ;;  %v289_v7 = vld [vmem:[%s591_s21 + $0xb] sm:$0xff] }
  0x1a   : > { %435 = vst.msk [vmem:[%s607_s2 + $0x80] sm:$0xff] %vm158_vm0, %v244_v4 }
  0x1b   : > { %436 = vst.msk [vmem:[%s607_s2 + $0x88] sm:$0xff] %vm158_vm0, %v245_v5 }
  0x1c   : > { %443 = vst.msk [vmem:[%s607_s2 + $0xc0] sm:$0xff] %vm158_vm0, %v288_v6 }
  0x1d   : > { %444 = vst.msk [vmem:[%s607_s2 + $0xc8] sm:$0xff] %vm158_vm0, %v289_v7 }
  0x1e   : > { %449 = vst.msk [vmem:[%s607_s2 + $0xf0] sm:$0xff] %vm158_vm0, %v542_v8 }
  0x1f   : > { %180 = vrot.lane.b32.xlu1 %v157_v1, %s539_s22  ;;  %167 = vrot.lane.b32.xlu0 %v157_v1, %s540_s23  ;;  %450 = vst.msk [vmem:[%s607_s2 + $0xf8] sm:$0xff] %vm158_vm0, %v542_v8 }
  0x20   : > { %193 = vrot.lane.b32.xlu2 %v157_v1, %s541_s24  ;;  %159 = vst.msk [vmem:[%s607_s2] sm:$0xff] %vm158_vm0, %v174_v0 }
  0x21   : > { %160 = vst.msk [vmem:[%s607_s2 + $0x8] sm:$0xff] %vm158_vm0, %v157_v1 }
  0x27   : > { %211 = vrot.lane.b32.xlu1 %v201_v2, %s540_s23  ;;  %209 = vrot.lane.b32.xlu0 %v200_v3, %s540_s23 }
  0x28   : > { %222 = vrot.lane.b32.xlu2 %v200_v3, %s539_s22 }
  0x2f   : > { %235 = vrot.lane.b32.xlu1 %v200_v3, %s541_s24  ;;  %224 = vrot.lane.b32.xlu0 %v201_v2, %s539_s22 }
  0x30   : > { %237 = vrot.lane.b32.xlu2 %v201_v2, %s541_s24 }
  0x37   : > { %255 = vrot.lane.b32.xlu1 %v245_v5, %s540_s23  ;;  %253 = vrot.lane.b32.xlu0 %v244_v4, %s540_s23 }
  0x38   : > { %266 = vrot.lane.b32.xlu2 %v244_v4, %s539_s22 }
  0x3f   : > { %279 = vrot.lane.b32.xlu1 %v244_v4, %s541_s24  ;;  %268 = vrot.lane.b32.xlu0 %v245_v5, %s539_s22 }
  0x40   : > { %281 = vrot.lane.b32.xlu2 %v245_v5, %s541_s24 }
  0x47   : > { %299 = vrot.lane.b32.xlu1 %v289_v7, %s540_s23  ;;  %297 = vrot.lane.b32.xlu0 %v288_v6, %s540_s23 }
  0x72   : > { %v192_v9 = vpop.permute.xlu2 %191 }
  0x73   : > { %425 = vst.msk [vmem:[%s607_s2 + $0x30] sm:$0xff] %vm158_vm0, %v192_v9 }
  0x7a   : > { %v194_v10 = vpop.permute.xlu2 %193 }
  0x7b   : > { %426 = vst.msk [vmem:[%s607_s2 + $0x38] sm:$0xff] %vm158_vm0, %v194_v10 }
  0x82   : > { %v223_v11 = vpop.permute.xlu2 %222 }
  0x83   : > { %431 = vst.msk [vmem:[%s607_s2 + $0x60] sm:$0xff] %vm158_vm0, %v223_v11 }
  0x89   : > { %v179_v12 = vpop.permute.xlu1 %178  ;;  %v166_v13 = vpop.permute.xlu0 %165 }
  0x8a   : > { %423 = vst.msk [vmem:[%s607_s2 + $0x20] sm:$0xff] %vm158_vm0, %v179_v12  ;;  %v238_v14 = vpop.permute.xlu2 %237 }
  0x8b   : > { %421 = vst.msk [vmem:[%s607_s2 + $0x10] sm:$0xff] %vm158_vm0, %v166_v13 }
  0x8c   : > { %434 = vst.msk [vmem:[%s607_s2 + $0x78] sm:$0xff] %vm158_vm0, %v238_v14 }
  0x91   : > { %v181_v15 = vpop.permute.xlu1 %180  ;;  %v168_v16 = vpop.permute.xlu0 %167 }
  0x92   : > { %424 = vst.msk [vmem:[%s607_s2 + $0x28] sm:$0xff] %vm158_vm0, %v181_v15  ;;  %v267_v17 = vpop.permute.xlu2 %266 }
  0x93   : > { %422 = vst.msk [vmem:[%s607_s2 + $0x18] sm:$0xff] %vm158_vm0, %v168_v16 }
  0x94   : > { %439 = vst.msk [vmem:[%s607_s2 + $0xa0] sm:$0xff] %vm158_vm0, %v267_v17 }
  0x99   : > { %v212_v18 = vpop.permute.xlu1 %211  ;;  %v210_v19 = vpop.permute.xlu0 %209 }
  0x9a   : > { %430 = vst.msk [vmem:[%s607_s2 + $0x58] sm:$0xff] %vm158_vm0, %v212_v18  ;;  %v282_v20 = vpop.permute.xlu2 %281 }
  0x9b   : > { %429 = vst.msk [vmem:[%s607_s2 + $0x50] sm:$0xff] %vm158_vm0, %v210_v19 }
  0x9c   : > { %442 = vst.msk [vmem:[%s607_s2 + $0xb8] sm:$0xff] %vm158_vm0, %v282_v20 }
  0xa1   : > { %v236_v21 = vpop.permute.xlu1 %235  ;;  %v225_v22 = vpop.permute.xlu0 %224 }
  0xa2   : > { %433 = vst.msk [vmem:[%s607_s2 + $0x70] sm:$0xff] %vm158_vm0, %v236_v21 }
  0xa3   : > { %432 = vst.msk [vmem:[%s607_s2 + $0x68] sm:$0xff] %vm158_vm0, %v225_v22 }
  0xa9   : > { %v256_v23 = vpop.permute.xlu1 %255  ;;  %v254_v24 = vpop.permute.xlu0 %253 }
  0xaa   : > { %438 = vst.msk [vmem:[%s607_s2 + $0x98] sm:$0xff] %vm158_vm0, %v256_v23 }
  0xab   : > { %437 = vst.msk [vmem:[%s607_s2 + $0x90] sm:$0xff] %vm158_vm0, %v254_v24 }
  0xb1   : > { %v280_v25 = vpop.permute.xlu1 %279  ;;  %v269_v26 = vpop.permute.xlu0 %268 }
  0xb2   : > { %441 = vst.msk [vmem:[%s607_s2 + $0xb0] sm:$0xff] %vm158_vm0, %v280_v25 }
  0xb3   : > { %440 = vst.msk [vmem:[%s607_s2 + $0xa8] sm:$0xff] %vm158_vm0, %v269_v26 }
  0xb9   : > { %v300_v27 = vpop.permute.xlu1 %299  ;;  %v298_v28 = vpop.permute.xlu0 %297 }
  0xba   : > { %446 = vst.msk [vmem:[%s607_s2 + $0xd8] sm:$0xff] %vm158_vm0, %v300_v27 }
  0xbb   : > { %445 = vst.msk [vmem:[%s607_s2 + $0xd0] sm:$0xff] %vm158_vm0, %v298_v28 }
  0xbc PF: > { %s11_s10 = sadd.s32 1, %s537_s10   ;;  %s707_s6 = smov %s529_s8 }
  0xbd   : > { %p8_p8 = scmp.ge.s32.totalorder %s11_s10, 10   ;;  %s708_s7 = smov %s533_s9 }
  0xbe   : > { %s709_s8 = smov %s712_s11  ;;  %s710_s9 = smov %s716_s12 }
  0xbf   :  { %10 = sbr.rel (!%p8_p8) target bundleno = 3 (0x3), region = 69 }

</bundles_post_ra>
